<compile_context>
chip_gen: v5e
topology: v5e:2x2
jax: 0.10.0
libtpu: 0.0.40
codegen_flags: <defaults>
</compile_context>

<pallas_src>
import jax
import jax.numpy as jnp
from jax.experimental import pallas as pl
from jax.experimental.pallas import tpu as pltpu

D = 8
W = 256
IN_XYZ = 63
IN_DIR = 27
SKIPS = (4,)
TB = 128  # batch rows per grid step (multiple of 8)

PARAM_ORDER = (
    "w0", "b0", "w1", "b1", "w2", "b2", "w3", "b3",
    "w4x", "w4h", "b4", "w5", "b5", "w6", "b6", "w7", "b7",
    "wf", "bf", "ws", "bs", "wdf", "wdd", "bd", "wr", "br",
)


def _nerf_kernel(xyz_ref, dir_ref, *rest):
    out_ref = rest[-1]
    (w0, b0, w1, b1, w2, b2, w3, b3,
     w4x, w4h, b4, w5, b5, w6, b6, w7, b7,
     wf, bf, ws, bs, wdf, wdd, bd, wr, br) = rest[:-1]

    f32 = jnp.float32

    def dense_relu(x, w_ref, b_ref):
        y = jnp.dot(x, w_ref[...], preferred_element_type=f32) + b_ref[...]
        return jnp.maximum(y, 0.0)

    xyz = xyz_ref[...].astype(f32)    # (TB, 63)
    dirs = dir_ref[...].astype(f32)   # (TB, 27)

    # xyz encoder, layers 0..3
    h = dense_relu(xyz, w0, b0)
    h = dense_relu(h, w1, b1)
    h = dense_relu(h, w2, b2)
    h = dense_relu(h, w3, b3)
    # layer 4 with skip connection: Linear(cat([xyz, h])) == xyz@w4x + h@w4h
    h = jnp.maximum(
        jnp.dot(xyz, w4x[...], preferred_element_type=f32)
        + jnp.dot(h, w4h[...], preferred_element_type=f32)
        + b4[...], 0.0)
    # layers 5..7
    h = dense_relu(h, w5, b5)
    h = dense_relu(h, w6, b6)
    h = dense_relu(h, w7, b7)

    # sigma head (no activation)
    sigma = jnp.dot(h, ws[...], preferred_element_type=f32) + bs[...]          # (TB, 1)

    # xyz_encoding_final (no activation)
    hf = jnp.dot(h, wf[...], preferred_element_type=f32) + bf[...]             # (TB, 256)

    # dir_encoding: Linear(cat([hf, dirs])) + ReLU == hf@wdf + dirs@wdd
    hd = jnp.maximum(
        jnp.dot(hf, wdf[...], preferred_element_type=f32)
        + jnp.dot(dirs, wdd[...], preferred_element_type=f32)
        + bd[...], 0.0)                                                        # (TB, 128)

    # rgb head: Linear + Sigmoid (explicit formula; EUP exp)
    z = jnp.dot(hd, wr[...], preferred_element_type=f32) + br[...]             # (TB, 3)
    rgb = 1.0 / (1.0 + jnp.exp(-z))

    # out = cat([rgb, sigma], -1): write lane sub-slices of the (TB, 4) block.
    out_ref[:, 0:3] = rgb.astype(out_ref.dtype)
    out_ref[:, 3:4] = sigma.astype(out_ref.dtype)


def nerf_forward(x, params, sigma_only=False):
    """Pallas equivalent of NeRF.forward(x, sigma_only)."""
    B = x.shape[0]
    if sigma_only:
        xyz = x[:, :IN_XYZ]
        dirs = jnp.zeros((B, IN_DIR), x.dtype)  # sigma does not depend on dirs
    else:
        xyz = x[:, :IN_XYZ]
        dirs = x[:, IN_XYZ:IN_XYZ + IN_DIR]

    # Pad batch up to a multiple of TB so (TB, ...) blocks tile evenly.
    Bp = ((B + TB - 1) // TB) * TB
    if Bp != B:
        pad = Bp - B
        xyz = jnp.pad(xyz, ((0, pad), (0, 0)))
        dirs = jnp.pad(dirs, ((0, pad), (0, 0)))

    param_list = [params[k] for k in PARAM_ORDER]

    data_specs = [
        pl.BlockSpec((TB, IN_XYZ), lambda i: (i, 0)),
        pl.BlockSpec((TB, IN_DIR), lambda i: (i, 0)),
    ]
    # Weights/biases: full-array blocks, constant block index -> fetched once,
    # resident in VMEM for the whole grid.
    param_specs = [pl.BlockSpec(p.shape, lambda i: (0, 0)) for p in param_list]

    per_row_flops = 2 * (
        IN_XYZ * W            # layer 0
        + 3 * W * W           # layers 1-3
        + (IN_XYZ + W) * W    # skip layer 4
        + 3 * W * W           # layers 5-7
        + W * W               # xyz_encoding_final
        + W * 1               # sigma
        + (W + IN_DIR) * (W // 2)  # dir_encoding
        + (W // 2) * 3        # rgb
    )
    param_bytes = sum(int(p.size) for p in param_list) * 4
    bytes_accessed = int((xyz.size + dirs.size + Bp * 4) * 4 + param_bytes)
    cost = pl.CostEstimate(
        flops=int(per_row_flops * Bp),
        transcendentals=int(Bp * 3),
        bytes_accessed=bytes_accessed,
    )

    out = pl.pallas_call(
        _nerf_kernel,
        out_shape=jax.ShapeDtypeStruct((Bp, 4), x.dtype),
        grid=(Bp // TB,),
        in_specs=data_specs + param_specs,
        out_specs=pl.BlockSpec((TB, 4), lambda i: (i, 0)),
        compiler_params=pltpu.CompilerParams(
            dimension_semantics=("parallel",),
            vmem_limit_bytes=32 * 1024 * 1024,
        ),
        cost_estimate=cost,
    )(xyz, dirs, *param_list)

    out = out[:B]
    if sigma_only:
        return out[:, 3:4]
    return out


# --------------------------- parameters & reference ---------------------------

def init_params(key):
    """PyTorch-nn.Linear-style uniform init, weights stored as (in, out)."""
    keys = jax.random.split(key, 30)
    it = iter(keys)

    def u(shape, bound):
        return jax.random.uniform(next(it), shape, jnp.float32, -bound, bound)

    p = {}
    b_in = 1.0 / IN_XYZ ** 0.5
    p["w0"], p["b0"] = u((IN_XYZ, W), b_in), u((1, W), b_in)
    b_w = 1.0 / W ** 0.5
    for n in ("1", "2", "3", "5", "6", "7"):
        p[f"w{n}"], p[f"b{n}"] = u((W, W), b_w), u((1, W), b_w)
    b_skip = 1.0 / (W + IN_XYZ) ** 0.5
    p["w4x"], p["w4h"], p["b4"] = (u((IN_XYZ, W), b_skip), u((W, W), b_skip),
                                   u((1, W), b_skip))
    p["wf"], p["bf"] = u((W, W), b_w), u((1, W), b_w)
    p["ws"], p["bs"] = u((W, 1), b_w), u((1, 1), b_w)
    b_d = 1.0 / (W + IN_DIR) ** 0.5
    p["wdf"], p["wdd"], p["bd"] = (u((W, W // 2), b_d), u((IN_DIR, W // 2), b_d),
                                   u((1, W // 2), b_d))
    b_r = 1.0 / (W // 2) ** 0.5
    p["wr"], p["br"] = u((W // 2, 3), b_r), u((1, 3), b_r)
    return p


def nerf_reference(x, p, sigma_only=False):
    """Pure-JAX mirror of the PyTorch module (uses explicit concats)."""
    mm = lambda a, b: jnp.dot(a, b, precision=jax.lax.Precision.HIGHEST)
    xyz = x[:, :IN_XYZ]
    if not sigma_only:
        dirs = x[:, IN_XYZ:IN_XYZ + IN_DIR]
    layer_ws = [p["w0"], p["w1"], p["w2"], p["w3"],
                jnp.concatenate([p["w4x"], p["w4h"]], axis=0),
                p["w5"], p["w6"], p["w7"]]
    layer_bs = [p["b0"], p["b1"], p["b2"], p["b3"], p["b4"],
                p["b5"], p["b6"], p["b7"]]
    h = xyz
    for i in range(D):
        if i in SKIPS:
            h = jnp.concatenate([xyz, h], axis=-1)
        h = jax.nn.relu(mm(h, layer_ws[i]) + layer_bs[i])
    sigma = mm(h, p["ws"]) + p["bs"]
    if sigma_only:
        return sigma
    hf = mm(h, p["wf"]) + p["bf"]
    wd = jnp.concatenate([p["wdf"], p["wdd"]], axis=0)
    hd = jax.nn.relu(mm(jnp.concatenate([hf, dirs], axis=-1), wd) + p["bd"])
    rgb = jax.nn.sigmoid(mm(hd, p["wr"]) + p["br"])
    return jnp.concatenate([rgb, sigma], axis=-1)


if __name__ == "__main__":
    key = jax.random.PRNGKey(0)
    k_x, k_p = jax.random.split(key)

    B = 8  # small demo batch of embedded (xyz + dir) samples
    x = jax.random.normal(k_x, (B, IN_XYZ + IN_DIR), dtype=jnp.float32)
    params = init_params(k_p)

    # Full forward (rgb + sigma).
    out = jax.block_until_ready(nerf_forward(x, params))
    ref = nerf_reference(x, params)
    assert out.shape == (B, 4) and out.dtype == x.dtype
    assert jnp.allclose(out, ref, atol=1e-2, rtol=1e-2), (
        float(jnp.max(jnp.abs(out - ref))))

    # sigma_only path.
    sig = jax.block_until_ready(
        nerf_forward(x[:, :IN_XYZ], params, sigma_only=True))
    ref_sig = nerf_reference(x[:, :IN_XYZ], params, sigma_only=True)
    assert sig.shape == (B, 1)
    assert jnp.allclose(sig, ref_sig, atol=1e-2, rtol=1e-2)

    print("KERNEL_OK")
</pallas_src>

<mosaic_0001>
module attributes {stable_mosaic.version = 11 : i64} {
  func.func @_nerf_kernel(%arg0: i32, %arg1: memref<128x63xf32, #tpu.memory_space<vmem>>, %arg2: memref<128x27xf32, #tpu.memory_space<vmem>>, %arg3: memref<63x256xf32, #tpu.memory_space<vmem>>, %arg4: memref<1x256xf32, #tpu.memory_space<vmem>>, %arg5: memref<256x256xf32, #tpu.memory_space<vmem>>, %arg6: memref<1x256xf32, #tpu.memory_space<vmem>>, %arg7: memref<256x256xf32, #tpu.memory_space<vmem>>, %arg8: memref<1x256xf32, #tpu.memory_space<vmem>>, %arg9: memref<256x256xf32, #tpu.memory_space<vmem>>, %arg10: memref<1x256xf32, #tpu.memory_space<vmem>>, %arg11: memref<63x256xf32, #tpu.memory_space<vmem>>, %arg12: memref<256x256xf32, #tpu.memory_space<vmem>>, %arg13: memref<1x256xf32, #tpu.memory_space<vmem>>, %arg14: memref<256x256xf32, #tpu.memory_space<vmem>>, %arg15: memref<1x256xf32, #tpu.memory_space<vmem>>, %arg16: memref<256x256xf32, #tpu.memory_space<vmem>>, %arg17: memref<1x256xf32, #tpu.memory_space<vmem>>, %arg18: memref<256x256xf32, #tpu.memory_space<vmem>>, %arg19: memref<1x256xf32, #tpu.memory_space<vmem>>, %arg20: memref<256x256xf32, #tpu.memory_space<vmem>>, %arg21: memref<1x256xf32, #tpu.memory_space<vmem>>, %arg22: memref<256x1xf32, #tpu.memory_space<vmem>>, %arg23: memref<1x1xf32, #tpu.memory_space<vmem>>, %arg24: memref<256x128xf32, #tpu.memory_space<vmem>>, %arg25: memref<27x128xf32, #tpu.memory_space<vmem>>, %arg26: memref<1x128xf32, #tpu.memory_space<vmem>>, %arg27: memref<128x3xf32, #tpu.memory_space<vmem>>, %arg28: memref<1x3xf32, #tpu.memory_space<vmem>>, %arg29: memref<128x4xf32, #tpu.memory_space<vmem>>) attributes {dimension_semantics = [#tpu.dimension_semantics<parallel>], iteration_bounds = array<i64: 1>, scalar_prefetch = 0 : i64, scratch_operands = 0 : i64, tpu.core_type = #tpu.core_type<tc>, window_params = [{transform_indices = @transform_0, window_bounds = array<i64: 128, 63>}, {transform_indices = @transform_1, window_bounds = array<i64: 128, 27>}, {pipeline_mode = #tpu.pipeline_mode<synchronous>, transform_indices = @transform_2, window_bounds = array<i64: 63, 256>}, {pipeline_mode = #tpu.pipeline_mode<synchronous>, transform_indices = @transform_3, window_bounds = array<i64: 1, 256>}, {pipeline_mode = #tpu.pipeline_mode<synchronous>, transform_indices = @transform_4, window_bounds = array<i64: 256, 256>}, {pipeline_mode = #tpu.pipeline_mode<synchronous>, transform_indices = @transform_5, window_bounds = array<i64: 1, 256>}, {pipeline_mode = #tpu.pipeline_mode<synchronous>, transform_indices = @transform_6, window_bounds = array<i64: 256, 256>}, {pipeline_mode = #tpu.pipeline_mode<synchronous>, transform_indices = @transform_7, window_bounds = array<i64: 1, 256>}, {pipeline_mode = #tpu.pipeline_mode<synchronous>, transform_indices = @transform_8, window_bounds = array<i64: 256, 256>}, {pipeline_mode = #tpu.pipeline_mode<synchronous>, transform_indices = @transform_9, window_bounds = array<i64: 1, 256>}, {pipeline_mode = #tpu.pipeline_mode<synchronous>, transform_indices = @transform_10, window_bounds = array<i64: 63, 256>}, {pipeline_mode = #tpu.pipeline_mode<synchronous>, transform_indices = @transform_11, window_bounds = array<i64: 256, 256>}, {pipeline_mode = #tpu.pipeline_mode<synchronous>, transform_indices = @transform_12, window_bounds = array<i64: 1, 256>}, {pipeline_mode = #tpu.pipeline_mode<synchronous>, transform_indices = @transform_13, window_bounds = array<i64: 256, 256>}, {pipeline_mode = #tpu.pipeline_mode<synchronous>, transform_indices = @transform_14, window_bounds = array<i64: 1, 256>}, {pipeline_mode = #tpu.pipeline_mode<synchronous>, transform_indices = @transform_15, window_bounds = array<i64: 256, 256>}, {pipeline_mode = #tpu.pipeline_mode<synchronous>, transform_indices = @transform_16, window_bounds = array<i64: 1, 256>}, {pipeline_mode = #tpu.pipeline_mode<synchronous>, transform_indices = @transform_17, window_bounds = array<i64: 256, 256>}, {pipeline_mode = #tpu.pipeline_mode<synchronous>, transform_indices = @transform_18, window_bounds = array<i64: 1, 256>}, {pipeline_mode = #tpu.pipeline_mode<synchronous>, transform_indices = @transform_19, window_bounds = array<i64: 256, 256>}, {pipeline_mode = #tpu.pipeline_mode<synchronous>, transform_indices = @transform_20, window_bounds = array<i64: 1, 256>}, {pipeline_mode = #tpu.pipeline_mode<synchronous>, transform_indices = @transform_21, window_bounds = array<i64: 256, 1>}, {pipeline_mode = #tpu.pipeline_mode<synchronous>, transform_indices = @transform_22, window_bounds = array<i64: 1, 1>}, {pipeline_mode = #tpu.pipeline_mode<synchronous>, transform_indices = @transform_23, window_bounds = array<i64: 256, 128>}, {pipeline_mode = #tpu.pipeline_mode<synchronous>, transform_indices = @transform_24, window_bounds = array<i64: 27, 128>}, {pipeline_mode = #tpu.pipeline_mode<synchronous>, transform_indices = @transform_25, window_bounds = array<i64: 1, 128>}, {pipeline_mode = #tpu.pipeline_mode<synchronous>, transform_indices = @transform_26, window_bounds = array<i64: 128, 3>}, {pipeline_mode = #tpu.pipeline_mode<synchronous>, transform_indices = @transform_27, window_bounds = array<i64: 1, 3>}, {transform_indices = @transform_28, window_bounds = array<i64: 128, 4>}]} {
    %c0 = arith.constant 0 : index
    %c0_0 = arith.constant 0 : index
    %0 = vector.load %arg1[%c0, %c0_0] : memref<128x63xf32, #tpu.memory_space<vmem>>, vector<128x63xf32>
    %c0_1 = arith.constant 0 : index
    %c0_2 = arith.constant 0 : index
    %1 = vector.load %arg2[%c0_1, %c0_2] : memref<128x27xf32, #tpu.memory_space<vmem>>, vector<128x27xf32>
    %c0_3 = arith.constant 0 : index
    %c0_4 = arith.constant 0 : index
    %2 = vector.load %arg3[%c0_3, %c0_4] : memref<63x256xf32, #tpu.memory_space<vmem>>, vector<63x256xf32>
    %cst = arith.constant dense<0.000000e+00> : vector<128x256xf32>
    %3 = tpu.matmul %0, %2, %cst {dimension_numbers = #tpu.dot_dimension_numbers<[1], [0], [0], [1], [0, 0, 1, 1], [], []>} : vector<128x63xf32>, vector<63x256xf32>, vector<128x256xf32> -> vector<128x256xf32>
    %c0_5 = arith.constant 0 : index
    %c0_6 = arith.constant 0 : index
    %4 = vector.load %arg4[%c0_5, %c0_6] : memref<1x256xf32, #tpu.memory_space<vmem>>, vector<1x256xf32>
    %5 = vector.broadcast %4 : vector<1x256xf32> to vector<128x256xf32>
    %6 = arith.addf %3, %5 : vector<128x256xf32>
    %cst_7 = arith.constant 0.000000e+00 : f32
    %7 = vector.broadcast %cst_7 : f32 to vector<128x256xf32>
    %8 = arith.maximumf %6, %7 : vector<128x256xf32>
    %c0_8 = arith.constant 0 : index
    %c0_9 = arith.constant 0 : index
    %9 = vector.load %arg5[%c0_8, %c0_9] : memref<256x256xf32, #tpu.memory_space<vmem>>, vector<256x256xf32>
    %cst_10 = arith.constant dense<0.000000e+00> : vector<128x256xf32>
    %10 = tpu.matmul %8, %9, %cst_10 {dimension_numbers = #tpu.dot_dimension_numbers<[1], [0], [0], [1], [0, 0, 1, 1], [], []>} : vector<128x256xf32>, vector<256x256xf32>, vector<128x256xf32> -> vector<128x256xf32>
    %c0_11 = arith.constant 0 : index
    %c0_12 = arith.constant 0 : index
    %11 = vector.load %arg6[%c0_11, %c0_12] : memref<1x256xf32, #tpu.memory_space<vmem>>, vector<1x256xf32>
    %12 = vector.broadcast %11 : vector<1x256xf32> to vector<128x256xf32>
    %13 = arith.addf %10, %12 : vector<128x256xf32>
    %cst_13 = arith.constant 0.000000e+00 : f32
    %14 = vector.broadcast %cst_13 : f32 to vector<128x256xf32>
    %15 = arith.maximumf %13, %14 : vector<128x256xf32>
    %c0_14 = arith.constant 0 : index
    %c0_15 = arith.constant 0 : index
    %16 = vector.load %arg7[%c0_14, %c0_15] : memref<256x256xf32, #tpu.memory_space<vmem>>, vector<256x256xf32>
    %cst_16 = arith.constant dense<0.000000e+00> : vector<128x256xf32>
    %17 = tpu.matmul %15, %16, %cst_16 {dimension_numbers = #tpu.dot_dimension_numbers<[1], [0], [0], [1], [0, 0, 1, 1], [], []>} : vector<128x256xf32>, vector<256x256xf32>, vector<128x256xf32> -> vector<128x256xf32>
    %c0_17 = arith.constant 0 : index
    %c0_18 = arith.constant 0 : index
    %18 = vector.load %arg8[%c0_17, %c0_18] : memref<1x256xf32, #tpu.memory_space<vmem>>, vector<1x256xf32>
    %19 = vector.broadcast %18 : vector<1x256xf32> to vector<128x256xf32>
    %20 = arith.addf %17, %19 : vector<128x256xf32>
    %cst_19 = arith.constant 0.000000e+00 : f32
    %21 = vector.broadcast %cst_19 : f32 to vector<128x256xf32>
    %22 = arith.maximumf %20, %21 : vector<128x256xf32>
    %c0_20 = arith.constant 0 : index
    %c0_21 = arith.constant 0 : index
    %23 = vector.load %arg9[%c0_20, %c0_21] : memref<256x256xf32, #tpu.memory_space<vmem>>, vector<256x256xf32>
    %cst_22 = arith.constant dense<0.000000e+00> : vector<128x256xf32>
    %24 = tpu.matmul %22, %23, %cst_22 {dimension_numbers = #tpu.dot_dimension_numbers<[1], [0], [0], [1], [0, 0, 1, 1], [], []>} : vector<128x256xf32>, vector<256x256xf32>, vector<128x256xf32> -> vector<128x256xf32>
    %c0_23 = arith.constant 0 : index
    %c0_24 = arith.constant 0 : index
    %25 = vector.load %arg10[%c0_23, %c0_24] : memref<1x256xf32, #tpu.memory_space<vmem>>, vector<1x256xf32>
    %26 = vector.broadcast %25 : vector<1x256xf32> to vector<128x256xf32>
    %27 = arith.addf %24, %26 : vector<128x256xf32>
    %cst_25 = arith.constant 0.000000e+00 : f32
    %28 = vector.broadcast %cst_25 : f32 to vector<128x256xf32>
    %29 = arith.maximumf %27, %28 : vector<128x256xf32>
    %c0_26 = arith.constant 0 : index
    %c0_27 = arith.constant 0 : index
    %30 = vector.load %arg11[%c0_26, %c0_27] : memref<63x256xf32, #tpu.memory_space<vmem>>, vector<63x256xf32>
    %cst_28 = arith.constant dense<0.000000e+00> : vector<128x256xf32>
    %31 = tpu.matmul %0, %30, %cst_28 {dimension_numbers = #tpu.dot_dimension_numbers<[1], [0], [0], [1], [0, 0, 1, 1], [], []>} : vector<128x63xf32>, vector<63x256xf32>, vector<128x256xf32> -> vector<128x256xf32>
    %c0_29 = arith.constant 0 : index
    %c0_30 = arith.constant 0 : index
    %32 = vector.load %arg12[%c0_29, %c0_30] : memref<256x256xf32, #tpu.memory_space<vmem>>, vector<256x256xf32>
    %cst_31 = arith.constant dense<0.000000e+00> : vector<128x256xf32>
    %33 = tpu.matmul %29, %32, %cst_31 {dimension_numbers = #tpu.dot_dimension_numbers<[1], [0], [0], [1], [0, 0, 1, 1], [], []>} : vector<128x256xf32>, vector<256x256xf32>, vector<128x256xf32> -> vector<128x256xf32>
    %34 = arith.addf %31, %33 : vector<128x256xf32>
    %c0_32 = arith.constant 0 : index
    %c0_33 = arith.constant 0 : index
    %35 = vector.load %arg13[%c0_32, %c0_33] : memref<1x256xf32, #tpu.memory_space<vmem>>, vector<1x256xf32>
    %36 = vector.broadcast %35 : vector<1x256xf32> to vector<128x256xf32>
    %37 = arith.addf %34, %36 : vector<128x256xf32>
    %cst_34 = arith.constant 0.000000e+00 : f32
    %38 = vector.broadcast %cst_34 : f32 to vector<128x256xf32>
    %39 = arith.maximumf %37, %38 : vector<128x256xf32>
    %c0_35 = arith.constant 0 : index
    %c0_36 = arith.constant 0 : index
    %40 = vector.load %arg14[%c0_35, %c0_36] : memref<256x256xf32, #tpu.memory_space<vmem>>, vector<256x256xf32>
    %cst_37 = arith.constant dense<0.000000e+00> : vector<128x256xf32>
    %41 = tpu.matmul %39, %40, %cst_37 {dimension_numbers = #tpu.dot_dimension_numbers<[1], [0], [0], [1], [0, 0, 1, 1], [], []>} : vector<128x256xf32>, vector<256x256xf32>, vector<128x256xf32> -> vector<128x256xf32>
    %c0_38 = arith.constant 0 : index
    %c0_39 = arith.constant 0 : index
    %42 = vector.load %arg15[%c0_38, %c0_39] : memref<1x256xf32, #tpu.memory_space<vmem>>, vector<1x256xf32>
    %43 = vector.broadcast %42 : vector<1x256xf32> to vector<128x256xf32>
    %44 = arith.addf %41, %43 : vector<128x256xf32>
    %cst_40 = arith.constant 0.000000e+00 : f32
    %45 = vector.broadcast %cst_40 : f32 to vector<128x256xf32>
    %46 = arith.maximumf %44, %45 : vector<128x256xf32>
    %c0_41 = arith.constant 0 : index
    %c0_42 = arith.constant 0 : index
    %47 = vector.load %arg16[%c0_41, %c0_42] : memref<256x256xf32, #tpu.memory_space<vmem>>, vector<256x256xf32>
    %cst_43 = arith.constant dense<0.000000e+00> : vector<128x256xf32>
    %48 = tpu.matmul %46, %47, %cst_43 {dimension_numbers = #tpu.dot_dimension_numbers<[1], [0], [0], [1], [0, 0, 1, 1], [], []>} : vector<128x256xf32>, vector<256x256xf32>, vector<128x256xf32> -> vector<128x256xf32>
    %c0_44 = arith.constant 0 : index
    %c0_45 = arith.constant 0 : index
    %49 = vector.load %arg17[%c0_44, %c0_45] : memref<1x256xf32, #tpu.memory_space<vmem>>, vector<1x256xf32>
    %50 = vector.broadcast %49 : vector<1x256xf32> to vector<128x256xf32>
    %51 = arith.addf %48, %50 : vector<128x256xf32>
    %cst_46 = arith.constant 0.000000e+00 : f32
    %52 = vector.broadcast %cst_46 : f32 to vector<128x256xf32>
    %53 = arith.maximumf %51, %52 : vector<128x256xf32>
    %c0_47 = arith.constant 0 : index
    %c0_48 = arith.constant 0 : index
    %54 = vector.load %arg18[%c0_47, %c0_48] : memref<256x256xf32, #tpu.memory_space<vmem>>, vector<256x256xf32>
    %cst_49 = arith.constant dense<0.000000e+00> : vector<128x256xf32>
    %55 = tpu.matmul %53, %54, %cst_49 {dimension_numbers = #tpu.dot_dimension_numbers<[1], [0], [0], [1], [0, 0, 1, 1], [], []>} : vector<128x256xf32>, vector<256x256xf32>, vector<128x256xf32> -> vector<128x256xf32>
    %c0_50 = arith.constant 0 : index
    %c0_51 = arith.constant 0 : index
    %56 = vector.load %arg19[%c0_50, %c0_51] : memref<1x256xf32, #tpu.memory_space<vmem>>, vector<1x256xf32>
    %57 = vector.broadcast %56 : vector<1x256xf32> to vector<128x256xf32>
    %58 = arith.addf %55, %57 : vector<128x256xf32>
    %cst_52 = arith.constant 0.000000e+00 : f32
    %59 = vector.broadcast %cst_52 : f32 to vector<128x256xf32>
    %60 = arith.maximumf %58, %59 : vector<128x256xf32>
    %c0_53 = arith.constant 0 : index
    %c0_54 = arith.constant 0 : index
    %61 = vector.load %arg22[%c0_53, %c0_54] : memref<256x1xf32, #tpu.memory_space<vmem>>, vector<256x1xf32>
    %cst_55 = arith.constant dense<0.000000e+00> : vector<128x1xf32>
    %62 = tpu.matmul %60, %61, %cst_55 {dimension_numbers = #tpu.dot_dimension_numbers<[1], [0], [0], [1], [0, 0, 1, 1], [], []>} : vector<128x256xf32>, vector<256x1xf32>, vector<128x1xf32> -> vector<128x1xf32>
    %c0_56 = arith.constant 0 : index
    %c0_57 = arith.constant 0 : index
    %63 = vector.load %arg23[%c0_56, %c0_57] : memref<1x1xf32, #tpu.memory_space<vmem>>, vector<1x1xf32>
    %64 = vector.broadcast %63 : vector<1x1xf32> to vector<128x1xf32>
    %65 = arith.addf %62, %64 : vector<128x1xf32>
    %c0_58 = arith.constant 0 : index
    %c0_59 = arith.constant 0 : index
    %66 = vector.load %arg20[%c0_58, %c0_59] : memref<256x256xf32, #tpu.memory_space<vmem>>, vector<256x256xf32>
    %cst_60 = arith.constant dense<0.000000e+00> : vector<128x256xf32>
    %67 = tpu.matmul %60, %66, %cst_60 {dimension_numbers = #tpu.dot_dimension_numbers<[1], [0], [0], [1], [0, 0, 1, 1], [], []>} : vector<128x256xf32>, vector<256x256xf32>, vector<128x256xf32> -> vector<128x256xf32>
    %c0_61 = arith.constant 0 : index
    %c0_62 = arith.constant 0 : index
    %68 = vector.load %arg21[%c0_61, %c0_62] : memref<1x256xf32, #tpu.memory_space<vmem>>, vector<1x256xf32>
    %69 = vector.broadcast %68 : vector<1x256xf32> to vector<128x256xf32>
    %70 = arith.addf %67, %69 : vector<128x256xf32>
    %c0_63 = arith.constant 0 : index
    %c0_64 = arith.constant 0 : index
    %71 = vector.load %arg24[%c0_63, %c0_64] : memref<256x128xf32, #tpu.memory_space<vmem>>, vector<256x128xf32>
    %cst_65 = arith.constant dense<0.000000e+00> : vector<128x128xf32>
    %72 = tpu.matmul %70, %71, %cst_65 {dimension_numbers = #tpu.dot_dimension_numbers<[1], [0], [0], [1], [0, 0, 1, 1], [], []>} : vector<128x256xf32>, vector<256x128xf32>, vector<128x128xf32> -> vector<128x128xf32>
    %c0_66 = arith.constant 0 : index
    %c0_67 = arith.constant 0 : index
    %73 = vector.load %arg25[%c0_66, %c0_67] : memref<27x128xf32, #tpu.memory_space<vmem>>, vector<27x128xf32>
    %cst_68 = arith.constant dense<0.000000e+00> : vector<128x128xf32>
    %74 = tpu.matmul %1, %73, %cst_68 {dimension_numbers = #tpu.dot_dimension_numbers<[1], [0], [0], [1], [0, 0, 1, 1], [], []>} : vector<128x27xf32>, vector<27x128xf32>, vector<128x128xf32> -> vector<128x128xf32>
    %75 = arith.addf %72, %74 : vector<128x128xf32>
    %c0_69 = arith.constant 0 : index
    %c0_70 = arith.constant 0 : index
    %76 = vector.load %arg26[%c0_69, %c0_70] : memref<1x128xf32, #tpu.memory_space<vmem>>, vector<1x128xf32>
    %77 = vector.broadcast %76 : vector<1x128xf32> to vector<128x128xf32>
    %78 = arith.addf %75, %77 : vector<128x128xf32>
    %cst_71 = arith.constant 0.000000e+00 : f32
    %79 = vector.broadcast %cst_71 : f32 to vector<128x128xf32>
    %80 = arith.maximumf %78, %79 : vector<128x128xf32>
    %c0_72 = arith.constant 0 : index
    %c0_73 = arith.constant 0 : index
    %81 = vector.load %arg27[%c0_72, %c0_73] : memref<128x3xf32, #tpu.memory_space<vmem>>, vector<128x3xf32>
    %cst_74 = arith.constant dense<0.000000e+00> : vector<128x3xf32>
    %82 = tpu.matmul %80, %81, %cst_74 {dimension_numbers = #tpu.dot_dimension_numbers<[1], [0], [0], [1], [0, 0, 1, 1], [], []>} : vector<128x128xf32>, vector<128x3xf32>, vector<128x3xf32> -> vector<128x3xf32>
    %c0_75 = arith.constant 0 : index
    %c0_76 = arith.constant 0 : index
    %83 = vector.load %arg28[%c0_75, %c0_76] : memref<1x3xf32, #tpu.memory_space<vmem>>, vector<1x3xf32>
    %84 = vector.broadcast %83 : vector<1x3xf32> to vector<128x3xf32>
    %85 = arith.addf %82, %84 : vector<128x3xf32>
    %cst_77 = arith.constant 0.000000e+00 : f32
    %86 = vector.broadcast %cst_77 : f32 to vector<128x3xf32>
    %87 = arith.subf %86, %85 : vector<128x3xf32>
    %88 = math.exp %87 : vector<128x3xf32>
    %cst_78 = arith.constant 1.000000e+00 : f32
    %89 = vector.broadcast %cst_78 : f32 to vector<128x3xf32>
    %90 = arith.addf %89, %88 : vector<128x3xf32>
    %cst_79 = arith.constant 1.000000e+00 : f32
    %91 = vector.broadcast %cst_79 : f32 to vector<128x3xf32>
    %92 = arith.divf %91, %90 : vector<128x3xf32>
    %c0_80 = arith.constant 0 : index
    %c0_81 = arith.constant 0 : index
    %93 = vector.load %arg29[%c0_80, %c0_81] : memref<128x4xf32, #tpu.memory_space<vmem>>, vector<128x3xf32>
    tpu.vector_store %arg29[%c0_80, %c0_81], %92 {strides = array<i32>} : memref<128x4xf32, #tpu.memory_space<vmem>>, vector<128x3xf32>,
    %c0_82 = arith.constant 0 : index
    %c3 = arith.constant 3 : index
    %94 = vector.load %arg29[%c0_82, %c3] : memref<128x4xf32, #tpu.memory_space<vmem>>, vector<128x1xf32>
    tpu.vector_store %arg29[%c0_82, %c3], %65 {strides = array<i32>} : memref<128x4xf32, #tpu.memory_space<vmem>>, vector<128x1xf32>,
    return
  }
  func.func @transform_0(%arg0: i32) -> (i32, i32) {
    %c0_i32 = arith.constant 0 : i32
    %c0_i32_0 = arith.constant 0 : i32
    return %arg0, %c0_i32 : i32, i32
  }
  func.func @transform_1(%arg0: i32) -> (i32, i32) {
    %c0_i32 = arith.constant 0 : i32
    %c0_i32_0 = arith.constant 0 : i32
    return %arg0, %c0_i32 : i32, i32
  }
  func.func @transform_2(%arg0: i32) -> (i32, i32) {
    %c0_i32 = arith.constant 0 : i32
    %c0_i32_0 = arith.constant 0 : i32
    %c0_i32_1 = arith.constant 0 : i32
    return %c0_i32, %c0_i32_0 : i32, i32
  }
  func.func @transform_3(%arg0: i32) -> (i32, i32) {
    %c0_i32 = arith.constant 0 : i32
    %c0_i32_0 = arith.constant 0 : i32
    %c0_i32_1 = arith.constant 0 : i32
    return %c0_i32, %c0_i32_0 : i32, i32
  }
  func.func @transform_4(%arg0: i32) -> (i32, i32) {
    %c0_i32 = arith.constant 0 : i32
    %c0_i32_0 = arith.constant 0 : i32
    %c0_i32_1 = arith.constant 0 : i32
    return %c0_i32, %c0_i32_0 : i32, i32
  }
  func.func @transform_5(%arg0: i32) -> (i32, i32) {
    %c0_i32 = arith.constant 0 : i32
    %c0_i32_0 = arith.constant 0 : i32
    %c0_i32_1 = arith.constant 0 : i32
    return %c0_i32, %c0_i32_0 : i32, i32
  }
  func.func @transform_6(%arg0: i32) -> (i32, i32) {
    %c0_i32 = arith.constant 0 : i32
    %c0_i32_0 = arith.constant 0 : i32
    %c0_i32_1 = arith.constant 0 : i32
    return %c0_i32, %c0_i32_0 : i32, i32
  }
  func.func @transform_7(%arg0: i32) -> (i32, i32) {
    %c0_i32 = arith.constant 0 : i32
    %c0_i32_0 = arith.constant 0 : i32
    %c0_i32_1 = arith.constant 0 : i32
    return %c0_i32, %c0_i32_0 : i32, i32
  }
  func.func @transform_8(%arg0: i32) -> (i32, i32) {
    %c0_i32 = arith.constant 0 : i32
    %c0_i32_0 = arith.constant 0 : i32
    %c0_i32_1 = arith.constant 0 : i32
    return %c0_i32, %c0_i32_0 : i32, i32
  }
  func.func @transform_9(%arg0: i32) -> (i32, i32) {
    %c0_i32 = arith.constant 0 : i32
    %c0_i32_0 = arith.constant 0 : i32
    %c0_i32_1 = arith.constant 0 : i32
    return %c0_i32, %c0_i32_0 : i32, i32
  }
  func.func @transform_10(%arg0: i32) -> (i32, i32) {
    %c0_i32 = arith.constant 0 : i32
    %c0_i32_0 = arith.constant 0 : i32
    %c0_i32_1 = arith.constant 0 : i32
    return %c0_i32, %c0_i32_0 : i32, i32
  }
  func.func @transform_11(%arg0: i32) -> (i32, i32) {
    %c0_i32 = arith.constant 0 : i32
    %c0_i32_0 = arith.constant 0 : i32
    %c0_i32_1 = arith.constant 0 : i32
    return %c0_i32, %c0_i32_0 : i32, i32
  }
  func.func @transform_12(%arg0: i32) -> (i32, i32) {
    %c0_i32 = arith.constant 0 : i32
    %c0_i32_0 = arith.constant 0 : i32
    %c0_i32_1 = arith.constant 0 : i32
    return %c0_i32, %c0_i32_0 : i32, i32
  }
  func.func @transform_13(%arg0: i32) -> (i32, i32) {
    %c0_i32 = arith.constant 0 : i32
    %c0_i32_0 = arith.constant 0 : i32
    %c0_i32_1 = arith.constant 0 : i32
    return %c0_i32, %c0_i32_0 : i32, i32
  }
  func.func @transform_14(%arg0: i32) -> (i32, i32) {
    %c0_i32 = arith.constant 0 : i32
    %c0_i32_0 = arith.constant 0 : i32
    %c0_i32_1 = arith.constant 0 : i32
    return %c0_i32, %c0_i32_0 : i32, i32
  }
  func.func @transform_15(%arg0: i32) -> (i32, i32) {
    %c0_i32 = arith.constant 0 : i32
    %c0_i32_0 = arith.constant 0 : i32
    %c0_i32_1 = arith.constant 0 : i32
    return %c0_i32, %c0_i32_0 : i32, i32
  }
  func.func @transform_16(%arg0: i32) -> (i32, i32) {
    %c0_i32 = arith.constant 0 : i32
    %c0_i32_0 = arith.constant 0 : i32
    %c0_i32_1 = arith.constant 0 : i32
    return %c0_i32, %c0_i32_0 : i32, i32
  }
  func.func @transform_17(%arg0: i32) -> (i32, i32) {
    %c0_i32 = arith.constant 0 : i32
    %c0_i32_0 = arith.constant 0 : i32
    %c0_i32_1 = arith.constant 0 : i32
    return %c0_i32, %c0_i32_0 : i32, i32
  }
  func.func @transform_18(%arg0: i32) -> (i32, i32) {
    %c0_i32 = arith.constant 0 : i32
    %c0_i32_0 = arith.constant 0 : i32
    %c0_i32_1 = arith.constant 0 : i32
    return %c0_i32, %c0_i32_0 : i32, i32
  }
  func.func @transform_19(%arg0: i32) -> (i32, i32) {
    %c0_i32 = arith.constant 0 : i32
    %c0_i32_0 = arith.constant 0 : i32
    %c0_i32_1 = arith.constant 0 : i32
    return %c0_i32, %c0_i32_0 : i32, i32
  }
  func.func @transform_20(%arg0: i32) -> (i32, i32) {
    %c0_i32 = arith.constant 0 : i32
    %c0_i32_0 = arith.constant 0 : i32
    %c0_i32_1 = arith.constant 0 : i32
    return %c0_i32, %c0_i32_0 : i32, i32
  }
  func.func @transform_21(%arg0: i32) -> (i32, i32) {
    %c0_i32 = arith.constant 0 : i32
    %c0_i32_0 = arith.constant 0 : i32
    %c0_i32_1 = arith.constant 0 : i32
    return %c0_i32, %c0_i32_0 : i32, i32
  }
  func.func @transform_22(%arg0: i32) -> (i32, i32) {
    %c0_i32 = arith.constant 0 : i32
    %c0_i32_0 = arith.constant 0 : i32
    %c0_i32_1 = arith.constant 0 : i32
    return %c0_i32, %c0_i32_0 : i32, i32
  }
  func.func @transform_23(%arg0: i32) -> (i32, i32) {
    %c0_i32 = arith.constant 0 : i32
    %c0_i32_0 = arith.constant 0 : i32
    %c0_i32_1 = arith.constant 0 : i32
    return %c0_i32, %c0_i32_0 : i32, i32
  }
  func.func @transform_24(%arg0: i32) -> (i32, i32) {
    %c0_i32 = arith.constant 0 : i32
    %c0_i32_0 = arith.constant 0 : i32
    %c0_i32_1 = arith.constant 0 : i32
    return %c0_i32, %c0_i32_0 : i32, i32
  }
  func.func @transform_25(%arg0: i32) -> (i32, i32) {
    %c0_i32 = arith.constant 0 : i32
    %c0_i32_0 = arith.constant 0 : i32
    %c0_i32_1 = arith.constant 0 : i32
    return %c0_i32, %c0_i32_0 : i32, i32
  }
  func.func @transform_26(%arg0: i32) -> (i32, i32) {
    %c0_i32 = arith.constant 0 : i32
    %c0_i32_0 = arith.constant 0 : i32
    %c0_i32_1 = arith.constant 0 : i32
    return %c0_i32, %c0_i32_0 : i32, i32
  }
  func.func @transform_27(%arg0: i32) -> (i32, i32) {
    %c0_i32 = arith.constant 0 : i32
    %c0_i32_0 = arith.constant 0 : i32
    %c0_i32_1 = arith.constant 0 : i32
    return %c0_i32, %c0_i32_0 : i32, i32
  }
  func.func @transform_28(%arg0: i32) -> (i32, i32) {
    %c0_i32 = arith.constant 0 : i32
    %c0_i32_0 = arith.constant 0 : i32
    return %arg0, %c0_i32 : i32, i32
  }
}

</mosaic_0001>

<bundles_post_ra>
// kernel: tpu_custom_call.1
= control target key start
LH: loop header
LB: loop body
LE: loop exit
PB: predicated region body
PF: predicated region fallthrough
CT: control target
= control target key end

     0   :  { %s6617_s0 = inlined_call_operand.vmem [shape: f32[128,63], index: 0, kind: input, shape index: {}]   ;;  %s6618_s1 = inlined_call_operand.vmem [shape: f32[128,27], index: 1, kind: input, shape index: {}]   ;;  %s6619_s2 = inlined_call_operand.vmem [shape: f32[63,256], index: 2, kind: input, shape index: {}]   ;;  %s6620_s3 = inlined_call_operand.vmem [shape: f32[1,256], index: 3, kind: input, shape index: {}]   ;;  %s6621_s4 = inlined_call_operand.vmem [shape: f32[256,256], index: 4, kind: input, shape index: {}]   ;;  %s6622_s5 = inlined_call_operand.vmem [shape: f32[1,256], index: 5, kind: input, shape index: {}]   ;;  %s6623_s6 = inlined_call_operand.hbm [shape: f32[256,256], index: 6, kind: input, shape index: {}]   ;;  %s6624_s7 = inlined_call_operand.vmem [shape: f32[1,256], index: 7, kind: input, shape index: {}]   ;;  %s6625_s8 = inlined_call_operand.hbm [shape: f32[256,256], index: 8, kind: input, shape index: {}]   ;;  %s6626_s9 = inlined_call_operand.vmem [shape: f32[1,256], index: 9, kind: input, shape index: {}]   ;;  %s6627_s10 = inlined_call_operand.hbm [shape: f32[63,256], index: 10, kind: input, shape index: {}]   ;;  %s6628_s11 = inlined_call_operand.hbm [shape: f32[256,256], index: 11, kind: input, shape index: {}]   ;;  %s6629_s12 = inlined_call_operand.vmem [shape: f32[1,256], index: 12, kind: input, shape index: {}]   ;;  %s6630_s13 = inlined_call_operand.hbm [shape: f32[256,256], index: 13, kind: input, shape index: {}]   ;;  %s6631_s14 = inlined_call_operand.vmem [shape: f32[1,256], index: 14, kind: input, shape index: {}]   ;;  %s6632_s15 = inlined_call_operand.hbm [shape: f32[256,256], index: 15, kind: input, shape index: {}]   ;;  %s6633_s16 = inlined_call_operand.vmem [shape: f32[1,256], index: 16, kind: input, shape index: {}]   ;;  %s6634_s17 = inlined_call_operand.hbm [shape: f32[256,256], index: 17, kind: input, shape index: {}]   ;;  %s6635_s18 = inlined_call_operand.vmem [shape: f32[1,256], index: 18, kind: input, shape index: {}]   ;;  %s6636_s19 = inlined_call_operand.hbm [shape: f32[256,256], index: 19, kind: input, shape index: {}]   ;;  %s6637_s20 = inlined_call_operand.vmem [shape: f32[1,256], index: 20, kind: input, shape index: {}]   ;;  %s6638_s21 = inlined_call_operand.vmem [shape: f32[256,1], index: 21, kind: input, shape index: {}]   ;;  %s6639_s22 = inlined_call_operand.<no memory space> [shape: f32[1,1], index: 22, kind: input, shape index: {}]   ;;  %s6640_s23 = inlined_call_operand.hbm [shape: f32[256,128], index: 23, kind: input, shape index: {}]   ;;  %s6641_s24 = inlined_call_operand.vmem [shape: f32[27,128], index: 24, kind: input, shape index: {}]   ;;  %s6642_s25 = inlined_call_operand.vmem [shape: f32[1,128], index: 25, kind: input, shape index: {}]   ;;  %s6643_s26 = inlined_call_operand.vmem [shape: f32[128,3], index: 26, kind: input, shape index: {}]   ;;  %s6644_s27 = inlined_call_operand.vmem [shape: f32[1,3], index: 27, kind: input, shape index: {}]   ;;  %s6645_s28 = inlined_call_operand.vmem [shape: f32[128,4], index: 28, kind: output, shape index: {}]  }
   0x1   :  { %6650 = sst [smem:[#allocation22_spill]] %s6617_s0  ;;  %v33_v0 = vstv %s6639_s22 }
   0x2   :  { %6651 = sst [smem:[#allocation23_spill]] %s6618_s1  ;;  %34 = vst [vmem:[#allocation2] sm:$0x1] %v33_v0 }
   0x3   :  { %6652 = sst [smem:[#allocation24_spill]] %s6619_s2 }
   0x4   :  { %6653 = sst [smem:[#allocation25_spill]] %s6620_s3 }
   0x5   :  { %6654 = sst [smem:[#allocation26_spill]] %s6621_s4 }
   0x6   :  { %6655 = sst [smem:[#allocation27_spill]] %s6622_s5 }
   0x7   :  { %6656 = sst [smem:[#allocation28_spill]] %s6623_s6 }
   0x8   :  { %6657 = sst [smem:[#allocation29_spill]] %s6624_s7 }
   0x9   :  { %6658 = sst [smem:[#allocation30_spill]] %s6625_s8 }
   0xa   :  { %6659 = sst [smem:[#allocation31_spill]] %s6626_s9 }
   0xb   :  { %6660 = sst [smem:[#allocation32_spill]] %s6627_s10 }
   0xc   :  { %6661 = sst [smem:[#allocation33_spill]] %s6628_s11 }
   0xd   :  { %6662 = sst [smem:[#allocation34_spill]] %s6629_s12 }
   0xe   :  { %35 = vsyncpa [#allocation4], 0 }
   0xf   :  { %36 = vsyncpa [#allocation6], 0 }
  0x10   :  { %37 = vsyncpa [#allocation9], 0 }
  0x11   :  { %38 = vsyncpa [#allocation12], 0 }
  0x12   :  { %39 = vsyncpa [#allocation15], 0  ;;  %s6663_s3 = sld [smem:[#allocation30_spill]]  ;;  %s4973_s10 = smov [#allocation5]  }
  0x13   :  { %s73_s0 = sshll.u32 %s4973_s10, 4  ;;  %s6664_s2 = sld [smem:[#allocation33_spill]]  ;;  %s74_s0 = int_to_ptr.vmem [resolvable:$true] %s73_s0 }
  0x14   :  { %s4974_s12 = smov 256   ;;  %s4975_s22 = smov 16  }
  0x15   :  { %s4976_s1 = smov [#allocation8]   ;;  %s129_s9 = sshll.u32 %s6632_s15, 4  ;;  %s130_s9 = int_to_ptr.hbm [resolvable:$true] %s129_s9 }
  0x16   :  { %s101_s4 = sshll.u32 %s4976_s1, 4  ;;  %s159_s10 = sshll.u32 %s6636_s19, 4  ;;  %s102_s4 = int_to_ptr.vmem [resolvable:$true] %s101_s4  ;;  %s160_s10 = int_to_ptr.hbm [resolvable:$true] %s159_s10 }
  0x17   :  { %s4977_s11 = smov [#allocation11]   ;;  %s6665_s1 = sld [smem:[#allocation28_spill]] }
  0x18   :  { %s71_s6 = sshll.u32 %s6663_s3, 4  ;;  %s131_s29 = sshll.u32 %s4977_s11, 4  ;;  %s72_s6 = int_to_ptr.hbm [resolvable:$true] %s71_s6  ;;  %s132_s29 = int_to_ptr.vmem [resolvable:$true] %s131_s29 }
  0x19   :  { %s99_s7 = sshll.u32 %s6664_s2, 4  ;;  %s4979_s30 = smov [#allocation3]   ;;  %s100_s7 = int_to_ptr.hbm [resolvable:$true] %s99_s7 }
  0x1a   :  { %79 = dma.hbm_to_vmem [thread:$0]  %s72_s6, 8192, %s74_s0, [#allocation6], %s4974_s12, %s4974_s12, %s4975_s22  }
  0x1b   :  { %107 = dma.hbm_to_vmem [thread:$0]  %s100_s7, 8192, %s102_s4, [#allocation9], %s4974_s12, %s4974_s12, %s4975_s22  }
  0x1c   :  { %137 = dma.hbm_to_vmem [thread:$0]  %s130_s9, 8192, %s132_s29, [#allocation12], %s4974_s12, %s4974_s12, %s4975_s22  }
  0x1d   :  { %s4978_s6 = smov [#allocation14]   ;;  %s56_s8 = sshll.u32 %s6665_s1, 4  ;;  %s57_s8 = int_to_ptr.hbm [resolvable:$true] %s56_s8 }
  0x1e   :  { %s161_s15 = sshll.u32 %s4978_s6, 4  ;;  %s6666_s4 = sld [smem:[#allocation32_spill]]  ;;  %s162_s15 = int_to_ptr.vmem [resolvable:$true] %s161_s15 }
  0x1f   :  { %167 = dma.hbm_to_vmem [thread:$0]  %s160_s10, 8192, %s162_s15, [#allocation15], %s4974_s12, %s4974_s12, %s4975_s22  }
  0x20   :  { %s58_s3 = sshll.u32 %s4979_s30, 4  ;;  %s4980_s9 = smov [#allocation7]   ;;  %s59_s3 = int_to_ptr.vmem [resolvable:$true] %s58_s3 }
  0x21   :  { %64 = dma.hbm_to_vmem [thread:$0]  %s57_s8, 8192, %s59_s3, [#allocation4], %s4974_s12, %s4974_s12, %s4975_s22  }
  0x22   :  { %s88_s11 = sshll.u32 %s4980_s9, 4  ;;  %s114_s0 = sshll.u32 %s6630_s13, 4  ;;  %s89_s11 = int_to_ptr.vmem [resolvable:$true] %s88_s11  ;;  %s115_s0 = int_to_ptr.hbm [resolvable:$true] %s114_s0 }
  0x23   :  { %s144_s2 = sshll.u32 %s6634_s17, 4  ;;  %s4981_s1 = smov [#allocation10]   ;;  %s145_s2 = int_to_ptr.hbm [resolvable:$true] %s144_s2 }
  0x24   :  { %s86_s5 = sshll.u32 %s6666_s4, 4  ;;  %s116_s19 = sshll.u32 %s4981_s1, 4  ;;  %s87_s5 = int_to_ptr.hbm [resolvable:$true] %s86_s5  ;;  %s117_s19 = int_to_ptr.vmem [resolvable:$true] %s116_s19 }
  0x25   :  { %94 = dma.hbm_to_vmem [thread:$0]  %s87_s5, 2048, %s89_s11, [#allocation6], %s4974_s12, %s4974_s12, %s4975_s22  }
  0x26   :  { %122 = dma.hbm_to_vmem [thread:$0]  %s115_s0, 8192, %s117_s19, [#allocation9], %s4974_s12, %s4974_s12, %s4975_s22  }
  0x27   :  { %s4982_s8 = smov [#allocation13]   ;;  %s178_s30 = sshll.u32 %s6640_s23, 4  ;;  %s179_s30 = int_to_ptr.hbm [resolvable:$true] %s178_s30 }
  0x28   :  { %s146_s13 = sshll.u32 %s4982_s8, 4  ;;  %s4983_s17 = smov [#allocation16]   ;;  %s147_s13 = int_to_ptr.vmem [resolvable:$true] %s146_s13 }
  0x29   :  { %152 = dma.hbm_to_vmem [thread:$0]  %s145_s2, 8192, %s147_s13, [#allocation12], %s4974_s12, %s4974_s12, %s4975_s22  }
  0x2a   :  { %s180_s5 = sshll.u32 %s4983_s17, 4  ;;  %s4984_s3 = smov 128   ;;  %s181_s5 = int_to_ptr.vmem [resolvable:$true] %s180_s5 }
  0x2b   :  { %s4985_s9 = smov 8  }
  0x2c   :  { %186 = dma.hbm_to_vmem [thread:$0]  %s179_s30, 4096, %s181_s5, [#allocation15], %s4984_s3, %s4984_s3, %s4985_s9  }
  0x2d   :  { %4963 = dma.done.wait [#allocation4], 8192  }
  0x2e   :  { %4964 = vsyncadd [#allocation4], 4294959104 }
  0x2f   :  { %4965 = dma.done.wait [#allocation6], 10240  }
  0x30   :  { %4966 = vsyncadd [#allocation6], 4294957056 }
  0x31   :  { %4967 = dma.done.wait [#allocation9], 16384  }
  0x32   :  { %4968 = vsyncadd [#allocation9], 4294950912 }
  0x33   :  { %4969 = dma.done.wait [#allocation12], 16384  }
  0x34   :  { %4970 = vsyncadd [#allocation12], 4294950912 }
  0x35   :  { %4971 = dma.done.wait [#allocation15], 12288  }
  0x36   :  { %4972 = vsyncadd [#allocation15], 4294955008  ;;  %vm334_vm0 = vcmask 1046528   ;;  %s6667_s12 = sld [smem:[#allocation24_spill]]  ;;  %vm285_vm1 = vcmask 515072   ;;  %vm3802_vm2 = vcmask 1042432  }
  0x37   :  { %s6668_s4 = sld [smem:[#allocation22_spill]]  ;;  %vm3753_vm3 = vcmask 220160   ;;  %s4986_s17 = smov 3   ;;  %vm4426_vm7 = vcmask 23552   ;;  %vm4507_vm8 = vcmask 31768  }
  0x38   :  { %s6669_s2 = sld [smem:[#allocation26_spill]] }
  0x39   :  { %s6670_s22 = sld [smem:[#allocation25_spill]] }
  0x3a   :  { %s6671_s6 = sld [smem:[#allocation27_spill]] }
  0x3b   :  { %s6672_s15 = sld [smem:[#allocation29_spill]] }
  0x3c   :  { %v277_v1 = vld [vmem:[%s6667_s12 + $0x70] sm:$0x7f]  ;;  %v275_v2 = vld [vmem:[%s6667_s12 + $0x60] sm:$0xff]  ;;  %v278_v3 = vld [vmem:[%s6667_s12 + $0x78] sm:$0x7f]  ;;  %s6673_s8 = sld [smem:[#allocation31_spill]] }
  0x3d   :  { %4533 = vmatpush.msk.msra.mxu0 %vm334_vm0, %v277_v1  ;;  %4550 = vmatpush.msk.msra.mxu1 %vm334_vm0, %v278_v3  ;;  %v276_v4 = vld [vmem:[%s6667_s12 + $0x68] sm:$0xff]  ;;  %v273_v5 = vld [vmem:[%s6667_s12 + $0x50] sm:$0xff]  ;;  %v274_v6 = vld [vmem:[%s6667_s12 + $0x58] sm:$0xff]  ;;  %s6674_s0 = sld [smem:[#allocation34_spill]] }
  0x3e   :  { %4626 = vmatpush.msk.msra.mxu3 %vm334_vm0, %v278_v3  ;;  %4618 = vmatpush.msk.msra.mxu2 %vm334_vm0, %v277_v1  ;;  %v271_v7 = vld [vmem:[%s6667_s12 + $0x40] sm:$0xff]  ;;  %v272_v8 = vld [vmem:[%s6667_s12 + $0x48] sm:$0xff]  ;;  %v269_v9 = vld [vmem:[%s6667_s12 + $0x30] sm:$0xff]  ;;  %s6675_s30 = sld [smem:[#allocation23_spill]] }
  0x3f   :  { %350 = vmatpush.msra.mxu0 %v275_v2  ;;  %415 = vmatpush.msra.mxu1 %v276_v4  ;;  %v270_v10 = vld [vmem:[%s6667_s12 + $0x38] sm:$0xff]  ;;  %v267_v11 = vld [vmem:[%s6667_s12 + $0x20] sm:$0xff]  ;;  %v268_v12 = vld [vmem:[%s6667_s12 + $0x28] sm:$0xff] }
  0x40   :  { %4627 = vmatpush.msra.mxu3 %v276_v4  ;;  %4619 = vmatpush.msra.mxu2 %v275_v2  ;;  %v265_v13 = vld [vmem:[%s6667_s12 + $0x10] sm:$0xff]  ;;  %v266_v14 = vld [vmem:[%s6667_s12 + $0x18] sm:$0xff]  ;;  %v263_v15 = vld [vmem:[%s6667_s12] sm:$0xff] }
  0x41   :  { %351 = vmatpush.msra.mxu0 %v273_v5  ;;  %416 = vmatpush.msra.mxu1 %v274_v6  ;;  %v264_v16 = vld [vmem:[%s6667_s12 + $0x8] sm:$0xff]  ;;  %v231_v17 = vld [vmem:[%s6668_s4] sm:$0xff]  ;;  %v233_v19 = vld [vmem:[%s6668_s4 + $0x10] sm:$0xff] }
  0x42   :  { %4628 = vmatpush.msra.mxu3 %v274_v6  ;;  %4620 = vmatpush.msra.mxu2 %v273_v5  ;;  %v232_v18 = vld [vmem:[%s6668_s4 + $0x8] sm:$0xff]  ;;  %v234_v20 = vld [vmem:[%s6668_s4 + $0x18] sm:$0xff]  ;;  %v5261_v21 = vld [vmem:[%s6668_s4 + $0x40] sm:$0xff] }
  0x43   :  { %352 = vmatpush.msra.mxu0 %v271_v7  ;;  %417 = vmatpush.msra.mxu1 %v272_v8  ;;  %v235_v22 = vld [vmem:[%s6668_s4 + $0x20] sm:$0xff]  ;;  %v240_v23 = vld [vmem:[%s6668_s4 + $0x48] sm:$0xff]  ;;  %v534_v24 = vld [vmem:[%s6669_s2 + $0xf8] sm:$0xff] }
  0x44   :  { %4629 = vmatpush.msra.mxu3 %v272_v8  ;;  %4621 = vmatpush.msra.mxu2 %v271_v7  ;;  %v565_v25 = vld [vmem:[%s6669_s2 + $0x1f0] sm:$0xff]  ;;  %v532_v26 = vld [vmem:[%s6669_s2 + $0xe8] sm:$0xff]  ;;  %v563_v27 = vld [vmem:[%s6669_s2 + $0x1e0] sm:$0xff] }
  0x45   :  { %353 = vmatpush.msra.mxu0 %v269_v9  ;;  %418 = vmatpush.msra.mxu1 %v270_v10  ;;  %v533_v28 = vld [vmem:[%s6669_s2 + $0xf0] sm:$0xff]  ;;  %v530_v29 = vld [vmem:[%s6669_s2 + $0xd8] sm:$0xff]  ;;  %v531_v31 = vld [vmem:[%s6669_s2 + $0xe0] sm:$0xff] }
  0x46   :  { %4630 = vmatpush.msra.mxu3 %v270_v10  ;;  %4622 = vmatpush.msra.mxu2 %v269_v9  ;;  %v566_v30 = vld [vmem:[%s6669_s2 + $0x1f8] sm:$0xff]  ;;  %v561_v32 = vld [vmem:[%s6669_s2 + $0x1d0] sm:$0xff]  ;;  %v528_v33 = vld [vmem:[%s6669_s2 + $0xc8] sm:$0xff] }
  0x47   :  { %354 = vmatpush.msra.mxu0 %v267_v11  ;;  %419 = vmatpush.msra.mxu1 %v268_v12  ;;  %v564_v34 = vld [vmem:[%s6669_s2 + $0x1e8] sm:$0xff]  ;;  %v241_v36 = vld [vmem:[%s6668_s4 + $0x50] sm:$0xff]  ;;  %v559_v37 = vld [vmem:[%s6669_s2 + $0x1c0] sm:$0xff] }
  0x48   :  { %4631 = vmatpush.msra.mxu3 %v268_v12  ;;  %4623 = vmatpush.msra.mxu2 %v267_v11  ;;  %v236_v35 = vld [vmem:[%s6668_s4 + $0x28] sm:$0xff]  ;;  %v529_v38 = vld [vmem:[%s6669_s2 + $0xd0] sm:$0xff]  ;;  %v526_v40 = vld [vmem:[%s6669_s2 + $0xb8] sm:$0xff] }
  0x49   :  { %355 = vmatpush.msra.mxu0 %v265_v13  ;;  %420 = vmatpush.msra.mxu1 %v266_v14  ;;  %v557_v39 = vld [vmem:[%s6669_s2 + $0x1b0] sm:$0xff]  ;;  %v562_v41 = vld [vmem:[%s6669_s2 + $0x1d8] sm:$0xff]  ;;  %v527_v42 = vld [vmem:[%s6669_s2 + $0xc0] sm:$0xff] }
  0x4a   :  { %4632 = vmatpush.msra.mxu3 %v266_v14  ;;  %4624 = vmatpush.msra.mxu2 %v265_v13  ;;  %v555_v43 = vld [vmem:[%s6669_s2 + $0x1a0] sm:$0xff]  ;;  %v524_v44 = vld [vmem:[%s6669_s2 + $0xa8] sm:$0xff]  ;;  %v525_v45 = vld [vmem:[%s6669_s2 + $0xb0] sm:$0xff] }
  0x4b   :  { %356 = vmatpush.msra.mxu0 %v263_v15  ;;  %421 = vmatpush.msra.mxu1 %v264_v16  ;;  %v560_v46 = vld [vmem:[%s6669_s2 + $0x1c8] sm:$0xff]  ;;  %v553_v47 = vld [vmem:[%s6669_s2 + $0x190] sm:$0xff]  ;;  %v522_v48 = vld [vmem:[%s6669_s2 + $0x98] sm:$0xff] }
  0x4c   :  { %4534 = vmatmul.msk.f32.vlgmr.msra.gmra.mxu0 %vm285_vm1, %v231_v17  ;;  %4551 = vmatmul.msk.f32.vlgmr.msra.gmra.mxu1 %vm285_vm1, %v231_v17  ;;  %v237_v49 = vld [vmem:[%s6668_s4 + $0x30] sm:$0xff]  ;;  %v242_v50 = vld [vmem:[%s6668_s4 + $0x58] sm:$0xff]  ;;  %v523_v52 = vld [vmem:[%s6669_s2 + $0xa0] sm:$0xff] }
  0x4d   :  { %4633 = vmatpush.msra.mxu3 %v264_v16  ;;  %4625 = vmatpush.msra.mxu2 %v263_v15  ;;  %v558_v51 = vld [vmem:[%s6669_s2 + $0x1b8] sm:$0xff]  ;;  %v551_v53 = vld [vmem:[%s6669_s2 + $0x180] sm:$0xff]  ;;  %v556_v54 = vld [vmem:[%s6669_s2 + $0x1a8] sm:$0xff] }
  0x4e   :  { %4559 = vmatmul.msk.f32.vlgmr.msra.gmra.mxu3 %vm285_vm1, %v5261_v21  ;;  %4543 = vmatmul.msk.f32.vlgmr.msra.gmra.mxu2 %vm285_vm1, %v240_v23  ;;  %v521_v55 = vld [vmem:[%s6669_s2 + $0x90] sm:$0xff]  ;;  %v520_v56 = vld [vmem:[%s6669_s2 + $0x88] sm:$0xff]  ;;  %v554_v58 = vld [vmem:[%s6669_s2 + $0x198] sm:$0xff] }
  0x4f   :  { %703 = vmatpush.msrb.mxu0 %v534_v24  ;;  %638 = vmatpush.msrb.mxu3 %v565_v25  ;;  %v549_v57 = vld [vmem:[%s6669_s2 + $0x170] sm:$0xff]  ;;  %v519_v59 = vld [vmem:[%s6669_s2 + $0x80] sm:$0xff]  ;;  %v518_v60 = vld [vmem:[%s6669_s2 + $0x78] sm:$0xff] }
  0x50   :  { %573 = vmatpush.msrb.mxu2 %v533_v28  ;;  %768 = vmatpush.msrb.mxu1 %v566_v30  ;;  %v547_v61 = vld [vmem:[%s6669_s2 + $0x160] sm:$0xff]  ;;  %v552_v62 = vld [vmem:[%s6669_s2 + $0x188] sm:$0xff]  ;;  %v238_v63 = vld [vmem:[%s6668_s4 + $0x38] sm:$0xff] }
  0x51   :  { %704 = vmatpush.msrb.mxu0 %v532_v26  ;;  %639 = vmatpush.msrb.mxu3 %v563_v27  ;;  %v243_v0 = vld [vmem:[%s6668_s4 + $0x60] sm:$0xff]  ;;  %v516_v1 = vld [vmem:[%s6669_s2 + $0x68] sm:$0xff]  ;;  %v517_v2 = vld [vmem:[%s6669_s2 + $0x70] sm:$0xff] }
  0x52   :  { %574 = vmatpush.msrb.mxu2 %v531_v31  ;;  %769 = vmatpush.msrb.mxu1 %v564_v34  ;;  %v545_v3 = vld [vmem:[%s6669_s2 + $0x150] sm:$0xff]  ;;  %v550_v4 = vld [vmem:[%s6669_s2 + $0x178] sm:$0xff]  ;;  %v515_v5 = vld [vmem:[%s6669_s2 + $0x60] sm:$0xff] }
  0x53   :  { %705 = vmatpush.msrb.mxu0 %v530_v29  ;;  %640 = vmatpush.msrb.mxu3 %v561_v32  ;;  %v514_v6 = vld [vmem:[%s6669_s2 + $0x58] sm:$0xff]  ;;  %v543_v7 = vld [vmem:[%s6669_s2 + $0x140] sm:$0xff]  ;;  %v548_v8 = vld [vmem:[%s6669_s2 + $0x168] sm:$0xff] }
  0x54   :  { %4535 = vmatmul.msk.f32.gmra.mxu0 %vm285_vm1, %v232_v18  ;;  %4552 = vmatmul.msk.f32.gmra.mxu1 %vm285_vm1, %v232_v18  ;;  %v513_v9 = vld [vmem:[%s6669_s2 + $0x50] sm:$0xff]  ;;  %v512_v10 = vld [vmem:[%s6669_s2 + $0x48] sm:$0xff]  ;;  %v546_v12 = vld [vmem:[%s6669_s2 + $0x158] sm:$0xff] }
  0x55   :  { %706 = vmatpush.msrb.mxu0 %v528_v33  ;;  %641 = vmatpush.msrb.mxu3 %v559_v37  ;;  %v541_v11 = vld [vmem:[%s6669_s2 + $0x130] sm:$0xff]  ;;  %v511_v13 = vld [vmem:[%s6669_s2 + $0x40] sm:$0xff]  ;;  %v244_v14 = vld [vmem:[%s6668_s4 + $0x68] sm:$0xff] }
  0x56   :  { %4560 = vmatmul.msk.f32.gmra.mxu3 %vm285_vm1, %v240_v23  ;;  %4544 = vmatmul.msk.f32.gmra.mxu2 %vm285_vm1, %v241_v36  ;;  %v539_v15 = vld [vmem:[%s6669_s2 + $0x120] sm:$0xff]  ;;  %v509_v16 = vld [vmem:[%s6669_s2 + $0x30] sm:$0xff]  ;;  %v510_v17 = vld [vmem:[%s6669_s2 + $0x38] sm:$0xff] }
  0x57   :  { %575 = vmatpush.msrb.mxu2 %v529_v38  ;;  %642 = vmatpush.msrb.mxu3 %v557_v39  ;;  %v544_v18 = vld [vmem:[%s6669_s2 + $0x148] sm:$0xff]  ;;  %v245_v23 = vld [vmem:[%s6668_s4 + $0x70] sm:$0xff]  ;;  %v246_v24 = vld [vmem:[%s6668_s4 + $0x78] sm:$0xff] }
  0x58   :  { %707 = vmatpush.msrb.mxu0 %v526_v40  ;;  %770 = vmatpush.msrb.mxu1 %v562_v41  ;;  %v508_v25 = vld [vmem:[%s6669_s2 + $0x28] sm:$0xff]  ;;  %v506_v26 = vld [vmem:[%s6669_s2 + $0x18] sm:$0xff]  ;;  %v503_v28 = vld [vmem:[%s6669_s2] sm:$0xff] }
  0x59   :  { %576 = vmatpush.msrb.mxu2 %v527_v42  ;;  %643 = vmatpush.msrb.mxu3 %v555_v43  ;;  %v540_v27 = vld [vmem:[%s6669_s2 + $0x128] sm:$0xff]  ;;  %v535_v29 = vld [vmem:[%s6669_s2 + $0x100] sm:$0xff]  ;;  %v538_v31 = vld [vmem:[%s6669_s2 + $0x118] sm:$0xff] }
  0x5a   :  { %708 = vmatpush.msrb.mxu0 %v524_v44  ;;  %771 = vmatpush.msrb.mxu1 %v560_v46  ;;  %v504_v30 = vld [vmem:[%s6669_s2 + $0x8] sm:$0xff]  ;;  %v895_v33 = vld [vmem:[#allocation3 + $0xf0] sm:$0xff]  ;;  %v928_v38 = vld [vmem:[#allocation3 + $0x1f8] sm:$0xff] }
  0x5b   :  { %577 = vmatpush.msrb.mxu2 %v525_v45  ;;  %644 = vmatpush.msrb.mxu3 %v553_v47  ;;  %v536_v32 = vld [vmem:[%s6669_s2 + $0x108] sm:$0xff]  ;;  %v927_v34 = vld [vmem:[#allocation3 + $0x1f0] sm:$0xff]  ;;  %v279_v39 = vld [vmem:[%s6670_s22] sm:$0x3] }
  0x5c   :  { %4536 = vmatmul.msk.f32.gmra.mxu0 %vm285_vm1, %v233_v19  ;;  %4553 = vmatmul.msk.f32.gmra.mxu1 %vm285_vm1, %v233_v19  ;;  %v507_v19 = vld [vmem:[%s6669_s2 + $0x20] sm:$0xff]  ;;  %v5517_v40 = vperm.slane %v279_v39, 0  ;;  %v5519_v41 = vperm.slane %v279_v39, 1  ;;  %v891_v42 = vld [vmem:[#allocation3 + $0xd0] sm:$0xff]  ;;  %v894_v43 = vld [vmem:[#allocation3 + $0xe8] sm:$0xff] }
  0x5d   :  { %709 = vmatpush.msrb.mxu0 %v522_v48  ;;  %772 = vmatpush.msrb.mxu1 %v558_v51  ;;  %v925_v37 = vld [vmem:[#allocation3 + $0x1e0] sm:$0xff]  ;;  %v923_v48 = vld [vmem:[#allocation3 + $0x1d0] sm:$0xff] }
  0x5e   :  { %4561 = vmatmul.msk.f32.gmra.mxu3 %vm285_vm1, %v241_v36  ;;  %4545 = vmatmul.msk.f32.gmra.mxu2 %vm285_vm1, %v242_v50  ;;  %v896_v36 = vld [vmem:[#allocation3 + $0xf8] sm:$0xff]  ;;  %v879_v39 = vld [vmem:[#allocation3 + $0x70] sm:$0xff] }
  0x5f   :  { %578 = vmatpush.msrb.mxu2 %v523_v52  ;;  %645 = vmatpush.msrb.mxu3 %v551_v53  ;;  %v889_v52 = vld [vmem:[#allocation3 + $0xc0] sm:$0xff]  ;;  %v892_v53 = vld [vmem:[#allocation3 + $0xd8] sm:$0xff] }
  0x60   :  { %773 = vmatpush.msrb.mxu1 %v556_v54  ;;  %710 = vmatpush.msrb.mxu0 %v520_v56 }
  0x61   :  { %579 = vmatpush.msrb.mxu2 %v521_v55  ;;  %646 = vmatpush.msrb.mxu3 %v549_v57 }
  0x62   :  { %774 = vmatpush.msrb.mxu1 %v554_v58  ;;  %711 = vmatpush.msrb.mxu0 %v518_v60  ;;  %v921_v58 = vld [vmem:[#allocation3 + $0x1c0] sm:$0xff] }
  0x63   :  { %580 = vmatpush.msrb.mxu2 %v519_v59  ;;  %647 = vmatpush.msrb.mxu3 %v547_v61  ;;  %v924_v59 = vld [vmem:[#allocation3 + $0x1d8] sm:$0xff] }
  0x64   :  { %4537 = vmatmul.msk.f32.gmra.mxu0 %vm285_vm1, %v234_v20  ;;  %4554 = vmatmul.msk.f32.gmra.mxu1 %vm285_vm1, %v234_v20  ;;  %v537_v20 = vld [vmem:[%s6669_s2 + $0x110] sm:$0xff] }
  0x65   :  { %775 = vmatpush.msrb.mxu1 %v552_v62  ;;  %712 = vmatpush.msrb.mxu0 %v516_v1  ;;  %v887_v62 = vld [vmem:[#allocation3 + $0xb0] sm:$0xff] }
  0x66   :  { %4562 = vmatmul.msk.f32.gmra.mxu3 %vm285_vm1, %v242_v50  ;;  %4546 = vmatmul.msk.f32.gmra.mxu2 %vm285_vm1, %v243_v0 }
  0x67   :  { %581 = vmatpush.msrb.mxu2 %v517_v2  ;;  %648 = vmatpush.msrb.mxu3 %v545_v3 }
  0x68   :  { %776 = vmatpush.msrb.mxu1 %v550_v4  ;;  %713 = vmatpush.msrb.mxu0 %v514_v6  ;;  %v919_v4 = vld [vmem:[#allocation3 + $0x1b0] sm:$0xff] }
  0x69   :  { %582 = vmatpush.msrb.mxu2 %v515_v5  ;;  %649 = vmatpush.msrb.mxu3 %v543_v7  ;;  %v922_v5 = vld [vmem:[#allocation3 + $0x1c8] sm:$0xff] }
  0x6a   :  { %777 = vmatpush.msrb.mxu1 %v548_v8  ;;  %714 = vmatpush.msrb.mxu0 %v512_v10  ;;  %v885_v8 = vld [vmem:[#allocation3 + $0xa0] sm:$0xff] }
  0x6b   :  { %583 = vmatpush.msrb.mxu2 %v513_v9  ;;  %650 = vmatpush.msrb.mxu3 %v541_v11  ;;  %v888_v9 = vld [vmem:[#allocation3 + $0xb8] sm:$0xff] }
  0x6c   :  { %4538 = vmatmul.msk.f32.gmra.mxu0 %vm285_vm1, %v235_v22  ;;  %4555 = vmatmul.msk.f32.gmra.mxu1 %vm285_vm1, %v235_v22  ;;  %v505_v22 = vld [vmem:[%s6669_s2 + $0x10] sm:$0xff] }
  0x6d   :  { %778 = vmatpush.msrb.mxu1 %v546_v12  ;;  %584 = vmatpush.msrb.mxu2 %v511_v13 }
  0x6e   :  { %4563 = vmatmul.msk.f32.gmra.mxu3 %vm285_vm1, %v243_v0  ;;  %4547 = vmatmul.msk.f32.gmra.mxu2 %vm285_vm1, %v244_v14 }
  0x6f   :  { %651 = vmatpush.msrb.mxu3 %v539_v15  ;;  %585 = vmatpush.msrb.mxu2 %v509_v16  ;;  %v920_v15 = vld [vmem:[#allocation3 + $0x1b8] sm:$0xff] }
  0x70   :  { %715 = vmatpush.msrb.mxu0 %v510_v17  ;;  %779 = vmatpush.msrb.mxu1 %v544_v18  ;;  %v883_v18 = vld [vmem:[#allocation3 + $0x90] sm:$0xff] }
  0x71   :  { %586 = vmatpush.msrb.mxu2 %v507_v19  ;;  %652 = vmatpush.msrb.mxu3 %v537_v20  ;;  %v886_v19 = vld [vmem:[#allocation3 + $0xa8] sm:$0xff] }
  0x72   :  { %716 = vmatpush.msrb.mxu0 %v508_v25  ;;  %v918_v25 = vld [vmem:[#allocation3 + $0x1a8] sm:$0xff] }
  0x73   :  { %587 = vmatpush.msrb.mxu2 %v505_v22  ;;  %653 = vmatpush.msrb.mxu3 %v535_v29  ;;  %v884_v29 = vld [vmem:[#allocation3 + $0x98] sm:$0xff] }
  0x74   :  { %4539 = vmatmul.msk.f32.gmra.mxu0 %vm285_vm1, %v236_v35  ;;  %4556 = vmatmul.msk.f32.gmra.mxu1 %vm285_vm1, %v236_v35  ;;  %v893_v35 = vld [vmem:[#allocation3 + $0xe0] sm:$0xff] }
  0x75   :  { %717 = vmatpush.msrb.mxu0 %v506_v26  ;;  %588 = vmatpush.msrb.mxu2 %v503_v28  ;;  %v881_v28 = vld [vmem:[#allocation3 + $0x80] sm:$0xff] }
  0x76   :  { %4564 = vmatmul.msk.f32.gmra.mxu3 %vm285_vm1, %v244_v14  ;;  %4548 = vmatmul.msk.f32.gmra.mxu2 %vm285_vm1, %v245_v23  ;;  %v917_v14 = vld [vmem:[#allocation3 + $0x1a0] sm:$0xff] }
  0x77   :  { %718 = vmatpush.msrb.mxu0 %v504_v30  ;;  %935 = vmatpush.msra.mxu2 %v895_v33  ;;  %v913_v30 = vld [vmem:[#allocation3 + $0x180] sm:$0xff] }
  0x78   :  { %1000 = vmatpush.msra.mxu3 %v927_v34 }
  0x79   :  { %936 = vmatpush.msra.mxu2 %v893_v35  ;;  %1065 = vmatpush.msra.mxu0 %v896_v36 }
  0x7a   :  { %1001 = vmatpush.msra.mxu3 %v925_v37 }
  0x7b   :  { %937 = vmatpush.msra.mxu2 %v891_v42  ;;  %1066 = vmatpush.msra.mxu0 %v894_v43  ;;  %v882_v42 = vld [vmem:[#allocation3 + $0x88] sm:$0xff]  ;;  %v911_v43 = vld [vmem:[#allocation3 + $0x170] sm:$0xff] }
  0x7c   :  { %4540 = vmatmul.msk.f32.gmra.mxu0 %vm285_vm1, %v237_v49  ;;  %4557 = vmatmul.msk.f32.gmra.mxu1 %vm285_vm1, %v237_v49  ;;  %v926_v49 = vld [vmem:[#allocation3 + $0x1e8] sm:$0xff] }
  0x7d   :  { %1002 = vmatpush.msra.mxu3 %v923_v48  ;;  %938 = vmatpush.msra.mxu2 %v889_v52  ;;  %v877_v52 = vld [vmem:[#allocation3 + $0x60] sm:$0xff] }
  0x7e   :  { %4565 = vmatmul.msk.f32.gmra.mxu3 %vm285_vm1, %v245_v23  ;;  %4549 = vmatmul.msk.f32.gmra.mxu2 %vm285_vm1, %v246_v24 }
  0x7f   :  { %1067 = vmatpush.msra.mxu0 %v892_v53  ;;  %1003 = vmatpush.msra.mxu3 %v921_v58  ;;  %v880_v53 = vld [vmem:[#allocation3 + $0x78] sm:$0xff] }
  0x80   :  { %939 = vmatpush.msra.mxu2 %v887_v62 }
  0x81   :  { %1004 = vmatpush.msra.mxu3 %v919_v4 }
  0x82   :  { %940 = vmatpush.msra.mxu2 %v885_v8 }
  0x83   :  { %1005 = vmatpush.msra.mxu3 %v917_v14  ;;  %v905_v14 = vld [vmem:[#allocation3 + $0x140] sm:$0xff] }
  0x84   :  { %4541 = vmatmul.msk.f32.gmra.mxu0 %vm285_vm1, %v238_v63  ;;  %4558 = vmatmul.msk.f32.gmra.mxu1 %vm285_vm1, %v238_v63  ;;  %v890_v63 = vld [vmem:[#allocation3 + $0xc8] sm:$0xff] }
  0x85   :  { %1068 = vmatpush.msra.mxu0 %v890_v63  ;;  %941 = vmatpush.msra.mxu2 %v883_v18 }
  0x86   :  { %4566 = vmatmul.msk.f32.gmra.mxu3 %vm285_vm1, %v246_v24  ;;  %v915_v24 = vld [vmem:[#allocation3 + $0x190] sm:$0xff] }
  0x87   :  { %1069 = vmatpush.msra.mxu0 %v888_v9  ;;  %1006 = vmatpush.msra.mxu3 %v915_v24  ;;  %v903_v24 = vld [vmem:[#allocation3 + $0x130] sm:$0xff] }
  0x88   :  { %942 = vmatpush.msra.mxu2 %v881_v28 }
  0x89   :  { %1070 = vmatpush.msra.mxu0 %v886_v19  ;;  %1007 = vmatpush.msra.mxu3 %v913_v30 }
  0x8a   :  { %943 = vmatpush.msra.mxu2 %v879_v39 }
  0x8b   :  { %1071 = vmatpush.msra.mxu0 %v884_v29  ;;  %1008 = vmatpush.msra.mxu3 %v911_v43  ;;  %v867_v43 = vld [vmem:[#allocation3 + $0x10] sm:$0xff] }
  0x8c   :  { %4542 = vmatmul.msk.f32.gmra.mxu0 %vm285_vm1, %v5261_v21  ;;  %v542_v21 = vld [vmem:[%s6669_s2 + $0x138] sm:$0xff]  ;;  %944 = vmatpush.msra.mxu2 %v877_v52 }
  0x8d   :  { %780 = vmatpush.msrb.mxu1 %v542_v21  ;;  %1072 = vmatpush.msra.mxu0 %v882_v42 }
  0x8f   :  { %781 = vmatpush.msrb.mxu1 %v540_v27  ;;  %1073 = vmatpush.msra.mxu0 %v880_v53  ;;  %v865_v53 = vld [vmem:[#allocation3] sm:$0xff] }
  0x91   :  { %782 = vmatpush.msrb.mxu1 %v538_v31  ;;  %v916_v31 = vld [vmem:[#allocation3 + $0x198] sm:$0xff] }
  0x93   :  { %783 = vmatpush.msrb.mxu1 %v536_v32 }
  0x95   :  { %1130 = vmatpush.msra.mxu1 %v928_v38 }
  0x97   :  { %1131 = vmatpush.msra.mxu1 %v926_v49 }
  0x99   :  { %1132 = vmatpush.msra.mxu1 %v924_v59 }
  0x9b   :  { %1133 = vmatpush.msra.mxu1 %v922_v5 }
  0x9d   :  { %1134 = vmatpush.msra.mxu1 %v920_v15  ;;  %v908_v15 = vld [vmem:[#allocation3 + $0x158] sm:$0xff] }
  0x9f   :  { %1135 = vmatpush.msra.mxu1 %v918_v25  ;;  %v906_v25 = vld [vmem:[#allocation3 + $0x148] sm:$0xff] }
  0xa1   :  { %1136 = vmatpush.msra.mxu1 %v916_v31 }
  0xc9   :  { %v358_v44 = vpop.f32.mrf.mxu0  ;;  %v423_v45 = vpop.f32.mrf.mxu1 }
  0xca   :  { %v359_v46 = vadd.f32 %v358_v44, %v5517_v40  ;;  %v424_v47 = vadd.f32 %v423_v45, %v5519_v41  ;;  %v914_v44 = vld [vmem:[#allocation3 + $0x188] sm:$0xff] }
  0xcb   :  { %1137 = vmatpush.msra.mxu1 %v914_v44  ;;  %v870_v44 = vld [vmem:[#allocation3 + $0x28] sm:$0xff] }
  0xcc   :  { %v471_v50 = vmax.f32 %v359_v46, 0.0  ;;  %v472_v51 = vmax.f32 %v424_v47, 0.0 }
  0xce   :  { %589 = vmatmul.f32.vlgmr.msrb.gmra.mxu2 %v471_v50  ;;  %719 = vmatmul.f32.vlgmr.msrb.gmra.mxu0 %v471_v50 }
  0xcf   :  { %654 = vmatmul.f32.vlgmr.msrb.gmra.mxu3 %v472_v51  ;;  %784 = vmatmul.f32.vlgmr.msrb.gmra.mxu1 %v472_v51 }
  0xd1   :  { %v361_v54 = vpop.f32.mrf.mxu0  ;;  %v426_v55 = vpop.f32.mrf.mxu1 }
  0xd2   :  { %v362_v56 = vadd.f32 %v361_v54, %v5517_v40  ;;  %v427_v57 = vadd.f32 %v426_v55, %v5519_v41  ;;  %v447_v38 = vpop.f32.mrf.mxu3  ;;  %v385_v51 = vpop.f32.mrf.mxu2  ;;  %v909_v54 = vld [vmem:[#allocation3 + $0x160] sm:$0xff] }
  0xd3   :  { %1009 = vmatpush.msra.mxu3 %v909_v54  ;;  %v448_v63 = vadd.f32 %v447_v38, %v5519_v41  ;;  %v868_v54 = vld [vmem:[#allocation3 + $0x18] sm:$0xff] }
  0xd4   :  { %v473_v60 = vmax.f32 %v362_v56, 0.0  ;;  %v474_v61 = vmax.f32 %v427_v57, 0.0  ;;  %v912_v56 = vld [vmem:[#allocation3 + $0x178] sm:$0xff] }
  0xd5   :  { %1138 = vmatpush.msra.mxu1 %v912_v56  ;;  %v488_v8 = vmax.f32 %v448_v63, 0.0 }
  0xd6   :  { %592 = vmatmul.f32.gmra.mxu2 %v473_v60  ;;  %722 = vmatmul.f32.gmra.mxu0 %v473_v60 }
  0xd7   :  { %657 = vmatmul.f32.gmra.mxu3 %v474_v61  ;;  %787 = vmatmul.f32.gmra.mxu1 %v474_v61 }
  0xd9   :  { %v364_v0 = vpop.f32.mrf.mxu0  ;;  %v429_v1 = vpop.f32.mrf.mxu1 }
  0xda   :  { %v365_v2 = vadd.f32 %v364_v0, %v5517_v40  ;;  %v430_v3 = vadd.f32 %v429_v1, %v5519_v41  ;;  %v450_v55 = vpop.f32.mrf.mxu3  ;;  %v875_v0 = vld [vmem:[#allocation3 + $0x50] sm:$0xff]  ;;  %v878_v1 = vld [vmem:[#allocation3 + $0x68] sm:$0xff]  ;;  %v388_v5 = vpop.f32.mrf.mxu2 }
  0xdb   :  { %945 = vmatpush.msra.mxu2 %v875_v0  ;;  %1074 = vmatpush.msra.mxu0 %v878_v1 }
  0xdc   :  { %v475_v6 = vmax.f32 %v365_v2, 0.0  ;;  %v476_v7 = vmax.f32 %v430_v3, 0.0  ;;  %v907_v2 = vld [vmem:[#allocation3 + $0x150] sm:$0xff]  ;;  %v910_v3 = vld [vmem:[#allocation3 + $0x168] sm:$0xff] }
  0xdd   :  { %1010 = vmatpush.msra.mxu3 %v907_v2  ;;  %1139 = vmatpush.msra.mxu1 %v910_v3 }
  0xde   :  { %595 = vmatmul.f32.gmra.mxu2 %v475_v6  ;;  %725 = vmatmul.f32.gmra.mxu0 %v475_v6 }
  0xdf   :  { %660 = vmatmul.f32.gmra.mxu3 %v476_v7  ;;  %790 = vmatmul.f32.gmra.mxu1 %v476_v7 }
  0xe0   :  { %1011 = vmatpush.msra.mxu3 %v905_v14  ;;  %1140 = vmatpush.msra.mxu1 %v908_v15 }
  0xe1   :  { %v367_v10 = vpop.f32.mrf.mxu0  ;;  %v432_v11 = vpop.f32.mrf.mxu1 }
  0xe2   :  { %v368_v12 = vadd.f32 %v367_v10, %v5517_v40  ;;  %v433_v13 = vadd.f32 %v432_v11, %v5519_v41  ;;  %v453_v7 = vpop.f32.mrf.mxu3  ;;  %v386_v10 = vadd.f32 %v385_v51, %v5517_v40  ;;  %v451_v11 = vadd.f32 %v450_v55, %v5519_v41  ;;  %v391_v18 = vpop.f32.mrf.mxu2  ;;  %1012 = vmatpush.msra.mxu3 %v903_v24  ;;  %v900_v51 = vld [vmem:[#allocation3 + $0x118] sm:$0xff]  ;;  %v897_v55 = vld [vmem:[#allocation3 + $0x100] sm:$0xff]  ;;  %v1256_v24 = vld [vmem:[#allocation5 + $0xe8] sm:$0xff] }
  0xe3   :  { %1141 = vmatpush.msra.mxu1 %v906_v25  ;;  %v392_v29 = vadd.f32 %v391_v18, %v5517_v40  ;;  %v1290_v18 = vld [vmem:[#allocation5 + $0x1f8] sm:$0xff] }
  0xe4   :  { %v477_v16 = vmax.f32 %v368_v12, 0.0  ;;  %v478_v17 = vmax.f32 %v433_v13, 0.0  ;;  %v873_v12 = vld [vmem:[#allocation3 + $0x40] sm:$0xff]  ;;  %v876_v13 = vld [vmem:[#allocation3 + $0x58] sm:$0xff] }
  0xe5   :  { %946 = vmatpush.msra.mxu2 %v873_v12  ;;  %1075 = vmatpush.msra.mxu0 %v876_v13  ;;  %v1258_v12 = vld [vmem:[#allocation5 + $0xf8] sm:$0xff] }
  0xe6   :  { %598 = vmatmul.f32.gmra.mxu2 %v477_v16  ;;  %728 = vmatmul.f32.gmra.mxu0 %v477_v16  ;;  %v489_v16 = vmax.f32 %v386_v10, 0.0  ;;  %v1289_v10 = vld [vmem:[#allocation5 + $0x1f0] sm:$0xff] }
  0xe7   :  { %663 = vmatmul.f32.gmra.mxu3 %v478_v17  ;;  %793 = vmatmul.f32.gmra.mxu1 %v478_v17  ;;  %v490_v17 = vmax.f32 %v451_v11, 0.0 }
  0xe9   :  { %v370_v20 = vpop.f32.mrf.mxu0  ;;  %v435_v21 = vpop.f32.mrf.mxu1 }
  0xea   :  { %v371_v22 = vadd.f32 %v370_v20, %v5517_v40  ;;  %v436_v23 = vadd.f32 %v435_v21, %v5519_v41  ;;  %v456_v19 = vpop.f32.mrf.mxu3  ;;  %v389_v20 = vadd.f32 %v388_v5, %v5517_v40  ;;  %v454_v21 = vadd.f32 %v453_v7, %v5519_v41  ;;  %v394_v28 = vpop.f32.mrf.mxu2  ;;  %v1257_v7 = vld [vmem:[#allocation5 + $0xf0] sm:$0xff] }
  0xeb   :  { %v457_v31 = vadd.f32 %v456_v19, %v5519_v41  ;;  %v395_v38 = vadd.f32 %v394_v28, %v5517_v40 }
  0xec   :  { %v479_v26 = vmax.f32 %v371_v22, 0.0  ;;  %v480_v27 = vmax.f32 %v436_v23, 0.0  ;;  %v871_v22 = vld [vmem:[#allocation3 + $0x30] sm:$0xff]  ;;  %v874_v23 = vld [vmem:[#allocation3 + $0x48] sm:$0xff] }
  0xed   :  { %947 = vmatpush.msra.mxu2 %v871_v22  ;;  %1076 = vmatpush.msra.mxu0 %v874_v23  ;;  %v1253_v23 = vld [vmem:[#allocation5 + $0xd0] sm:$0xff] }
  0xee   :  { %601 = vmatmul.f32.gmra.mxu2 %v479_v26  ;;  %731 = vmatmul.f32.gmra.mxu0 %v479_v26  ;;  %v491_v26 = vmax.f32 %v389_v20, 0.0 }
  0xef   :  { %666 = vmatmul.f32.gmra.mxu3 %v480_v27  ;;  %796 = vmatmul.f32.gmra.mxu1 %v480_v27  ;;  %v492_v27 = vmax.f32 %v454_v21, 0.0 }
  0xf1   :  { %v373_v32 = vpop.f32.mrf.mxu0  ;;  %v438_v33 = vpop.f32.mrf.mxu1 }
  0xf2   :  { %v374_v34 = vadd.f32 %v373_v32, %v5517_v40  ;;  %v439_v35 = vadd.f32 %v438_v33, %v5519_v41  ;;  %v459_v30 = vpop.f32.mrf.mxu3  ;;  %v869_v32 = vld [vmem:[#allocation3 + $0x20] sm:$0xff]  ;;  %v872_v33 = vld [vmem:[#allocation3 + $0x38] sm:$0xff]  ;;  %v397_v42 = vpop.f32.mrf.mxu2 }
  0xf3   :  { %948 = vmatpush.msra.mxu2 %v869_v32  ;;  %1077 = vmatpush.msra.mxu0 %v872_v33  ;;  %v460_v39 = vadd.f32 %v459_v30, %v5519_v41  ;;  %v1288_v32 = vld [vmem:[#allocation5 + $0x1e8] sm:$0xff] }
  0xf4   :  { %v481_v36 = vmax.f32 %v374_v34, 0.0  ;;  %v482_v37 = vmax.f32 %v439_v35, 0.0  ;;  %v901_v34 = vld [vmem:[#allocation3 + $0x120] sm:$0xff]  ;;  %v904_v35 = vld [vmem:[#allocation3 + $0x138] sm:$0xff] }
  0xf5   :  { %1013 = vmatpush.msra.mxu3 %v901_v34  ;;  %1142 = vmatpush.msra.mxu1 %v904_v35 }
  0xf6   :  { %604 = vmatmul.f32.gmra.mxu2 %v481_v36  ;;  %734 = vmatmul.f32.gmra.mxu0 %v481_v36  ;;  %v493_v36 = vmax.f32 %v392_v29, 0.0 }
  0xf7   :  { %669 = vmatmul.f32.gmra.mxu3 %v482_v37  ;;  %799 = vmatmul.f32.gmra.mxu1 %v482_v37  ;;  %v494_v37 = vmax.f32 %v457_v31, 0.0  ;;  %v1285_v31 = vld [vmem:[#allocation5 + $0x1d0] sm:$0xff] }
  0xf8   :  { %949 = vmatpush.msra.mxu2 %v867_v43  ;;  %1078 = vmatpush.msra.mxu0 %v870_v44 }
  0xf9   :  { %v376_v45 = vpop.f32.mrf.mxu0  ;;  %v441_v46 = vpop.f32.mrf.mxu1 }
  0xfa   :  { %v377_v47 = vadd.f32 %v376_v45, %v5517_v40  ;;  %v442_v48 = vadd.f32 %v441_v46, %v5519_v41  ;;  %v899_v45 = vld [vmem:[#allocation3 + $0x110] sm:$0xff]  ;;  %v462_v46 = vpop.f32.mrf.mxu3  ;;  %v400_v56 = vpop.f32.mrf.mxu2  ;;  %950 = vmatpush.msra.mxu2 %v865_v53  ;;  %1079 = vmatpush.msra.mxu0 %v868_v54  ;;  %v1252_v54 = vld [vmem:[#allocation5 + $0xc8] sm:$0xff] }
  0xfb   :  { %1014 = vmatpush.msra.mxu3 %v899_v45  ;;  %v463_v52 = vadd.f32 %v462_v46, %v5519_v41  ;;  %v1249_v53 = vld [vmem:[#allocation5 + $0xb0] sm:$0xff] }
  0xfc   :  { %v483_v49 = vmax.f32 %v377_v47, 0.0  ;;  %v484_v50 = vmax.f32 %v442_v48, 0.0  ;;  %v902_v47 = vld [vmem:[#allocation3 + $0x128] sm:$0xff]  ;;  %v495_v48 = vmax.f32 %v395_v38, 0.0  ;;  %1297 = vmatpush.msrb.mxu2 %v1257_v7  ;;  %v1254_v38 = vld [vmem:[#allocation5 + $0xd8] sm:$0xff] }
  0xfd   :  { %1143 = vmatpush.msra.mxu1 %v902_v47  ;;  %1015 = vmatpush.msra.mxu3 %v897_v55  ;;  %v1283_v47 = vld [vmem:[#allocation5 + $0x1c0] sm:$0xff] }
  0xfe   :  { %607 = vmatmul.f32.gmra.mxu2 %v483_v49  ;;  %737 = vmatmul.f32.gmra.mxu0 %v483_v49  ;;  %v496_v49 = vmax.f32 %v460_v39, 0.0 }
  0xff   :  { %672 = vmatmul.f32.gmra.mxu3 %v484_v50  ;;  %802 = vmatmul.f32.gmra.mxu1 %v484_v50  ;;  %v398_v50 = vadd.f32 %v397_v42, %v5517_v40 }
 0x100   :  { %1144 = vmatpush.msra.mxu1 %v900_v51  ;;  %1362 = vmatpush.msrb.mxu3 %v1289_v10 }
 0x101   :  { %v379_v57 = vpop.f32.mrf.mxu0  ;;  %v444_v58 = vpop.f32.mrf.mxu1 }
 0x102   :  { %v380_v59 = vadd.f32 %v379_v57, %v5517_v40  ;;  %v445_v60 = vadd.f32 %v444_v58, %v5519_v41  ;;  %v898_v57 = vld [vmem:[#allocation3 + $0x108] sm:$0xff]  ;;  %v497_v58 = vmax.f32 %v398_v50, 0.0  ;;  %v403_v2 = vpop.f32.mrf.mxu2 }
 0x103   :  { %1145 = vmatpush.msra.mxu1 %v898_v57 }
 0x104   :  { %v485_v61 = vmax.f32 %v380_v59, 0.0  ;;  %v486_v62 = vmax.f32 %v445_v60, 0.0  ;;  %v465_v59 = vpop.f32.mrf.mxu3  ;;  %v498_v60 = vmax.f32 %v463_v52, 0.0 }
 0x105   :  { %v466_v63 = vadd.f32 %v465_v59, %v5519_v41  ;;  %1492 = vmatpush.msrb.mxu1 %v1290_v18  ;;  %v1248_v18 = vld [vmem:[#allocation5 + $0xa8] sm:$0xff] }
 0x106   :  { %610 = vmatmul.f32.gmra.mxu2 %v485_v61  ;;  %740 = vmatmul.f32.gmra.mxu0 %v485_v61  ;;  %v401_v61 = vadd.f32 %v400_v56, %v5517_v40 }
 0x107   :  { %675 = vmatmul.f32.gmra.mxu3 %v486_v62  ;;  %805 = vmatmul.f32.gmra.mxu1 %v486_v62  ;;  %v866_v62 = vld [vmem:[#allocation3 + $0x8] sm:$0xff]  ;;  %v500_v1 = vmax.f32 %v466_v63, 0.0 }
 0x108   :  { %1080 = vmatpush.msra.mxu0 %v866_v62  ;;  %v499_v0 = vmax.f32 %v401_v61, 0.0  ;;  %1493 = vmatpush.msrb.mxu1 %v1288_v32  ;;  %v1281_v61 = vld [vmem:[#allocation5 + $0x1b0] sm:$0xff]  ;;  %v1284_v62 = vld [vmem:[#allocation5 + $0x1c8] sm:$0xff]  ;;  %v1246_v32 = vld [vmem:[#allocation5 + $0x98] sm:$0xff] }
 0x109   :  { %v382_v4 = vpop.f32.mrf.mxu0 }
 0x10a   :  { %v383_v6 = vadd.f32 %v382_v4, %v5517_v40  ;;  %v404_v4 = vadd.f32 %v403_v2, %v5517_v40  ;;  %v1255_v40 = vld [vmem:[#allocation5 + $0xe0] sm:$0xff]  ;;  %1427 = vmatpush.msrb.mxu0 %v1258_v12  ;;  %v1282_v12 = vld [vmem:[#allocation5 + $0x1b8] sm:$0xff] }
 0x10b   :  { %1298 = vmatpush.msrb.mxu2 %v1255_v40  ;;  %v1279_v40 = vld [vmem:[#allocation5 + $0x1a0] sm:$0xff] }
 0x10c   :  { %v487_v9 = vmax.f32 %v383_v6, 0.0  ;;  %v468_v3 = vpop.f32.mrf.mxu3  ;;  %v501_v6 = vmax.f32 %v404_v4, 0.0  ;;  %1428 = vmatpush.msrb.mxu0 %v1256_v24  ;;  %v1250_v4 = vld [vmem:[#allocation5 + $0xb8] sm:$0xff] }
 0x10d   :  { %v469_v5 = vadd.f32 %v468_v3, %v5519_v41  ;;  %1299 = vmatpush.msrb.mxu2 %v1253_v23  ;;  %v1247_v3 = vld [vmem:[#allocation5 + $0xa0] sm:$0xff] }
 0x10e   :  { %613 = vmatmul.f32.gmra.mxu2 %v487_v9  ;;  %743 = vmatmul.f32.gmra.mxu0 %v487_v9  ;;  %v567_v9 = vld [vmem:[%s6671_s6] sm:$0x3] }
 0x10f   :  { %678 = vmatmul.f32.gmra.mxu3 %v488_v8  ;;  %808 = vmatmul.f32.gmra.mxu1 %v488_v8  ;;  %v502_v8 = vmax.f32 %v469_v5, 0.0  ;;  %v5556_v11 = vperm.slane %v567_v9, 1 }
 0x110   :  { %1429 = vmatpush.msrb.mxu0 %v1254_v38 }
 0x112   :  { %1430 = vmatpush.msrb.mxu0 %v1252_v54 }
 0x114   :  { %1431 = vmatpush.msrb.mxu0 %v1250_v4 }
 0x116   :  { %616 = vmatmul.f32.gmra.mxu2 %v489_v16  ;;  %746 = vmatmul.f32.gmra.mxu0 %v489_v16  ;;  %v5559_v16 = vperm.slane %v567_v9, 0 }
 0x117   :  { %681 = vmatmul.f32.gmra.mxu3 %v490_v17  ;;  %811 = vmatmul.f32.gmra.mxu1 %v490_v17  ;;  %v1287_v17 = vld [vmem:[#allocation5 + $0x1e0] sm:$0xff] }
 0x118   :  { %1363 = vmatpush.msrb.mxu3 %v1287_v17  ;;  %v1245_v17 = vld [vmem:[#allocation5 + $0x90] sm:$0xff]  ;;  %1432 = vmatpush.msrb.mxu0 %v1248_v18 }
 0x11a   :  { %1364 = vmatpush.msrb.mxu3 %v1285_v31  ;;  %v1243_v31 = vld [vmem:[#allocation5 + $0x80] sm:$0xff]  ;;  %1433 = vmatpush.msrb.mxu0 %v1246_v32 }
 0x11c   :  { %1365 = vmatpush.msrb.mxu3 %v1283_v47  ;;  %v1241_v47 = vld [vmem:[#allocation5 + $0x70] sm:$0xff] }
 0x11e   :  { %619 = vmatmul.f32.gmra.mxu2 %v491_v26  ;;  %749 = vmatmul.f32.gmra.mxu0 %v491_v26 }
 0x11f   :  { %684 = vmatmul.f32.gmra.mxu3 %v492_v27  ;;  %814 = vmatmul.f32.gmra.mxu1 %v492_v27 }
 0x120   :  { %1366 = vmatpush.msrb.mxu3 %v1281_v61  ;;  %v1239_v61 = vld [vmem:[#allocation5 + $0x60] sm:$0xff] }
 0x122   :  { %1367 = vmatpush.msrb.mxu3 %v1279_v40  ;;  %v1237_v40 = vld [vmem:[#allocation5 + $0x50] sm:$0xff] }
 0x126   :  { %622 = vmatmul.f32.gmra.mxu2 %v493_v36  ;;  %752 = vmatmul.f32.gmra.mxu0 %v493_v36 }
 0x127   :  { %687 = vmatmul.f32.gmra.mxu3 %v494_v37  ;;  %817 = vmatmul.f32.gmra.mxu1 %v494_v37  ;;  %v1251_v37 = vld [vmem:[#allocation5 + $0xc0] sm:$0xff] }
 0x128   :  { %1300 = vmatpush.msrb.mxu2 %v1251_v37 }
 0x12a   :  { %1301 = vmatpush.msrb.mxu2 %v1249_v53 }
 0x12c   :  { %1302 = vmatpush.msrb.mxu2 %v1247_v3 }
 0x12e   :  { %625 = vmatmul.f32.gmra.mxu2 %v495_v48  ;;  %755 = vmatmul.f32.gmra.mxu0 %v495_v48  ;;  %v1286_v48 = vld [vmem:[#allocation5 + $0x1d8] sm:$0xff] }
 0x12f   :  { %690 = vmatmul.f32.gmra.mxu3 %v496_v49  ;;  %820 = vmatmul.f32.gmra.mxu1 %v496_v49 }
 0x130   :  { %1494 = vmatpush.msrb.mxu1 %v1286_v48  ;;  %1303 = vmatpush.msrb.mxu2 %v1245_v17  ;;  %v1244_v48 = vld [vmem:[#allocation5 + $0x88] sm:$0xff] }
 0x131   :  { %1434 = vmatpush.msrb.mxu0 %v1244_v48 }
 0x132   :  { %1495 = vmatpush.msrb.mxu1 %v1284_v62  ;;  %1304 = vmatpush.msrb.mxu2 %v1243_v31  ;;  %v1242_v62 = vld [vmem:[#allocation5 + $0x78] sm:$0xff] }
 0x133   :  { %1435 = vmatpush.msrb.mxu0 %v1242_v62 }
 0x134   :  { %1496 = vmatpush.msrb.mxu1 %v1282_v12  ;;  %1305 = vmatpush.msrb.mxu2 %v1241_v47  ;;  %v1240_v12 = vld [vmem:[#allocation5 + $0x68] sm:$0xff] }
 0x135   :  { %1436 = vmatpush.msrb.mxu0 %v1240_v12 }
 0x136   :  { %628 = vmatmul.f32.gmra.mxu2 %v497_v58  ;;  %758 = vmatmul.f32.gmra.mxu0 %v497_v58 }
 0x137   :  { %693 = vmatmul.f32.gmra.mxu3 %v498_v60  ;;  %823 = vmatmul.f32.gmra.mxu1 %v498_v60 }
 0x138   :  { %1306 = vmatpush.msrb.mxu2 %v1239_v61 }
 0x13a   :  { %1307 = vmatpush.msrb.mxu2 %v1237_v40 }
 0x13e   :  { %631 = vmatmul.f32.gmra.mxu2 %v499_v0  ;;  %761 = vmatmul.f32.gmra.mxu0 %v499_v0 }
 0x13f   :  { %696 = vmatmul.f32.gmra.mxu3 %v500_v1  ;;  %826 = vmatmul.f32.gmra.mxu1 %v500_v1 }
 0x146   :  { %634 = vmatmul.f32.gmra.mxu2 %v501_v6  ;;  %764 = vmatmul.f32.gmra.mxu0 %v501_v6 }
 0x147   :  { %699 = vmatmul.f32.gmra.mxu3 %v502_v8  ;;  %829 = vmatmul.f32.gmra.mxu1 %v502_v8 }
 0x14b   :  { %v720_v13 = vpop.f32.mrf.mxu0 }
 0x14c   :  { %v721_v41 = vadd.f32 %v720_v13, %v5556_v11  ;;  %v785_v14 = vpop.f32.mrf.mxu1 }
 0x14e   :  { %v786_v15 = vadd.f32 %v785_v14, %v721_v41 }
 0x150   :  { %v834_v19 = vmax.f32 %v786_v15, 0.0 }
 0x151   :  { %v590_v20 = vpop.f32.mrf.mxu2 }
 0x152   :  { %v591_v21 = vadd.f32 %v590_v20, %v5559_v16  ;;  %1016 = vmatmul.f32.vlgmr.msra.gmra.mxu3 %v834_v19  ;;  %1146 = vmatmul.f32.vlgmr.msra.gmra.mxu1 %v834_v19  ;;  %v655_v22 = vpop.f32.mrf.mxu3 }
 0x153   :  { %v723_v25 = vpop.f32.mrf.mxu0 }
 0x154   :  { %v656_v26 = vadd.f32 %v655_v22, %v591_v21  ;;  %v724_v27 = vadd.f32 %v723_v25, %v5556_v11  ;;  %v788_v28 = vpop.f32.mrf.mxu1  ;;  %v1277_v25 = vld [vmem:[#allocation5 + $0x190] sm:$0xff] }
 0x155   :  { %1368 = vmatpush.msrb.mxu3 %v1277_v25  ;;  %v1235_v25 = vld [vmem:[#allocation5 + $0x40] sm:$0xff] }
 0x156   :  { %v833_v29 = vmax.f32 %v656_v26, 0.0  ;;  %v789_v30 = vadd.f32 %v788_v28, %v724_v27  ;;  %v1280_v26 = vld [vmem:[#allocation5 + $0x1a8] sm:$0xff]  ;;  %1308 = vmatpush.msrb.mxu2 %v1235_v25 }
 0x157   :  { %1497 = vmatpush.msrb.mxu1 %v1280_v26  ;;  %v1238_v26 = vld [vmem:[#allocation5 + $0x58] sm:$0xff] }
 0x158   :  { %v836_v33 = vmax.f32 %v789_v30, 0.0  ;;  %951 = vmatmul.f32.vlgmr.msra.gmra.mxu2 %v833_v29  ;;  %1081 = vmatmul.f32.vlgmr.msra.gmra.mxu0 %v833_v29 }
 0x159   :  { %v593_v34 = vpop.f32.mrf.mxu2  ;;  %1437 = vmatpush.msrb.mxu0 %v1238_v26 }
 0x15a   :  { %v594_v35 = vadd.f32 %v593_v34, %v5559_v16  ;;  %1019 = vmatmul.f32.gmra.mxu3 %v836_v33  ;;  %1149 = vmatmul.f32.gmra.mxu1 %v836_v33  ;;  %v658_v36 = vpop.f32.mrf.mxu3 }
 0x15b   :  { %v726_v39 = vpop.f32.mrf.mxu0 }
 0x15c   :  { %v659_v42 = vadd.f32 %v658_v36, %v594_v35  ;;  %v727_v43 = vadd.f32 %v726_v39, %v5556_v11  ;;  %v791_v44 = vpop.f32.mrf.mxu1  ;;  %v1275_v39 = vld [vmem:[#allocation5 + $0x180] sm:$0xff] }
 0x15d   :  { %1369 = vmatpush.msrb.mxu3 %v1275_v39  ;;  %v1233_v39 = vld [vmem:[#allocation5 + $0x30] sm:$0xff] }
 0x15e   :  { %v835_v45 = vmax.f32 %v659_v42, 0.0  ;;  %v792_v46 = vadd.f32 %v791_v44, %v727_v43  ;;  %v1278_v42 = vld [vmem:[#allocation5 + $0x198] sm:$0xff]  ;;  %1309 = vmatpush.msrb.mxu2 %v1233_v39 }
 0x15f   :  { %1498 = vmatpush.msrb.mxu1 %v1278_v42  ;;  %v1236_v42 = vld [vmem:[#allocation5 + $0x48] sm:$0xff] }
 0x160   :  { %v838_v49 = vmax.f32 %v792_v46, 0.0  ;;  %954 = vmatmul.f32.gmra.mxu2 %v835_v45  ;;  %1084 = vmatmul.f32.gmra.mxu0 %v835_v45 }
 0x161   :  { %v596_v50 = vpop.f32.mrf.mxu2  ;;  %1438 = vmatpush.msrb.mxu0 %v1236_v42 }
 0x162   :  { %v597_v51 = vadd.f32 %v596_v50, %v5559_v16  ;;  %1022 = vmatmul.f32.gmra.mxu3 %v838_v49  ;;  %1152 = vmatmul.f32.gmra.mxu1 %v838_v49  ;;  %v661_v52 = vpop.f32.mrf.mxu3 }
 0x163   :  { %v729_v55 = vpop.f32.mrf.mxu0 }
 0x164   :  { %v662_v56 = vadd.f32 %v661_v52, %v597_v51  ;;  %v730_v57 = vadd.f32 %v729_v55, %v5556_v11  ;;  %v794_v58 = vpop.f32.mrf.mxu1  ;;  %v1273_v55 = vld [vmem:[#allocation5 + $0x170] sm:$0xff] }
 0x165   :  { %1370 = vmatpush.msrb.mxu3 %v1273_v55  ;;  %v1231_v55 = vld [vmem:[#allocation5 + $0x20] sm:$0xff] }
 0x166   :  { %v837_v59 = vmax.f32 %v662_v56, 0.0  ;;  %v795_v60 = vadd.f32 %v794_v58, %v730_v57  ;;  %v1276_v56 = vld [vmem:[#allocation5 + $0x188] sm:$0xff]  ;;  %1310 = vmatpush.msrb.mxu2 %v1231_v55  ;;  %v1633_v55 = vld [vmem:[#allocation8 + $0xe0] sm:$0xff] }
 0x167   :  { %1499 = vmatpush.msrb.mxu1 %v1276_v56  ;;  %v1234_v56 = vld [vmem:[#allocation5 + $0x38] sm:$0xff] }
 0x168   :  { %v840_v63 = vmax.f32 %v795_v60, 0.0  ;;  %957 = vmatmul.f32.gmra.mxu2 %v837_v59  ;;  %1087 = vmatmul.f32.gmra.mxu0 %v837_v59 }
 0x169   :  { %v599_v0 = vpop.f32.mrf.mxu2  ;;  %1439 = vmatpush.msrb.mxu0 %v1234_v56 }
 0x16a   :  { %v600_v1 = vadd.f32 %v599_v0, %v5559_v16  ;;  %1025 = vmatmul.f32.gmra.mxu3 %v840_v63  ;;  %1155 = vmatmul.f32.gmra.mxu1 %v840_v63  ;;  %v664_v2 = vpop.f32.mrf.mxu3 }
 0x16b   :  { %v732_v5 = vpop.f32.mrf.mxu0 }
 0x16c   :  { %v665_v6 = vadd.f32 %v664_v2, %v600_v1  ;;  %v733_v7 = vadd.f32 %v732_v5, %v5556_v11  ;;  %v797_v8 = vpop.f32.mrf.mxu1  ;;  %v1271_v5 = vld [vmem:[#allocation5 + $0x160] sm:$0xff] }
 0x16d   :  { %1371 = vmatpush.msrb.mxu3 %v1271_v5 }
 0x16e   :  { %v839_v9 = vmax.f32 %v665_v6, 0.0  ;;  %v798_v10 = vadd.f32 %v797_v8, %v733_v7  ;;  %v1274_v6 = vld [vmem:[#allocation5 + $0x178] sm:$0xff] }
 0x16f   :  { %1500 = vmatpush.msrb.mxu1 %v1274_v6  ;;  %v1264_v6 = vld [vmem:[#allocation5 + $0x128] sm:$0xff] }
 0x170   :  { %v842_v13 = vmax.f32 %v798_v10, 0.0  ;;  %960 = vmatmul.f32.gmra.mxu2 %v839_v9  ;;  %1090 = vmatmul.f32.gmra.mxu0 %v839_v9 }
 0x171   :  { %v602_v41 = vpop.f32.mrf.mxu2 }
 0x172   :  { %v603_v14 = vadd.f32 %v602_v41, %v5559_v16  ;;  %1028 = vmatmul.f32.gmra.mxu3 %v842_v13  ;;  %1158 = vmatmul.f32.gmra.mxu1 %v842_v13  ;;  %v667_v15 = vpop.f32.mrf.mxu3 }
 0x173   :  { %v735_v19 = vpop.f32.mrf.mxu0 }
 0x174   :  { %v668_v20 = vadd.f32 %v667_v15, %v603_v14  ;;  %v736_v21 = vadd.f32 %v735_v19, %v5556_v11  ;;  %v800_v22 = vpop.f32.mrf.mxu1  ;;  %v1269_v19 = vld [vmem:[#allocation5 + $0x150] sm:$0xff] }
 0x175   :  { %1372 = vmatpush.msrb.mxu3 %v1269_v19 }
 0x176   :  { %v841_v23 = vmax.f32 %v668_v20, 0.0  ;;  %v801_v24 = vadd.f32 %v800_v22, %v736_v21  ;;  %v1272_v20 = vld [vmem:[#allocation5 + $0x168] sm:$0xff] }
 0x177   :  { %1501 = vmatpush.msrb.mxu1 %v1272_v20  ;;  %v1227_v20 = vld [vmem:[#allocation5] sm:$0xff] }
 0x178   :  { %v844_v27 = vmax.f32 %v801_v24, 0.0  ;;  %963 = vmatmul.f32.gmra.mxu2 %v841_v23  ;;  %1093 = vmatmul.f32.gmra.mxu0 %v841_v23 }
 0x179   :  { %v605_v28 = vpop.f32.mrf.mxu2 }
 0x17a   :  { %v606_v29 = vadd.f32 %v605_v28, %v5559_v16  ;;  %1031 = vmatmul.f32.gmra.mxu3 %v844_v27  ;;  %1161 = vmatmul.f32.gmra.mxu1 %v844_v27  ;;  %v670_v30 = vpop.f32.mrf.mxu3 }
 0x17b   :  { %v738_v33 = vpop.f32.mrf.mxu0 }
 0x17c   :  { %v671_v34 = vadd.f32 %v670_v30, %v606_v29  ;;  %v739_v35 = vadd.f32 %v738_v33, %v5556_v11  ;;  %v803_v36 = vpop.f32.mrf.mxu1  ;;  %v1267_v33 = vld [vmem:[#allocation5 + $0x140] sm:$0xff] }
 0x17d   :  { %1373 = vmatpush.msrb.mxu3 %v1267_v33 }
 0x17e   :  { %v843_v37 = vmax.f32 %v671_v34, 0.0  ;;  %v804_v38 = vadd.f32 %v803_v36, %v739_v35  ;;  %v1270_v34 = vld [vmem:[#allocation5 + $0x158] sm:$0xff] }
 0x17f   :  { %1502 = vmatpush.msrb.mxu1 %v1270_v34 }
 0x180   :  { %v846_v43 = vmax.f32 %v804_v38, 0.0  ;;  %966 = vmatmul.f32.gmra.mxu2 %v843_v37  ;;  %1096 = vmatmul.f32.gmra.mxu0 %v843_v37 }
 0x181   :  { %v608_v44 = vpop.f32.mrf.mxu2 }
 0x182   :  { %v609_v45 = vadd.f32 %v608_v44, %v5559_v16  ;;  %1034 = vmatmul.f32.gmra.mxu3 %v846_v43  ;;  %1164 = vmatmul.f32.gmra.mxu1 %v846_v43  ;;  %v673_v46 = vpop.f32.mrf.mxu3 }
 0x183   :  { %v741_v49 = vpop.f32.mrf.mxu0 }
 0x184   :  { %v674_v50 = vadd.f32 %v673_v46, %v609_v45  ;;  %v742_v51 = vadd.f32 %v741_v49, %v5556_v11  ;;  %v806_v52 = vpop.f32.mrf.mxu1  ;;  %v1265_v49 = vld [vmem:[#allocation5 + $0x130] sm:$0xff] }
 0x185   :  { %1374 = vmatpush.msrb.mxu3 %v1265_v49  ;;  %v1635_v49 = vld [vmem:[#allocation8 + $0xf0] sm:$0xff] }
 0x186   :  { %v845_v53 = vmax.f32 %v674_v50, 0.0  ;;  %v807_v54 = vadd.f32 %v806_v52, %v742_v51  ;;  %v1268_v50 = vld [vmem:[#allocation5 + $0x148] sm:$0xff] }
 0x187   :  { %1503 = vmatpush.msrb.mxu1 %v1268_v50 }
 0x188   :  { %v848_v57 = vmax.f32 %v807_v54, 0.0  ;;  %969 = vmatmul.f32.gmra.mxu2 %v845_v53  ;;  %1099 = vmatmul.f32.gmra.mxu0 %v845_v53 }
 0x189   :  { %v611_v58 = vpop.f32.mrf.mxu2 }
 0x18a   :  { %v612_v59 = vadd.f32 %v611_v58, %v5559_v16  ;;  %1037 = vmatmul.f32.gmra.mxu3 %v848_v57  ;;  %1167 = vmatmul.f32.gmra.mxu1 %v848_v57  ;;  %v676_v60 = vpop.f32.mrf.mxu3 }
 0x18b   :  { %v744_v63 = vpop.f32.mrf.mxu0 }
 0x18c   :  { %v677_v0 = vadd.f32 %v676_v60, %v612_v59  ;;  %v745_v1 = vadd.f32 %v744_v63, %v5556_v11  ;;  %v809_v2 = vpop.f32.mrf.mxu1  ;;  %v1263_v63 = vld [vmem:[#allocation5 + $0x120] sm:$0xff] }
 0x18d   :  { %1375 = vmatpush.msrb.mxu3 %v1263_v63 }
 0x18e   :  { %v847_v3 = vmax.f32 %v677_v0, 0.0  ;;  %v810_v4 = vadd.f32 %v809_v2, %v745_v1  ;;  %v1266_v0 = vld [vmem:[#allocation5 + $0x138] sm:$0xff]  ;;  %v1229_v2 = vld [vmem:[#allocation5 + $0x10] sm:$0xff] }
 0x18f   :  { %1504 = vmatpush.msrb.mxu1 %v1266_v0  ;;  %1311 = vmatpush.msrb.mxu2 %v1229_v2 }
 0x190   :  { %v850_v7 = vmax.f32 %v810_v4, 0.0  ;;  %972 = vmatmul.f32.gmra.mxu2 %v847_v3  ;;  %1102 = vmatmul.f32.gmra.mxu0 %v847_v3  ;;  %v1232_v3 = vld [vmem:[#allocation5 + $0x28] sm:$0xff]  ;;  %v1261_v4 = vld [vmem:[#allocation5 + $0x110] sm:$0xff] }
 0x191   :  { %v614_v8 = vpop.f32.mrf.mxu2  ;;  %1440 = vmatpush.msrb.mxu0 %v1232_v3  ;;  %1376 = vmatpush.msrb.mxu3 %v1261_v4  ;;  %v1631_v3 = vld [vmem:[#allocation8 + $0xd0] sm:$0xff] }
 0x192   :  { %v615_v9 = vadd.f32 %v614_v8, %v5559_v16  ;;  %1040 = vmatmul.f32.gmra.mxu3 %v850_v7  ;;  %1170 = vmatmul.f32.gmra.mxu1 %v850_v7  ;;  %v679_v10 = vpop.f32.mrf.mxu3 }
 0x193   :  { %v747_v13 = vpop.f32.mrf.mxu0  ;;  %1505 = vmatpush.msrb.mxu1 %v1264_v6  ;;  %1312 = vmatpush.msrb.mxu2 %v1227_v20 }
 0x194   :  { %v680_v41 = vadd.f32 %v679_v10, %v615_v9  ;;  %v748_v14 = vadd.f32 %v747_v13, %v5556_v11  ;;  %v812_v15 = vpop.f32.mrf.mxu1 }
 0x195   :  { %1669 = vmatpush.msra.mxu2 %v1635_v49 }
 0x196   :  { %v849_v17 = vmax.f32 %v680_v41, 0.0  ;;  %v813_v18 = vadd.f32 %v812_v15, %v748_v14  ;;  %v1262_v15 = vld [vmem:[#allocation5 + $0x118] sm:$0xff] }
 0x197   :  { %1506 = vmatpush.msrb.mxu1 %v1262_v15  ;;  %1670 = vmatpush.msra.mxu2 %v1633_v55 }
 0x198   :  { %v852_v21 = vmax.f32 %v813_v18, 0.0  ;;  %975 = vmatmul.f32.gmra.mxu2 %v849_v17  ;;  %1105 = vmatmul.f32.gmra.mxu0 %v849_v17 }
 0x199   :  { %v617_v22 = vpop.f32.mrf.mxu2  ;;  %1671 = vmatpush.msra.mxu2 %v1631_v3 }
 0x19a   :  { %v618_v23 = vadd.f32 %v617_v22, %v5559_v16  ;;  %1043 = vmatmul.f32.gmra.mxu3 %v852_v21  ;;  %1173 = vmatmul.f32.gmra.mxu1 %v852_v21  ;;  %v682_v24 = vpop.f32.mrf.mxu3  ;;  %v1230_v21 = vld [vmem:[#allocation5 + $0x18] sm:$0xff]  ;;  %v1259_v22 = vld [vmem:[#allocation5 + $0x100] sm:$0xff] }
 0x19b   :  { %v750_v27 = vpop.f32.mrf.mxu0  ;;  %1441 = vmatpush.msrb.mxu0 %v1230_v21  ;;  %1377 = vmatpush.msrb.mxu3 %v1259_v22 }
 0x19c   :  { %v683_v28 = vadd.f32 %v682_v24, %v618_v23  ;;  %v751_v29 = vadd.f32 %v750_v27, %v5556_v11  ;;  %v815_v30 = vpop.f32.mrf.mxu1  ;;  %v1260_v24 = vld [vmem:[#allocation5 + $0x108] sm:$0xff] }
 0x19d   :  { %1507 = vmatpush.msrb.mxu1 %v1260_v24 }
 0x19e   :  { %v851_v31 = vmax.f32 %v683_v28, 0.0  ;;  %v816_v32 = vadd.f32 %v815_v30, %v751_v29 }
 0x1a0   :  { %v854_v35 = vmax.f32 %v816_v32, 0.0  ;;  %978 = vmatmul.f32.gmra.mxu2 %v851_v31  ;;  %1108 = vmatmul.f32.gmra.mxu0 %v851_v31  ;;  %v1228_v31 = vld [vmem:[#allocation5 + $0x8] sm:$0xff] }
 0x1a1   :  { %v620_v36 = vpop.f32.mrf.mxu2  ;;  %1442 = vmatpush.msrb.mxu0 %v1228_v31  ;;  %v1659_v31 = vld [vmem:[#allocation8 + $0x1b0] sm:$0xff] }
 0x1a2   :  { %v621_v37 = vadd.f32 %v620_v36, %v5559_v16  ;;  %1046 = vmatmul.f32.gmra.mxu3 %v854_v35  ;;  %1176 = vmatmul.f32.gmra.mxu1 %v854_v35  ;;  %v685_v38 = vpop.f32.mrf.mxu3 }
 0x1a3   :  { %v753_v43 = vpop.f32.mrf.mxu0 }
 0x1a4   :  { %v686_v44 = vadd.f32 %v685_v38, %v621_v37  ;;  %v754_v45 = vadd.f32 %v753_v43, %v5556_v11  ;;  %v818_v46 = vpop.f32.mrf.mxu1 }
 0x1a6   :  { %v853_v47 = vmax.f32 %v686_v44, 0.0  ;;  %v819_v48 = vadd.f32 %v818_v46, %v754_v45 }
 0x1a8   :  { %v856_v51 = vmax.f32 %v819_v48, 0.0  ;;  %981 = vmatmul.f32.gmra.mxu2 %v853_v47  ;;  %1111 = vmatmul.f32.gmra.mxu0 %v853_v47 }
 0x1a9   :  { %v623_v52 = vpop.f32.mrf.mxu2 }
 0x1aa   :  { %v624_v53 = vadd.f32 %v623_v52, %v5559_v16  ;;  %1049 = vmatmul.f32.gmra.mxu3 %v856_v51  ;;  %1179 = vmatmul.f32.gmra.mxu1 %v856_v51  ;;  %v688_v54 = vpop.f32.mrf.mxu3  ;;  %v1667_v51 = vld [vmem:[#allocation8 + $0x1f0] sm:$0xff] }
 0x1ab   :  { %v756_v57 = vpop.f32.mrf.mxu0  ;;  %1734 = vmatpush.msra.mxu3 %v1667_v51 }
 0x1ac   :  { %v689_v58 = vadd.f32 %v688_v54, %v624_v53  ;;  %v757_v59 = vadd.f32 %v756_v57, %v5556_v11  ;;  %v821_v60 = vpop.f32.mrf.mxu1 }
 0x1ae   :  { %v855_v61 = vmax.f32 %v689_v58, 0.0  ;;  %v822_v62 = vadd.f32 %v821_v60, %v757_v59  ;;  %v1665_v59 = vld [vmem:[#allocation8 + $0x1e0] sm:$0xff] }
 0x1af   :  { %1735 = vmatpush.msra.mxu3 %v1665_v59 }
 0x1b0   :  { %v858_v1 = vmax.f32 %v822_v62, 0.0  ;;  %984 = vmatmul.f32.gmra.mxu2 %v855_v61  ;;  %1114 = vmatmul.f32.gmra.mxu0 %v855_v61 }
 0x1b1   :  { %v626_v5 = vpop.f32.mrf.mxu2 }
 0x1b2   :  { %v627_v7 = vadd.f32 %v626_v5, %v5559_v16  ;;  %1052 = vmatmul.f32.gmra.mxu3 %v858_v1  ;;  %1182 = vmatmul.f32.gmra.mxu1 %v858_v1  ;;  %v691_v8 = vpop.f32.mrf.mxu3 }
 0x1b3   :  { %v759_v9 = vpop.f32.mrf.mxu0 }
 0x1b4   :  { %v692_v10 = vadd.f32 %v691_v8, %v627_v7  ;;  %v760_v40 = vadd.f32 %v759_v9, %v5556_v11  ;;  %v824_v12 = vpop.f32.mrf.mxu1  ;;  %v1663_v7 = vld [vmem:[#allocation8 + $0x1d0] sm:$0xff] }
 0x1b5   :  { %1736 = vmatpush.msra.mxu3 %v1663_v7 }
 0x1b6   :  { %v857_v13 = vmax.f32 %v692_v10, 0.0  ;;  %v825_v41 = vadd.f32 %v824_v12, %v760_v40 }
 0x1b8   :  { %v860_v14 = vmax.f32 %v825_v41, 0.0  ;;  %987 = vmatmul.f32.gmra.mxu2 %v857_v13  ;;  %1117 = vmatmul.f32.gmra.mxu0 %v857_v13 }
 0x1b9   :  { %v629_v17 = vpop.f32.mrf.mxu2 }
 0x1ba   :  { %v630_v18 = vadd.f32 %v629_v17, %v5559_v16  ;;  %1055 = vmatmul.f32.gmra.mxu3 %v860_v14  ;;  %1185 = vmatmul.f32.gmra.mxu1 %v860_v14  ;;  %v694_v19 = vpop.f32.mrf.mxu3  ;;  %v1629_v14 = vld [vmem:[#allocation8 + $0xc0] sm:$0xff] }
 0x1bb   :  { %v762_v23 = vpop.f32.mrf.mxu0  ;;  %1672 = vmatpush.msra.mxu2 %v1629_v14 }
 0x1bc   :  { %v695_v25 = vadd.f32 %v694_v19, %v630_v18  ;;  %v763_v26 = vadd.f32 %v762_v23, %v5556_v11  ;;  %v827_v27 = vpop.f32.mrf.mxu1  ;;  %v1661_v19 = vld [vmem:[#allocation8 + $0x1c0] sm:$0xff] }
 0x1bd   :  { %1737 = vmatpush.msra.mxu3 %v1661_v19 }
 0x1be   :  { %v859_v28 = vmax.f32 %v695_v25, 0.0  ;;  %v828_v29 = vadd.f32 %v827_v27, %v763_v26  ;;  %v1627_v27 = vld [vmem:[#allocation8 + $0xb0] sm:$0xff] }
 0x1bf   :  { %1673 = vmatpush.msra.mxu2 %v1627_v27  ;;  %1738 = vmatpush.msra.mxu3 %v1659_v31 }
 0x1c0   :  { %v862_v30 = vmax.f32 %v828_v29, 0.0  ;;  %990 = vmatmul.f32.gmra.mxu2 %v859_v28  ;;  %1120 = vmatmul.f32.gmra.mxu0 %v859_v28 }
 0x1c1   :  { %v632_v32 = vpop.f32.mrf.mxu2 }
 0x1c2   :  { %v633_v33 = vadd.f32 %v632_v32, %v5559_v16  ;;  %1058 = vmatmul.f32.gmra.mxu3 %v862_v30  ;;  %1188 = vmatmul.f32.gmra.mxu1 %v862_v30  ;;  %v697_v34 = vpop.f32.mrf.mxu3 }
 0x1c3   :  { %v765_v35 = vpop.f32.mrf.mxu0 }
 0x1c4   :  { %v698_v36 = vadd.f32 %v697_v34, %v633_v33  ;;  %v766_v37 = vadd.f32 %v765_v35, %v5556_v11  ;;  %v830_v38 = vpop.f32.mrf.mxu1  ;;  %v929_v11 = vld [vmem:[%s6672_s15] sm:$0x3] }
 0x1c5   :  { %v5595_v52 = vperm.slane %v929_v11, 1  ;;  %v5598_v58 = vperm.slane %v929_v11, 0 }
 0x1c6   :  { %v861_v39 = vmax.f32 %v698_v36, 0.0  ;;  %v831_v42 = vadd.f32 %v830_v38, %v766_v37 }
 0x1c8   :  { %v864_v43 = vmax.f32 %v831_v42, 0.0  ;;  %993 = vmatmul.f32.gmra.mxu2 %v861_v39  ;;  %1123 = vmatmul.f32.gmra.mxu0 %v861_v39  ;;  %v1625_v39 = vld [vmem:[#allocation8 + $0xa0] sm:$0xff] }
 0x1c9   :  { %v635_v44 = vpop.f32.mrf.mxu2  ;;  %1674 = vmatpush.msra.mxu2 %v1625_v39 }
 0x1ca   :  { %v636_v45 = vadd.f32 %v635_v44, %v5559_v16  ;;  %1061 = vmatmul.f32.gmra.mxu3 %v864_v43  ;;  %1191 = vmatmul.f32.gmra.mxu1 %v864_v43  ;;  %v700_v46 = vpop.f32.mrf.mxu3 }
 0x1cc   :  { %v701_v47 = vadd.f32 %v700_v46, %v636_v45  ;;  %v1657_v45 = vld [vmem:[#allocation8 + $0x1a0] sm:$0xff] }
 0x1cd   :  { %1739 = vmatpush.msra.mxu3 %v1657_v45 }
 0x1ce   :  { %v863_v48 = vmax.f32 %v701_v47, 0.0 }
 0x1cf   :  { %v1147_v50 = vpop.f32.mrf.mxu1 }
 0x1d0   :  { %996 = vmatmul.f32.gmra.mxu2 %v863_v48  ;;  %1126 = vmatmul.f32.gmra.mxu0 %v863_v48 }
 0x1d5   :  { %v1017_v53 = vpop.f32.mrf.mxu3  ;;  %v1082_v16 = vpop.f32.mrf.mxu0 }
 0x1d6   :  { %v1083_v54 = vadd.f32 %v1082_v16, %v5595_v52 }
 0x1d7   :  { %v1150_v56 = vpop.f32.mrf.mxu1 }
 0x1d8   :  { %v1148_v57 = vadd.f32 %v1147_v50, %v1083_v54 }
 0x1da   :  { %v1196_v60 = vmax.f32 %v1148_v57, 0.0 }
 0x1db   :  { %v952_v61 = vpop.f32.mrf.mxu2 }
 0x1dc   :  { %v953_v62 = vadd.f32 %v952_v61, %v5598_v58  ;;  %1378 = vmatmul.f32.vlgmr.msrb.gmra.mxu3 %v1196_v60  ;;  %1508 = vmatmul.f32.vlgmr.msrb.gmra.mxu1 %v1196_v60 }
 0x1dd   :  { %v1020_v63 = vpop.f32.mrf.mxu3  ;;  %v1085_v0 = vpop.f32.mrf.mxu0 }
 0x1de   :  { %v1018_v1 = vadd.f32 %v1017_v53, %v953_v62  ;;  %v1086_v2 = vadd.f32 %v1085_v0, %v5595_v52  ;;  %v1623_v53 = vld [vmem:[#allocation8 + $0x90] sm:$0xff] }
 0x1df   :  { %v1153_v4 = vpop.f32.mrf.mxu1  ;;  %1675 = vmatpush.msra.mxu2 %v1623_v53 }
 0x1e0   :  { %v1195_v5 = vmax.f32 %v1018_v1, 0.0  ;;  %v1151_v6 = vadd.f32 %v1150_v56, %v1086_v2  ;;  %v1655_v56 = vld [vmem:[#allocation8 + $0x190] sm:$0xff]  ;;  %v1621_v1 = vld [vmem:[#allocation8 + $0x80] sm:$0xff] }
 0x1e1   :  { %1740 = vmatpush.msra.mxu3 %v1655_v56  ;;  %1676 = vmatpush.msra.mxu2 %v1621_v1  ;;  %v1666_v56 = vld [vmem:[#allocation8 + $0x1e8] sm:$0xff] }
 0x1e2   :  { %1313 = vmatmul.f32.vlgmr.msrb.gmra.mxu2 %v1195_v5  ;;  %1443 = vmatmul.f32.vlgmr.msrb.gmra.mxu0 %v1195_v5  ;;  %v1198_v8 = vmax.f32 %v1151_v6, 0.0  ;;  %v1653_v5 = vld [vmem:[#allocation8 + $0x180] sm:$0xff] }
 0x1e3   :  { %v955_v9 = vpop.f32.mrf.mxu2  ;;  %1741 = vmatpush.msra.mxu3 %v1653_v5  ;;  %v1634_v5 = vld [vmem:[#allocation8 + $0xe8] sm:$0xff] }
 0x1e4   :  { %v956_v10 = vadd.f32 %v955_v9, %v5598_v58  ;;  %1381 = vmatmul.f32.gmra.mxu3 %v1198_v8  ;;  %1511 = vmatmul.f32.gmra.mxu1 %v1198_v8 }
 0x1e5   :  { %v1023_v40 = vpop.f32.mrf.mxu3  ;;  %v1088_v12 = vpop.f32.mrf.mxu0 }
 0x1e6   :  { %v1021_v13 = vadd.f32 %v1020_v63, %v956_v10  ;;  %v1089_v41 = vadd.f32 %v1088_v12, %v5595_v52 }
 0x1e7   :  { %v1156_v15 = vpop.f32.mrf.mxu1 }
 0x1e8   :  { %v1154_v17 = vadd.f32 %v1153_v4, %v1089_v41  ;;  %v1197_v18 = vmax.f32 %v1021_v13, 0.0  ;;  %v1619_v13 = vld [vmem:[#allocation8 + $0x70] sm:$0xff] }
 0x1e9   :  { %1677 = vmatpush.msra.mxu2 %v1619_v13 }
 0x1ea   :  { %1316 = vmatmul.f32.gmra.mxu2 %v1197_v18  ;;  %1446 = vmatmul.f32.gmra.mxu0 %v1197_v18  ;;  %v1200_v20 = vmax.f32 %v1154_v17, 0.0  ;;  %v1651_v17 = vld [vmem:[#allocation8 + $0x170] sm:$0xff] }
 0x1eb   :  { %v958_v21 = vpop.f32.mrf.mxu2  ;;  %1742 = vmatpush.msra.mxu3 %v1651_v17 }
 0x1ec   :  { %v959_v22 = vadd.f32 %v958_v21, %v5598_v58  ;;  %1384 = vmatmul.f32.gmra.mxu3 %v1200_v20  ;;  %1514 = vmatmul.f32.gmra.mxu1 %v1200_v20 }
 0x1ed   :  { %v1026_v23 = vpop.f32.mrf.mxu3  ;;  %v1091_v24 = vpop.f32.mrf.mxu0 }
 0x1ee   :  { %v1024_v25 = vadd.f32 %v1023_v40, %v959_v22  ;;  %v1092_v26 = vadd.f32 %v1091_v24, %v5595_v52 }
 0x1ef   :  { %v1159_v28 = vpop.f32.mrf.mxu1 }
 0x1f0   :  { %v1157_v29 = vadd.f32 %v1156_v15, %v1092_v26  ;;  %v1199_v30 = vmax.f32 %v1024_v25, 0.0  ;;  %v1617_v25 = vld [vmem:[#allocation8 + $0x60] sm:$0xff] }
 0x1f1   :  { %1678 = vmatpush.msra.mxu2 %v1617_v25  ;;  %v1626_v25 = vld [vmem:[#allocation8 + $0xa8] sm:$0xff] }
 0x1f2   :  { %1319 = vmatmul.f32.gmra.mxu2 %v1199_v30  ;;  %1449 = vmatmul.f32.gmra.mxu0 %v1199_v30  ;;  %v1202_v32 = vmax.f32 %v1157_v29, 0.0  ;;  %v1649_v29 = vld [vmem:[#allocation8 + $0x160] sm:$0xff] }
 0x1f3   :  { %v961_v33 = vpop.f32.mrf.mxu2  ;;  %1743 = vmatpush.msra.mxu3 %v1649_v29 }
 0x1f4   :  { %v962_v34 = vadd.f32 %v961_v33, %v5598_v58  ;;  %1387 = vmatmul.f32.gmra.mxu3 %v1202_v32  ;;  %1517 = vmatmul.f32.gmra.mxu1 %v1202_v32 }
 0x1f5   :  { %v1029_v35 = vpop.f32.mrf.mxu3  ;;  %v1094_v36 = vpop.f32.mrf.mxu0 }
 0x1f6   :  { %v1027_v37 = vadd.f32 %v1026_v23, %v962_v34  ;;  %v1095_v38 = vadd.f32 %v1094_v36, %v5595_v52 }
 0x1f7   :  { %v1162_v42 = vpop.f32.mrf.mxu1 }
 0x1f8   :  { %v1160_v43 = vadd.f32 %v1159_v28, %v1095_v38  ;;  %v1201_v44 = vmax.f32 %v1027_v37, 0.0  ;;  %v1615_v37 = vld [vmem:[#allocation8 + $0x50] sm:$0xff] }
 0x1f9   :  { %1679 = vmatpush.msra.mxu2 %v1615_v37  ;;  %v1607_v37 = vld [vmem:[#allocation8 + $0x10] sm:$0xff] }
 0x1fa   :  { %1322 = vmatmul.f32.gmra.mxu2 %v1201_v44  ;;  %1452 = vmatmul.f32.gmra.mxu0 %v1201_v44  ;;  %v1204_v46 = vmax.f32 %v1160_v43, 0.0  ;;  %v1647_v43 = vld [vmem:[#allocation8 + $0x150] sm:$0xff] }
 0x1fb   :  { %v964_v47 = vpop.f32.mrf.mxu2  ;;  %1744 = vmatpush.msra.mxu3 %v1647_v43  ;;  %v1646_v43 = vld [vmem:[#allocation8 + $0x148] sm:$0xff] }
 0x1fc   :  { %v965_v48 = vadd.f32 %v964_v47, %v5598_v58  ;;  %1390 = vmatmul.f32.gmra.mxu3 %v1204_v46  ;;  %1520 = vmatmul.f32.gmra.mxu1 %v1204_v46 }
 0x1fd   :  { %v1032_v49 = vpop.f32.mrf.mxu3  ;;  %v1097_v50 = vpop.f32.mrf.mxu0 }
 0x1fe   :  { %v1030_v11 = vadd.f32 %v1029_v35, %v965_v48  ;;  %v1098_v51 = vadd.f32 %v1097_v50, %v5595_v52 }
 0x1ff   :  { %v1165_v16 = vpop.f32.mrf.mxu1 }
 0x200   :  { %v1163_v54 = vadd.f32 %v1162_v42, %v1098_v51  ;;  %v1203_v55 = vmax.f32 %v1030_v11, 0.0  ;;  %v1613_v11 = vld [vmem:[#allocation8 + $0x40] sm:$0xff]  ;;  %v1668_v51 = vld [vmem:[#allocation8 + $0x1f8] sm:$0xff] }
 0x201   :  { %1680 = vmatpush.msra.mxu2 %v1613_v11  ;;  %1864 = vmatpush.msra.mxu1 %v1668_v51  ;;  %v1616_v11 = vld [vmem:[#allocation8 + $0x58] sm:$0xff]  ;;  %v1642_v51 = vld [vmem:[#allocation8 + $0x128] sm:$0xff] }
 0x202   :  { %1325 = vmatmul.f32.gmra.mxu2 %v1203_v55  ;;  %1455 = vmatmul.f32.gmra.mxu0 %v1203_v55  ;;  %v1206_v57 = vmax.f32 %v1163_v54, 0.0  ;;  %v1645_v55 = vld [vmem:[#allocation8 + $0x140] sm:$0xff] }
 0x203   :  { %v967_v59 = vpop.f32.mrf.mxu2  ;;  %1745 = vmatpush.msra.mxu3 %v1645_v55  ;;  %1865 = vmatpush.msra.mxu1 %v1666_v56  ;;  %v1640_v55 = vld [vmem:[#allocation8 + $0x118] sm:$0xff] }
 0x204   :  { %v968_v60 = vadd.f32 %v967_v59, %v5598_v58  ;;  %1393 = vmatmul.f32.gmra.mxu3 %v1206_v57  ;;  %1523 = vmatmul.f32.gmra.mxu1 %v1206_v57  ;;  %v1664_v59 = vld [vmem:[#allocation8 + $0x1d8] sm:$0xff] }
 0x205   :  { %v1035_v61 = vpop.f32.mrf.mxu3  ;;  %v1100_v62 = vpop.f32.mrf.mxu0  ;;  %1866 = vmatpush.msra.mxu1 %v1664_v59  ;;  %v1605_v59 = vld [vmem:[#allocation8] sm:$0xff] }
 0x206   :  { %v1033_v63 = vadd.f32 %v1032_v49, %v968_v60  ;;  %v1101_v0 = vadd.f32 %v1100_v62, %v5595_v52  ;;  %v1636_v62 = vld [vmem:[#allocation8 + $0xf8] sm:$0xff] }
 0x207   :  { %v1168_v2 = vpop.f32.mrf.mxu1  ;;  %1799 = vmatpush.msra.mxu0 %v1636_v62 }
 0x208   :  { %v1166_v3 = vadd.f32 %v1165_v16, %v1101_v0  ;;  %v1205_v4 = vmax.f32 %v1033_v63, 0.0  ;;  %v1662_v63 = vld [vmem:[#allocation8 + $0x1c8] sm:$0xff] }
 0x209   :  { %1867 = vmatpush.msra.mxu1 %v1662_v63  ;;  %1800 = vmatpush.msra.mxu0 %v1634_v5 }
 0x20a   :  { %1328 = vmatmul.f32.gmra.mxu2 %v1205_v4  ;;  %1458 = vmatmul.f32.gmra.mxu0 %v1205_v4  ;;  %v1208_v6 = vmax.f32 %v1166_v3, 0.0  ;;  %v1611_v4 = vld [vmem:[#allocation8 + $0x30] sm:$0xff] }
 0x20b   :  { %v970_v7 = vpop.f32.mrf.mxu2  ;;  %1681 = vmatpush.msra.mxu2 %v1611_v4 }
 0x20c   :  { %v971_v8 = vadd.f32 %v970_v7, %v5598_v58  ;;  %1396 = vmatmul.f32.gmra.mxu3 %v1208_v6  ;;  %1526 = vmatmul.f32.gmra.mxu1 %v1208_v6  ;;  %v1660_v6 = vld [vmem:[#allocation8 + $0x1b8] sm:$0xff] }
 0x20d   :  { %v1038_v9 = vpop.f32.mrf.mxu3  ;;  %v1103_v10 = vpop.f32.mrf.mxu0  ;;  %1868 = vmatpush.msra.mxu1 %v1660_v6  ;;  %v1608_v6 = vld [vmem:[#allocation8 + $0x18] sm:$0xff] }
 0x20e   :  { %v1036_v40 = vadd.f32 %v1035_v61, %v971_v8  ;;  %v1104_v12 = vadd.f32 %v1103_v10, %v5595_v52  ;;  %v1632_v10 = vld [vmem:[#allocation8 + $0xd8] sm:$0xff] }
 0x20f   :  { %v1171_v41 = vpop.f32.mrf.mxu1  ;;  %1801 = vmatpush.msra.mxu0 %v1632_v10 }
 0x210   :  { %v1169_v14 = vadd.f32 %v1168_v2, %v1104_v12  ;;  %v1207_v15 = vmax.f32 %v1036_v40, 0.0  ;;  %v1658_v40 = vld [vmem:[#allocation8 + $0x1a8] sm:$0xff] }
 0x211   :  { %1869 = vmatpush.msra.mxu1 %v1658_v40 }
 0x212   :  { %1331 = vmatmul.f32.gmra.mxu2 %v1207_v15  ;;  %1461 = vmatmul.f32.gmra.mxu0 %v1207_v15  ;;  %v1210_v18 = vmax.f32 %v1169_v14, 0.0  ;;  %v1656_v14 = vld [vmem:[#allocation8 + $0x198] sm:$0xff] }
 0x213   :  { %v973_v19 = vpop.f32.mrf.mxu2  ;;  %1870 = vmatpush.msra.mxu1 %v1656_v14 }
 0x214   :  { %v974_v20 = vadd.f32 %v973_v19, %v5598_v58  ;;  %1399 = vmatmul.f32.gmra.mxu3 %v1210_v18  ;;  %1529 = vmatmul.f32.gmra.mxu1 %v1210_v18  ;;  %v1628_v18 = vld [vmem:[#allocation8 + $0xb8] sm:$0xff]  ;;  %v1654_v19 = vld [vmem:[#allocation8 + $0x188] sm:$0xff] }
 0x215   :  { %v1041_v21 = vpop.f32.mrf.mxu3  ;;  %v1106_v22 = vpop.f32.mrf.mxu0  ;;  %1871 = vmatpush.msra.mxu1 %v1654_v19  ;;  %v1604_v19 = vld [vmem:[#allocation7 + $0x78] sm:$0x7f] }
 0x216   :  { %v1039_v23 = vadd.f32 %v1038_v9, %v974_v20  ;;  %v1107_v24 = vadd.f32 %v1106_v22, %v5595_v52  ;;  %v1643_v9 = vld [vmem:[#allocation8 + $0x130] sm:$0xff] }
 0x217   :  { %v1174_v26 = vpop.f32.mrf.mxu1  ;;  %1746 = vmatpush.msra.mxu3 %v1643_v9 }
 0x218   :  { %v1172_v27 = vadd.f32 %v1171_v41, %v1107_v24  ;;  %v1209_v28 = vmax.f32 %v1039_v23, 0.0  ;;  %v1630_v41 = vld [vmem:[#allocation8 + $0xc8] sm:$0xff]  ;;  %v1609_v23 = vld [vmem:[#allocation8 + $0x20] sm:$0xff] }
 0x219   :  { %1802 = vmatpush.msra.mxu0 %v1630_v41  ;;  %v1641_v24 = vld [vmem:[#allocation8 + $0x120] sm:$0xff]  ;;  %1682 = vmatpush.msra.mxu2 %v1609_v23 }
 0x21a   :  { %1334 = vmatmul.f32.gmra.mxu2 %v1209_v28  ;;  %1464 = vmatmul.f32.gmra.mxu0 %v1209_v28  ;;  %v1212_v30 = vmax.f32 %v1172_v27, 0.0  ;;  %v1652_v27 = vld [vmem:[#allocation8 + $0x178] sm:$0xff] }
 0x21b   :  { %v976_v31 = vpop.f32.mrf.mxu2  ;;  %1803 = vmatpush.msra.mxu0 %v1628_v18  ;;  %1747 = vmatpush.msra.mxu3 %v1641_v24 }
 0x21c   :  { %v977_v32 = vadd.f32 %v976_v31, %v5598_v58  ;;  %1402 = vmatmul.f32.gmra.mxu3 %v1212_v30  ;;  %1532 = vmatmul.f32.gmra.mxu1 %v1212_v30  ;;  %v1624_v30 = vld [vmem:[#allocation8 + $0x98] sm:$0xff]  ;;  %v1650_v31 = vld [vmem:[#allocation8 + $0x168] sm:$0xff] }
 0x21d   :  { %v1044_v33 = vpop.f32.mrf.mxu3  ;;  %v1109_v34 = vpop.f32.mrf.mxu0  ;;  %1804 = vmatpush.msra.mxu0 %v1626_v25  ;;  %1872 = vmatpush.msra.mxu1 %v1652_v27 }
 0x21e   :  { %v1042_v35 = vadd.f32 %v1041_v21, %v977_v32  ;;  %v1110_v36 = vadd.f32 %v1109_v34, %v5595_v52  ;;  %v1648_v34 = vld [vmem:[#allocation8 + $0x158] sm:$0xff]  ;;  %1683 = vmatpush.msra.mxu2 %v1607_v37 }
 0x21f   :  { %v1177_v38 = vpop.f32.mrf.mxu1  ;;  %1805 = vmatpush.msra.mxu0 %v1624_v30  ;;  %1873 = vmatpush.msra.mxu1 %v1650_v31  ;;  %v1602_v31 = vld [vmem:[#allocation7 + $0x68] sm:$0xff] }
 0x220   :  { %v1175_v39 = vadd.f32 %v1174_v26, %v1110_v36  ;;  %v1211_v42 = vmax.f32 %v1042_v35, 0.0  ;;  %1684 = vmatpush.msra.mxu2 %v1605_v59 }
 0x221   :  { %1874 = vmatpush.msra.mxu1 %v1648_v34 }
 0x222   :  { %1337 = vmatmul.f32.gmra.mxu2 %v1211_v42  ;;  %1467 = vmatmul.f32.gmra.mxu0 %v1211_v42  ;;  %v1214_v44 = vmax.f32 %v1175_v39, 0.0  ;;  %v1620_v42 = vld [vmem:[#allocation8 + $0x78] sm:$0xff] }
 0x223   :  { %v979_v45 = vpop.f32.mrf.mxu2  ;;  %1875 = vmatpush.msra.mxu1 %v1646_v43 }
 0x224   :  { %v980_v46 = vadd.f32 %v979_v45, %v5598_v58  ;;  %1405 = vmatmul.f32.gmra.mxu3 %v1214_v44  ;;  %1535 = vmatmul.f32.gmra.mxu1 %v1214_v44 }
 0x225   :  { %v1047_v47 = vpop.f32.mrf.mxu3  ;;  %v1112_v48 = vpop.f32.mrf.mxu0 }
 0x226   :  { %v1045_v49 = vadd.f32 %v1044_v33, %v980_v46  ;;  %v1113_v50 = vadd.f32 %v1112_v48, %v5595_v52  ;;  %v1622_v33 = vld [vmem:[#allocation8 + $0x88] sm:$0xff]  ;;  %v1644_v48 = vld [vmem:[#allocation8 + $0x138] sm:$0xff] }
 0x227   :  { %v1180_v53 = vpop.f32.mrf.mxu1  ;;  %1806 = vmatpush.msra.mxu0 %v1622_v33  ;;  %1876 = vmatpush.msra.mxu1 %v1644_v48  ;;  %v1599_v48 = vld [vmem:[#allocation7 + $0x50] sm:$0xff] }
 0x228   :  { %v1178_v16 = vadd.f32 %v1177_v38, %v1113_v50  ;;  %v1213_v54 = vmax.f32 %v1045_v49, 0.0  ;;  %v1639_v38 = vld [vmem:[#allocation8 + $0x110] sm:$0xff] }
 0x229   :  { %1748 = vmatpush.msra.mxu3 %v1639_v38  ;;  %1807 = vmatpush.msra.mxu0 %v1620_v42 }
 0x22a   :  { %1340 = vmatmul.f32.gmra.mxu2 %v1213_v54  ;;  %1470 = vmatmul.f32.gmra.mxu0 %v1213_v54  ;;  %v1216_v57 = vmax.f32 %v1178_v16, 0.0  ;;  %v1614_v54 = vld [vmem:[#allocation8 + $0x48] sm:$0xff] }
 0x22b   :  { %v982_v60 = vpop.f32.mrf.mxu2  ;;  %1877 = vmatpush.msra.mxu1 %v1642_v51 }
 0x22c   :  { %v983_v61 = vadd.f32 %v982_v60, %v5598_v58  ;;  %1408 = vmatmul.f32.gmra.mxu3 %v1216_v57  ;;  %1538 = vmatmul.f32.gmra.mxu1 %v1216_v57  ;;  %v1637_v60 = vld [vmem:[#allocation8 + $0x100] sm:$0xff] }
 0x22d   :  { %v1050_v0 = vpop.f32.mrf.mxu3  ;;  %v1115_v1 = vpop.f32.mrf.mxu0  ;;  %1878 = vmatpush.msra.mxu1 %v1640_v55  ;;  %1749 = vmatpush.msra.mxu3 %v1637_v60 }
 0x22e   :  { %v1048_v2 = vadd.f32 %v1047_v47, %v983_v61  ;;  %v1116_v3 = vadd.f32 %v1115_v1, %v5595_v52  ;;  %v1618_v47 = vld [vmem:[#allocation8 + $0x68] sm:$0xff]  ;;  %v1612_v61 = vld [vmem:[#allocation8 + $0x38] sm:$0xff] }
 0x22f   :  { %v1183_v12 = vpop.f32.mrf.mxu1  ;;  %1808 = vmatpush.msra.mxu0 %v1618_v47  ;;  %4584 = vmatpush.msk.msrb.mxu3 %vm334_vm0, %v1604_v19 }
 0x230   :  { %v1181_v7 = vadd.f32 %v1180_v53, %v1116_v3  ;;  %v1215_v8 = vmax.f32 %v1048_v2, 0.0  ;;  %v1610_v3 = vld [vmem:[#allocation8 + $0x28] sm:$0xff] }
 0x231   :  { %1809 = vmatpush.msra.mxu0 %v1616_v11  ;;  %2009 = vmatpush.msrb.mxu3 %v1602_v31 }
 0x232   :  { %1343 = vmatmul.f32.gmra.mxu2 %v1215_v8  ;;  %1473 = vmatmul.f32.gmra.mxu0 %v1215_v8  ;;  %v1218_v13 = vmax.f32 %v1181_v7, 0.0  ;;  %v1606_v8 = vld [vmem:[#allocation8 + $0x8] sm:$0xff] }
 0x233   :  { %v985_v15 = vpop.f32.mrf.mxu2  ;;  %1810 = vmatpush.msra.mxu0 %v1614_v54  ;;  %v1600_v54 = vld [vmem:[#allocation7 + $0x58] sm:$0xff] }
 0x234   :  { %v986_v17 = vadd.f32 %v985_v15, %v5598_v58  ;;  %1411 = vmatmul.f32.gmra.mxu3 %v1218_v13  ;;  %1541 = vmatmul.f32.gmra.mxu1 %v1218_v13 }
 0x235   :  { %v1118_v20 = vpop.f32.mrf.mxu0  ;;  %v1053_v26 = vpop.f32.mrf.mxu3  ;;  %1811 = vmatpush.msra.mxu0 %v1612_v61  ;;  %2010 = vmatpush.msrb.mxu3 %v1600_v54 }
 0x236   :  { %v1051_v21 = vadd.f32 %v1050_v0, %v986_v17  ;;  %v1119_v22 = vadd.f32 %v1118_v20, %v5595_v52  ;;  %v1638_v0 = vld [vmem:[#allocation8 + $0x108] sm:$0xff] }
 0x237   :  { %v1186_v35 = vpop.f32.mrf.mxu1  ;;  %1879 = vmatpush.msra.mxu1 %v1638_v0  ;;  %1812 = vmatpush.msra.mxu0 %v1610_v3 }
 0x238   :  { %v1184_v28 = vadd.f32 %v1183_v12, %v1119_v22  ;;  %v1217_v29 = vmax.f32 %v1051_v21, 0.0  ;;  %v1603_v12 = vld [vmem:[#allocation7 + $0x70] sm:$0x7f] }
 0x239   :  { %1813 = vmatpush.msra.mxu0 %v1608_v6  ;;  %4567 = vmatpush.msk.msrb.mxu2 %vm334_vm0, %v1603_v12  ;;  %v1597_v6 = vld [vmem:[#allocation7 + $0x40] sm:$0xff] }
 0x23a   :  { %1346 = vmatmul.f32.gmra.mxu2 %v1217_v29  ;;  %1476 = vmatmul.f32.gmra.mxu0 %v1217_v29  ;;  %v1220_v32 = vmax.f32 %v1184_v28, 0.0  ;;  %v1601_v28 = vld [vmem:[#allocation7 + $0x60] sm:$0xff] }
 0x23b   :  { %v988_v36 = vpop.f32.mrf.mxu2  ;;  %1814 = vmatpush.msra.mxu0 %v1606_v8  ;;  %1944 = vmatpush.msrb.mxu2 %v1601_v28  ;;  %v1595_v28 = vld [vmem:[#allocation7 + $0x30] sm:$0xff] }
 0x23c   :  { %v989_v39 = vadd.f32 %v988_v36, %v5598_v58  ;;  %1414 = vmatmul.f32.gmra.mxu3 %v1220_v32  ;;  %1544 = vmatmul.f32.gmra.mxu1 %v1220_v32 }
 0x23d   :  { %v1121_v44 = vpop.f32.mrf.mxu0  ;;  %v1056_v53 = vpop.f32.mrf.mxu3  ;;  %1945 = vmatpush.msrb.mxu2 %v1599_v48 }
 0x23e   :  { %v1054_v45 = vadd.f32 %v1053_v26, %v989_v39  ;;  %v1122_v46 = vadd.f32 %v1121_v44, %v5595_v52 }
 0x23f   :  { %v1189_v62 = vpop.f32.mrf.mxu1  ;;  %1946 = vmatpush.msrb.mxu2 %v1597_v6 }
 0x240   :  { %v1187_v49 = vadd.f32 %v1186_v35, %v1122_v46  ;;  %v1219_v50 = vmax.f32 %v1054_v45, 0.0 }
 0x241   :  { %1947 = vmatpush.msrb.mxu2 %v1595_v28 }
 0x242   :  { %1349 = vmatmul.f32.gmra.mxu2 %v1219_v50  ;;  %1479 = vmatmul.f32.gmra.mxu0 %v1219_v50  ;;  %v1222_v16 = vmax.f32 %v1187_v49, 0.0 }
 0x243   :  { %v991_v56 = vpop.f32.mrf.mxu2 }
 0x244   :  { %v992_v57 = vadd.f32 %v991_v56, %v5598_v58  ;;  %1417 = vmatmul.f32.gmra.mxu3 %v1222_v16  ;;  %1547 = vmatmul.f32.gmra.mxu1 %v1222_v16 }
 0x245   :  { %v1124_v63 = vpop.f32.mrf.mxu0  ;;  %v1059_v9 = vpop.f32.mrf.mxu3 }
 0x246   :  { %v1057_v1 = vadd.f32 %v1056_v53, %v992_v57  ;;  %v1125_v2 = vadd.f32 %v1124_v63, %v5595_v52 }
 0x247   :  { %v1192_v15 = vpop.f32.mrf.mxu1 }
 0x248   :  { %v1190_v4 = vadd.f32 %v1189_v62, %v1125_v2  ;;  %v1221_v5 = vmax.f32 %v1057_v1, 0.0 }
 0x24a   :  { %1352 = vmatmul.f32.gmra.mxu2 %v1221_v5  ;;  %1482 = vmatmul.f32.gmra.mxu0 %v1221_v5  ;;  %v1224_v7 = vmax.f32 %v1190_v4, 0.0 }
 0x24b   :  { %v994_v10 = vpop.f32.mrf.mxu2 }
 0x24c   :  { %v995_v40 = vadd.f32 %v994_v10, %v5598_v58  ;;  %1420 = vmatmul.f32.gmra.mxu3 %v1224_v7  ;;  %1550 = vmatmul.f32.gmra.mxu1 %v1224_v7 }
 0x24d   :  { %v1127_v13 = vpop.f32.mrf.mxu0  ;;  %v1062_v23 = vpop.f32.mrf.mxu3 }
 0x24e   :  { %v1060_v41 = vadd.f32 %v1059_v9, %v995_v40  ;;  %v1128_v14 = vadd.f32 %v1127_v13, %v5595_v52  ;;  %v1291_v52 = vld [vmem:[%s6673_s8] sm:$0x3]  ;;  %v1598_v13 = vld [vmem:[#allocation7 + $0x48] sm:$0xff] }
 0x24f   :  { %v5636_v27 = vperm.slane %v1291_v52, 1  ;;  %v5639_v34 = vperm.slane %v1291_v52, 0  ;;  %2011 = vmatpush.msrb.mxu3 %v1598_v13 }
 0x250   :  { %v1193_v17 = vadd.f32 %v1192_v15, %v1128_v14  ;;  %v1223_v18 = vmax.f32 %v1060_v41, 0.0 }
 0x252   :  { %1355 = vmatmul.f32.gmra.mxu2 %v1223_v18  ;;  %1485 = vmatmul.f32.gmra.mxu0 %v1223_v18  ;;  %v1226_v20 = vmax.f32 %v1193_v17, 0.0 }
 0x253   :  { %v997_v21 = vpop.f32.mrf.mxu2 }
 0x254   :  { %v998_v22 = vadd.f32 %v997_v21, %v5598_v58  ;;  %1423 = vmatmul.f32.gmra.mxu3 %v1226_v20  ;;  %1553 = vmatmul.f32.gmra.mxu1 %v1226_v20 }
 0x256   :  { %v1063_v24 = vadd.f32 %v1062_v23, %v998_v22 }
 0x258   :  { %v1225_v25 = vmax.f32 %v1063_v24, 0.0 }
 0x259   :  { %v1509_v26 = vpop.f32.mrf.mxu1 }
 0x25a   :  { %1358 = vmatmul.f32.gmra.mxu2 %v1225_v25  ;;  %1488 = vmatmul.f32.gmra.mxu0 %v1225_v25 }
 0x25f   :  { %v1379_v29 = vpop.f32.mrf.mxu3  ;;  %v1444_v30 = vpop.f32.mrf.mxu0 }
 0x260   :  { %v1445_v58 = vadd.f32 %v1444_v30, %v5636_v27 }
 0x261   :  { %v1512_v32 = vpop.f32.mrf.mxu1 }
 0x262   :  { %v1510_v33 = vadd.f32 %v1509_v26, %v1445_v58 }
 0x264   :  { %v1558_v35 = vmax.f32 %v1510_v33, 0.0 }
 0x265   :  { %v1314_v36 = vpop.f32.mrf.mxu2 }
 0x266   :  { %v1315_v37 = vadd.f32 %v1314_v36, %v5639_v34  ;;  %1750 = vmatmul.f32.vlgmr.msra.gmra.mxu3 %v1558_v35  ;;  %1880 = vmatmul.f32.vlgmr.msra.gmra.mxu1 %v1558_v35  ;;  %v1596_v35 = vld [vmem:[#allocation7 + $0x38] sm:$0xff] }
 0x267   :  { %v1382_v38 = vpop.f32.mrf.mxu3  ;;  %v1447_v39 = vpop.f32.mrf.mxu0  ;;  %2012 = vmatpush.msrb.mxu3 %v1596_v35 }
 0x268   :  { %v1380_v42 = vadd.f32 %v1379_v29, %v1315_v37  ;;  %v1448_v43 = vadd.f32 %v1447_v39, %v5636_v27 }
 0x269   :  { %v1515_v44 = vpop.f32.mrf.mxu1 }
 0x26a   :  { %v1557_v45 = vmax.f32 %v1380_v42, 0.0  ;;  %v1513_v46 = vadd.f32 %v1512_v32, %v1448_v43 }
 0x26c   :  { %1685 = vmatmul.f32.vlgmr.msra.gmra.mxu2 %v1557_v45  ;;  %1815 = vmatmul.f32.vlgmr.msra.gmra.mxu0 %v1557_v45  ;;  %v1560_v47 = vmax.f32 %v1513_v46, 0.0 }
 0x26d   :  { %v1317_v49 = vpop.f32.mrf.mxu2 }
 0x26e   :  { %v1318_v50 = vadd.f32 %v1317_v49, %v5639_v34  ;;  %1753 = vmatmul.f32.gmra.mxu3 %v1560_v47  ;;  %1883 = vmatmul.f32.gmra.mxu1 %v1560_v47 }
 0x26f   :  { %v1385_v11 = vpop.f32.mrf.mxu3  ;;  %v1450_v51 = vpop.f32.mrf.mxu0 }
 0x270   :  { %v1383_v53 = vadd.f32 %v1382_v38, %v1318_v50  ;;  %v1451_v16 = vadd.f32 %v1450_v51, %v5636_v27  ;;  %v1593_v51 = vld [vmem:[#allocation7 + $0x20] sm:$0xff] }
 0x271   :  { %v1518_v55 = vpop.f32.mrf.mxu1  ;;  %1948 = vmatpush.msrb.mxu2 %v1593_v51 }
 0x272   :  { %v1516_v56 = vadd.f32 %v1515_v44, %v1451_v16  ;;  %v1559_v57 = vmax.f32 %v1383_v53, 0.0 }
 0x274   :  { %1688 = vmatmul.f32.gmra.mxu2 %v1559_v57  ;;  %1818 = vmatmul.f32.gmra.mxu0 %v1559_v57  ;;  %v1562_v59 = vmax.f32 %v1516_v56, 0.0 }
 0x275   :  { %v1320_v60 = vpop.f32.mrf.mxu2 }
 0x276   :  { %v1321_v61 = vadd.f32 %v1320_v60, %v5639_v34  ;;  %1756 = vmatmul.f32.gmra.mxu3 %v1562_v59  ;;  %1886 = vmatmul.f32.gmra.mxu1 %v1562_v59  ;;  %v1594_v59 = vld [vmem:[#allocation7 + $0x28] sm:$0xff] }
 0x277   :  { %v1388_v62 = vpop.f32.mrf.mxu3  ;;  %v1453_v63 = vpop.f32.mrf.mxu0  ;;  %2013 = vmatpush.msrb.mxu3 %v1594_v59 }
 0x278   :  { %v1386_v0 = vadd.f32 %v1385_v11, %v1321_v61  ;;  %v1454_v1 = vadd.f32 %v1453_v63, %v5636_v27 }
 0x279   :  { %v1521_v2 = vpop.f32.mrf.mxu1 }
 0x27a   :  { %v1519_v3 = vadd.f32 %v1518_v55, %v1454_v1  ;;  %v1561_v4 = vmax.f32 %v1386_v0, 0.0 }
 0x27c   :  { %1691 = vmatmul.f32.gmra.mxu2 %v1561_v4  ;;  %1821 = vmatmul.f32.gmra.mxu0 %v1561_v4  ;;  %v1564_v5 = vmax.f32 %v1519_v3, 0.0 }
 0x27d   :  { %v1323_v7 = vpop.f32.mrf.mxu2 }
 0x27e   :  { %v1324_v8 = vadd.f32 %v1323_v7, %v5639_v34  ;;  %1759 = vmatmul.f32.gmra.mxu3 %v1564_v5  ;;  %1889 = vmatmul.f32.gmra.mxu1 %v1564_v5 }
 0x27f   :  { %v1391_v9 = vpop.f32.mrf.mxu3  ;;  %v1456_v10 = vpop.f32.mrf.mxu0 }
 0x280   :  { %v1389_v40 = vadd.f32 %v1388_v62, %v1324_v8  ;;  %v1457_v12 = vadd.f32 %v1456_v10, %v5636_v27  ;;  %v1591_v10 = vld [vmem:[#allocation7 + $0x10] sm:$0xff] }
 0x281   :  { %v1524_v41 = vpop.f32.mrf.mxu1  ;;  %1949 = vmatpush.msrb.mxu2 %v1591_v10 }
 0x282   :  { %v1522_v14 = vadd.f32 %v1521_v2, %v1457_v12  ;;  %v1563_v15 = vmax.f32 %v1389_v40, 0.0 }
 0x284   :  { %1694 = vmatmul.f32.gmra.mxu2 %v1563_v15  ;;  %1824 = vmatmul.f32.gmra.mxu0 %v1563_v15  ;;  %v1566_v17 = vmax.f32 %v1522_v14, 0.0 }
 0x285   :  { %v1326_v18 = vpop.f32.mrf.mxu2 }
 0x286   :  { %v1327_v19 = vadd.f32 %v1326_v18, %v5639_v34  ;;  %1762 = vmatmul.f32.gmra.mxu3 %v1566_v17  ;;  %1892 = vmatmul.f32.gmra.mxu1 %v1566_v17  ;;  %v1592_v17 = vld [vmem:[#allocation7 + $0x18] sm:$0xff] }
 0x287   :  { %v1394_v20 = vpop.f32.mrf.mxu3  ;;  %v1459_v21 = vpop.f32.mrf.mxu0  ;;  %2014 = vmatpush.msrb.mxu3 %v1592_v17 }
 0x288   :  { %v1392_v22 = vadd.f32 %v1391_v9, %v1327_v19  ;;  %v1460_v23 = vadd.f32 %v1459_v21, %v5636_v27 }
 0x289   :  { %v1527_v24 = vpop.f32.mrf.mxu1 }
 0x28a   :  { %v1525_v25 = vadd.f32 %v1524_v41, %v1460_v23  ;;  %v1565_v26 = vmax.f32 %v1392_v22, 0.0 }
 0x28c   :  { %1697 = vmatmul.f32.gmra.mxu2 %v1565_v26  ;;  %1827 = vmatmul.f32.gmra.mxu0 %v1565_v26  ;;  %v1568_v52 = vmax.f32 %v1525_v25, 0.0 }
 0x28d   :  { %v1329_v29 = vpop.f32.mrf.mxu2 }
 0x28e   :  { %v1330_v30 = vadd.f32 %v1329_v29, %v5639_v34  ;;  %1765 = vmatmul.f32.gmra.mxu3 %v1568_v52  ;;  %1895 = vmatmul.f32.gmra.mxu1 %v1568_v52 }
 0x28f   :  { %v1397_v58 = vpop.f32.mrf.mxu3  ;;  %v1462_v31 = vpop.f32.mrf.mxu0 }
 0x290   :  { %v1395_v32 = vadd.f32 %v1394_v20, %v1330_v30  ;;  %v1463_v33 = vadd.f32 %v1462_v31, %v5636_v27  ;;  %v1589_v31 = vld [vmem:[#allocation7] sm:$0xff] }
 0x291   :  { %v1530_v36 = vpop.f32.mrf.mxu1  ;;  %1950 = vmatpush.msrb.mxu2 %v1589_v31 }
 0x292   :  { %v1528_v37 = vadd.f32 %v1527_v24, %v1463_v33  ;;  %v1567_v38 = vmax.f32 %v1395_v32, 0.0 }
 0x294   :  { %1700 = vmatmul.f32.gmra.mxu2 %v1567_v38  ;;  %1830 = vmatmul.f32.gmra.mxu0 %v1567_v38  ;;  %v1570_v39 = vmax.f32 %v1528_v37, 0.0  ;;  %v1590_v38 = vld [vmem:[#allocation7 + $0x8] sm:$0xff] }
 0x295   :  { %v1332_v42 = vpop.f32.mrf.mxu2  ;;  %2015 = vmatpush.msrb.mxu3 %v1590_v38 }
 0x296   :  { %v1333_v43 = vadd.f32 %v1332_v42, %v5639_v34  ;;  %1768 = vmatmul.f32.gmra.mxu3 %v1570_v39  ;;  %1898 = vmatmul.f32.gmra.mxu1 %v1570_v39 }
 0x297   :  { %v1400_v44 = vpop.f32.mrf.mxu3  ;;  %v1465_v45 = vpop.f32.mrf.mxu0 }
 0x298   :  { %v1398_v46 = vadd.f32 %v1397_v58, %v1333_v43  ;;  %v1466_v47 = vadd.f32 %v1465_v45, %v5636_v27 }
 0x299   :  { %v1533_v48 = vpop.f32.mrf.mxu1 }
 0x29a   :  { %v1531_v49 = vadd.f32 %v1530_v36, %v1466_v47  ;;  %v1569_v50 = vmax.f32 %v1398_v46, 0.0 }
 0x29c   :  { %1703 = vmatmul.f32.gmra.mxu2 %v1569_v50  ;;  %1833 = vmatmul.f32.gmra.mxu0 %v1569_v50  ;;  %v1572_v11 = vmax.f32 %v1531_v49, 0.0 }
 0x29d   :  { %v1335_v53 = vpop.f32.mrf.mxu2 }
 0x29e   :  { %v1336_v16 = vadd.f32 %v1335_v53, %v5639_v34  ;;  %1771 = vmatmul.f32.gmra.mxu3 %v1572_v11  ;;  %1901 = vmatmul.f32.gmra.mxu1 %v1572_v11 }
 0x29f   :  { %v1403_v54 = vpop.f32.mrf.mxu3  ;;  %v1468_v55 = vpop.f32.mrf.mxu0 }
 0x2a0   :  { %v1401_v56 = vadd.f32 %v1400_v44, %v1336_v16  ;;  %v1469_v57 = vadd.f32 %v1468_v55, %v5636_v27 }
 0x2a1   :  { %v1536_v60 = vpop.f32.mrf.mxu1 }
 0x2a2   :  { %v1534_v61 = vadd.f32 %v1533_v48, %v1469_v57  ;;  %v1571_v62 = vmax.f32 %v1401_v56, 0.0 }
 0x2a4   :  { %1706 = vmatmul.f32.gmra.mxu2 %v1571_v62  ;;  %1836 = vmatmul.f32.gmra.mxu0 %v1571_v62  ;;  %v1574_v63 = vmax.f32 %v1534_v61, 0.0 }
 0x2a5   :  { %v1338_v0 = vpop.f32.mrf.mxu2 }
 0x2a6   :  { %v1339_v1 = vadd.f32 %v1338_v0, %v5639_v34  ;;  %1774 = vmatmul.f32.gmra.mxu3 %v1574_v63  ;;  %1904 = vmatmul.f32.gmra.mxu1 %v1574_v63 }
 0x2a7   :  { %v1406_v2 = vpop.f32.mrf.mxu3  ;;  %v1471_v3 = vpop.f32.mrf.mxu0 }
 0x2a8   :  { %v1404_v4 = vadd.f32 %v1403_v54, %v1339_v1  ;;  %v1472_v5 = vadd.f32 %v1471_v3, %v5636_v27  ;;  %v2166_v3 = vld [vmem:[#allocation10 + $0xf8] sm:$0xff] }
 0x2a9   :  { %v1539_v6 = vpop.f32.mrf.mxu1  ;;  %2335 = vmatpush.msra.mxu2 %v2166_v3  ;;  %v2151_v3 = vld [vmem:[#allocation10 + $0x80] sm:$0xff] }
 0x2aa   :  { %v1537_v7 = vadd.f32 %v1536_v60, %v1472_v5  ;;  %v1573_v8 = vmax.f32 %v1404_v4, 0.0 }
 0x2ac   :  { %1709 = vmatmul.f32.gmra.mxu2 %v1573_v8  ;;  %1839 = vmatmul.f32.gmra.mxu0 %v1573_v8  ;;  %v1576_v9 = vmax.f32 %v1537_v7, 0.0  ;;  %v2198_v7 = vld [vmem:[#allocation10 + $0x1f8] sm:$0xff] }
 0x2ad   :  { %v1341_v40 = vpop.f32.mrf.mxu2  ;;  %2400 = vmatpush.msra.mxu3 %v2198_v7 }
 0x2ae   :  { %v1342_v12 = vadd.f32 %v1341_v40, %v5639_v34  ;;  %1777 = vmatmul.f32.gmra.mxu3 %v1576_v9  ;;  %1907 = vmatmul.f32.gmra.mxu1 %v1576_v9  ;;  %v2165_v40 = vld [vmem:[#allocation10 + $0xf0] sm:$0xff] }
 0x2af   :  { %v1409_v13 = vpop.f32.mrf.mxu3  ;;  %v1474_v41 = vpop.f32.mrf.mxu0  ;;  %2205 = vmatpush.msrb.mxu0 %v2165_v40  ;;  %v2149_v40 = vld [vmem:[#allocation10 + $0x70] sm:$0xff] }
 0x2b0   :  { %v1407_v14 = vadd.f32 %v1406_v2, %v1342_v12  ;;  %v1475_v15 = vadd.f32 %v1474_v41, %v5636_v27 }
 0x2b1   :  { %v1542_v18 = vpop.f32.mrf.mxu1 }
 0x2b2   :  { %v1540_v19 = vadd.f32 %v1539_v6, %v1475_v15  ;;  %v1575_v20 = vmax.f32 %v1407_v14, 0.0  ;;  %v2164_v15 = vld [vmem:[#allocation10 + $0xe8] sm:$0xff] }
 0x2b3   :  { %2336 = vmatpush.msra.mxu2 %v2164_v15 }
 0x2b4   :  { %1712 = vmatmul.f32.gmra.mxu2 %v1575_v20  ;;  %1842 = vmatmul.f32.gmra.mxu0 %v1575_v20  ;;  %v1578_v21 = vmax.f32 %v1540_v19, 0.0  ;;  %v2163_v20 = vld [vmem:[#allocation10 + $0xe0] sm:$0xff] }
 0x2b5   :  { %v1344_v22 = vpop.f32.mrf.mxu2  ;;  %2206 = vmatpush.msrb.mxu0 %v2163_v20  ;;  %v4739_v20 = vld [vmem:[%s6668_s4 + $0x40] sm:$0xff] }
 0x2b6   :  { %v1345_v23 = vadd.f32 %v1344_v22, %v5639_v34  ;;  %1780 = vmatmul.f32.gmra.mxu3 %v1578_v21  ;;  %1910 = vmatmul.f32.gmra.mxu1 %v1578_v21  ;;  %v2195_v21 = vld [vmem:[#allocation10 + $0x1e0] sm:$0xff] }
 0x2b7   :  { %v1412_v24 = vpop.f32.mrf.mxu3  ;;  %v1477_v25 = vpop.f32.mrf.mxu0  ;;  %v4731_v22 = vld [vmem:[%s6668_s4] sm:$0xff] }
 0x2b8   :  { %v1410_v26 = vadd.f32 %v1409_v13, %v1345_v23  ;;  %v1478_v52 = vadd.f32 %v1477_v25, %v5636_v27  ;;  %v2197_v13 = vld [vmem:[#allocation10 + $0x1f0] sm:$0xff]  ;;  %v2194_v23 = vld [vmem:[#allocation10 + $0x1d8] sm:$0xff] }
 0x2b9   :  { %v1545_v30 = vpop.f32.mrf.mxu1  ;;  %2270 = vmatpush.msrb.mxu1 %v2197_v13  ;;  %v2161_v25 = vld [vmem:[#allocation10 + $0xd0] sm:$0xff] }
 0x2ba   :  { %v1543_v28 = vadd.f32 %v1542_v18, %v1478_v52  ;;  %v1577_v29 = vmax.f32 %v1410_v26, 0.0  ;;  %v2196_v18 = vld [vmem:[#allocation10 + $0x1e8] sm:$0xff]  ;;  %2207 = vmatpush.msrb.mxu0 %v2161_v25  ;;  %v2193_v26 = vld [vmem:[#allocation10 + $0x1d0] sm:$0xff] }
 0x2bb   :  { %2401 = vmatpush.msra.mxu3 %v2196_v18  ;;  %2271 = vmatpush.msrb.mxu1 %v2195_v21  ;;  %v4732_v52 = vld [vmem:[%s6668_s4 + $0x8] sm:$0xff]  ;;  %v4738_v13 = vld [vmem:[%s6668_s4 + $0x38] sm:$0xff] }
 0x2bc   :  { %1715 = vmatmul.f32.gmra.mxu2 %v1577_v29  ;;  %1845 = vmatmul.f32.gmra.mxu0 %v1577_v29  ;;  %v1580_v58 = vmax.f32 %v1543_v28, 0.0  ;;  %v2160_v28 = vld [vmem:[#allocation10 + $0xc8] sm:$0xff]  ;;  %v2147_v18 = vld [vmem:[#allocation10 + $0x60] sm:$0xff]  ;;  %v2146_v21 = vld [vmem:[#allocation10 + $0x58] sm:$0xff] }
 0x2bd   :  { %v1347_v32 = vpop.f32.mrf.mxu2  ;;  %2402 = vmatpush.msra.mxu3 %v2194_v23  ;;  %2272 = vmatpush.msrb.mxu1 %v2193_v26  ;;  %v2178_v23 = vld [vmem:[#allocation10 + $0x158] sm:$0xff]  ;;  %v2145_v25 = vld [vmem:[#allocation10 + $0x50] sm:$0xff] }
 0x2be   :  { %v1348_v33 = vadd.f32 %v1347_v32, %v5639_v34  ;;  %1783 = vmatmul.f32.gmra.mxu3 %v1580_v58  ;;  %1913 = vmatmul.f32.gmra.mxu1 %v1580_v58  ;;  %v2192_v58 = vld [vmem:[#allocation10 + $0x1c8] sm:$0xff]  ;;  %v2159_v32 = vld [vmem:[#allocation10 + $0xc0] sm:$0xff]  ;;  %v2177_v26 = vld [vmem:[#allocation10 + $0x150] sm:$0xff] }
 0x2bf   :  { %v1480_v35 = vpop.f32.mrf.mxu0  ;;  %v1415_v39 = vpop.f32.mrf.mxu3  ;;  %2403 = vmatpush.msra.mxu3 %v2192_v58  ;;  %2208 = vmatpush.msrb.mxu0 %v2159_v32  ;;  %v2176_v58 = vld [vmem:[#allocation10 + $0x148] sm:$0xff]  ;;  %v2143_v32 = vld [vmem:[#allocation10 + $0x40] sm:$0xff] }
 0x2c0   :  { %v1413_v36 = vadd.f32 %v1412_v24, %v1348_v33  ;;  %v1481_v37 = vadd.f32 %v1480_v35, %v5636_v27  ;;  %v2191_v33 = vld [vmem:[#allocation10 + $0x1c0] sm:$0xff]  ;;  %v4733_v35 = vld [vmem:[%s6668_s4 + $0x10] sm:$0xff] }
 0x2c1   :  { %v1548_v45 = vpop.f32.mrf.mxu1  ;;  %2273 = vmatpush.msrb.mxu1 %v2191_v33  ;;  %v2175_v33 = vld [vmem:[#allocation10 + $0x140] sm:$0xff] }
 0x2c2   :  { %v1546_v42 = vadd.f32 %v1545_v30, %v1481_v37  ;;  %v1579_v43 = vmax.f32 %v1413_v36, 0.0  ;;  %v2158_v36 = vld [vmem:[#allocation10 + $0xb8] sm:$0xff] }
 0x2c4   :  { %1718 = vmatmul.f32.gmra.mxu2 %v1579_v43  ;;  %1848 = vmatmul.f32.gmra.mxu0 %v1579_v43  ;;  %v1582_v44 = vmax.f32 %v1546_v42, 0.0  ;;  %v2157_v43 = vld [vmem:[#allocation10 + $0xb0] sm:$0xff] }
 0x2c5   :  { %v1350_v46 = vpop.f32.mrf.mxu2  ;;  %2209 = vmatpush.msrb.mxu0 %v2157_v43  ;;  %v2141_v43 = vld [vmem:[#allocation10 + $0x30] sm:$0xff] }
 0x2c6   :  { %v1351_v47 = vadd.f32 %v1350_v46, %v5639_v34  ;;  %1786 = vmatmul.f32.gmra.mxu3 %v1582_v44  ;;  %1916 = vmatmul.f32.gmra.mxu1 %v1582_v44  ;;  %v2189_v44 = vld [vmem:[#allocation10 + $0x1b0] sm:$0xff]  ;;  %v2156_v46 = vld [vmem:[#allocation10 + $0xa8] sm:$0xff] }
 0x2c7   :  { %v1483_v48 = vpop.f32.mrf.mxu0  ;;  %v1418_v53 = vpop.f32.mrf.mxu3  ;;  %2274 = vmatpush.msrb.mxu1 %v2189_v44  ;;  %v2173_v44 = vld [vmem:[#allocation10 + $0x130] sm:$0xff] }
 0x2c8   :  { %v1416_v49 = vadd.f32 %v1415_v39, %v1351_v47  ;;  %v1484_v50 = vadd.f32 %v1483_v48, %v5636_v27  ;;  %v2190_v39 = vld [vmem:[#allocation10 + $0x1b8] sm:$0xff] }
 0x2c9   :  { %v1551_v56 = vpop.f32.mrf.mxu1  ;;  %2404 = vmatpush.msra.mxu3 %v2190_v39  ;;  %v2174_v39 = vld [vmem:[#allocation10 + $0x138] sm:$0xff] }
 0x2ca   :  { %v1549_v11 = vadd.f32 %v1548_v45, %v1484_v50  ;;  %v1581_v51 = vmax.f32 %v1416_v49, 0.0  ;;  %v4734_v45 = vld [vmem:[%s6668_s4 + $0x18] sm:$0xff]  ;;  %v2188_v49 = vld [vmem:[#allocation10 + $0x1a8] sm:$0xff] }
 0x2cb   :  { %2405 = vmatpush.msra.mxu3 %v2188_v49  ;;  %v2172_v49 = vld [vmem:[#allocation10 + $0x128] sm:$0xff] }
 0x2cc   :  { %1721 = vmatmul.f32.gmra.mxu2 %v1581_v51  ;;  %1851 = vmatmul.f32.gmra.mxu0 %v1581_v51  ;;  %v1584_v16 = vmax.f32 %v1549_v11, 0.0  ;;  %v2155_v11 = vld [vmem:[#allocation10 + $0xa0] sm:$0xff] }
 0x2cd   :  { %v1353_v54 = vpop.f32.mrf.mxu2  ;;  %2210 = vmatpush.msrb.mxu0 %v2155_v11  ;;  %v2187_v51 = vld [vmem:[#allocation10 + $0x1a0] sm:$0xff] }
 0x2ce   :  { %v1354_v55 = vadd.f32 %v1353_v54, %v5639_v34  ;;  %1789 = vmatmul.f32.gmra.mxu3 %v1584_v16  ;;  %1919 = vmatmul.f32.gmra.mxu1 %v1584_v16  ;;  %v2154_v16 = vld [vmem:[#allocation10 + $0x98] sm:$0xff]  ;;  %v2139_v11 = vld [vmem:[#allocation10 + $0x20] sm:$0xff] }
 0x2cf   :  { %v1486_v57 = vpop.f32.mrf.mxu0  ;;  %v1421_v0 = vpop.f32.mrf.mxu3  ;;  %2275 = vmatpush.msrb.mxu1 %v2187_v51  ;;  %v2171_v51 = vld [vmem:[#allocation10 + $0x120] sm:$0xff] }
 0x2d0   :  { %v1419_v59 = vadd.f32 %v1418_v53, %v1354_v55  ;;  %v1487_v60 = vadd.f32 %v1486_v57, %v5636_v27  ;;  %v4735_v53 = vld [vmem:[%s6668_s4 + $0x20] sm:$0xff] }
 0x2d1   :  { %v1554_v8 = vpop.f32.mrf.mxu1 }
 0x2d2   :  { %v1552_v61 = vadd.f32 %v1551_v56, %v1487_v60  ;;  %v1583_v62 = vmax.f32 %v1419_v59, 0.0  ;;  %v2186_v56 = vld [vmem:[#allocation10 + $0x198] sm:$0xff]  ;;  %v2153_v59 = vld [vmem:[#allocation10 + $0x90] sm:$0xff] }
 0x2d3   :  { %2406 = vmatpush.msra.mxu3 %v2186_v56  ;;  %2211 = vmatpush.msrb.mxu0 %v2153_v59  ;;  %v2185_v60 = vld [vmem:[#allocation10 + $0x190] sm:$0xff] }
 0x2d4   :  { %1724 = vmatmul.f32.gmra.mxu2 %v1583_v62  ;;  %1854 = vmatmul.f32.gmra.mxu0 %v1583_v62  ;;  %v1586_v63 = vmax.f32 %v1552_v61, 0.0  ;;  %v4736_v61 = vld [vmem:[%s6668_s4 + $0x28] sm:$0xff] }
 0x2d5   :  { %v1356_v1 = vpop.f32.mrf.mxu2  ;;  %2276 = vmatpush.msrb.mxu1 %v2185_v60  ;;  %v2152_v62 = vld [vmem:[#allocation10 + $0x88] sm:$0xff]  ;;  %2212 = vmatpush.msrb.mxu0 %v2151_v3 }
 0x2d6   :  { %v1357_v2 = vadd.f32 %v1356_v1, %v5639_v34  ;;  %1792 = vmatmul.f32.gmra.mxu3 %v1586_v63  ;;  %1922 = vmatmul.f32.gmra.mxu1 %v1586_v63  ;;  %v2184_v1 = vld [vmem:[#allocation10 + $0x188] sm:$0xff] }
 0x2d7   :  { %v1489_v4 = vpop.f32.mrf.mxu0  ;;  %v1424_v17 = vpop.f32.mrf.mxu3  ;;  %2407 = vmatpush.msra.mxu3 %v2184_v1  ;;  %2213 = vmatpush.msrb.mxu0 %v2149_v40  ;;  %v2136_v1 = vld [vmem:[#allocation10 + $0x8] sm:$0xff] }
 0x2d8   :  { %v1422_v5 = vadd.f32 %v1421_v0, %v1357_v2  ;;  %v1490_v6 = vadd.f32 %v1489_v4, %v5636_v27  ;;  %v2183_v4 = vld [vmem:[#allocation10 + $0x180] sm:$0xff] }
 0x2d9   :  { %2277 = vmatpush.msrb.mxu1 %v2183_v4  ;;  %2214 = vmatpush.msrb.mxu0 %v2147_v18  ;;  %v2168_v4 = vld [vmem:[#allocation10 + $0x108] sm:$0xff] }
 0x2da   :  { %v1555_v9 = vadd.f32 %v1554_v8, %v1490_v6  ;;  %v1585_v10 = vmax.f32 %v1422_v5, 0.0  ;;  %v4737_v5 = vld [vmem:[%s6668_s4 + $0x30] sm:$0xff]  ;;  %v2150_v6 = vld [vmem:[#allocation10 + $0x78] sm:$0xff] }
 0x2db   :  { %2215 = vmatpush.msrb.mxu0 %v2145_v25  ;;  %v2526_v25 = vld [vmem:[#allocation11 + $0xe8] sm:$0xff] }
 0x2dc   :  { %1727 = vmatmul.f32.gmra.mxu2 %v1585_v10  ;;  %1857 = vmatmul.f32.gmra.mxu0 %v1585_v10  ;;  %v1588_v12 = vmax.f32 %v1555_v9, 0.0  ;;  %v2182_v9 = vld [vmem:[#allocation10 + $0x178] sm:$0xff] }
 0x2dd   :  { %v1359_v41 = vpop.f32.mrf.mxu2  ;;  %2408 = vmatpush.msra.mxu3 %v2182_v9  ;;  %2216 = vmatpush.msrb.mxu0 %v2143_v32  ;;  %v2135_v9 = vld [vmem:[#allocation10] sm:$0xff] }
 0x2de   :  { %v1360_v14 = vadd.f32 %v1359_v41, %v5639_v34  ;;  %1795 = vmatmul.f32.gmra.mxu3 %v1588_v12  ;;  %1925 = vmatmul.f32.gmra.mxu1 %v1588_v12  ;;  %v2162_v34 = vld [vmem:[#allocation10 + $0xd8] sm:$0xff]  ;;  %v2181_v12 = vld [vmem:[#allocation10 + $0x170] sm:$0xff]  ;;  %v2148_v41 = vld [vmem:[#allocation10 + $0x68] sm:$0xff] }
 0x2df   :  { %2337 = vmatpush.msra.mxu2 %v2162_v34  ;;  %2278 = vmatpush.msrb.mxu1 %v2181_v12 }
 0x2e0   :  { %v1425_v27 = vadd.f32 %v1424_v17, %v1360_v14  ;;  %v2180_v17 = vld [vmem:[#allocation10 + $0x168] sm:$0xff]  ;;  %2217 = vmatpush.msrb.mxu0 %v2141_v43  ;;  %v2557_v43 = vld [vmem:[#allocation11 + $0x1e0] sm:$0xff] }
 0x2e1   :  { %2338 = vmatpush.msra.mxu2 %v2160_v28  ;;  %2409 = vmatpush.msra.mxu3 %v2180_v17  ;;  %v2144_v28 = vld [vmem:[#allocation10 + $0x48] sm:$0xff]  ;;  %v2528_v17 = vld [vmem:[#allocation11 + $0xf8] sm:$0xff] }
 0x2e2   :  { %v1587_v19 = vmax.f32 %v1425_v27, 0.0  ;;  %2218 = vmatpush.msrb.mxu0 %v2139_v11 }
 0x2e3   :  { %2339 = vmatpush.msra.mxu2 %v2158_v36  ;;  %2410 = vmatpush.msra.mxu3 %v2178_v23  ;;  %v2142_v36 = vld [vmem:[#allocation10 + $0x38] sm:$0xff]  ;;  %v1881_v59 = vpop.f32.mrf.mxu1 }
 0x2e4   :  { %1730 = vmatmul.f32.gmra.mxu2 %v1587_v19  ;;  %1860 = vmatmul.f32.gmra.mxu0 %v1587_v19  ;;  %v2179_v19 = vld [vmem:[#allocation10 + $0x160] sm:$0xff] }
 0x2e5   :  { %2340 = vmatpush.msra.mxu2 %v2156_v46  ;;  %2279 = vmatpush.msrb.mxu1 %v2179_v19  ;;  %v2140_v46 = vld [vmem:[#allocation10 + $0x28] sm:$0xff]  ;;  %v2560_v19 = vld [vmem:[#allocation11 + $0x1f8] sm:$0xff] }
 0x2e6   :  { %4585 = vmatmul.msk.f32.vlgmr.msrb.gmra.mxu3 %vm285_vm1, %v4731_v22  ;;  %v2065_v23 = vld [vmem:[%s6674_s0] sm:$0x3] }
 0x2e7   :  { %2341 = vmatpush.msra.mxu2 %v2154_v16  ;;  %2280 = vmatpush.msrb.mxu1 %v2177_v26  ;;  %v4743_v16 = vld [vmem:[%s6668_s4 + $0x60] sm:$0xff] }
 0x2e8   :  { %2411 = vmatpush.msra.mxu3 %v2176_v58  ;;  %v5807_v58 = vperm.slane %v2065_v23, 1 }
 0x2e9   :  { %v1751_v24 = vpop.f32.mrf.mxu3  ;;  %2342 = vmatpush.msra.mxu2 %v2152_v62  ;;  %2281 = vmatpush.msrb.mxu1 %v2175_v33  ;;  %v4744_v62 = vld [vmem:[%s6668_s4 + $0x68] sm:$0xff] }
 0x2ea   :  { %2412 = vmatpush.msra.mxu3 %v2174_v39  ;;  %v2525_v39 = vld [vmem:[#allocation11 + $0xe0] sm:$0xff] }
 0x2eb   :  { %2343 = vmatpush.msra.mxu2 %v2150_v6  ;;  %2282 = vmatpush.msrb.mxu1 %v2173_v44 }
 0x2ec   :  { %4568 = vmatmul.msk.f32.vlgmr.msrb.gmra.mxu2 %vm285_vm1, %v4731_v22  ;;  %2413 = vmatpush.msra.mxu3 %v2172_v49 }
 0x2ed   :  { %2344 = vmatpush.msra.mxu2 %v2148_v41  ;;  %2283 = vmatpush.msrb.mxu1 %v2171_v51 }
 0x2ee   :  { %4586 = vmatmul.msk.f32.gmra.mxu3 %vm285_vm1, %v4732_v52 }
 0x2ef   :  { %v1686_v29 = vpop.f32.mrf.mxu2  ;;  %2345 = vmatpush.msra.mxu2 %v2146_v21  ;;  %v2559_v21 = vld [vmem:[#allocation11 + $0x1f0] sm:$0xff] }
 0x2f0   :  { %v5681_v30 = vadd.f32 %v1751_v24, %v1686_v29 }
 0x2f1   :  { %v1754_v31 = vpop.f32.mrf.mxu3  ;;  %2346 = vmatpush.msra.mxu2 %v2144_v28 }
 0x2f3   :  { %2347 = vmatpush.msra.mxu2 %v2142_v36 }
 0x2f4   :  { %4569 = vmatmul.msk.f32.gmra.mxu2 %vm285_vm1, %v4732_v52  ;;  %v4740_v52 = vld [vmem:[%s6668_s4 + $0x48] sm:$0xff] }
 0x2f5   :  { %2348 = vmatpush.msra.mxu2 %v2140_v46  ;;  %v2524_v46 = vld [vmem:[#allocation11 + $0xd8] sm:$0xff] }
 0x2f6   :  { %4587 = vmatmul.msk.f32.gmra.mxu3 %vm285_vm1, %v4733_v35 }
 0x2f7   :  { %v1689_v37 = vpop.f32.mrf.mxu2 }
 0x2f8   :  { %v5688_v38 = vadd.f32 %v1754_v31, %v1689_v37 }
 0x2f9   :  { %v1757_v42 = vpop.f32.mrf.mxu3 }
 0x2fc   :  { %4570 = vmatmul.msk.f32.gmra.mxu2 %vm285_vm1, %v4733_v35  ;;  %v4741_v35 = vld [vmem:[%s6668_s4 + $0x50] sm:$0xff] }
 0x2fe   :  { %4588 = vmatmul.msk.f32.gmra.mxu3 %vm285_vm1, %v4734_v45 }
 0x2ff   :  { %v1692_v47 = vpop.f32.mrf.mxu2 }
 0x300   :  { %v5695_v48 = vadd.f32 %v1757_v42, %v1692_v47 }
 0x301   :  { %v1760_v50 = vpop.f32.mrf.mxu3 }
 0x304   :  { %4571 = vmatmul.msk.f32.gmra.mxu2 %vm285_vm1, %v4734_v45  ;;  %v4742_v45 = vld [vmem:[%s6668_s4 + $0x58] sm:$0xff] }
 0x306   :  { %4589 = vmatmul.msk.f32.gmra.mxu3 %vm285_vm1, %v4735_v53 }
 0x307   :  { %v1695_v54 = vpop.f32.mrf.mxu2 }
 0x308   :  { %v5702_v55 = vadd.f32 %v1760_v50, %v1695_v54  ;;  %v1816_v54 = vpop.f32.mrf.mxu0 }
 0x309   :  { %v1763_v57 = vpop.f32.mrf.mxu3  ;;  %v1882_v28 = vadd.f32 %v1881_v59, %v1816_v54 }
 0x30c   :  { %4572 = vmatmul.msk.f32.gmra.mxu2 %vm285_vm1, %v4735_v53  ;;  %v2138_v53 = vld [vmem:[#allocation10 + $0x18] sm:$0xff] }
 0x30d   :  { %2349 = vmatpush.msra.mxu2 %v2138_v53 }
 0x30e   :  { %4590 = vmatmul.msk.f32.gmra.mxu3 %vm285_vm1, %v4736_v61 }
 0x30f   :  { %v1698_v63 = vpop.f32.mrf.mxu2  ;;  %2350 = vmatpush.msra.mxu2 %v2136_v1  ;;  %v2523_v1 = vld [vmem:[#allocation11 + $0xd0] sm:$0xff] }
 0x310   :  { %v5709_v0 = vadd.f32 %v1763_v57, %v1698_v63  ;;  %v2170_v57 = vld [vmem:[#allocation10 + $0x118] sm:$0xff]  ;;  %v2137_v63 = vld [vmem:[#allocation10 + $0x10] sm:$0xff] }
 0x311   :  { %v1766_v2 = vpop.f32.mrf.mxu3  ;;  %2414 = vmatpush.msra.mxu3 %v2170_v57  ;;  %2219 = vmatpush.msrb.mxu0 %v2137_v63 }
 0x312   :  { %2697 = vmatpush.msrb.mxu2 %v2528_v17 }
 0x313   :  { %2415 = vmatpush.msra.mxu3 %v2168_v4  ;;  %2220 = vmatpush.msrb.mxu0 %v2135_v9  ;;  %v2522_v4 = vld [vmem:[#allocation11 + $0xc8] sm:$0xff] }
 0x314   :  { %4573 = vmatmul.msk.f32.gmra.mxu2 %vm285_vm1, %v4736_v61  ;;  %v2169_v61 = vld [vmem:[#allocation10 + $0x110] sm:$0xff] }
 0x315   :  { %2284 = vmatpush.msrb.mxu1 %v2169_v61  ;;  %2762 = vmatpush.msrb.mxu3 %v2560_v19  ;;  %v2556_v61 = vld [vmem:[#allocation11 + $0x1d8] sm:$0xff] }
 0x316   :  { %4591 = vmatmul.msk.f32.gmra.mxu3 %vm285_vm1, %v4737_v5  ;;  %2698 = vmatpush.msrb.mxu2 %v2526_v25 }
 0x317   :  { %v1701_v7 = vpop.f32.mrf.mxu2 }
 0x318   :  { %v5716_v8 = vadd.f32 %v1766_v2, %v1701_v7  ;;  %v2167_v2 = vld [vmem:[#allocation10 + $0x100] sm:$0xff]  ;;  %v1884_v7 = vpop.f32.mrf.mxu1  ;;  %2699 = vmatpush.msrb.mxu2 %v2524_v46 }
 0x319   :  { %v1769_v10 = vpop.f32.mrf.mxu3  ;;  %2285 = vmatpush.msrb.mxu1 %v2167_v2  ;;  %v2555_v2 = vld [vmem:[#allocation11 + $0x1d0] sm:$0xff] }
 0x31a   :  { %2700 = vmatpush.msrb.mxu2 %v2522_v4 }
 0x31b   :  { %2632 = vmatpush.msra.mxu1 %v2559_v21 }
 0x31c   :  { %4574 = vmatmul.msk.f32.gmra.mxu2 %vm285_vm1, %v4737_v5  ;;  %v1819_v5 = vpop.f32.mrf.mxu0 }
 0x31d   :  { %2633 = vmatpush.msra.mxu1 %v2557_v43  ;;  %v1885_v51 = vadd.f32 %v1884_v7, %v1819_v5 }
 0x31e   :  { %4592 = vmatmul.msk.f32.gmra.mxu3 %vm285_vm1, %v4738_v13 }
 0x31f   :  { %v1704_v14 = vpop.f32.mrf.mxu2  ;;  %2634 = vmatpush.msra.mxu1 %v2555_v2  ;;  %v2550_v2 = vld [vmem:[#allocation11 + $0x1a8] sm:$0xff] }
 0x320   :  { %v5723_v15 = vadd.f32 %v1769_v10, %v1704_v14  ;;  %v4745_v10 = vld [vmem:[%s6668_s4 + $0x70] sm:$0xff]  ;;  %v1887_v41 = vpop.f32.mrf.mxu1  ;;  %v4746_v14 = vld [vmem:[%s6668_s4 + $0x78] sm:$0xff] }
 0x321   :  { %v1772_v27 = vpop.f32.mrf.mxu3 }
 0x324   :  { %4575 = vmatmul.msk.f32.gmra.mxu2 %vm285_vm1, %v4738_v13  ;;  %v1822_v13 = vpop.f32.mrf.mxu0 }
 0x325   :  { %v1888_v7 = vadd.f32 %v1887_v41, %v1822_v13  ;;  %v2520_v13 = vld [vmem:[#allocation11 + $0xb8] sm:$0xff] }
 0x326   :  { %4593 = vmatmul.msk.f32.gmra.mxu3 %vm285_vm1, %v4739_v20  ;;  %2701 = vmatpush.msrb.mxu2 %v2520_v13  ;;  %v2515_v13 = vld [vmem:[#allocation11 + $0x90] sm:$0xff] }
 0x327   :  { %v1707_v22 = vpop.f32.mrf.mxu2 }
 0x328   :  { %v5730_v34 = vadd.f32 %v1772_v27, %v1707_v22  ;;  %v5803_v26 = vpop.f32.mrf.mxu1 }
 0x329   :  { %v5732_v24 = vpop.f32.mrf.mxu3 }
 0x32c   :  { %4576 = vmatmul.msk.f32.gmra.mxu2 %vm285_vm1, %v4739_v20  ;;  %v2527_v20 = vld [vmem:[#allocation11 + $0xf0] sm:$0xff]  ;;  %v5798_v22 = vpop.f32.mrf.mxu0 }
 0x32d   :  { %2567 = vmatpush.msra.mxu0 %v2527_v20  ;;  %v2554_v20 = vld [vmem:[#allocation11 + $0x1c8] sm:$0xff] }
 0x32e   :  { %4594 = vmatmul.msk.f32.gmra.mxu3 %vm285_vm1, %v4740_v52 }
 0x32f   :  { %v5739_v29 = vpop.f32.mrf.mxu2  ;;  %2568 = vmatpush.msra.mxu0 %v2525_v39 }
 0x331   :  { %v5741_v31 = vpop.f32.mrf.mxu3  ;;  %2569 = vmatpush.msra.mxu0 %v2523_v1 }
 0x334   :  { %4577 = vmatmul.msk.f32.gmra.mxu2 %vm285_vm1, %v4740_v52  ;;  %v5812_v49 = vpop.f32.mrf.mxu0 }
 0x336   :  { %4595 = vmatmul.msk.f32.gmra.mxu3 %vm285_vm1, %v4741_v35 }
 0x337   :  { %v5748_v37 = vpop.f32.mrf.mxu2 }
 0x339   :  { %v5750_v42 = vpop.f32.mrf.mxu3 }
 0x33c   :  { %4578 = vmatmul.msk.f32.gmra.mxu2 %vm285_vm1, %v4741_v35  ;;  %v2558_v35 = vld [vmem:[#allocation11 + $0x1e8] sm:$0xff] }
 0x33d   :  { %2763 = vmatpush.msrb.mxu3 %v2558_v35 }
 0x33e   :  { %4596 = vmatmul.msk.f32.gmra.mxu3 %vm285_vm1, %v4742_v45 }
 0x33f   :  { %v5757_v47 = vpop.f32.mrf.mxu2  ;;  %2764 = vmatpush.msrb.mxu3 %v2556_v61 }
 0x341   :  { %v5759_v50 = vpop.f32.mrf.mxu3  ;;  %2765 = vmatpush.msrb.mxu3 %v2554_v20 }
 0x344   :  { %4579 = vmatmul.msk.f32.gmra.mxu2 %vm285_vm1, %v4742_v45  ;;  %v5810_v45 = vperm.slane %v2065_v23, 0 }
 0x346   :  { %4597 = vmatmul.msk.f32.gmra.mxu3 %vm285_vm1, %v4743_v16 }
 0x347   :  { %v5766_v56 = vpop.f32.mrf.mxu2 }
 0x349   :  { %v5768_v60 = vpop.f32.mrf.mxu3 }
 0x34c   :  { %4580 = vmatmul.msk.f32.gmra.mxu2 %vm285_vm1, %v4743_v16  ;;  %v5815_v16 = vpop.f32.mrf.mxu1 }
 0x34e   :  { %4598 = vmatmul.msk.f32.gmra.mxu3 %vm285_vm1, %v4744_v62 }
 0x34f   :  { %v5775_v3 = vpop.f32.mrf.mxu2 }
 0x351   :  { %v5777_v6 = vpop.f32.mrf.mxu3 }
 0x354   :  { %4581 = vmatmul.msk.f32.gmra.mxu2 %vm285_vm1, %v4744_v62  ;;  %v1896_v21 = vpop.f32.mrf.mxu1 }
 0x356   :  { %4599 = vmatmul.msk.f32.gmra.mxu3 %vm285_vm1, %v4745_v10 }
 0x357   :  { %v5784_v40 = vpop.f32.mrf.mxu2 }
 0x359   :  { %v5786_v12 = vpop.f32.mrf.mxu3 }
 0x35c   :  { %4582 = vmatmul.msk.f32.gmra.mxu2 %vm285_vm1, %v4745_v10  ;;  %v5820_v10 = vpop.f32.mrf.mxu0 }
 0x35e   :  { %4600 = vmatmul.msk.f32.gmra.mxu3 %vm285_vm1, %v4746_v14 }
 0x35f   :  { %v5793_v27 = vpop.f32.mrf.mxu2 }
 0x361   :  { %v5795_v18 = vpop.f32.mrf.mxu3 }
 0x364   :  { %4583 = vmatmul.msk.f32.gmra.mxu2 %vm285_vm1, %v4746_v14  ;;  %v1834_v46 = vpop.f32.mrf.mxu0 }
 0x367   :  { %v5805_v52 = vpop.f32.mrf.mxu2 }
 0x369   :  { %v2017_v32 = vpop.f32.mrf.mxu3 }
 0x36a   :  { %v2018_v33 = vadd.f32 %v2017_v32, %v1882_v28  ;;  %v2521_v28 = vld [vmem:[#allocation11 + $0xc0] sm:$0xff] }
 0x36b   :  { %v2553_v32 = vld [vmem:[#allocation11 + $0x1c0] sm:$0xff]  ;;  %2570 = vmatpush.msra.mxu0 %v2521_v28  ;;  %v2548_v28 = vld [vmem:[#allocation11 + $0x198] sm:$0xff] }
 0x36c   :  { %v2072_v36 = vadd.f32 %v5807_v58, %v2018_v33  ;;  %2635 = vmatpush.msra.mxu1 %v2553_v32  ;;  %v1891_v33 = vadd.f32 %v5803_v26, %v5798_v22  ;;  %v2518_v22 = vld [vmem:[#allocation11 + $0xa8] sm:$0xff] }
 0x36d   :  { %2702 = vmatpush.msrb.mxu2 %v2518_v22  ;;  %v2545_v22 = vld [vmem:[#allocation11 + $0x180] sm:$0xff] }
 0x36e   :  { %v2104_v44 = vmax.f32 %v2072_v36, 0.0 }
 0x36f   :  { %v1952_v11 = vpop.f32.mrf.mxu2 }
 0x370   :  { %v1953_v53 = vadd.f32 %v1952_v11, %v5681_v30  ;;  %2286 = vmatmul.f32.vlgmr.msrb.gmra.mxu1 %v2104_v44  ;;  %2416 = vmatmul.f32.vlgmr.msra.gmra.mxu3 %v2104_v44  ;;  %v2552_v44 = vld [vmem:[#allocation11 + $0x1b8] sm:$0xff] }
 0x371   :  { %v2020_v54 = vpop.f32.mrf.mxu3  ;;  %2766 = vmatpush.msrb.mxu3 %v2552_v44 }
 0x372   :  { %v2071_v57 = vadd.f32 %v5810_v45, %v1953_v53  ;;  %v2021_v59 = vadd.f32 %v2020_v54, %v1885_v51  ;;  %v2519_v53 = vld [vmem:[#allocation11 + $0xb0] sm:$0xff] }
 0x373   :  { %v2551_v54 = vld [vmem:[#allocation11 + $0x1b0] sm:$0xff]  ;;  %2571 = vmatpush.msra.mxu0 %v2519_v53  ;;  %2767 = vmatpush.msrb.mxu3 %v2550_v2  ;;  %v2544_v2 = vld [vmem:[#allocation11 + $0x178] sm:$0xff] }
 0x374   :  { %v2103_v62 = vmax.f32 %v2071_v57, 0.0  ;;  %v2074_v63 = vadd.f32 %v5807_v58, %v2021_v59  ;;  %v1899_v57 = vpop.f32.mrf.mxu1  ;;  %2636 = vmatpush.msra.mxu1 %v2551_v54  ;;  %v1894_v59 = vadd.f32 %v5815_v16, %v5812_v49 }
 0x375   :  { %2768 = vmatpush.msrb.mxu3 %v2548_v28 }
 0x376   :  { %2221 = vmatmul.f32.vlgmr.msrb.gmra.mxu0 %v2103_v62  ;;  %2351 = vmatmul.f32.vlgmr.msra.gmra.mxu2 %v2103_v62  ;;  %v2106_v30 = vmax.f32 %v2074_v63, 0.0 }
 0x377   :  { %v1955_v5 = vpop.f32.mrf.mxu2 }
 0x378   :  { %v1956_v9 = vadd.f32 %v1955_v5, %v5688_v38  ;;  %2289 = vmatmul.f32.gmra.mxu1 %v2106_v30  ;;  %2419 = vmatmul.f32.gmra.mxu3 %v2106_v30  ;;  %v2517_v5 = vld [vmem:[#allocation11 + $0xa0] sm:$0xff] }
 0x379   :  { %v2023_v14 = vpop.f32.mrf.mxu3  ;;  %2572 = vmatpush.msra.mxu0 %v2517_v5 }
 0x37a   :  { %v2073_v17 = vadd.f32 %v5810_v45, %v1956_v9  ;;  %v2024_v19 = vadd.f32 %v2023_v14, %v1888_v7  ;;  %v2549_v7 = vld [vmem:[#allocation11 + $0x1a0] sm:$0xff]  ;;  %v1837_v9 = vpop.f32.mrf.mxu0 }
 0x37b   :  { %2637 = vmatpush.msra.mxu1 %v2549_v7  ;;  %2573 = vmatpush.msra.mxu0 %v2515_v13  ;;  %v2511_v7 = vld [vmem:[#allocation11 + $0x70] sm:$0xff]  ;;  %v2541_v13 = vld [vmem:[#allocation11 + $0x160] sm:$0xff] }
 0x37c   :  { %v2076_v23 = vadd.f32 %v5807_v58, %v2024_v19  ;;  %v2105_v25 = vmax.f32 %v2073_v17, 0.0  ;;  %v1902_v16 = vpop.f32.mrf.mxu1  ;;  %v1897_v17 = vadd.f32 %v1896_v21, %v5820_v10  ;;  %v2514_v21 = vld [vmem:[#allocation11 + $0x88] sm:$0xff] }
 0x37e   :  { %2224 = vmatmul.f32.gmra.mxu0 %v2105_v25  ;;  %2354 = vmatmul.f32.gmra.mxu2 %v2105_v25  ;;  %v2108_v38 = vmax.f32 %v2076_v23, 0.0 }
 0x37f   :  { %v1958_v41 = vpop.f32.mrf.mxu2 }
 0x380   :  { %v1959_v35 = vadd.f32 %v1958_v41, %v5695_v48  ;;  %2292 = vmatmul.f32.gmra.mxu1 %v2108_v38  ;;  %2422 = vmatmul.f32.gmra.mxu3 %v2108_v38  ;;  %v2547_v41 = vld [vmem:[#allocation11 + $0x190] sm:$0xff] }
 0x381   :  { %v2026_v36 = vpop.f32.mrf.mxu3  ;;  %2638 = vmatpush.msra.mxu1 %v2547_v41 }
 0x382   :  { %v2075_v39 = vadd.f32 %v5810_v45, %v1959_v35  ;;  %v2027_v43 = vadd.f32 %v2026_v36, %v1891_v33  ;;  %v1900_v35 = vadd.f32 %v1899_v57, %v1834_v46 }
 0x383   :  { %2639 = vmatpush.msra.mxu1 %v2545_v22  ;;  %v2506_v22 = vld [vmem:[#allocation11 + $0x48] sm:$0xff] }
 0x384   :  { %v2078_v11 = vadd.f32 %v5807_v58, %v2027_v43  ;;  %v2107_v51 = vmax.f32 %v2075_v39, 0.0  ;;  %v1905_v39 = vpop.f32.mrf.mxu1 }
 0x386   :  { %2227 = vmatmul.f32.gmra.mxu0 %v2107_v51  ;;  %2357 = vmatmul.f32.gmra.mxu2 %v2107_v51  ;;  %v2110_v48 = vmax.f32 %v2078_v11, 0.0  ;;  %v2546_v51 = vld [vmem:[#allocation11 + $0x188] sm:$0xff] }
 0x387   :  { %v1961_v26 = vpop.f32.mrf.mxu2  ;;  %2769 = vmatpush.msrb.mxu3 %v2546_v51 }
 0x388   :  { %v1962_v61 = vadd.f32 %v1961_v26, %v5702_v55  ;;  %2295 = vmatmul.f32.gmra.mxu1 %v2110_v48  ;;  %2425 = vmatmul.f32.gmra.mxu3 %v2110_v48  ;;  %v2516_v55 = vld [vmem:[#allocation11 + $0x98] sm:$0xff]  ;;  %v2513_v48 = vld [vmem:[#allocation11 + $0x80] sm:$0xff]  ;;  %v1903_v26 = vadd.f32 %v1902_v16, %v1837_v9  ;;  %v2510_v9 = vld [vmem:[#allocation11 + $0x68] sm:$0xff] }
 0x389   :  { %v2029_v62 = vpop.f32.mrf.mxu3  ;;  %2703 = vmatpush.msrb.mxu2 %v2516_v55  ;;  %2574 = vmatpush.msra.mxu0 %v2513_v48 }
 0x38a   :  { %v2077_v63 = vadd.f32 %v5810_v45, %v1962_v61  ;;  %v2030_v1 = vadd.f32 %v2029_v62, %v1894_v59  ;;  %2770 = vmatpush.msrb.mxu3 %v2544_v2  ;;  %v2537_v2 = vld [vmem:[#allocation11 + $0x140] sm:$0xff] }
 0x38b   :  { %2704 = vmatpush.msrb.mxu2 %v2514_v21  ;;  %2575 = vmatpush.msra.mxu0 %v2511_v7  ;;  %v2508_v21 = vld [vmem:[#allocation11 + $0x58] sm:$0xff] }
 0x38c   :  { %v2080_v30 = vadd.f32 %v5807_v58, %v2030_v1  ;;  %v2109_v4 = vmax.f32 %v2077_v63, 0.0 }
 0x38e   :  { %2230 = vmatmul.f32.gmra.mxu0 %v2109_v4  ;;  %2360 = vmatmul.f32.gmra.mxu2 %v2109_v4  ;;  %v2112_v49 = vmax.f32 %v2080_v30, 0.0  ;;  %v1908_v30 = vpop.f32.mrf.mxu1 }
 0x38f   :  { %v1964_v14 = vpop.f32.mrf.mxu2 }
 0x390   :  { %v1965_v19 = vadd.f32 %v1964_v14, %v5709_v0  ;;  %2298 = vmatmul.f32.gmra.mxu1 %v2112_v49  ;;  %2428 = vmatmul.f32.gmra.mxu3 %v2112_v49  ;;  %v1840_v0 = vpop.f32.mrf.mxu0  ;;  %v2543_v49 = vld [vmem:[#allocation11 + $0x170] sm:$0xff] }
 0x391   :  { %v2032_v20 = vpop.f32.mrf.mxu3  ;;  %2640 = vmatpush.msra.mxu1 %v2543_v49  ;;  %v1906_v16 = vadd.f32 %v1905_v39, %v1840_v0 }
 0x392   :  { %v2079_v23 = vadd.f32 %v5810_v45, %v1965_v19  ;;  %v2033_v25 = vadd.f32 %v2032_v20, %v1897_v17 }
 0x393   :  { %2641 = vmatpush.msra.mxu1 %v2541_v13 }
 0x394   :  { %v2082_v32 = vadd.f32 %v5807_v58, %v2033_v25  ;;  %v2111_v38 = vmax.f32 %v2079_v23, 0.0  ;;  %v2542_v23 = vld [vmem:[#allocation11 + $0x168] sm:$0xff] }
 0x395   :  { %2771 = vmatpush.msrb.mxu3 %v2542_v23  ;;  %v2535_v23 = vld [vmem:[#allocation11 + $0x130] sm:$0xff] }
 0x396   :  { %2233 = vmatmul.f32.gmra.mxu0 %v2111_v38  ;;  %2363 = vmatmul.f32.gmra.mxu2 %v2111_v38  ;;  %v2114_v10 = vmax.f32 %v2082_v32, 0.0  ;;  %v2509_v38 = vld [vmem:[#allocation11 + $0x60] sm:$0xff]  ;;  %v1911_v41 = vpop.f32.mrf.mxu1 }
 0x397   :  { %v1967_v33 = vpop.f32.mrf.mxu2  ;;  %2576 = vmatpush.msra.mxu0 %v2509_v38 }
 0x398   :  { %v1968_v36 = vadd.f32 %v1967_v33, %v5716_v8  ;;  %2301 = vmatmul.f32.gmra.mxu1 %v2114_v10  ;;  %2431 = vmatmul.f32.gmra.mxu3 %v2114_v10  ;;  %v2512_v8 = vld [vmem:[#allocation11 + $0x78] sm:$0xff]  ;;  %v1843_v61 = vpop.f32.mrf.mxu0 }
 0x399   :  { %v2035_v43 = vpop.f32.mrf.mxu3  ;;  %2705 = vmatpush.msrb.mxu2 %v2512_v8  ;;  %v1909_v33 = vadd.f32 %v1908_v30, %v1843_v61  ;;  %v1782_v30 = vadd.f32 %v5750_v42, %v5757_v47 }
 0x39a   :  { %v2081_v44 = vadd.f32 %v5810_v45, %v1968_v36  ;;  %v2036_v11 = vadd.f32 %v2035_v43, %v1900_v35 }
 0x39b   :  { %2706 = vmatpush.msrb.mxu2 %v2510_v9 }
 0x39c   :  { %v2084_v53 = vadd.f32 %v5807_v58, %v2036_v11  ;;  %v2113_v54 = vmax.f32 %v2081_v44, 0.0  ;;  %v2540_v44 = vld [vmem:[#allocation11 + $0x158] sm:$0xff] }
 0x39d   :  { %2707 = vmatpush.msrb.mxu2 %v2508_v21  ;;  %2772 = vmatpush.msrb.mxu3 %v2540_v44 }
 0x39e   :  { %2236 = vmatmul.f32.gmra.mxu0 %v2113_v54  ;;  %2366 = vmatmul.f32.gmra.mxu2 %v2113_v54  ;;  %v2116_v46 = vmax.f32 %v2084_v53, 0.0  ;;  %v1779_v54 = vadd.f32 %v5741_v31, %v5748_v37  ;;  %v2505_v37 = vld [vmem:[#allocation11 + $0x40] sm:$0xff] }
 0x39f   :  { %v1970_v57 = vpop.f32.mrf.mxu2  ;;  %2708 = vmatpush.msrb.mxu2 %v2506_v22 }
 0x3a0   :  { %v1971_v59 = vadd.f32 %v1970_v57, %v5723_v15  ;;  %2304 = vmatmul.f32.gmra.mxu1 %v2116_v46  ;;  %2434 = vmatmul.f32.gmra.mxu3 %v2116_v46  ;;  %v1846_v25 = vpop.f32.mrf.mxu0  ;;  %v1914_v46 = vpop.f32.mrf.mxu1 }
 0x3a1   :  { %v2038_v62 = vpop.f32.mrf.mxu3  ;;  %v1912_v57 = vadd.f32 %v1911_v41, %v1846_v25  ;;  %v1785_v25 = vadd.f32 %v5759_v50, %v5766_v56 }
 0x3a2   :  { %v2083_v63 = vadd.f32 %v5810_v45, %v1971_v59  ;;  %v2039_v1 = vadd.f32 %v2038_v62, %v1903_v26 }
 0x3a4   :  { %v2086_v4 = vadd.f32 %v5807_v58, %v2039_v1  ;;  %v2115_v5 = vmax.f32 %v2083_v63, 0.0  ;;  %v2538_v63 = vld [vmem:[#allocation11 + $0x148] sm:$0xff] }
 0x3a5   :  { %2773 = vmatpush.msrb.mxu3 %v2538_v63 }
 0x3a6   :  { %2239 = vmatmul.f32.gmra.mxu0 %v2115_v5  ;;  %2369 = vmatmul.f32.gmra.mxu2 %v2115_v5  ;;  %v2118_v15 = vmax.f32 %v2086_v4, 0.0  ;;  %v2504_v5 = vld [vmem:[#allocation11 + $0x38] sm:$0xff] }
 0x3a7   :  { %v1973_v55 = vpop.f32.mrf.mxu2  ;;  %2709 = vmatpush.msrb.mxu2 %v2504_v5 }
 0x3a8   :  { %v1974_v14 = vadd.f32 %v1973_v55, %v5730_v34  ;;  %2307 = vmatmul.f32.gmra.mxu1 %v2118_v15  ;;  %2437 = vmatmul.f32.gmra.mxu3 %v2118_v15  ;;  %v1776_v34 = vadd.f32 %v5732_v24, %v5739_v29  ;;  %v2507_v24 = vld [vmem:[#allocation11 + $0x50] sm:$0xff]  ;;  %v1849_v53 = vpop.f32.mrf.mxu0  ;;  %v1917_v55 = vpop.f32.mrf.mxu1 }
 0x3a9   :  { %v2041_v17 = vpop.f32.mrf.mxu3  ;;  %v2539_v29 = vld [vmem:[#allocation11 + $0x150] sm:$0xff]  ;;  %2577 = vmatpush.msra.mxu0 %v2507_v24  ;;  %v1915_v15 = vadd.f32 %v1914_v46, %v1849_v53 }
 0x3aa   :  { %v2085_v19 = vadd.f32 %v5810_v45, %v1974_v14  ;;  %v2042_v20 = vadd.f32 %v2041_v17, %v1906_v16  ;;  %2642 = vmatpush.msra.mxu1 %v2539_v29  ;;  %v2499_v24 = vld [vmem:[#allocation11 + $0x10] sm:$0xff] }
 0x3ab   :  { %2578 = vmatpush.msra.mxu0 %v2505_v37  ;;  %v2530_v37 = vld [vmem:[#allocation11 + $0x108] sm:$0xff] }
 0x3ac   :  { %v2088_v28 = vadd.f32 %v5807_v58, %v2042_v20  ;;  %v2117_v32 = vmax.f32 %v2085_v19, 0.0  ;;  %2643 = vmatpush.msra.mxu1 %v2537_v2  ;;  %v2536_v19 = vld [vmem:[#allocation11 + $0x138] sm:$0xff]  ;;  %v2503_v20 = vld [vmem:[#allocation11 + $0x30] sm:$0xff] }
 0x3ad   :  { %2774 = vmatpush.msrb.mxu3 %v2536_v19  ;;  %2579 = vmatpush.msra.mxu0 %v2503_v20 }
 0x3ae   :  { %2242 = vmatmul.f32.gmra.mxu0 %v2117_v32  ;;  %2372 = vmatmul.f32.gmra.mxu2 %v2117_v32  ;;  %v2120_v10 = vmax.f32 %v2088_v28, 0.0  ;;  %v2502_v32 = vld [vmem:[#allocation11 + $0x28] sm:$0xff] }
 0x3af   :  { %v1976_v0 = vpop.f32.mrf.mxu2  ;;  %2644 = vmatpush.msra.mxu1 %v2535_v23  ;;  %2710 = vmatpush.msrb.mxu2 %v2502_v32 }
 0x3b0   :  { %v1977_v35 = vadd.f32 %v1976_v0, %v1776_v34  ;;  %2310 = vmatmul.f32.gmra.mxu1 %v2120_v10  ;;  %2440 = vmatmul.f32.gmra.mxu3 %v2120_v10  ;;  %v1852_v7 = vpop.f32.mrf.mxu0 }
 0x3b1   :  { %v2044_v36 = vpop.f32.mrf.mxu3  ;;  %v1918_v13 = vadd.f32 %v1917_v55, %v1852_v7 }
 0x3b2   :  { %v2087_v39 = vadd.f32 %v5810_v45, %v1977_v35  ;;  %v2045_v43 = vadd.f32 %v2044_v36, %v1909_v33  ;;  %v2534_v33 = vld [vmem:[#allocation11 + $0x128] sm:$0xff]  ;;  %v2501_v35 = vld [vmem:[#allocation11 + $0x20] sm:$0xff] }
 0x3b3   :  { %v2533_v36 = vld [vmem:[#allocation11 + $0x120] sm:$0xff]  ;;  %2775 = vmatpush.msrb.mxu3 %v2534_v33  ;;  %2580 = vmatpush.msra.mxu0 %v2501_v35 }
 0x3b4   :  { %v2090_v11 = vadd.f32 %v5807_v58, %v2045_v43  ;;  %v2119_v51 = vmax.f32 %v2087_v39, 0.0  ;;  %v1920_v39 = vpop.f32.mrf.mxu1  ;;  %2645 = vmatpush.msra.mxu1 %v2533_v36  ;;  %v1788_v43 = vadd.f32 %v5768_v60, %v5775_v3  ;;  %v2887_v36 = vld [vmem:[#allocation13 + $0xe0] sm:$0xff] }
 0x3b5   :  { %2581 = vmatpush.msra.mxu0 %v2499_v24 }
 0x3b6   :  { %2245 = vmatmul.f32.gmra.mxu0 %v2119_v51  ;;  %2375 = vmatmul.f32.gmra.mxu2 %v2119_v51  ;;  %v2122_v48 = vmax.f32 %v2090_v11, 0.0  ;;  %v2500_v11 = vld [vmem:[#allocation11 + $0x18] sm:$0xff] }
 0x3b7   :  { %v1979_v8 = vpop.f32.mrf.mxu2  ;;  %v2532_v51 = vld [vmem:[#allocation11 + $0x118] sm:$0xff]  ;;  %2711 = vmatpush.msrb.mxu2 %v2500_v11 }
 0x3b8   :  { %v1980_v26 = vadd.f32 %v1979_v8, %v1779_v54  ;;  %2313 = vmatmul.f32.gmra.mxu1 %v2122_v48  ;;  %2443 = vmatmul.f32.gmra.mxu3 %v2122_v48  ;;  %v1855_v34 = vpop.f32.mrf.mxu0 }
 0x3b9   :  { %v2047_v59 = vpop.f32.mrf.mxu3  ;;  %2776 = vmatpush.msrb.mxu3 %v2532_v51  ;;  %v1921_v53 = vadd.f32 %v1920_v39, %v1855_v34  ;;  %v2889_v34 = vld [vmem:[#allocation13 + $0xf0] sm:$0xff]  ;;  %v2918_v51 = vld [vmem:[#allocation13 + $0x1d8] sm:$0xff] }
 0x3ba   :  { %v2089_v61 = vadd.f32 %v5810_v45, %v1980_v26  ;;  %v2048_v62 = vadd.f32 %v2047_v59, %v1912_v57  ;;  %v1791_v26 = vadd.f32 %v5777_v6, %v5784_v40 }
 0x3bb   :  { %2777 = vmatpush.msrb.mxu3 %v2530_v37 }
 0x3bc   :  { %v2092_v1 = vadd.f32 %v5807_v58, %v2048_v62  ;;  %v2121_v31 = vmax.f32 %v2089_v61, 0.0  ;;  %v1923_v57 = vpop.f32.mrf.mxu1 }
 0x3be   :  { %2248 = vmatmul.f32.gmra.mxu0 %v2121_v31  ;;  %2378 = vmatmul.f32.gmra.mxu2 %v2121_v31  ;;  %v2124_v4 = vmax.f32 %v2092_v1, 0.0  ;;  %v2531_v1 = vld [vmem:[#allocation11 + $0x110] sm:$0xff]  ;;  %v2498_v31 = vld [vmem:[#allocation11 + $0x8] sm:$0xff] }
 0x3bf   :  { %v1982_v49 = vpop.f32.mrf.mxu2  ;;  %2646 = vmatpush.msra.mxu1 %v2531_v1  ;;  %2712 = vmatpush.msrb.mxu2 %v2498_v31 }
 0x3c0   :  { %v1983_v9 = vadd.f32 %v1982_v49, %v1782_v30  ;;  %2316 = vmatmul.f32.gmra.mxu1 %v2124_v4  ;;  %2446 = vmatmul.f32.gmra.mxu3 %v2124_v4  ;;  %v1858_v8 = vpop.f32.mrf.mxu0  ;;  %v2497_v30 = vld [vmem:[#allocation11] sm:$0xff]  ;;  %v1794_v49 = vadd.f32 %v5786_v12, %v5793_v27  ;;  %v1797_v12 = vadd.f32 %v5795_v18, %v5805_v52  ;;  %v2921_v52 = vld [vmem:[#allocation13 + $0x1f0] sm:$0xff] }
 0x3c1   :  { %v2050_v16 = vpop.f32.mrf.mxu3  ;;  %v1924_v62 = vadd.f32 %v1923_v57, %v1858_v8  ;;  %2582 = vmatpush.msra.mxu0 %v2497_v30  ;;  %v2199_v18 = vld [vmem:[%s6631_s14] sm:$0x3]  ;;  %v2917_v57 = vld [vmem:[#allocation13 + $0x1d0] sm:$0xff] }
 0x3c2   :  { %v2091_v14 = vadd.f32 %v5810_v45, %v1983_v9  ;;  %v2051_v17 = vadd.f32 %v2050_v16, %v1915_v15  ;;  %v2529_v9 = vld [vmem:[#allocation11 + $0x100] sm:$0xff] }
 0x3c3   :  { %2647 = vmatpush.msra.mxu1 %v2529_v9  ;;  %2929 = vmatpush.msrb.mxu0 %v2889_v34  ;;  %v2883_v30 = vld [vmem:[#allocation13 + $0xc0] sm:$0xff] }
 0x3c4   :  { %v2094_v42 = vadd.f32 %v5807_v58, %v2051_v17  ;;  %v2123_v47 = vmax.f32 %v2091_v14, 0.0  ;;  %v1926_v55 = vpop.f32.mrf.mxu1 }
 0x3c5   :  { %2994 = vmatpush.msrb.mxu1 %v2921_v52  ;;  %2930 = vmatpush.msrb.mxu0 %v2887_v36  ;;  %v2910_v36 = vld [vmem:[#allocation13 + $0x198] sm:$0xff] }
 0x3c6   :  { %2251 = vmatmul.f32.gmra.mxu0 %v2123_v47  ;;  %2381 = vmatmul.f32.gmra.mxu2 %v2123_v47  ;;  %v2126_v28 = vmax.f32 %v2094_v42, 0.0 }
 0x3c7   :  { %v1985_v38 = vpop.f32.mrf.mxu2 }
 0x3c8   :  { %v1986_v41 = vadd.f32 %v1985_v38, %v1785_v25  ;;  %2319 = vmatmul.f32.gmra.mxu1 %v2126_v28  ;;  %2449 = vmatmul.f32.gmra.mxu3 %v2126_v28  ;;  %v1861_v7 = vpop.f32.mrf.mxu0  ;;  %v2890_v25 = vld [vmem:[#allocation13 + $0xf8] sm:$0xff] }
 0x3c9   :  { %v2053_v10 = vpop.f32.mrf.mxu3  ;;  %v1927_v14 = vadd.f32 %v1926_v55, %v1861_v7  ;;  %3059 = vmatpush.msra.mxu2 %v2890_v25  ;;  %v2922_v38 = vld [vmem:[#allocation13 + $0x1f8] sm:$0xff] }
 0x3ca   :  { %v2093_v21 = vadd.f32 %v5810_v45, %v1986_v41  ;;  %v2054_v0 = vadd.f32 %v2053_v10, %v1918_v13  ;;  %3124 = vmatpush.msra.mxu3 %v2922_v38  ;;  %v2888_v10 = vld [vmem:[#allocation13 + $0xe8] sm:$0xff]  ;;  %v2882_v7 = vld [vmem:[#allocation13 + $0xb8] sm:$0xff] }
 0x3cb   :  { %3060 = vmatpush.msra.mxu2 %v2888_v10 }
 0x3cc   :  { %v2096_v50 = vadd.f32 %v5807_v58, %v2054_v0  ;;  %v2125_v56 = vmax.f32 %v2093_v21, 0.0  ;;  %v5881_v21 = vperm.slane %v2199_v18, 0  ;;  %v2920_v0 = vld [vmem:[#allocation13 + $0x1e8] sm:$0xff] }
 0x3cd   :  { %3125 = vmatpush.msra.mxu3 %v2920_v0 }
 0x3ce   :  { %2254 = vmatmul.f32.gmra.mxu0 %v2125_v56  ;;  %2384 = vmatmul.f32.gmra.mxu2 %v2125_v56  ;;  %v2128_v44 = vmax.f32 %v2096_v50, 0.0  ;;  %v5884_v56 = vperm.slane %v2199_v18, 1  ;;  %v2879_v18 = vld [vmem:[#allocation13 + $0xa0] sm:$0xff] }
 0x3cf   :  { %v1988_v29 = vpop.f32.mrf.mxu2  ;;  %3126 = vmatpush.msra.mxu3 %v2918_v51 }
 0x3d0   :  { %v1989_v54 = vadd.f32 %v1988_v29, %v1788_v43  ;;  %2322 = vmatmul.f32.gmra.mxu1 %v2128_v44  ;;  %2452 = vmatmul.f32.gmra.mxu3 %v2128_v44  ;;  %v2919_v43 = vld [vmem:[#allocation13 + $0x1e0] sm:$0xff]  ;;  %v2886_v44 = vld [vmem:[#allocation13 + $0xd8] sm:$0xff] }
 0x3d1   :  { %v2056_v48 = vpop.f32.mrf.mxu3  ;;  %2995 = vmatpush.msrb.mxu1 %v2919_v43  ;;  %3061 = vmatpush.msra.mxu2 %v2886_v44 }
 0x3d2   :  { %v2095_v22 = vadd.f32 %v5810_v45, %v1989_v54  ;;  %v2057_v46 = vadd.f32 %v2056_v48, %v1921_v53 }
 0x3d3   :  { %2996 = vmatpush.msrb.mxu1 %v2917_v57 }
 0x3d4   :  { %v2098_v60 = vadd.f32 %v5807_v58, %v2057_v46  ;;  %v2127_v3 = vmax.f32 %v2095_v22, 0.0  ;;  %v2885_v46 = vld [vmem:[#allocation13 + $0xd0] sm:$0xff] }
 0x3d5   :  { %2931 = vmatpush.msrb.mxu0 %v2885_v46 }
 0x3d6   :  { %2257 = vmatmul.f32.gmra.mxu0 %v2127_v3  ;;  %2387 = vmatmul.f32.gmra.mxu2 %v2127_v3  ;;  %v2130_v59 = vmax.f32 %v2098_v60, 0.0 }
 0x3d7   :  { %v1991_v61 = vpop.f32.mrf.mxu2  ;;  %2932 = vmatpush.msrb.mxu0 %v2883_v30 }
 0x3d8   :  { %v1992_v63 = vadd.f32 %v1991_v61, %v1791_v26  ;;  %2325 = vmatmul.f32.gmra.mxu1 %v2130_v59  ;;  %2455 = vmatmul.f32.gmra.mxu3 %v2130_v59  ;;  %v2884_v26 = vld [vmem:[#allocation13 + $0xc8] sm:$0xff] }
 0x3d9   :  { %v2059_v2 = vpop.f32.mrf.mxu3  ;;  %3062 = vmatpush.msra.mxu2 %v2884_v26  ;;  %v2916_v61 = vld [vmem:[#allocation13 + $0x1c8] sm:$0xff] }
 0x3da   :  { %v2097_v4 = vadd.f32 %v5810_v45, %v1992_v63  ;;  %v2060_v5 = vadd.f32 %v2059_v2, %v1924_v62  ;;  %3127 = vmatpush.msra.mxu3 %v2916_v61 }
 0x3db   :  { %3063 = vmatpush.msra.mxu2 %v2882_v7 }
 0x3dc   :  { %v2100_v6 = vadd.f32 %v5807_v58, %v2060_v5  ;;  %v2129_v40 = vmax.f32 %v2097_v4, 0.0 }
 0x3de   :  { %2260 = vmatmul.f32.gmra.mxu0 %v2129_v40  ;;  %2390 = vmatmul.f32.gmra.mxu2 %v2129_v40  ;;  %v2132_v15 = vmax.f32 %v2100_v6, 0.0  ;;  %v2915_v40 = vld [vmem:[#allocation13 + $0x1c0] sm:$0xff] }
 0x3df   :  { %v1994_v16 = vpop.f32.mrf.mxu2  ;;  %2997 = vmatpush.msrb.mxu1 %v2915_v40 }
 0x3e0   :  { %v1995_v17 = vadd.f32 %v1994_v16, %v1794_v49  ;;  %2328 = vmatmul.f32.gmra.mxu1 %v2132_v15  ;;  %2458 = vmatmul.f32.gmra.mxu3 %v2132_v15  ;;  %v2914_v15 = vld [vmem:[#allocation13 + $0x1b8] sm:$0xff] }
 0x3e1   :  { %v2062_v19 = vpop.f32.mrf.mxu3  ;;  %3128 = vmatpush.msra.mxu3 %v2914_v15 }
 0x3e2   :  { %v2099_v42 = vadd.f32 %v5810_v45, %v1995_v17  ;;  %v2063_v47 = vadd.f32 %v2062_v19, %v1927_v14 }
 0x3e4   :  { %v2102_v20 = vadd.f32 %v5807_v58, %v2063_v47  ;;  %v2131_v23 = vmax.f32 %v2099_v42, 0.0  ;;  %v2881_v42 = vld [vmem:[#allocation13 + $0xb0] sm:$0xff] }
 0x3e5   :  { %2933 = vmatpush.msrb.mxu0 %v2881_v42 }
 0x3e6   :  { %2263 = vmatmul.f32.gmra.mxu0 %v2131_v23  ;;  %2393 = vmatmul.f32.gmra.mxu2 %v2131_v23  ;;  %v2134_v27 = vmax.f32 %v2102_v20, 0.0 }
 0x3e7   :  { %v1997_v28 = vpop.f32.mrf.mxu2  ;;  %2934 = vmatpush.msrb.mxu0 %v2879_v18 }
 0x3e8   :  { %v1998_v32 = vadd.f32 %v1997_v28, %v1797_v12  ;;  %2331 = vmatmul.f32.gmra.mxu1 %v2134_v27  ;;  %2461 = vmatmul.f32.gmra.mxu3 %v2134_v27  ;;  %v2913_v12 = vld [vmem:[#allocation13 + $0x1b0] sm:$0xff]  ;;  %v2880_v27 = vld [vmem:[#allocation13 + $0xa8] sm:$0xff] }
 0x3e9   :  { %2998 = vmatpush.msrb.mxu1 %v2913_v12  ;;  %3064 = vmatpush.msra.mxu2 %v2880_v27  ;;  %v2912_v28 = vld [vmem:[#allocation13 + $0x1a8] sm:$0xff] }
 0x3ea   :  { %v2101_v13 = vadd.f32 %v5810_v45, %v1998_v32  ;;  %3129 = vmatpush.msra.mxu3 %v2912_v28 }
 0x3ec   :  { %v2133_v41 = vmax.f32 %v2101_v13, 0.0  ;;  %3130 = vmatpush.msra.mxu3 %v2910_v36 }
 0x3ed   :  { %v2287_v58 = vpop.f32.mrf.mxu1 }
 0x3ee   :  { %2266 = vmatmul.f32.gmra.mxu0 %v2133_v41  ;;  %2396 = vmatmul.f32.gmra.mxu2 %v2133_v41 }
 0x3f3   :  { %v2222_v33 = vpop.f32.mrf.mxu0  ;;  %v2417_v45 = vpop.f32.mrf.mxu3 }
 0x3f4   :  { %v2223_v35 = vadd.f32 %v2222_v33, %v5881_v21  ;;  %v2911_v33 = vld [vmem:[#allocation13 + $0x1a0] sm:$0xff] }
 0x3f5   :  { %v2290_v39 = vpop.f32.mrf.mxu1  ;;  %2999 = vmatpush.msrb.mxu1 %v2911_v33 }
 0x3f6   :  { %v2288_v50 = vadd.f32 %v2287_v58, %v2223_v35 }
 0x3f8   :  { %v2465_v11 = vmax.f32 %v2288_v50, 0.0 }
 0x3f9   :  { %v2352_v24 = vpop.f32.mrf.mxu2 }
 0x3fa   :  { %v2353_v29 = vadd.f32 %v2352_v24, %v5884_v56  ;;  %2583 = vmatmul.f32.vlgmr.msra.gmra.mxu0 %v2465_v11  ;;  %2713 = vmatmul.f32.vlgmr.msrb.gmra.mxu2 %v2465_v11  ;;  %v2877_v24 = vld [vmem:[#allocation13 + $0x90] sm:$0xff] }
 0x3fb   :  { %v2225_v53 = vpop.f32.mrf.mxu0  ;;  %v2420_v54 = vpop.f32.mrf.mxu3  ;;  %2935 = vmatpush.msrb.mxu0 %v2877_v24 }
 0x3fc   :  { %v2418_v48 = vadd.f32 %v2417_v45, %v2353_v29  ;;  %v2226_v22 = vadd.f32 %v2225_v53, %v5881_v21  ;;  %v2878_v45 = vld [vmem:[#allocation13 + $0x98] sm:$0xff] }
 0x3fd   :  { %v2293_v8 = vpop.f32.mrf.mxu1  ;;  %3065 = vmatpush.msra.mxu2 %v2878_v45 }
 0x3fe   :  { %v2466_v60 = vmax.f32 %v2418_v48, 0.0  ;;  %v2291_v3 = vadd.f32 %v2290_v39, %v2226_v22  ;;  %v2909_v48 = vld [vmem:[#allocation13 + $0x190] sm:$0xff]  ;;  %v2876_v22 = vld [vmem:[#allocation13 + $0x88] sm:$0xff] }
 0x3ff   :  { %3000 = vmatpush.msrb.mxu1 %v2909_v48  ;;  %3066 = vmatpush.msra.mxu2 %v2876_v22 }
 0x400   :  { %2648 = vmatmul.f32.vlgmr.msra.gmra.mxu1 %v2466_v60  ;;  %2778 = vmatmul.f32.vlgmr.msrb.gmra.mxu3 %v2466_v60  ;;  %v2467_v59 = vmax.f32 %v2291_v3, 0.0 }
 0x401   :  { %v2355_v62 = vpop.f32.mrf.mxu2 }
 0x402   :  { %v2356_v63 = vadd.f32 %v2355_v62, %v5884_v56  ;;  %2586 = vmatmul.f32.gmra.mxu0 %v2467_v59  ;;  %2716 = vmatmul.f32.gmra.mxu2 %v2467_v59  ;;  %v2875_v62 = vld [vmem:[#allocation13 + $0x80] sm:$0xff] }
 0x403   :  { %v2228_v1 = vpop.f32.mrf.mxu0  ;;  %v2423_v31 = vpop.f32.mrf.mxu3  ;;  %2936 = vmatpush.msrb.mxu0 %v2875_v62 }
 0x404   :  { %v2421_v37 = vadd.f32 %v2420_v54, %v2356_v63  ;;  %v2229_v2 = vadd.f32 %v2228_v1, %v5881_v21 }
 0x405   :  { %v2296_v4 = vpop.f32.mrf.mxu1 }
 0x406   :  { %v2294_v5 = vadd.f32 %v2293_v8, %v2229_v2  ;;  %v2468_v6 = vmax.f32 %v2421_v37, 0.0  ;;  %v2908_v8 = vld [vmem:[#allocation13 + $0x188] sm:$0xff]  ;;  %v2907_v37 = vld [vmem:[#allocation13 + $0x180] sm:$0xff]  ;;  %v2874_v2 = vld [vmem:[#allocation13 + $0x78] sm:$0xff] }
 0x407   :  { %3131 = vmatpush.msra.mxu3 %v2908_v8  ;;  %3001 = vmatpush.msrb.mxu1 %v2907_v37 }
 0x408   :  { %2651 = vmatmul.f32.gmra.mxu1 %v2468_v6  ;;  %2781 = vmatmul.f32.gmra.mxu3 %v2468_v6  ;;  %v2469_v49 = vmax.f32 %v2294_v5, 0.0 }
 0x409   :  { %v2358_v9 = vpop.f32.mrf.mxu2  ;;  %3067 = vmatpush.msra.mxu2 %v2874_v2 }
 0x40a   :  { %v2359_v55 = vadd.f32 %v2358_v9, %v5884_v56  ;;  %2589 = vmatmul.f32.gmra.mxu0 %v2469_v49  ;;  %2719 = vmatmul.f32.gmra.mxu2 %v2469_v49  ;;  %v2873_v9 = vld [vmem:[#allocation13 + $0x70] sm:$0xff] }
 0x40b   :  { %v2231_v16 = vpop.f32.mrf.mxu0  ;;  %v2426_v14 = vpop.f32.mrf.mxu3  ;;  %2937 = vmatpush.msrb.mxu0 %v2873_v9 }
 0x40c   :  { %v2424_v17 = vadd.f32 %v2423_v31, %v2359_v55  ;;  %v2232_v19 = vadd.f32 %v2231_v16, %v5881_v21 }
 0x40d   :  { %v2299_v47 = vpop.f32.mrf.mxu1 }
 0x40e   :  { %v2297_v20 = vadd.f32 %v2296_v4, %v2232_v19  ;;  %v2470_v23 = vmax.f32 %v2424_v17, 0.0  ;;  %v2906_v4 = vld [vmem:[#allocation13 + $0x178] sm:$0xff]  ;;  %v2905_v17 = vld [vmem:[#allocation13 + $0x170] sm:$0xff]  ;;  %v2872_v19 = vld [vmem:[#allocation13 + $0x68] sm:$0xff] }
 0x40f   :  { %3132 = vmatpush.msra.mxu3 %v2906_v4  ;;  %3002 = vmatpush.msrb.mxu1 %v2905_v17 }
 0x410   :  { %2654 = vmatmul.f32.gmra.mxu1 %v2470_v23  ;;  %2784 = vmatmul.f32.gmra.mxu3 %v2470_v23  ;;  %v2471_v25 = vmax.f32 %v2297_v20, 0.0 }
 0x411   :  { %v2361_v32 = vpop.f32.mrf.mxu2  ;;  %3068 = vmatpush.msra.mxu2 %v2872_v19 }
 0x412   :  { %v2362_v38 = vadd.f32 %v2361_v32, %v5884_v56  ;;  %2592 = vmatmul.f32.gmra.mxu0 %v2471_v25  ;;  %2722 = vmatmul.f32.gmra.mxu2 %v2471_v25  ;;  %v2871_v32 = vld [vmem:[#allocation13 + $0x60] sm:$0xff] }
 0x413   :  { %v2234_v13 = vpop.f32.mrf.mxu0  ;;  %v2429_v41 = vpop.f32.mrf.mxu3  ;;  %2938 = vmatpush.msrb.mxu0 %v2871_v32  ;;  %v2894_v32 = vld [vmem:[#allocation13 + $0x118] sm:$0xff] }
 0x414   :  { %v2427_v34 = vadd.f32 %v2426_v14, %v2362_v38  ;;  %v2235_v58 = vadd.f32 %v2234_v13, %v5881_v21 }
 0x415   :  { %v2302_v52 = vpop.f32.mrf.mxu1 }
 0x416   :  { %v2300_v10 = vadd.f32 %v2299_v47, %v2235_v58  ;;  %v2472_v0 = vmax.f32 %v2427_v34, 0.0  ;;  %v2904_v47 = vld [vmem:[#allocation13 + $0x168] sm:$0xff]  ;;  %v2903_v34 = vld [vmem:[#allocation13 + $0x160] sm:$0xff]  ;;  %v2870_v58 = vld [vmem:[#allocation13 + $0x58] sm:$0xff] }
 0x417   :  { %3133 = vmatpush.msra.mxu3 %v2904_v47  ;;  %3003 = vmatpush.msrb.mxu1 %v2903_v34  ;;  %v2863_v47 = vld [vmem:[#allocation13 + $0x20] sm:$0xff] }
 0x418   :  { %2657 = vmatmul.f32.gmra.mxu1 %v2472_v0  ;;  %2787 = vmatmul.f32.gmra.mxu3 %v2472_v0  ;;  %v2473_v35 = vmax.f32 %v2300_v10, 0.0 }
 0x419   :  { %v2364_v39 = vpop.f32.mrf.mxu2  ;;  %3069 = vmatpush.msra.mxu2 %v2870_v58 }
 0x41a   :  { %v2365_v50 = vadd.f32 %v2364_v39, %v5884_v56  ;;  %2595 = vmatmul.f32.gmra.mxu0 %v2473_v35  ;;  %2725 = vmatmul.f32.gmra.mxu2 %v2473_v35  ;;  %v2869_v39 = vld [vmem:[#allocation13 + $0x50] sm:$0xff] }
 0x41b   :  { %v2237_v43 = vpop.f32.mrf.mxu0  ;;  %v2432_v44 = vpop.f32.mrf.mxu3  ;;  %2939 = vmatpush.msrb.mxu0 %v2869_v39  ;;  %v2892_v39 = vld [vmem:[#allocation13 + $0x108] sm:$0xff] }
 0x41c   :  { %v2430_v11 = vadd.f32 %v2429_v41, %v2365_v50  ;;  %v2238_v51 = vadd.f32 %v2237_v43, %v5881_v21 }
 0x41d   :  { %v2305_v29 = vpop.f32.mrf.mxu1 }
 0x41e   :  { %v2303_v53 = vadd.f32 %v2302_v52, %v2238_v51  ;;  %v2474_v54 = vmax.f32 %v2430_v11, 0.0  ;;  %v2902_v52 = vld [vmem:[#allocation13 + $0x158] sm:$0xff]  ;;  %v2901_v11 = vld [vmem:[#allocation13 + $0x150] sm:$0xff]  ;;  %v2868_v51 = vld [vmem:[#allocation13 + $0x48] sm:$0xff] }
 0x41f   :  { %3134 = vmatpush.msra.mxu3 %v2902_v52  ;;  %3004 = vmatpush.msrb.mxu1 %v2901_v11 }
 0x420   :  { %2660 = vmatmul.f32.gmra.mxu1 %v2474_v54  ;;  %2790 = vmatmul.f32.gmra.mxu3 %v2474_v54  ;;  %v2475_v46 = vmax.f32 %v2303_v53, 0.0 }
 0x421   :  { %v2367_v60 = vpop.f32.mrf.mxu2  ;;  %3070 = vmatpush.msra.mxu2 %v2868_v51 }
 0x422   :  { %v2368_v3 = vadd.f32 %v2367_v60, %v5884_v56  ;;  %2598 = vmatmul.f32.gmra.mxu0 %v2475_v46  ;;  %2728 = vmatmul.f32.gmra.mxu2 %v2475_v46  ;;  %v2867_v60 = vld [vmem:[#allocation13 + $0x40] sm:$0xff] }
 0x423   :  { %v2240_v57 = vpop.f32.mrf.mxu0  ;;  %v2435_v26 = vpop.f32.mrf.mxu3  ;;  %2940 = vmatpush.msrb.mxu0 %v2867_v60 }
 0x424   :  { %v2433_v59 = vadd.f32 %v2432_v44, %v2368_v3  ;;  %v2241_v61 = vadd.f32 %v2240_v57, %v5881_v21 }
 0x425   :  { %v2308_v63 = vpop.f32.mrf.mxu1 }
 0x426   :  { %v2306_v1 = vadd.f32 %v2305_v29, %v2241_v61  ;;  %v2476_v31 = vmax.f32 %v2433_v59, 0.0  ;;  %v2900_v29 = vld [vmem:[#allocation13 + $0x148] sm:$0xff]  ;;  %v2899_v59 = vld [vmem:[#allocation13 + $0x140] sm:$0xff]  ;;  %v2866_v61 = vld [vmem:[#allocation13 + $0x38] sm:$0xff] }
 0x427   :  { %3135 = vmatpush.msra.mxu3 %v2900_v29  ;;  %3005 = vmatpush.msrb.mxu1 %v2899_v59 }
 0x428   :  { %2663 = vmatmul.f32.gmra.mxu1 %v2476_v31  ;;  %2793 = vmatmul.f32.gmra.mxu3 %v2476_v31  ;;  %v2477_v30 = vmax.f32 %v2306_v1, 0.0 }
 0x429   :  { %v2370_v5 = vpop.f32.mrf.mxu2  ;;  %3071 = vmatpush.msra.mxu2 %v2866_v61 }
 0x42a   :  { %v2371_v6 = vadd.f32 %v2370_v5, %v5884_v56  ;;  %2601 = vmatmul.f32.gmra.mxu0 %v2477_v30  ;;  %2731 = vmatmul.f32.gmra.mxu2 %v2477_v30  ;;  %v2865_v5 = vld [vmem:[#allocation13 + $0x30] sm:$0xff] }
 0x42b   :  { %v2243_v40 = vpop.f32.mrf.mxu0  ;;  %v2438_v7 = vpop.f32.mrf.mxu3  ;;  %2941 = vmatpush.msrb.mxu0 %v2865_v5 }
 0x42c   :  { %v2436_v49 = vadd.f32 %v2435_v26, %v2371_v6  ;;  %v2244_v15 = vadd.f32 %v2243_v40, %v5881_v21 }
 0x42d   :  { %v2311_v55 = vpop.f32.mrf.mxu1  ;;  %2942 = vmatpush.msrb.mxu0 %v2863_v47 }
 0x42e   :  { %v2309_v16 = vadd.f32 %v2308_v63, %v2244_v15  ;;  %v2478_v14 = vmax.f32 %v2436_v49, 0.0  ;;  %v2898_v63 = vld [vmem:[#allocation13 + $0x138] sm:$0xff]  ;;  %v2864_v49 = vld [vmem:[#allocation13 + $0x28] sm:$0xff] }
 0x42f   :  { %3136 = vmatpush.msra.mxu3 %v2898_v63  ;;  %3072 = vmatpush.msra.mxu2 %v2864_v49 }
 0x430   :  { %2666 = vmatmul.f32.gmra.mxu1 %v2478_v14  ;;  %2796 = vmatmul.f32.gmra.mxu3 %v2478_v14  ;;  %v2479_v42 = vmax.f32 %v2309_v16, 0.0 }
 0x431   :  { %v2373_v20 = vpop.f32.mrf.mxu2 }
 0x432   :  { %v2374_v23 = vadd.f32 %v2373_v20, %v5884_v56  ;;  %2604 = vmatmul.f32.gmra.mxu0 %v2479_v42  ;;  %2734 = vmatmul.f32.gmra.mxu2 %v2479_v42  ;;  %v2895_v20 = vld [vmem:[#allocation13 + $0x120] sm:$0xff] }
 0x433   :  { %v2246_v12 = vpop.f32.mrf.mxu0  ;;  %v2441_v27 = vpop.f32.mrf.mxu3 }
 0x434   :  { %v2439_v25 = vadd.f32 %v2438_v7, %v2374_v23  ;;  %v2247_v28 = vadd.f32 %v2246_v12, %v5881_v21  ;;  %v2897_v7 = vld [vmem:[#allocation13 + $0x130] sm:$0xff]  ;;  %v2862_v23 = vld [vmem:[#allocation13 + $0x18] sm:$0xff] }
 0x435   :  { %v2314_v38 = vpop.f32.mrf.mxu1  ;;  %3006 = vmatpush.msrb.mxu1 %v2897_v7  ;;  %3073 = vmatpush.msra.mxu2 %v2862_v23  ;;  %v3235_v7 = vld [vmem:[%s6638_s21 + $0x70] sm:$0xff] }
 0x436   :  { %v2312_v13 = vadd.f32 %v2311_v55, %v2247_v28  ;;  %v2480_v41 = vmax.f32 %v2439_v25, 0.0  ;;  %v2896_v55 = vld [vmem:[#allocation13 + $0x128] sm:$0xff] }
 0x437   :  { %3137 = vmatpush.msra.mxu3 %v2896_v55  ;;  %3007 = vmatpush.msrb.mxu1 %v2895_v20 }
 0x438   :  { %2669 = vmatmul.f32.gmra.mxu1 %v2480_v41  ;;  %2799 = vmatmul.f32.gmra.mxu3 %v2480_v41  ;;  %v2481_v18 = vmax.f32 %v2312_v13, 0.0  ;;  %v2893_v13 = vld [vmem:[#allocation13 + $0x110] sm:$0xff] }
 0x439   :  { %v2376_v10 = vpop.f32.mrf.mxu2  ;;  %3138 = vmatpush.msra.mxu3 %v2894_v32  ;;  %3008 = vmatpush.msrb.mxu1 %v2893_v13 }
 0x43a   :  { %v2377_v0 = vadd.f32 %v2376_v10, %v5884_v56  ;;  %2607 = vmatmul.f32.gmra.mxu0 %v2481_v18  ;;  %2737 = vmatmul.f32.gmra.mxu2 %v2481_v18 }
 0x43b   :  { %v2249_v33 = vpop.f32.mrf.mxu0  ;;  %v2444_v45 = vpop.f32.mrf.mxu3  ;;  %3139 = vmatpush.msra.mxu3 %v2892_v39 }
 0x43c   :  { %v2442_v35 = vadd.f32 %v2441_v27, %v2377_v0  ;;  %v2250_v36 = vadd.f32 %v2249_v33, %v5881_v21 }
 0x43d   :  { %v2317_v50 = vpop.f32.mrf.mxu1 }
 0x43e   :  { %v2315_v43 = vadd.f32 %v2314_v38, %v2250_v36  ;;  %v2482_v44 = vmax.f32 %v2442_v35, 0.0  ;;  %v2861_v38 = vld [vmem:[#allocation13 + $0x10] sm:$0xff]  ;;  %v2860_v36 = vld [vmem:[#allocation13 + $0x8] sm:$0xff] }
 0x43f   :  { %2943 = vmatpush.msrb.mxu0 %v2861_v38  ;;  %3074 = vmatpush.msra.mxu2 %v2860_v36 }
 0x440   :  { %2672 = vmatmul.f32.gmra.mxu1 %v2482_v44  ;;  %2802 = vmatmul.f32.gmra.mxu3 %v2482_v44  ;;  %v2483_v24 = vmax.f32 %v2315_v43, 0.0 }
 0x441   :  { %v2379_v53 = vpop.f32.mrf.mxu2 }
 0x442   :  { %v2380_v54 = vadd.f32 %v2379_v53, %v5884_v56  ;;  %2610 = vmatmul.f32.gmra.mxu0 %v2483_v24  ;;  %2740 = vmatmul.f32.gmra.mxu2 %v2483_v24 }
 0x443   :  { %v2252_v48 = vpop.f32.mrf.mxu0  ;;  %v2447_v22 = vpop.f32.mrf.mxu3 }
 0x444   :  { %v2445_v46 = vadd.f32 %v2444_v45, %v2380_v54  ;;  %v2253_v8 = vadd.f32 %v2252_v48, %v5881_v21  ;;  %v2891_v48 = vld [vmem:[#allocation13 + $0x100] sm:$0xff] }
 0x445   :  { %v2320_v3 = vpop.f32.mrf.mxu1  ;;  %3009 = vmatpush.msrb.mxu1 %v2891_v48 }
 0x446   :  { %v2318_v57 = vadd.f32 %v2317_v50, %v2253_v8  ;;  %v2484_v26 = vmax.f32 %v2445_v46, 0.0  ;;  %v2859_v50 = vld [vmem:[#allocation13] sm:$0xff] }
 0x447   :  { %2944 = vmatpush.msrb.mxu0 %v2859_v50  ;;  %v3232_v50 = vld [vmem:[%s6638_s21 + $0x58] sm:$0xff] }
 0x448   :  { %2675 = vmatmul.f32.gmra.mxu1 %v2484_v26  ;;  %2805 = vmatmul.f32.gmra.mxu3 %v2484_v26  ;;  %v2485_v62 = vmax.f32 %v2318_v57, 0.0 }
 0x449   :  { %v2382_v1 = vpop.f32.mrf.mxu2 }
 0x44a   :  { %v2383_v31 = vadd.f32 %v2382_v1, %v5884_v56  ;;  %2613 = vmatmul.f32.gmra.mxu0 %v2485_v62  ;;  %2743 = vmatmul.f32.gmra.mxu2 %v2485_v62  ;;  %v3236_v1 = vld [vmem:[%s6638_s21 + $0x78] sm:$0xff] }
 0x44b   :  { %v2255_v37 = vpop.f32.mrf.mxu0  ;;  %v2450_v2 = vpop.f32.mrf.mxu3  ;;  %3257 = vmatpush.msra.mxu0 %v3236_v1 }
 0x44c   :  { %v2448_v30 = vadd.f32 %v2447_v22, %v2383_v31  ;;  %v2256_v4 = vadd.f32 %v2255_v37, %v5881_v21  ;;  %v3252_v31 = vld [vmem:[%s6638_s21 + $0xf8] sm:$0xff] }
 0x44d   :  { %v2323_v15 = vpop.f32.mrf.mxu1  ;;  %3322 = vmatpush.msra.mxu1 %v3252_v31  ;;  %3258 = vmatpush.msra.mxu0 %v3235_v7 }
 0x44e   :  { %v2321_v6 = vadd.f32 %v2320_v3, %v2256_v4  ;;  %v2486_v40 = vmax.f32 %v2448_v30, 0.0  ;;  %v2561_v4 = vld [vmem:[%s6633_s16] sm:$0x3] }
 0x450   :  { %2678 = vmatmul.f32.gmra.mxu1 %v2486_v40  ;;  %2808 = vmatmul.f32.gmra.mxu3 %v2486_v40  ;;  %v2487_v9 = vmax.f32 %v2321_v6, 0.0  ;;  %v5926_v40 = vperm.slane %v2561_v4, 0 }
 0x451   :  { %v2385_v16 = vpop.f32.mrf.mxu2 }
 0x452   :  { %v2386_v14 = vadd.f32 %v2385_v16, %v5884_v56  ;;  %2616 = vmatmul.f32.gmra.mxu0 %v2487_v9  ;;  %2746 = vmatmul.f32.gmra.mxu2 %v2487_v9  ;;  %v5935_v16 = vperm.slane %v2561_v4, 1 }
 0x453   :  { %v2258_v17 = vpop.f32.mrf.mxu0  ;;  %v2453_v12 = vpop.f32.mrf.mxu3 }
 0x454   :  { %v2451_v19 = vadd.f32 %v2450_v2, %v2386_v14  ;;  %v2259_v42 = vadd.f32 %v2258_v17, %v5881_v21 }
 0x455   :  { %v2326_v41 = vpop.f32.mrf.mxu1 }
 0x456   :  { %v2324_v27 = vadd.f32 %v2323_v15, %v2259_v42  ;;  %v2488_v25 = vmax.f32 %v2451_v19, 0.0  ;;  %v3234_v19 = vld [vmem:[%s6638_s21 + $0x68] sm:$0xff] }
 0x457   :  { %v3250_v42 = vld [vmem:[%s6638_s21 + $0xe8] sm:$0xff]  ;;  %3259 = vmatpush.msra.mxu0 %v3234_v19 }
 0x458   :  { %2681 = vmatmul.f32.gmra.mxu1 %v2488_v25  ;;  %2811 = vmatmul.f32.gmra.mxu3 %v2488_v25  ;;  %v2489_v28 = vmax.f32 %v2324_v27, 0.0 }
 0x459   :  { %v2388_v34 = vpop.f32.mrf.mxu2 }
 0x45a   :  { %v2389_v58 = vadd.f32 %v2388_v34, %v5884_v56  ;;  %2619 = vmatmul.f32.gmra.mxu0 %v2489_v28  ;;  %2749 = vmatmul.f32.gmra.mxu2 %v2489_v28  ;;  %v3249_v34 = vld [vmem:[%s6638_s21 + $0xe0] sm:$0xff] }
 0x45b   :  { %v2261_v18 = vpop.f32.mrf.mxu0  ;;  %v2456_v45 = vpop.f32.mrf.mxu3 }
 0x45c   :  { %v2454_v52 = vadd.f32 %v2453_v12, %v2389_v58  ;;  %v2262_v10 = vadd.f32 %v2261_v18, %v5881_v21 }
 0x45d   :  { %v2329_v11 = vpop.f32.mrf.mxu1 }
 0x45e   :  { %v2327_v0 = vadd.f32 %v2326_v41, %v2262_v10  ;;  %v2490_v33 = vmax.f32 %v2454_v52, 0.0  ;;  %v3233_v41 = vld [vmem:[%s6638_s21 + $0x60] sm:$0xff] }
 0x45f   :  { %3260 = vmatpush.msra.mxu0 %v3233_v41 }
 0x460   :  { %2684 = vmatmul.f32.gmra.mxu1 %v2490_v33  ;;  %2814 = vmatmul.f32.gmra.mxu3 %v2490_v33  ;;  %v2491_v35 = vmax.f32 %v2327_v0, 0.0 }
 0x461   :  { %v2391_v43 = vpop.f32.mrf.mxu2  ;;  %3261 = vmatpush.msra.mxu0 %v3232_v50 }
 0x462   :  { %v2392_v44 = vadd.f32 %v2391_v43, %v5884_v56  ;;  %2622 = vmatmul.f32.gmra.mxu0 %v2491_v35  ;;  %2752 = vmatmul.f32.gmra.mxu2 %v2491_v35  ;;  %v3248_v43 = vld [vmem:[%s6638_s21 + $0xd8] sm:$0xff] }
 0x463   :  { %v2264_v51 = vpop.f32.mrf.mxu0  ;;  %v2459_v46 = vpop.f32.mrf.mxu3 }
 0x464   :  { %v2457_v24 = vadd.f32 %v2456_v45, %v2392_v44  ;;  %v2265_v29 = vadd.f32 %v2264_v51, %v5881_v21 }
 0x465   :  { %v2332_v59 = vpop.f32.mrf.mxu1 }
 0x466   :  { %v2330_v53 = vadd.f32 %v2329_v11, %v2265_v29  ;;  %v2492_v54 = vmax.f32 %v2457_v24, 0.0 }
 0x468   :  { %2687 = vmatmul.f32.gmra.mxu1 %v2492_v54  ;;  %2817 = vmatmul.f32.gmra.mxu3 %v2492_v54  ;;  %v2493_v22 = vmax.f32 %v2330_v53, 0.0 }
 0x469   :  { %v2394_v8 = vpop.f32.mrf.mxu2 }
 0x46a   :  { %v2395_v60 = vadd.f32 %v2394_v8, %v5884_v56  ;;  %2625 = vmatmul.f32.gmra.mxu0 %v2493_v22  ;;  %2755 = vmatmul.f32.gmra.mxu2 %v2493_v22  ;;  %v3231_v8 = vld [vmem:[%s6638_s21 + $0x50] sm:$0xff] }
 0x46b   :  { %v2267_v3 = vpop.f32.mrf.mxu0  ;;  %3262 = vmatpush.msra.mxu0 %v3231_v8 }
 0x46c   :  { %v2460_v57 = vadd.f32 %v2459_v46, %v2395_v60  ;;  %v2268_v26 = vadd.f32 %v2267_v3, %v5881_v21  ;;  %v2462_v21 = vpop.f32.mrf.mxu3  ;;  %v3247_v60 = vld [vmem:[%s6638_s21 + $0xd0] sm:$0xff] }
 0x46e   :  { %v2333_v61 = vadd.f32 %v2332_v59, %v2268_v26  ;;  %v2494_v62 = vmax.f32 %v2460_v57, 0.0 }
 0x470   :  { %2690 = vmatmul.f32.gmra.mxu1 %v2494_v62  ;;  %2820 = vmatmul.f32.gmra.mxu3 %v2494_v62  ;;  %v2495_v63 = vmax.f32 %v2333_v61, 0.0 }
 0x471   :  { %v2397_v37 = vpop.f32.mrf.mxu2 }
 0x472   :  { %v2398_v2 = vadd.f32 %v2397_v37, %v5884_v56  ;;  %2628 = vmatmul.f32.gmra.mxu0 %v2495_v63  ;;  %2758 = vmatmul.f32.gmra.mxu2 %v2495_v63  ;;  %v3251_v56 = vld [vmem:[%s6638_s21 + $0xf0] sm:$0xff] }
 0x473   :  { %3323 = vmatpush.msra.mxu1 %v3251_v56 }
 0x474   :  { %v2463_v30 = vadd.f32 %v2462_v21, %v2398_v2  ;;  %v3230_v2 = vld [vmem:[%s6638_s21 + $0x48] sm:$0xff] }
 0x475   :  { %3324 = vmatpush.msra.mxu1 %v3250_v42  ;;  %v3246_v21 = vld [vmem:[%s6638_s21 + $0xc8] sm:$0xff]  ;;  %3263 = vmatpush.msra.mxu0 %v3230_v2 }
 0x476   :  { %v2496_v5 = vmax.f32 %v2463_v30, 0.0 }
 0x477   :  { %v2584_v6 = vpop.f32.mrf.mxu0  ;;  %3325 = vmatpush.msra.mxu1 %v3249_v34 }
 0x478   :  { %2693 = vmatmul.f32.gmra.mxu1 %v2496_v5  ;;  %2823 = vmatmul.f32.gmra.mxu3 %v2496_v5  ;;  %v2585_v49 = vadd.f32 %v2584_v6, %v5926_v40 }
 0x479   :  { %3326 = vmatpush.msra.mxu1 %v3248_v43 }
 0x47b   :  { %3327 = vmatpush.msra.mxu1 %v3247_v60 }
 0x47d   :  { %v2649_v15 = vpop.f32.mrf.mxu1  ;;  %v2714_v9 = vpop.f32.mrf.mxu2  ;;  %3328 = vmatpush.msra.mxu1 %v3246_v21  ;;  %v3417_v21 = vld [vmem:[#allocation14 + $0xf0] sm:$0xff] }
 0x47e   :  { %v2650_v55 = vadd.f32 %v2649_v15, %v2585_v49  ;;  %v2715_v47 = vadd.f32 %v2714_v9, %v5935_v16  ;;  %3457 = vmatpush.msrb.mxu2 %v3417_v21 }
 0x47f   :  { %v2587_v14 = vpop.f32.mrf.mxu0 }
 0x480   :  { %v2827_v17 = vmax.f32 %v2650_v55, 0.0  ;;  %v2588_v23 = vadd.f32 %v2587_v14, %v5926_v40  ;;  %v3229_v14 = vld [vmem:[%s6638_s21 + $0x40] sm:$0xff] }
 0x481   :  { %3264 = vmatpush.msra.mxu0 %v3229_v14 }
 0x482   :  { %2945 = vmatmul.f32.vlgmr.msrb.gmra.mxu0 %v2827_v17  ;;  %3075 = vmatmul.f32.vlgmr.msra.gmra.mxu2 %v2827_v17  ;;  %v3245_v17 = vld [vmem:[%s6638_s21 + $0xc0] sm:$0xff] }
 0x483   :  { %v2779_v20 = vpop.f32.mrf.mxu3  ;;  %3329 = vmatpush.msra.mxu1 %v3245_v17  ;;  %v3224_v17 = vld [vmem:[%s6638_s21 + $0x18] sm:$0xff] }
 0x484   :  { %v2780_v12 = vadd.f32 %v2779_v20, %v2715_v47 }
 0x485   :  { %v2652_v27 = vpop.f32.mrf.mxu1  ;;  %v2717_v25 = vpop.f32.mrf.mxu2 }
 0x486   :  { %v2828_v28 = vmax.f32 %v2780_v12, 0.0  ;;  %v2653_v32 = vadd.f32 %v2652_v27, %v2588_v23  ;;  %v2718_v58 = vadd.f32 %v2717_v25, %v5935_v16 }
 0x487   :  { %v2590_v38 = vpop.f32.mrf.mxu0 }
 0x488   :  { %v2829_v13 = vmax.f32 %v2653_v32, 0.0  ;;  %3010 = vmatmul.f32.vlgmr.msrb.gmra.mxu1 %v2828_v28  ;;  %3140 = vmatmul.f32.vlgmr.msra.gmra.mxu3 %v2828_v28  ;;  %v2591_v52 = vadd.f32 %v2590_v38, %v5926_v40  ;;  %v3228_v38 = vld [vmem:[%s6638_s21 + $0x38] sm:$0xff] }
 0x489   :  { %3265 = vmatpush.msra.mxu0 %v3228_v38  ;;  %v3445_v38 = vld [vmem:[#allocation14 + $0x1d0] sm:$0xff] }
 0x48a   :  { %2948 = vmatmul.f32.gmra.mxu0 %v2829_v13  ;;  %3078 = vmatmul.f32.gmra.mxu2 %v2829_v13  ;;  %v3244_v13 = vld [vmem:[%s6638_s21 + $0xb8] sm:$0xff] }
 0x48b   :  { %v2782_v18 = vpop.f32.mrf.mxu3  ;;  %3330 = vmatpush.msra.mxu1 %v3244_v13 }
 0x48c   :  { %v2783_v10 = vadd.f32 %v2782_v18, %v2718_v58 }
 0x48d   :  { %v2655_v0 = vpop.f32.mrf.mxu1  ;;  %v2720_v33 = vpop.f32.mrf.mxu2 }
 0x48e   :  { %v2830_v45 = vmax.f32 %v2783_v10, 0.0  ;;  %v2656_v35 = vadd.f32 %v2655_v0, %v2591_v52  ;;  %v2721_v44 = vadd.f32 %v2720_v33, %v5935_v16 }
 0x48f   :  { %v2593_v36 = vpop.f32.mrf.mxu0 }
 0x490   :  { %v2831_v39 = vmax.f32 %v2656_v35, 0.0  ;;  %3013 = vmatmul.f32.gmra.mxu1 %v2830_v45  ;;  %3143 = vmatmul.f32.gmra.mxu3 %v2830_v45  ;;  %v2594_v51 = vadd.f32 %v2593_v36, %v5926_v40  ;;  %v3227_v36 = vld [vmem:[%s6638_s21 + $0x30] sm:$0xff] }
 0x491   :  { %3266 = vmatpush.msra.mxu0 %v3227_v36 }
 0x492   :  { %2951 = vmatmul.f32.gmra.mxu0 %v2831_v39  ;;  %3081 = vmatmul.f32.gmra.mxu2 %v2831_v39  ;;  %v3243_v39 = vld [vmem:[%s6638_s21 + $0xb0] sm:$0xff] }
 0x493   :  { %v2785_v11 = vpop.f32.mrf.mxu3  ;;  %3331 = vmatpush.msra.mxu1 %v3243_v39  ;;  %v3441_v39 = vld [vmem:[#allocation14 + $0x1b0] sm:$0xff] }
 0x494   :  { %v2786_v24 = vadd.f32 %v2785_v11, %v2721_v44 }
 0x495   :  { %v2658_v29 = vpop.f32.mrf.mxu1  ;;  %v2723_v53 = vpop.f32.mrf.mxu2 }
 0x496   :  { %v2832_v54 = vmax.f32 %v2786_v24, 0.0  ;;  %v2659_v48 = vadd.f32 %v2658_v29, %v2594_v51  ;;  %v2724_v3 = vadd.f32 %v2723_v53, %v5935_v16 }
 0x497   :  { %v2596_v22 = vpop.f32.mrf.mxu0 }
 0x498   :  { %v2833_v46 = vmax.f32 %v2659_v48, 0.0  ;;  %3016 = vmatmul.f32.gmra.mxu1 %v2832_v54  ;;  %3146 = vmatmul.f32.gmra.mxu3 %v2832_v54  ;;  %v2597_v26 = vadd.f32 %v2596_v22, %v5926_v40  ;;  %v3226_v22 = vld [vmem:[%s6638_s21 + $0x28] sm:$0xff] }
 0x499   :  { %3267 = vmatpush.msra.mxu0 %v3226_v22  ;;  %v3437_v22 = vld [vmem:[#allocation14 + $0x190] sm:$0xff] }
 0x49a   :  { %2954 = vmatmul.f32.gmra.mxu0 %v2833_v46  ;;  %3084 = vmatmul.f32.gmra.mxu2 %v2833_v46  ;;  %v3242_v46 = vld [vmem:[%s6638_s21 + $0xa8] sm:$0xff] }
 0x49b   :  { %v2788_v57 = vpop.f32.mrf.mxu3  ;;  %3332 = vmatpush.msra.mxu1 %v3242_v46  ;;  %v3222_v46 = vld [vmem:[%s6638_s21 + $0x8] sm:$0xff] }
 0x49c   :  { %v2789_v59 = vadd.f32 %v2788_v57, %v2724_v3 }
 0x49d   :  { %v2661_v61 = vpop.f32.mrf.mxu1  ;;  %v2726_v62 = vpop.f32.mrf.mxu2 }
 0x49e   :  { %v2834_v63 = vmax.f32 %v2789_v59, 0.0  ;;  %v2662_v1 = vadd.f32 %v2661_v61, %v2597_v26  ;;  %v2727_v30 = vadd.f32 %v2726_v62, %v5935_v16 }
 0x49f   :  { %v2599_v31 = vpop.f32.mrf.mxu0 }
 0x4a0   :  { %v2835_v37 = vmax.f32 %v2662_v1, 0.0  ;;  %3019 = vmatmul.f32.gmra.mxu1 %v2834_v63  ;;  %3149 = vmatmul.f32.gmra.mxu3 %v2834_v63  ;;  %v2600_v5 = vadd.f32 %v2599_v31, %v5926_v40  ;;  %v3225_v31 = vld [vmem:[%s6638_s21 + $0x20] sm:$0xff] }
 0x4a1   :  { %3268 = vmatpush.msra.mxu0 %v3225_v31 }
 0x4a2   :  { %2957 = vmatmul.f32.gmra.mxu0 %v2835_v37  ;;  %3087 = vmatmul.f32.gmra.mxu2 %v2835_v37  ;;  %v3241_v37 = vld [vmem:[%s6638_s21 + $0xa0] sm:$0xff] }
 0x4a3   :  { %v2791_v4 = vpop.f32.mrf.mxu3  ;;  %3333 = vmatpush.msra.mxu1 %v3241_v37  ;;  %3269 = vmatpush.msra.mxu0 %v3224_v17  ;;  %v3393_v37 = vld [vmem:[#allocation14 + $0x30] sm:$0xff] }
 0x4a4   :  { %v2792_v6 = vadd.f32 %v2791_v4, %v2727_v30 }
 0x4a5   :  { %v2664_v7 = vpop.f32.mrf.mxu1  ;;  %v2729_v56 = vpop.f32.mrf.mxu2 }
 0x4a6   :  { %v2836_v49 = vmax.f32 %v2792_v6, 0.0  ;;  %v2665_v15 = vadd.f32 %v2664_v7, %v2600_v5  ;;  %v2730_v19 = vadd.f32 %v2729_v56, %v5935_v16  ;;  %v3415_v6 = vld [vmem:[#allocation14 + $0xe0] sm:$0xff] }
 0x4a7   :  { %v2602_v9 = vpop.f32.mrf.mxu0  ;;  %3458 = vmatpush.msrb.mxu2 %v3415_v6  ;;  %v3391_v6 = vld [vmem:[#allocation14 + $0x20] sm:$0xff] }
 0x4a8   :  { %v2837_v55 = vmax.f32 %v2665_v15, 0.0  ;;  %3022 = vmatmul.f32.gmra.mxu1 %v2836_v49  ;;  %3152 = vmatmul.f32.gmra.mxu3 %v2836_v49  ;;  %v2603_v47 = vadd.f32 %v2602_v9, %v5926_v40  ;;  %v3413_v9 = vld [vmem:[#allocation14 + $0xd0] sm:$0xff] }
 0x4a9   :  { %3459 = vmatpush.msrb.mxu2 %v3413_v9  ;;  %v3389_v9 = vld [vmem:[#allocation14 + $0x10] sm:$0xff] }
 0x4aa   :  { %2960 = vmatmul.f32.gmra.mxu0 %v2837_v55  ;;  %3090 = vmatmul.f32.gmra.mxu2 %v2837_v55 }
 0x4ab   :  { %v2794_v42 = vpop.f32.mrf.mxu3 }
 0x4ac   :  { %v2795_v20 = vadd.f32 %v2794_v42, %v2730_v19  ;;  %v3240_v19 = vld [vmem:[%s6638_s21 + $0x98] sm:$0xff]  ;;  %v3411_v42 = vld [vmem:[#allocation14 + $0xc0] sm:$0xff] }
 0x4ad   :  { %v2667_v23 = vpop.f32.mrf.mxu1  ;;  %v2732_v12 = vpop.f32.mrf.mxu2  ;;  %3334 = vmatpush.msra.mxu1 %v3240_v19  ;;  %3460 = vmatpush.msrb.mxu2 %v3411_v42  ;;  %v3387_v19 = vld [vmem:[#allocation14] sm:$0xff] }
 0x4ae   :  { %v2838_v27 = vmax.f32 %v2795_v20, 0.0  ;;  %v2668_v25 = vadd.f32 %v2667_v23, %v2603_v47  ;;  %v2733_v41 = vadd.f32 %v2732_v12, %v5935_v16  ;;  %v3449_v47 = vld [vmem:[#allocation14 + $0x1f0] sm:$0xff]  ;;  %v3447_v12 = vld [vmem:[#allocation14 + $0x1e0] sm:$0xff] }
 0x4af   :  { %v2605_v28 = vpop.f32.mrf.mxu0  ;;  %v3409_v23 = vld [vmem:[#allocation14 + $0xb0] sm:$0xff]  ;;  %3522 = vmatpush.msrb.mxu3 %v3449_v47 }
 0x4b0   :  { %v2839_v32 = vmax.f32 %v2668_v25, 0.0  ;;  %3025 = vmatmul.f32.gmra.mxu1 %v2838_v27  ;;  %3155 = vmatmul.f32.gmra.mxu3 %v2838_v27  ;;  %v2606_v58 = vadd.f32 %v2605_v28, %v5926_v40  ;;  %v3425_v47 = vld [vmem:[#allocation14 + $0x130] sm:$0xff] }
 0x4b1   :  { %3461 = vmatpush.msrb.mxu2 %v3409_v23  ;;  %3523 = vmatpush.msrb.mxu3 %v3447_v12 }
 0x4b2   :  { %2963 = vmatmul.f32.gmra.mxu0 %v2839_v32  ;;  %3093 = vmatmul.f32.gmra.mxu2 %v2839_v32  ;;  %v3407_v32 = vld [vmem:[#allocation14 + $0xa0] sm:$0xff] }
 0x4b3   :  { %v2797_v34 = vpop.f32.mrf.mxu3  ;;  %3462 = vmatpush.msrb.mxu2 %v3407_v32  ;;  %3524 = vmatpush.msrb.mxu3 %v3445_v38  ;;  %v3423_v32 = vld [vmem:[#allocation14 + $0x120] sm:$0xff] }
 0x4b4   :  { %v2798_v18 = vadd.f32 %v2797_v34, %v2733_v41 }
 0x4b5   :  { %v2670_v52 = vpop.f32.mrf.mxu1  ;;  %v2735_v10 = vpop.f32.mrf.mxu2 }
 0x4b6   :  { %v2840_v0 = vmax.f32 %v2798_v18, 0.0  ;;  %v2671_v33 = vadd.f32 %v2670_v52, %v2606_v58  ;;  %v2736_v50 = vadd.f32 %v2735_v10, %v5935_v16  ;;  %v3405_v18 = vld [vmem:[#allocation14 + $0x90] sm:$0xff] }
 0x4b7   :  { %v2608_v45 = vpop.f32.mrf.mxu0  ;;  %3463 = vmatpush.msrb.mxu2 %v3405_v18 }
 0x4b8   :  { %v2841_v35 = vmax.f32 %v2671_v33, 0.0  ;;  %3028 = vmatmul.f32.gmra.mxu1 %v2840_v0  ;;  %3158 = vmatmul.f32.gmra.mxu3 %v2840_v0  ;;  %v2609_v44 = vadd.f32 %v2608_v45, %v5926_v40  ;;  %v3223_v0 = vld [vmem:[%s6638_s21 + $0x10] sm:$0xff]  ;;  %v3443_v33 = vld [vmem:[#allocation14 + $0x1c0] sm:$0xff] }
 0x4b9   :  { %v3239_v45 = vld [vmem:[%s6638_s21 + $0x90] sm:$0xff]  ;;  %3270 = vmatpush.msra.mxu0 %v3223_v0  ;;  %3525 = vmatpush.msrb.mxu3 %v3443_v33 }
 0x4ba   :  { %2966 = vmatmul.f32.gmra.mxu0 %v2841_v35  ;;  %3096 = vmatmul.f32.gmra.mxu2 %v2841_v35  ;;  %v3403_v35 = vld [vmem:[#allocation14 + $0x80] sm:$0xff] }
 0x4bb   :  { %v2800_v43 = vpop.f32.mrf.mxu3  ;;  %3335 = vmatpush.msra.mxu1 %v3239_v45  ;;  %3464 = vmatpush.msrb.mxu2 %v3403_v35 }
 0x4bc   :  { %v2801_v11 = vadd.f32 %v2800_v43, %v2736_v50  ;;  %v3401_v43 = vld [vmem:[#allocation14 + $0x70] sm:$0xff]  ;;  %3526 = vmatpush.msrb.mxu3 %v3441_v39  ;;  %3271 = vmatpush.msra.mxu0 %v3222_v46 }
 0x4bd   :  { %v2673_v51 = vpop.f32.mrf.mxu1  ;;  %v2738_v24 = vpop.f32.mrf.mxu2  ;;  %3465 = vmatpush.msrb.mxu2 %v3401_v43  ;;  %v3416_v43 = vld [vmem:[#allocation14 + $0xe8] sm:$0xff] }
 0x4be   :  { %v2842_v29 = vmax.f32 %v2801_v11, 0.0  ;;  %v2674_v53 = vadd.f32 %v2673_v51, %v2609_v44  ;;  %v2739_v8 = vadd.f32 %v2738_v24, %v5935_v16  ;;  %v3439_v51 = vld [vmem:[#allocation14 + $0x1a0] sm:$0xff] }
 0x4bf   :  { %v2611_v54 = vpop.f32.mrf.mxu0  ;;  %3527 = vmatpush.msrb.mxu3 %v3439_v51 }
 0x4c0   :  { %v2843_v48 = vmax.f32 %v2674_v53, 0.0  ;;  %3031 = vmatmul.f32.gmra.mxu1 %v2842_v29  ;;  %3161 = vmatmul.f32.gmra.mxu3 %v2842_v29  ;;  %v2612_v3 = vadd.f32 %v2611_v54, %v5926_v40 }
 0x4c1   :  { %3528 = vmatpush.msrb.mxu3 %v3437_v22  ;;  %v3446_v22 = vld [vmem:[#allocation14 + $0x1d8] sm:$0xff] }
 0x4c2   :  { %2969 = vmatmul.f32.gmra.mxu0 %v2843_v48  ;;  %3099 = vmatmul.f32.gmra.mxu2 %v2843_v48  ;;  %v3399_v48 = vld [vmem:[#allocation14 + $0x60] sm:$0xff] }
 0x4c3   :  { %v2803_v60 = vpop.f32.mrf.mxu3  ;;  %3466 = vmatpush.msrb.mxu2 %v3399_v48  ;;  %v3414_v48 = vld [vmem:[#allocation14 + $0xd8] sm:$0xff] }
 0x4c4   :  { %v2804_v57 = vadd.f32 %v2803_v60, %v2739_v8 }
 0x4c5   :  { %v2676_v26 = vpop.f32.mrf.mxu1  ;;  %v2741_v59 = vpop.f32.mrf.mxu2 }
 0x4c6   :  { %v2844_v61 = vmax.f32 %v2804_v57, 0.0  ;;  %v2677_v62 = vadd.f32 %v2676_v26, %v2612_v3  ;;  %v2742_v2 = vadd.f32 %v2741_v59, %v5935_v16  ;;  %v3397_v3 = vld [vmem:[#allocation14 + $0x50] sm:$0xff]  ;;  %v3435_v57 = vld [vmem:[#allocation14 + $0x180] sm:$0xff] }
 0x4c7   :  { %v2614_v63 = vpop.f32.mrf.mxu0  ;;  %v3238_v26 = vld [vmem:[%s6638_s21 + $0x88] sm:$0xff]  ;;  %3467 = vmatpush.msrb.mxu2 %v3397_v3  ;;  %3529 = vmatpush.msrb.mxu3 %v3435_v57 }
 0x4c8   :  { %v2845_v1 = vmax.f32 %v2677_v62, 0.0  ;;  %3034 = vmatmul.f32.gmra.mxu1 %v2844_v61  ;;  %3164 = vmatmul.f32.gmra.mxu3 %v2844_v61  ;;  %v2615_v4 = vadd.f32 %v2614_v63, %v5926_v40  ;;  %v3395_v61 = vld [vmem:[#allocation14 + $0x40] sm:$0xff]  ;;  %v3433_v62 = vld [vmem:[#allocation14 + $0x170] sm:$0xff] }
 0x4c9   :  { %3336 = vmatpush.msra.mxu1 %v3238_v26  ;;  %3468 = vmatpush.msrb.mxu2 %v3395_v61  ;;  %v3444_v61 = vld [vmem:[#allocation14 + $0x1c8] sm:$0xff] }
 0x4ca   :  { %2972 = vmatmul.f32.gmra.mxu0 %v2845_v1  ;;  %3102 = vmatmul.f32.gmra.mxu2 %v2845_v1 }
 0x4cb   :  { %v2806_v30 = vpop.f32.mrf.mxu3  ;;  %3530 = vmatpush.msrb.mxu3 %v3433_v62  ;;  %3469 = vmatpush.msrb.mxu2 %v3393_v37 }
 0x4cc   :  { %v2807_v5 = vadd.f32 %v2806_v30, %v2742_v2  ;;  %v3431_v2 = vld [vmem:[#allocation14 + $0x160] sm:$0xff] }
 0x4cd   :  { %v2679_v7 = vpop.f32.mrf.mxu1  ;;  %v2744_v56 = vpop.f32.mrf.mxu2  ;;  %3531 = vmatpush.msrb.mxu3 %v3431_v2  ;;  %3470 = vmatpush.msrb.mxu2 %v3391_v6  ;;  %v3410_v6 = vld [vmem:[#allocation14 + $0xb8] sm:$0xff] }
 0x4ce   :  { %v2846_v49 = vmax.f32 %v2807_v5, 0.0  ;;  %v2680_v15 = vadd.f32 %v2679_v7, %v2615_v4  ;;  %v2745_v20 = vadd.f32 %v2744_v56, %v5935_v16  ;;  %v3429_v7 = vld [vmem:[#allocation14 + $0x150] sm:$0xff] }
 0x4cf   :  { %v2617_v55 = vpop.f32.mrf.mxu0  ;;  %3532 = vmatpush.msrb.mxu3 %v3429_v7  ;;  %3471 = vmatpush.msrb.mxu2 %v3389_v9  ;;  %v3442_v7 = vld [vmem:[#allocation14 + $0x1b8] sm:$0xff] }
 0x4d0   :  { %v2847_v14 = vmax.f32 %v2680_v15, 0.0  ;;  %3037 = vmatmul.f32.gmra.mxu1 %v2846_v49  ;;  %3167 = vmatmul.f32.gmra.mxu3 %v2846_v49  ;;  %v2618_v25 = vadd.f32 %v2617_v55, %v5926_v40  ;;  %v3221_v15 = vld [vmem:[%s6638_s21] sm:$0xff] }
 0x4d1   :  { %v3427_v55 = vld [vmem:[#allocation14 + $0x140] sm:$0xff]  ;;  %3272 = vmatpush.msra.mxu0 %v3221_v15  ;;  %3472 = vmatpush.msrb.mxu2 %v3387_v19 }
 0x4d2   :  { %2975 = vmatmul.f32.gmra.mxu0 %v2847_v14  ;;  %3105 = vmatmul.f32.gmra.mxu2 %v2847_v14  ;;  %v3237_v14 = vld [vmem:[%s6638_s21 + $0x80] sm:$0xff] }
 0x4d3   :  { %v2809_v27 = vpop.f32.mrf.mxu3  ;;  %3533 = vmatpush.msrb.mxu3 %v3427_v55  ;;  %3337 = vmatpush.msra.mxu1 %v3237_v14 }
 0x4d4   :  { %v2810_v28 = vadd.f32 %v2809_v27, %v2745_v20 }
 0x4d5   :  { %v2682_v13 = vpop.f32.mrf.mxu1  ;;  %v2747_v41 = vpop.f32.mrf.mxu2  ;;  %3534 = vmatpush.msrb.mxu3 %v3425_v47 }
 0x4d6   :  { %v2848_v34 = vmax.f32 %v2810_v28, 0.0  ;;  %v2683_v58 = vadd.f32 %v2682_v13, %v2618_v25  ;;  %v2748_v36 = vadd.f32 %v2747_v41, %v5935_v16  ;;  %v3421_v13 = vld [vmem:[#allocation14 + $0x110] sm:$0xff]  ;;  %v3418_v41 = vld [vmem:[#allocation14 + $0xf8] sm:$0xff] }
 0x4d7   :  { %v2620_v52 = vpop.f32.mrf.mxu0  ;;  %3535 = vmatpush.msrb.mxu3 %v3423_v32  ;;  %3587 = vmatpush.msrb.mxu0 %v3418_v41 }
 0x4d8   :  { %v2849_v10 = vmax.f32 %v2683_v58, 0.0  ;;  %3040 = vmatmul.f32.gmra.mxu1 %v2848_v34  ;;  %3170 = vmatmul.f32.gmra.mxu3 %v2848_v34  ;;  %v2621_v44 = vadd.f32 %v2620_v52, %v5926_v40  ;;  %v3450_v34 = vld [vmem:[#allocation14 + $0x1f8] sm:$0xff]  ;;  %v3419_v52 = vld [vmem:[#allocation14 + $0x100] sm:$0xff] }
 0x4d9   :  { %3536 = vmatpush.msrb.mxu3 %v3421_v13  ;;  %3652 = vmatpush.msrb.mxu1 %v3450_v34 }
 0x4da   :  { %2978 = vmatmul.f32.gmra.mxu0 %v2849_v10  ;;  %3108 = vmatmul.f32.gmra.mxu2 %v2849_v10 }
 0x4db   :  { %v2812_v50 = vpop.f32.mrf.mxu3  ;;  %4634 = vmatpush.msra.mxu2 %v3418_v41  ;;  %3537 = vmatpush.msrb.mxu3 %v3419_v52  ;;  %v3438_v52 = vld [vmem:[#allocation14 + $0x198] sm:$0xff] }
 0x4dc   :  { %v2813_v11 = vadd.f32 %v2812_v50, %v2748_v36  ;;  %3588 = vmatpush.msrb.mxu0 %v3416_v43 }
 0x4dd   :  { %v2685_v24 = vpop.f32.mrf.mxu1  ;;  %v2750_v29 = vpop.f32.mrf.mxu2  ;;  %4635 = vmatpush.msra.mxu2 %v3416_v43 }
 0x4de   :  { %v2850_v53 = vmax.f32 %v2813_v11, 0.0  ;;  %v2686_v54 = vadd.f32 %v2685_v24, %v2621_v44  ;;  %v2751_v59 = vadd.f32 %v2750_v29, %v5935_v16  ;;  %v3448_v44 = vld [vmem:[#allocation14 + $0x1e8] sm:$0xff]  ;;  %v2923_v24 = vld [vmem:[%s6635_s18] sm:$0x3]  ;;  %3589 = vmatpush.msrb.mxu0 %v3414_v48 }
 0x4df   :  { %v2623_v8 = vpop.f32.mrf.mxu0  ;;  %3653 = vmatpush.msrb.mxu1 %v3448_v44  ;;  %4636 = vmatpush.msra.mxu2 %v3414_v48  ;;  %v6058_v3 = vperm.slane %v2923_v24, 1 }
 0x4e0   :  { %v2851_v60 = vmax.f32 %v2686_v54, 0.0  ;;  %3043 = vmatmul.f32.gmra.mxu1 %v2850_v53  ;;  %3173 = vmatmul.f32.gmra.mxu3 %v2850_v53  ;;  %v2624_v1 = vadd.f32 %v2623_v8, %v5926_v40  ;;  %v6055_v54 = vperm.slane %v2923_v24, 0 }
 0x4e1   :  { %3654 = vmatpush.msrb.mxu1 %v3446_v22 }
 0x4e2   :  { %2981 = vmatmul.f32.gmra.mxu0 %v2851_v60  ;;  %3111 = vmatmul.f32.gmra.mxu2 %v2851_v60 }
 0x4e3   :  { %v2815_v63 = vpop.f32.mrf.mxu3  ;;  %3655 = vmatpush.msrb.mxu1 %v3444_v61 }
 0x4e4   :  { %v2816_v31 = vadd.f32 %v2815_v63, %v2751_v59  ;;  %v3412_v59 = vld [vmem:[#allocation14 + $0xc8] sm:$0xff] }
 0x4e5   :  { %v2688_v21 = vpop.f32.mrf.mxu1  ;;  %v2753_v30 = vpop.f32.mrf.mxu2  ;;  %3590 = vmatpush.msrb.mxu0 %v3412_v59  ;;  %4637 = vmatpush.msra.mxu2 %v3412_v59  ;;  %v3434_v59 = vld [vmem:[#allocation14 + $0x178] sm:$0xff] }
 0x4e6   :  { %v2852_v4 = vmax.f32 %v2816_v31, 0.0  ;;  %v2689_v5 = vadd.f32 %v2688_v21, %v2624_v1  ;;  %v2754_v17 = vadd.f32 %v2753_v30, %v5935_v16  ;;  %3656 = vmatpush.msrb.mxu1 %v3442_v7  ;;  %v3400_v7 = vld [vmem:[#allocation14 + $0x68] sm:$0xff] }
 0x4e7   :  { %v2626_v56 = vpop.f32.mrf.mxu0  ;;  %3591 = vmatpush.msrb.mxu0 %v3410_v6  ;;  %4638 = vmatpush.msra.mxu2 %v3410_v6 }
 0x4e8   :  { %v2853_v49 = vmax.f32 %v2689_v5, 0.0  ;;  %3046 = vmatmul.f32.gmra.mxu1 %v2852_v4  ;;  %3176 = vmatmul.f32.gmra.mxu3 %v2852_v4  ;;  %v2627_v20 = vadd.f32 %v2626_v56, %v5926_v40 }
 0x4ea   :  { %2984 = vmatmul.f32.gmra.mxu0 %v2853_v49  ;;  %3114 = vmatmul.f32.gmra.mxu2 %v2853_v49 }
 0x4eb   :  { %v2818_v42 = vpop.f32.mrf.mxu3 }
 0x4ec   :  { %v2819_v23 = vadd.f32 %v2818_v42, %v2754_v17 }
 0x4ed   :  { %v2691_v12 = vpop.f32.mrf.mxu1  ;;  %v2756_v27 = vpop.f32.mrf.mxu2 }
 0x4ee   :  { %v2854_v25 = vmax.f32 %v2819_v23, 0.0  ;;  %v2692_v28 = vadd.f32 %v2691_v12, %v2627_v20  ;;  %v2757_v18 = vadd.f32 %v2756_v27, %v5935_v16  ;;  %v3408_v20 = vld [vmem:[#allocation14 + $0xa8] sm:$0xff] }
 0x4ef   :  { %v2629_v58 = vpop.f32.mrf.mxu0  ;;  %v3440_v23 = vld [vmem:[#allocation14 + $0x1a8] sm:$0xff]  ;;  %3592 = vmatpush.msrb.mxu0 %v3408_v20  ;;  %4639 = vmatpush.msra.mxu2 %v3408_v20 }
 0x4f0   :  { %v2855_v38 = vmax.f32 %v2692_v28, 0.0  ;;  %3049 = vmatmul.f32.gmra.mxu1 %v2854_v25  ;;  %3179 = vmatmul.f32.gmra.mxu3 %v2854_v25  ;;  %v2630_v0 = vadd.f32 %v2629_v58, %v5926_v40 }
 0x4f1   :  { %3657 = vmatpush.msrb.mxu1 %v3440_v23 }
 0x4f2   :  { %2987 = vmatmul.f32.gmra.mxu0 %v2855_v38  ;;  %3117 = vmatmul.f32.gmra.mxu2 %v2855_v38 }
 0x4f3   :  { %v2821_v10 = vpop.f32.mrf.mxu3  ;;  %3658 = vmatpush.msrb.mxu1 %v3438_v52 }
 0x4f4   :  { %v2822_v33 = vadd.f32 %v2821_v10, %v2757_v18  ;;  %v3406_v18 = vld [vmem:[#allocation14 + $0x98] sm:$0xff] }
 0x4f5   :  { %v2694_v45 = vpop.f32.mrf.mxu1  ;;  %v2759_v39 = vpop.f32.mrf.mxu2  ;;  %3593 = vmatpush.msrb.mxu0 %v3406_v18  ;;  %4640 = vmatpush.msra.mxu2 %v3406_v18 }
 0x4f6   :  { %v2856_v35 = vmax.f32 %v2822_v33, 0.0  ;;  %v2695_v36 = vadd.f32 %v2694_v45, %v2630_v0  ;;  %v2760_v11 = vadd.f32 %v2759_v39, %v5935_v16 }
 0x4f8   :  { %v2857_v50 = vmax.f32 %v2695_v36, 0.0  ;;  %3052 = vmatmul.f32.gmra.mxu1 %v2856_v35  ;;  %3182 = vmatmul.f32.gmra.mxu3 %v2856_v35 }
 0x4fa   :  { %2990 = vmatmul.f32.gmra.mxu0 %v2857_v50  ;;  %3120 = vmatmul.f32.gmra.mxu2 %v2857_v50 }
 0x4fb   :  { %v2824_v51 = vpop.f32.mrf.mxu3 }
 0x4fc   :  { %v2825_v40 = vadd.f32 %v2824_v51, %v2760_v11  ;;  %v3404_v11 = vld [vmem:[#allocation14 + $0x88] sm:$0xff] }
 0x4fd   :  { %v3436_v51 = vld [vmem:[#allocation14 + $0x188] sm:$0xff]  ;;  %3594 = vmatpush.msrb.mxu0 %v3404_v11  ;;  %4641 = vmatpush.msra.mxu2 %v3404_v11 }
 0x4fe   :  { %v2858_v29 = vmax.f32 %v2825_v40, 0.0  ;;  %3659 = vmatpush.msrb.mxu1 %v3436_v51 }
 0x4ff   :  { %v2946_v53 = vpop.f32.mrf.mxu0 }
 0x500   :  { %3055 = vmatmul.f32.gmra.mxu1 %v2858_v29  ;;  %3185 = vmatmul.f32.gmra.mxu3 %v2858_v29  ;;  %v2947_v16 = vadd.f32 %v2946_v53, %v6055_v54 }
 0x501   :  { %3660 = vmatpush.msrb.mxu1 %v3434_v59 }
 0x505   :  { %v3011_v46 = vpop.f32.mrf.mxu1  ;;  %v3076_v8 = vpop.f32.mrf.mxu2 }
 0x506   :  { %v3012_v60 = vadd.f32 %v3011_v46, %v2947_v16  ;;  %v3077_v62 = vadd.f32 %v3076_v8, %v6058_v3 }
 0x507   :  { %v2949_v57 = vpop.f32.mrf.mxu0 }
 0x508   :  { %v6060_v26 = vmax.f32 %v3012_v60, 0.0  ;;  %v2950_v1 = vadd.f32 %v2949_v57, %v6055_v54  ;;  %v3402_v57 = vld [vmem:[#allocation14 + $0x78] sm:$0xff] }
 0x509   :  { %3595 = vmatpush.msrb.mxu0 %v3402_v57  ;;  %4642 = vmatpush.msra.mxu2 %v3402_v57 }
 0x50a   :  { %3273 = vmatmul.f32.vlgmr.msra.gmra.mxu0 %v6060_v26  ;;  %3473 = vmatmul.f32.vlgmr.msrb.gmra.mxu2 %v6060_v26 }
 0x50b   :  { %v3141_v63 = vpop.f32.mrf.mxu3  ;;  %3596 = vmatpush.msrb.mxu0 %v3400_v7  ;;  %4643 = vmatpush.msra.mxu2 %v3400_v7  ;;  %v3392_v7 = vld [vmem:[#allocation14 + $0x28] sm:$0xff] }
 0x50c   :  { %v3142_v31 = vadd.f32 %v3141_v63, %v3077_v62 }
 0x50d   :  { %v3014_v37 = vpop.f32.mrf.mxu1  ;;  %v3079_v2 = vpop.f32.mrf.mxu2 }
 0x50e   :  { %v6066_v21 = vmax.f32 %v3142_v31, 0.0  ;;  %v3015_v30 = vadd.f32 %v3014_v37, %v2950_v1  ;;  %v3080_v56 = vadd.f32 %v3079_v2, %v6058_v3 }
 0x50f   :  { %v2952_v4 = vpop.f32.mrf.mxu0 }
 0x510   :  { %v6068_v5 = vmax.f32 %v3015_v30, 0.0  ;;  %3338 = vmatmul.f32.vlgmr.msra.gmra.mxu1 %v6066_v21  ;;  %3538 = vmatmul.f32.vlgmr.msrb.gmra.mxu3 %v6066_v21  ;;  %v2953_v15 = vadd.f32 %v2952_v4, %v6055_v54 }
 0x512   :  { %3276 = vmatmul.f32.gmra.mxu0 %v6068_v5  ;;  %3476 = vmatmul.f32.gmra.mxu2 %v6068_v5 }
 0x513   :  { %v3144_v49 = vpop.f32.mrf.mxu3 }
 0x514   :  { %v3145_v9 = vadd.f32 %v3144_v49, %v3080_v56  ;;  %v3432_v56 = vld [vmem:[#allocation14 + $0x168] sm:$0xff] }
 0x515   :  { %v3017_v55 = vpop.f32.mrf.mxu1  ;;  %v3082_v14 = vpop.f32.mrf.mxu2  ;;  %3661 = vmatpush.msrb.mxu1 %v3432_v56  ;;  %v3424_v56 = vld [vmem:[#allocation14 + $0x128] sm:$0xff] }
 0x516   :  { %v6076_v17 = vmax.f32 %v3145_v9, 0.0  ;;  %v3018_v19 = vadd.f32 %v3017_v55, %v2953_v15  ;;  %v3083_v12 = vadd.f32 %v3082_v14, %v6058_v3 }
 0x517   :  { %v2955_v42 = vpop.f32.mrf.mxu0 }
 0x518   :  { %v6078_v47 = vmax.f32 %v3018_v19, 0.0  ;;  %3341 = vmatmul.f32.gmra.mxu1 %v6076_v17  ;;  %3541 = vmatmul.f32.gmra.mxu3 %v6076_v17  ;;  %v2956_v25 = vadd.f32 %v2955_v42, %v6055_v54 }
 0x51a   :  { %3279 = vmatmul.f32.gmra.mxu0 %v6078_v47  ;;  %3479 = vmatmul.f32.gmra.mxu2 %v6078_v47 }
 0x51b   :  { %v3147_v27 = vpop.f32.mrf.mxu3 }
 0x51c   :  { %v3148_v28 = vadd.f32 %v3147_v27, %v3083_v12  ;;  %v3398_v27 = vld [vmem:[#allocation14 + $0x58] sm:$0xff] }
 0x51d   :  { %v3020_v32 = vpop.f32.mrf.mxu1  ;;  %v3085_v38 = vpop.f32.mrf.mxu2  ;;  %3597 = vmatpush.msrb.mxu0 %v3398_v27  ;;  %4644 = vmatpush.msra.mxu2 %v3398_v27 }
 0x51e   :  { %v6086_v13 = vmax.f32 %v3148_v28, 0.0  ;;  %v3021_v41 = vadd.f32 %v3020_v32, %v2956_v25  ;;  %v3086_v10 = vadd.f32 %v3085_v38, %v6058_v3  ;;  %v3430_v25 = vld [vmem:[#allocation14 + $0x158] sm:$0xff] }
 0x51f   :  { %v2958_v34 = vpop.f32.mrf.mxu0  ;;  %3662 = vmatpush.msrb.mxu1 %v3430_v25 }
 0x520   :  { %v6088_v58 = vmax.f32 %v3021_v41, 0.0  ;;  %3344 = vmatmul.f32.gmra.mxu1 %v6086_v13  ;;  %3544 = vmatmul.f32.gmra.mxu3 %v6086_v13  ;;  %v2959_v33 = vadd.f32 %v2958_v34, %v6055_v54 }
 0x522   :  { %3282 = vmatmul.f32.gmra.mxu0 %v6088_v58  ;;  %3482 = vmatmul.f32.gmra.mxu2 %v6088_v58 }
 0x523   :  { %v3150_v0 = vpop.f32.mrf.mxu3 }
 0x524   :  { %v3151_v45 = vadd.f32 %v3150_v0, %v3086_v10 }
 0x525   :  { %v3023_v35 = vpop.f32.mrf.mxu1  ;;  %v3088_v36 = vpop.f32.mrf.mxu2 }
 0x526   :  { %v6096_v39 = vmax.f32 %v3151_v45, 0.0  ;;  %v3024_v50 = vadd.f32 %v3023_v35, %v2959_v33  ;;  %v3089_v40 = vadd.f32 %v3088_v36, %v6058_v3  ;;  %v3396_v45 = vld [vmem:[#allocation14 + $0x48] sm:$0xff] }
 0x527   :  { %v2961_v43 = vpop.f32.mrf.mxu0  ;;  %v3428_v35 = vld [vmem:[#allocation14 + $0x148] sm:$0xff]  ;;  %3598 = vmatpush.msrb.mxu0 %v3396_v45  ;;  %4645 = vmatpush.msra.mxu2 %v3396_v45 }
 0x528   :  { %v6098_v44 = vmax.f32 %v3024_v50, 0.0  ;;  %3347 = vmatmul.f32.gmra.mxu1 %v6096_v39  ;;  %3547 = vmatmul.f32.gmra.mxu3 %v6096_v39  ;;  %v2962_v29 = vadd.f32 %v2961_v43, %v6055_v54  ;;  %v3726_v45 = vld [vmem:[#allocation16 + $0x48] sm:$0xff] }
 0x529   :  { %3663 = vmatpush.msrb.mxu1 %v3428_v35 }
 0x52a   :  { %3285 = vmatmul.f32.gmra.mxu0 %v6098_v44  ;;  %3485 = vmatmul.f32.gmra.mxu2 %v6098_v44 }
 0x52b   :  { %v3153_v24 = vpop.f32.mrf.mxu3 }
 0x52c   :  { %v3154_v53 = vadd.f32 %v3153_v24, %v3089_v40 }
 0x52d   :  { %v3026_v48 = vpop.f32.mrf.mxu1  ;;  %v3091_v22 = vpop.f32.mrf.mxu2 }
 0x52e   :  { %v6106_v16 = vmax.f32 %v3154_v53, 0.0  ;;  %v3027_v46 = vadd.f32 %v3026_v48, %v2962_v29  ;;  %v3092_v61 = vadd.f32 %v3091_v22, %v6058_v3  ;;  %v3394_v22 = vld [vmem:[#allocation14 + $0x38] sm:$0xff] }
 0x52f   :  { %v2964_v8 = vpop.f32.mrf.mxu0  ;;  %3599 = vmatpush.msrb.mxu0 %v3394_v22  ;;  %4646 = vmatpush.msra.mxu2 %v3394_v22  ;;  %v3724_v22 = vld [vmem:[#allocation16 + $0x38] sm:$0xff] }
 0x530   :  { %v6108_v60 = vmax.f32 %v3027_v46, 0.0  ;;  %3350 = vmatmul.f32.gmra.mxu1 %v6106_v16  ;;  %3550 = vmatmul.f32.gmra.mxu3 %v6106_v16  ;;  %v2965_v63 = vadd.f32 %v2964_v8, %v6055_v54  ;;  %v3426_v46 = vld [vmem:[#allocation14 + $0x138] sm:$0xff] }
 0x531   :  { %3664 = vmatpush.msrb.mxu1 %v3426_v46  ;;  %3600 = vmatpush.msrb.mxu0 %v3392_v7 }
 0x532   :  { %3288 = vmatmul.f32.gmra.mxu0 %v6108_v60  ;;  %3488 = vmatmul.f32.gmra.mxu2 %v6108_v60 }
 0x533   :  { %v3156_v62 = vpop.f32.mrf.mxu3  ;;  %3665 = vmatpush.msrb.mxu1 %v3424_v56  ;;  %4647 = vmatpush.msra.mxu2 %v3392_v7 }
 0x534   :  { %v3157_v1 = vadd.f32 %v3156_v62, %v3092_v61 }
 0x535   :  { %v3029_v31 = vpop.f32.mrf.mxu1  ;;  %v3094_v37 = vpop.f32.mrf.mxu2 }
 0x536   :  { %v6116_v2 = vmax.f32 %v3157_v1, 0.0  ;;  %v3030_v30 = vadd.f32 %v3029_v31, %v2965_v63  ;;  %v3095_v49 = vadd.f32 %v3094_v37, %v6058_v3  ;;  %v3732_v37 = vld [vmem:[#allocation16 + $0x78] sm:$0xff] }
 0x537   :  { %v2967_v4 = vpop.f32.mrf.mxu0  ;;  %3871 = vmatpush.msra.mxu3 %v3732_v37 }
 0x538   :  { %v6118_v6 = vmax.f32 %v3030_v30, 0.0  ;;  %3353 = vmatmul.f32.gmra.mxu1 %v6116_v2  ;;  %3553 = vmatmul.f32.gmra.mxu3 %v6116_v2  ;;  %v2968_v9 = vadd.f32 %v2967_v4, %v6055_v54 }
 0x53a   :  { %3291 = vmatmul.f32.gmra.mxu0 %v6118_v6  ;;  %3491 = vmatmul.f32.gmra.mxu2 %v6118_v6 }
 0x53b   :  { %v3159_v15 = vpop.f32.mrf.mxu3 }
 0x53c   :  { %v3160_v55 = vadd.f32 %v3159_v15, %v3095_v49  ;;  %v3731_v49 = vld [vmem:[#allocation16 + $0x70] sm:$0xff] }
 0x53d   :  { %v3032_v14 = vpop.f32.mrf.mxu1  ;;  %v3097_v19 = vpop.f32.mrf.mxu2  ;;  %3872 = vmatpush.msra.mxu3 %v3731_v49 }
 0x53e   :  { %v6126_v42 = vmax.f32 %v3160_v55, 0.0  ;;  %v3033_v20 = vadd.f32 %v3032_v14, %v2968_v9  ;;  %v3098_v28 = vadd.f32 %v3097_v19, %v6058_v3  ;;  %v3730_v9 = vld [vmem:[#allocation16 + $0x68] sm:$0xff] }
 0x53f   :  { %v2970_v23 = vpop.f32.mrf.mxu0  ;;  %3873 = vmatpush.msra.mxu3 %v3730_v9  ;;  %v3752_v9 = vld [vmem:[%s6641_s24 + $0x18] sm:$0x7] }
 0x540   :  { %v6128_v12 = vmax.f32 %v3033_v20, 0.0  ;;  %3356 = vmatmul.f32.gmra.mxu1 %v6126_v42  ;;  %3556 = vmatmul.f32.gmra.mxu3 %v6126_v42  ;;  %v2971_v38 = vadd.f32 %v2970_v23, %v6055_v54  ;;  %v3729_v20 = vld [vmem:[#allocation16 + $0x60] sm:$0xff] }
 0x541   :  { %3874 = vmatpush.msra.mxu3 %v3729_v20  ;;  %v3751_v20 = vld [vmem:[%s6641_s24 + $0x10] sm:$0xff] }
 0x542   :  { %3294 = vmatmul.f32.gmra.mxu0 %v6128_v12  ;;  %3494 = vmatmul.f32.gmra.mxu2 %v6128_v12 }
 0x543   :  { %v3162_v32 = vpop.f32.mrf.mxu3 }
 0x544   :  { %v3163_v41 = vadd.f32 %v3162_v32, %v3098_v28  ;;  %v3728_v32 = vld [vmem:[#allocation16 + $0x58] sm:$0xff] }
 0x545   :  { %v3035_v34 = vpop.f32.mrf.mxu1  ;;  %v3100_v18 = vpop.f32.mrf.mxu2  ;;  %3875 = vmatpush.msra.mxu3 %v3728_v32  ;;  %v3718_v32 = vld [vmem:[#allocation16 + $0x8] sm:$0xff] }
 0x546   :  { %v6136_v52 = vmax.f32 %v3163_v41, 0.0  ;;  %v3036_v10 = vadd.f32 %v3035_v34, %v2971_v38  ;;  %v3101_v36 = vadd.f32 %v3100_v18, %v6058_v3  ;;  %v3390_v34 = vld [vmem:[#allocation14 + $0x18] sm:$0xff] }
 0x547   :  { %v2973_v0 = vpop.f32.mrf.mxu0  ;;  %v3422_v18 = vld [vmem:[#allocation14 + $0x118] sm:$0xff]  ;;  %3601 = vmatpush.msrb.mxu0 %v3390_v34  ;;  %4648 = vmatpush.msra.mxu2 %v3390_v34 }
 0x548   :  { %v6138_v33 = vmax.f32 %v3036_v10, 0.0  ;;  %3359 = vmatmul.f32.gmra.mxu1 %v6136_v52  ;;  %3559 = vmatmul.f32.gmra.mxu3 %v6136_v52  ;;  %v2974_v43 = vadd.f32 %v2973_v0, %v6055_v54  ;;  %v3727_v10 = vld [vmem:[#allocation16 + $0x50] sm:$0xff] }
 0x549   :  { %3666 = vmatpush.msrb.mxu1 %v3422_v18  ;;  %3876 = vmatpush.msra.mxu3 %v3727_v10  ;;  %v3749_v10 = vld [vmem:[%s6641_s24] sm:$0xff] }
 0x54a   :  { %3297 = vmatmul.f32.gmra.mxu0 %v6138_v33  ;;  %3497 = vmatmul.f32.gmra.mxu2 %v6138_v33 }
 0x54b   :  { %v3165_v50 = vpop.f32.mrf.mxu3  ;;  %3877 = vmatpush.msra.mxu3 %v3726_v45 }
 0x54c   :  { %v3166_v11 = vadd.f32 %v3165_v50, %v3101_v36 }
 0x54d   :  { %v3038_v51 = vpop.f32.mrf.mxu1  ;;  %v3103_v40 = vpop.f32.mrf.mxu2 }
 0x54e   :  { %v6146_v24 = vmax.f32 %v3166_v11, 0.0  ;;  %v3039_v29 = vadd.f32 %v3038_v51, %v2974_v43  ;;  %v3104_v8 = vadd.f32 %v3103_v40, %v6058_v3  ;;  %v3725_v43 = vld [vmem:[#allocation16 + $0x40] sm:$0xff] }
 0x54f   :  { %v2976_v53 = vpop.f32.mrf.mxu0  ;;  %3878 = vmatpush.msra.mxu3 %v3725_v43 }
 0x550   :  { %v6148_v48 = vmax.f32 %v3039_v29, 0.0  ;;  %3362 = vmatmul.f32.gmra.mxu1 %v6146_v24  ;;  %3562 = vmatmul.f32.gmra.mxu3 %v6146_v24  ;;  %v2977_v59 = vadd.f32 %v2976_v53, %v6055_v54  ;;  %v3388_v53 = vld [vmem:[#allocation14 + $0x8] sm:$0xff] }
 0x551   :  { %3602 = vmatpush.msrb.mxu0 %v3388_v53  ;;  %3879 = vmatpush.msra.mxu3 %v3724_v22 }
 0x552   :  { %3300 = vmatmul.f32.gmra.mxu0 %v6148_v48  ;;  %3500 = vmatmul.f32.gmra.mxu2 %v6148_v48 }
 0x553   :  { %v3168_v57 = vpop.f32.mrf.mxu3  ;;  %4649 = vmatpush.msra.mxu2 %v3388_v53 }
 0x554   :  { %v3169_v61 = vadd.f32 %v3168_v57, %v3104_v8  ;;  %v3420_v57 = vld [vmem:[#allocation14 + $0x108] sm:$0xff] }
 0x555   :  { %v3041_v62 = vpop.f32.mrf.mxu1  ;;  %v3106_v63 = vpop.f32.mrf.mxu2  ;;  %3667 = vmatpush.msrb.mxu1 %v3420_v57  ;;  %4601 = vmatpush.msk.msrb.mxu2 %vm3802_vm2, %v3752_v9  ;;  %v3746_v9 = vld [vmem:[#allocation16 + $0xe8] sm:$0xff] }
 0x556   :  { %v6156_v1 = vmax.f32 %v3169_v61, 0.0  ;;  %v3042_v31 = vadd.f32 %v3041_v62, %v2977_v59  ;;  %v3107_v15 = vadd.f32 %v3106_v63, %v6058_v3  ;;  %v3723_v59 = vld [vmem:[#allocation16 + $0x30] sm:$0xff]  ;;  %v3722_v62 = vld [vmem:[#allocation16 + $0x28] sm:$0xff] }
 0x557   :  { %v2979_v30 = vpop.f32.mrf.mxu0  ;;  %3880 = vmatpush.msra.mxu3 %v3723_v59  ;;  %3819 = vmatpush.msrb.mxu2 %v3751_v20 }
 0x558   :  { %v6158_v4 = vmax.f32 %v3042_v31, 0.0  ;;  %3365 = vmatmul.f32.gmra.mxu1 %v6156_v1  ;;  %3565 = vmatmul.f32.gmra.mxu3 %v6156_v1  ;;  %v2980_v14 = vadd.f32 %v2979_v30, %v6055_v54  ;;  %v3721_v30 = vld [vmem:[#allocation16 + $0x20] sm:$0xff] }
 0x559   :  { %3881 = vmatpush.msra.mxu3 %v3722_v62 }
 0x55a   :  { %3303 = vmatmul.f32.gmra.mxu0 %v6158_v4  ;;  %3503 = vmatmul.f32.gmra.mxu2 %v6158_v4 }
 0x55b   :  { %v3171_v55 = vpop.f32.mrf.mxu3  ;;  %3882 = vmatpush.msra.mxu3 %v3721_v30 }
 0x55c   :  { %v3172_v19 = vadd.f32 %v3171_v55, %v3107_v15  ;;  %v3720_v55 = vld [vmem:[#allocation16 + $0x18] sm:$0xff] }
 0x55d   :  { %v3044_v23 = vpop.f32.mrf.mxu1  ;;  %v3109_v27 = vpop.f32.mrf.mxu2  ;;  %3883 = vmatpush.msra.mxu3 %v3720_v55 }
 0x55e   :  { %v6166_v25 = vmax.f32 %v3172_v19, 0.0  ;;  %v3045_v28 = vadd.f32 %v3044_v23, %v2980_v14  ;;  %v3110_v0 = vadd.f32 %v3109_v27, %v6058_v3  ;;  %v3719_v23 = vld [vmem:[#allocation16 + $0x10] sm:$0xff] }
 0x55f   :  { %v2982_v38 = vpop.f32.mrf.mxu0  ;;  %3884 = vmatpush.msra.mxu3 %v3719_v23 }
 0x560   :  { %v6168_v41 = vmax.f32 %v3045_v28, 0.0  ;;  %3368 = vmatmul.f32.gmra.mxu1 %v6166_v25  ;;  %3568 = vmatmul.f32.gmra.mxu3 %v6166_v25  ;;  %v2983_v36 = vadd.f32 %v2982_v38, %v6055_v54  ;;  %v3750_v28 = vld [vmem:[%s6641_s24 + $0x8] sm:$0xff] }
 0x561   :  { %3820 = vmatpush.msrb.mxu2 %v3750_v28  ;;  %3885 = vmatpush.msra.mxu3 %v3718_v32  ;;  %v247_v32 = vld [vmem:[%s6675_s30] sm:$0xff] }
 0x562   :  { %3306 = vmatmul.f32.gmra.mxu0 %v6168_v41  ;;  %3506 = vmatmul.f32.gmra.mxu2 %v6168_v41 }
 0x563   :  { %v3174_v35 = vpop.f32.mrf.mxu3  ;;  %3821 = vmatpush.msrb.mxu2 %v3749_v10 }
 0x564   :  { %v3175_v50 = vadd.f32 %v3174_v35, %v3110_v0  ;;  %v3717_v0 = vld [vmem:[#allocation16] sm:$0xff] }
 0x565   :  { %v3047_v11 = vpop.f32.mrf.mxu1  ;;  %v3112_v51 = vpop.f32.mrf.mxu2  ;;  %3886 = vmatpush.msra.mxu3 %v3717_v0 }
 0x566   :  { %v6176_v40 = vmax.f32 %v3175_v50, 0.0  ;;  %v3048_v29 = vadd.f32 %v3047_v11, %v2983_v36  ;;  %v3113_v61 = vadd.f32 %v3112_v51, %v6058_v3  ;;  %v3748_v11 = vld [vmem:[#allocation16 + $0xf8] sm:$0xff] }
 0x567   :  { %v2985_v46 = vpop.f32.mrf.mxu0  ;;  %3936 = vmatpush.msra.mxu0 %v3748_v11  ;;  %v248_v11 = vld [vmem:[%s6675_s30 + $0x8] sm:$0xff] }
 0x568   :  { %v6178_v8 = vmax.f32 %v3048_v29, 0.0  ;;  %3371 = vmatmul.f32.gmra.mxu1 %v6176_v40  ;;  %3571 = vmatmul.f32.gmra.mxu3 %v6176_v40  ;;  %v2986_v31 = vadd.f32 %v2985_v46, %v6055_v54 }
 0x56a   :  { %3309 = vmatmul.f32.gmra.mxu0 %v6178_v8  ;;  %3509 = vmatmul.f32.gmra.mxu2 %v6178_v8 }
 0x56b   :  { %v3177_v63 = vpop.f32.mrf.mxu3 }
 0x56c   :  { %v3178_v37 = vadd.f32 %v3177_v63, %v3113_v61 }
 0x56d   :  { %v3050_v7 = vpop.f32.mrf.mxu1  ;;  %v3115_v56 = vpop.f32.mrf.mxu2 }
 0x56e   :  { %v6186_v49 = vmax.f32 %v3178_v37, 0.0  ;;  %v3051_v15 = vadd.f32 %v3050_v7, %v2986_v31  ;;  %v3116_v27 = vadd.f32 %v3115_v56, %v6058_v3  ;;  %v3747_v31 = vld [vmem:[#allocation16 + $0xf0] sm:$0xff] }
 0x56f   :  { %v2988_v14 = vpop.f32.mrf.mxu0  ;;  %3937 = vmatpush.msra.mxu0 %v3747_v31 }
 0x570   :  { %v6191_v19 = vmax.f32 %v3051_v15, 0.0  ;;  %3374 = vmatmul.f32.gmra.mxu1 %v6186_v49  ;;  %3574 = vmatmul.f32.gmra.mxu3 %v6186_v49  ;;  %v2989_v34 = vadd.f32 %v2988_v14, %v6055_v54  ;;  %v6225_v15 = vld [vmem:[#allocation2] ss:$0 sm:$0xff] }
 0x571   :  { %3938 = vmatpush.msra.mxu0 %v3746_v9  ;;  %v3742_v9 = vld [vmem:[#allocation16 + $0xc8] sm:$0xff] }
 0x572   :  { %3312 = vmatmul.f32.gmra.mxu0 %v6191_v19  ;;  %3512 = vmatmul.f32.gmra.mxu2 %v6191_v19 }
 0x573   :  { %v3180_v38 = vpop.f32.mrf.mxu3 }
 0x574   :  { %v3181_v18 = vadd.f32 %v3180_v38, %v3116_v27 }
 0x575   :  { %v3053_v45 = vpop.f32.mrf.mxu1  ;;  %v3118_v35 = vpop.f32.mrf.mxu2 }
 0x576   :  { %v6208_v36 = vmax.f32 %v3181_v18, 0.0  ;;  %v3054_v50 = vadd.f32 %v3053_v45, %v2989_v34  ;;  %v3119_v29 = vadd.f32 %v3118_v35, %v6058_v3 }
 0x577   :  { %v2991_v51 = vpop.f32.mrf.mxu0 }
 0x578   :  { %v6210_v43 = vmax.f32 %v3054_v50, 0.0  ;;  %3377 = vmatmul.f32.gmra.mxu1 %v6208_v36  ;;  %3577 = vmatmul.f32.gmra.mxu3 %v6208_v36  ;;  %v2992_v22 = vadd.f32 %v2991_v51, %v6055_v54 }
 0x57a   :  { %3315 = vmatmul.f32.gmra.mxu0 %v6210_v43  ;;  %3515 = vmatmul.f32.gmra.mxu2 %v6210_v43 }
 0x57b   :  { %v3183_v53 = vpop.f32.mrf.mxu3 }
 0x57c   :  { %v3184_v46 = vadd.f32 %v3183_v53, %v3119_v29 }
 0x57d   :  { %v3056_v57 = vpop.f32.mrf.mxu1  ;;  %v3121_v62 = vpop.f32.mrf.mxu2 }
 0x57e   :  { %v6218_v59 = vmax.f32 %v3184_v46, 0.0  ;;  %v3057_v61 = vadd.f32 %v3056_v57, %v2992_v22  ;;  %v3122_v37 = vadd.f32 %v3121_v62, %v6058_v3  ;;  %v6233_v3 = vld [vmem:[%s6637_s20] sm:$0x3] }
 0x57f   :  { %v6237_v23 = vperm.slane %v6233_v3, 0 }
 0x580   :  { %v3219_v63 = vmax.f32 %v3057_v61, 0.0  ;;  %3380 = vmatmul.f32.gmra.mxu1 %v6218_v59  ;;  %3580 = vmatmul.f32.gmra.mxu3 %v6218_v59  ;;  %v3743_v61 = vld [vmem:[#allocation16 + $0xd0] sm:$0xff] }
 0x582   :  { %3318 = vmatmul.f32.gmra.mxu0 %v3219_v63  ;;  %3518 = vmatmul.f32.gmra.mxu2 %v3219_v63 }
 0x583   :  { %v3186_v30 = vpop.f32.mrf.mxu3 }
 0x584   :  { %v3187_v7 = vadd.f32 %v3186_v30, %v3122_v37 }
 0x586   :  { %v6223_v54 = vmax.f32 %v3187_v7, 0.0 }
 0x587   :  { %v3274_v56 = vpop.f32.mrf.mxu0 }
 0x588   :  { %3383 = vmatmul.f32.gmra.mxu1 %v6223_v54  ;;  %3583 = vmatmul.f32.gmra.mxu3 %v6223_v54  ;;  %v3275_v55 = vadd.f32 %v6225_v15, %v3274_v56 }
 0x58a   :  { %3603 = vmatmul.f32.vlgmr.msrb.gmra.mxu0 %v6060_v26  ;;  %3648 = vmatmul.f32.vlgmr.msra.gmra.mxu2 %v3219_v63  ;;  %v3745_v26 = vld [vmem:[#allocation16 + $0xe0] sm:$0xff] }
 0x58b   :  { %3939 = vmatpush.msra.mxu0 %v3745_v26 }
 0x58d   :  { %v3339_v14 = vpop.f32.mrf.mxu1  ;;  %v3474_v20 = vpop.f32.mrf.mxu2 }
 0x58e   :  { %v3340_v27 = vadd.f32 %v3339_v14, %v3275_v55  ;;  %v3475_v38 = vadd.f32 %v3474_v20, %v6237_v23 }
 0x58f   :  { %v3277_v28 = vpop.f32.mrf.mxu0 }
 0x590   :  { %3668 = vmatmul.f32.vlgmr.msrb.gmra.mxu1 %v6066_v21  ;;  %4459 = vrot.lane.b32.xlu0 %v3340_v27, %s4986_s17  ;;  %v3278_v18 = vadd.f32 %v6225_v15, %v3277_v28  ;;  %v3744_v21 = vld [vmem:[#allocation16 + $0xd8] sm:$0xff] }
 0x591   :  { %3940 = vmatpush.msra.mxu0 %v3744_v21 }
 0x592   :  { %3606 = vmatmul.f32.gmra.mxu0 %v6068_v5  ;;  %4602 = vmatmul.msk.f32.vlgmr.msrb.gmra.mxu2 %vm3753_vm3, %v247_v32 }
 0x593   :  { %v3539_v34 = vpop.f32.mrf.mxu3  ;;  %3941 = vmatpush.msra.mxu0 %v3743_v61 }
 0x594   :  { %v3540_v10 = vadd.f32 %v3539_v34, %v3475_v38  ;;  %v3741_v38 = vld [vmem:[#allocation16 + $0xc0] sm:$0xff] }
 0x595   :  { %v3342_v0 = vpop.f32.mrf.mxu1  ;;  %v3477_v45 = vpop.f32.mrf.mxu2  ;;  %3942 = vmatpush.msra.mxu0 %v3742_v9 }
 0x596   :  { %v3343_v35 = vadd.f32 %v3342_v0, %v3278_v18  ;;  %3887 = vmatmul.f32.vlgmr.msra.gmra.mxu3 %v3540_v10  ;;  %v3478_v5 = vadd.f32 %v3477_v45, %v6237_v23  ;;  %v3740_v45 = vld [vmem:[#allocation16 + $0xb8] sm:$0xff] }
 0x597   :  { %v3280_v50 = vpop.f32.mrf.mxu0  ;;  %3943 = vmatpush.msra.mxu0 %v3741_v38 }
 0x598   :  { %3671 = vmatmul.f32.gmra.mxu1 %v6076_v17  ;;  %4461 = vrot.lane.b32.xlu0 %v3343_v35, %s4986_s17  ;;  %v3281_v29 = vadd.f32 %v6225_v15, %v3280_v50  ;;  %v249_v17 = vld [vmem:[%s6675_s30 + $0x10] sm:$0xff] }
 0x599   :  { %3944 = vmatpush.msra.mxu0 %v3740_v45 }
 0x59a   :  { %3609 = vmatmul.f32.gmra.mxu0 %v6078_v47  ;;  %4603 = vmatmul.msk.f32.gmra.mxu2 %vm3753_vm3, %v248_v11 }
 0x59b   :  { %v3542_v51 = vpop.f32.mrf.mxu3 }
 0x59c   :  { %v3543_v53 = vadd.f32 %v3542_v51, %v3478_v5 }
 0x59d   :  { %v3345_v22 = vpop.f32.mrf.mxu1  ;;  %v3480_v46 = vpop.f32.mrf.mxu2 }
 0x59e   :  { %3890 = vmatmul.f32.gmra.mxu3 %v3543_v53  ;;  %v3346_v57 = vadd.f32 %v3345_v22, %v3281_v29  ;;  %v3481_v47 = vadd.f32 %v3480_v46, %v6237_v23  ;;  %v3739_v53 = vld [vmem:[#allocation16 + $0xb0] sm:$0xff] }
 0x59f   :  { %v3283_v62 = vpop.f32.mrf.mxu0  ;;  %3945 = vmatpush.msra.mxu0 %v3739_v53 }
 0x5a0   :  { %3674 = vmatmul.f32.gmra.mxu1 %v6086_v13  ;;  %4463 = vrot.lane.b32.xlu1 %v3346_v57, %s4986_s17  ;;  %v3284_v31 = vadd.f32 %v6225_v15, %v3283_v62  ;;  %v250_v13 = vld [vmem:[%s6675_s30 + $0x18] sm:$0xff] }
 0x5a2   :  { %3612 = vmatmul.f32.gmra.mxu0 %v6088_v58  ;;  %4604 = vmatmul.msk.f32.gmra.mxu2 %vm3753_vm3, %v249_v17 }
 0x5a3   :  { %v3545_v63 = vpop.f32.mrf.mxu3 }
 0x5a4   :  { %v3546_v37 = vadd.f32 %v3545_v63, %v3481_v47  ;;  %v3738_v63 = vld [vmem:[#allocation16 + $0xa8] sm:$0xff] }
 0x5a5   :  { %v3348_v30 = vpop.f32.mrf.mxu1  ;;  %v3483_v7 = vpop.f32.mrf.mxu2  ;;  %3946 = vmatpush.msra.mxu0 %v3738_v63 }
 0x5a6   :  { %v3349_v56 = vadd.f32 %v3348_v30, %v3284_v31  ;;  %3893 = vmatmul.f32.gmra.mxu3 %v3546_v37  ;;  %v3484_v58 = vadd.f32 %v3483_v7, %v6237_v23 }
 0x5a7   :  { %v3286_v55 = vpop.f32.mrf.mxu0 }
 0x5a8   :  { %3677 = vmatmul.f32.gmra.mxu1 %v6096_v39  ;;  %4465 = vrot.lane.b32.xlu1 %v3349_v56, %s4986_s17  ;;  %v3287_v20 = vadd.f32 %v6225_v15, %v3286_v55  ;;  %v251_v39 = vld [vmem:[%s6675_s30 + $0x20] sm:$0xff] }
 0x5aa   :  { %3615 = vmatmul.f32.gmra.mxu0 %v6098_v44  ;;  %4605 = vmatmul.msk.f32.gmra.mxu2 %vm3753_vm3, %v250_v13  ;;  %v3737_v13 = vld [vmem:[#allocation16 + $0xa0] sm:$0xff] }
 0x5ab   :  { %v3548_v14 = vpop.f32.mrf.mxu3  ;;  %3947 = vmatpush.msra.mxu0 %v3737_v13  ;;  %v4051_v13 = vld [vmem:[%s6643_s26 + $0x70] sm:$0xff] }
 0x5ac   :  { %v3549_v27 = vadd.f32 %v3548_v14, %v3484_v58 }
 0x5ad   :  { %v3351_v28 = vpop.f32.mrf.mxu1  ;;  %v3486_v32 = vpop.f32.mrf.mxu2 }
 0x5ae   :  { %3896 = vmatmul.f32.gmra.mxu3 %v3549_v27  ;;  %v3352_v26 = vadd.f32 %v3351_v28, %v3287_v20  ;;  %v3487_v44 = vadd.f32 %v3486_v32, %v6237_v23  ;;  %v3736_v28 = vld [vmem:[#allocation16 + $0x98] sm:$0xff] }
 0x5af   :  { %v3289_v34 = vpop.f32.mrf.mxu0  ;;  %3948 = vmatpush.msra.mxu0 %v3736_v28 }
 0x5b0   :  { %3680 = vmatmul.f32.gmra.mxu1 %v6106_v16  ;;  %4467 = vrot.lane.b32.xlu2 %v3352_v26, %s4986_s17  ;;  %v3290_v10 = vadd.f32 %v6225_v15, %v3289_v34  ;;  %v252_v16 = vld [vmem:[%s6675_s30 + $0x28] sm:$0xff] }
 0x5b2   :  { %3618 = vmatmul.f32.gmra.mxu0 %v6108_v60  ;;  %4606 = vmatmul.msk.f32.gmra.mxu2 %vm3753_vm3, %v251_v39 }
 0x5b3   :  { %v3551_v18 = vpop.f32.mrf.mxu3 }
 0x5b4   :  { %v3552_v0 = vadd.f32 %v3551_v18, %v3487_v44 }
 0x5b5   :  { %v3354_v35 = vpop.f32.mrf.mxu1  ;;  %v3489_v21 = vpop.f32.mrf.mxu2 }
 0x5b6   :  { %v3355_v50 = vadd.f32 %v3354_v35, %v3290_v10  ;;  %3899 = vmatmul.f32.gmra.mxu3 %v3552_v0  ;;  %v3490_v60 = vadd.f32 %v3489_v21, %v6237_v23  ;;  %v3735_v10 = vld [vmem:[#allocation16 + $0x90] sm:$0xff] }
 0x5b7   :  { %v3292_v11 = vpop.f32.mrf.mxu0  ;;  %3949 = vmatpush.msra.mxu0 %v3735_v10 }
 0x5b8   :  { %3683 = vmatmul.f32.gmra.mxu1 %v6116_v2  ;;  %4469 = vrot.lane.b32.xlu2 %v3355_v50, %s4986_s17  ;;  %v3293_v51 = vadd.f32 %v6225_v15, %v3292_v11  ;;  %v253_v2 = vld [vmem:[%s6675_s30 + $0x30] sm:$0xff] }
 0x5ba   :  { %3621 = vmatmul.f32.gmra.mxu0 %v6118_v6  ;;  %4607 = vmatmul.msk.f32.gmra.mxu2 %vm3753_vm3, %v252_v16 }
 0x5bb   :  { %v3554_v5 = vpop.f32.mrf.mxu3 }
 0x5bc   :  { %v3555_v29 = vadd.f32 %v3554_v5, %v3490_v60 }
 0x5bd   :  { %v3357_v22 = vpop.f32.mrf.mxu1  ;;  %v3492_v46 = vpop.f32.mrf.mxu2 }
 0x5be   :  { %v3358_v57 = vadd.f32 %v3357_v22, %v3293_v51  ;;  %3902 = vmatmul.f32.gmra.mxu3 %v3555_v29  ;;  %v3493_v6 = vadd.f32 %v3492_v46, %v6237_v23 }
 0x5bf   :  { %v3295_v61 = vpop.f32.mrf.mxu0 }
 0x5c0   :  { %3686 = vmatmul.f32.gmra.mxu1 %v6126_v42  ;;  %4471 = vrot.lane.b32.xlu0 %v3358_v57, %s4986_s17  ;;  %v3296_v17 = vadd.f32 %v6225_v15, %v3295_v61  ;;  %v254_v42 = vld [vmem:[%s6675_s30 + $0x38] sm:$0xff] }
 0x5c2   :  { %3624 = vmatmul.f32.gmra.mxu0 %v6128_v12  ;;  %4608 = vmatmul.msk.f32.gmra.mxu2 %vm3753_vm3, %v253_v2 }
 0x5c3   :  { %v3557_v62 = vpop.f32.mrf.mxu3 }
 0x5c4   :  { %v3558_v47 = vadd.f32 %v3557_v62, %v3493_v6 }
 0x5c5   :  { %v3360_v31 = vpop.f32.mrf.mxu1  ;;  %v3495_v37 = vpop.f32.mrf.mxu2 }
 0x5c6   :  { %v3361_v30 = vadd.f32 %v3360_v31, %v3296_v17  ;;  %3905 = vmatmul.f32.gmra.mxu3 %v3558_v47  ;;  %v3496_v12 = vadd.f32 %v3495_v37, %v6237_v23  ;;  %v4052_v37 = vld [vmem:[%s6643_s26 + $0x78] sm:$0xff] }
 0x5c7   :  { %v3298_v7 = vpop.f32.mrf.mxu0  ;;  %4057 = vmatpush.msra.mxu1 %v4052_v37 }
 0x5c8   :  { %3689 = vmatmul.f32.gmra.mxu1 %v6136_v52  ;;  %4473 = vrot.lane.b32.xlu1 %v3361_v30, %s4986_s17  ;;  %v3299_v9 = vadd.f32 %v6225_v15, %v3298_v7  ;;  %v255_v52 = vld [vmem:[%s6675_s30 + $0x40] sm:$0xff] }
 0x5c9   :  { %4058 = vmatpush.msra.mxu1 %v4051_v13 }
 0x5ca   :  { %3627 = vmatmul.f32.gmra.mxu0 %v6138_v33  ;;  %4609 = vmatmul.msk.f32.gmra.mxu2 %vm3753_vm3, %v254_v42 }
 0x5cb   :  { %v3560_v56 = vpop.f32.mrf.mxu3 }
 0x5cc   :  { %v3561_v55 = vadd.f32 %v3560_v56, %v3496_v12 }
 0x5cd   :  { %v3363_v58 = vpop.f32.mrf.mxu1  ;;  %v3498_v14 = vpop.f32.mrf.mxu2 }
 0x5ce   :  { %v3364_v20 = vadd.f32 %v3363_v58, %v3299_v9  ;;  %3908 = vmatmul.f32.gmra.mxu3 %v3561_v55  ;;  %v3499_v33 = vadd.f32 %v3498_v14, %v6237_v23 }
 0x5cf   :  { %v3301_v27 = vpop.f32.mrf.mxu0 }
 0x5d0   :  { %3692 = vmatmul.f32.gmra.mxu1 %v6146_v24  ;;  %4475 = vrot.lane.b32.xlu2 %v3364_v20, %s4986_s17  ;;  %v3302_v26 = vadd.f32 %v6225_v15, %v3301_v27  ;;  %v256_v24 = vld [vmem:[%s6675_s30 + $0x48] sm:$0xff] }
 0x5d2   :  { %3630 = vmatmul.f32.gmra.mxu0 %v6148_v48  ;;  %4610 = vmatmul.msk.f32.gmra.mxu2 %vm3753_vm3, %v255_v52 }
 0x5d3   :  { %v3563_v32 = vpop.f32.mrf.mxu3 }
 0x5d4   :  { %v3564_v38 = vadd.f32 %v3563_v32, %v3499_v33  ;;  %v4050_v32 = vld [vmem:[%s6643_s26 + $0x68] sm:$0xff] }
 0x5d5   :  { %v3366_v34 = vpop.f32.mrf.mxu1  ;;  %v3501_v39 = vpop.f32.mrf.mxu2  ;;  %4059 = vmatpush.msra.mxu1 %v4050_v32 }
 0x5d6   :  { %v3367_v44 = vadd.f32 %v3366_v34, %v3302_v26  ;;  %3911 = vmatmul.f32.gmra.mxu3 %v3564_v38  ;;  %v3502_v48 = vadd.f32 %v3501_v39, %v6237_v23 }
 0x5d7   :  { %v3304_v18 = vpop.f32.mrf.mxu0 }
 0x5d8   :  { %3695 = vmatmul.f32.gmra.mxu1 %v6156_v1  ;;  %4477 = vrot.lane.b32.xlu0 %v3367_v44, %s4986_s17  ;;  %v3305_v45 = vadd.f32 %v6225_v15, %v3304_v18  ;;  %v257_v1 = vld [vmem:[%s6675_s30 + $0x50] sm:$0xff] }
 0x5da   :  { %3633 = vmatmul.f32.gmra.mxu0 %v6158_v4  ;;  %4611 = vmatmul.msk.f32.gmra.mxu2 %vm3753_vm3, %v256_v24  ;;  %v3734_v4 = vld [vmem:[#allocation16 + $0x88] sm:$0xff]  ;;  %v262_v24 = vld [vmem:[%s6675_s30 + $0x78] sm:$0xff] }
 0x5db   :  { %v3566_v0 = vpop.f32.mrf.mxu3  ;;  %3950 = vmatpush.msra.mxu0 %v3734_v4  ;;  %v4047_v4 = vld [vmem:[%s6643_s26 + $0x50] sm:$0xff] }
 0x5dc   :  { %v3567_v35 = vadd.f32 %v3566_v0, %v3502_v48  ;;  %v6386_v48 = vperm.slane %v6233_v3, 1 }
 0x5dd   :  { %v3369_v21 = vpop.f32.mrf.mxu1  ;;  %v3504_v50 = vpop.f32.mrf.mxu2 }
 0x5de   :  { %v3370_v11 = vadd.f32 %v3369_v21, %v3305_v45  ;;  %3914 = vmatmul.f32.gmra.mxu3 %v3567_v35  ;;  %v3505_v60 = vadd.f32 %v3504_v50, %v6237_v23 }
 0x5df   :  { %v3307_v16 = vpop.f32.mrf.mxu0 }
 0x5e0   :  { %3698 = vmatmul.f32.gmra.mxu1 %v6166_v25  ;;  %4479 = vrot.lane.b32.xlu1 %v3370_v11, %s4986_s17  ;;  %v3308_v51 = vadd.f32 %v6225_v15, %v3307_v16  ;;  %v258_v25 = vld [vmem:[%s6675_s30 + $0x58] sm:$0xff] }
 0x5e2   :  { %3636 = vmatmul.f32.gmra.mxu0 %v6168_v41  ;;  %4612 = vmatmul.msk.f32.gmra.mxu2 %vm3753_vm3, %v257_v1  ;;  %v3733_v41 = vld [vmem:[#allocation16 + $0x80] sm:$0xff] }
 0x5e3   :  { %v3569_v5 = vpop.f32.mrf.mxu3  ;;  %3951 = vmatpush.msra.mxu0 %v3733_v41  ;;  %v4045_v41 = vld [vmem:[%s6643_s26 + $0x40] sm:$0xff] }
 0x5e4   :  { %v3570_v29 = vadd.f32 %v3569_v5, %v3505_v60 }
 0x5e5   :  { %v3372_v53 = vpop.f32.mrf.mxu1  ;;  %v3507_v22 = vpop.f32.mrf.mxu2 }
 0x5e6   :  { %v3373_v46 = vadd.f32 %v3372_v53, %v3308_v51  ;;  %3917 = vmatmul.f32.gmra.mxu3 %v3570_v29  ;;  %v3508_v61 = vadd.f32 %v3507_v22, %v6237_v23  ;;  %v4046_v53 = vld [vmem:[%s6643_s26 + $0x48] sm:$0xff] }
 0x5e7   :  { %v3310_v57 = vpop.f32.mrf.mxu0 }
 0x5e8   :  { %3701 = vmatmul.f32.gmra.mxu1 %v6176_v40  ;;  %4481 = vrot.lane.b32.xlu2 %v3373_v46, %s4986_s17  ;;  %v3311_v6 = vadd.f32 %v6225_v15, %v3310_v57  ;;  %v259_v40 = vld [vmem:[%s6675_s30 + $0x60] sm:$0xff] }
 0x5ea   :  { %3639 = vmatmul.f32.gmra.mxu0 %v6178_v8  ;;  %4613 = vmatmul.msk.f32.gmra.mxu2 %vm3753_vm3, %v258_v25 }
 0x5eb   :  { %v3572_v2 = vpop.f32.mrf.mxu3 }
 0x5ec   :  { %v3573_v62 = vadd.f32 %v3572_v2, %v3508_v61 }
 0x5ed   :  { %v3375_v17 = vpop.f32.mrf.mxu1  ;;  %v3510_v47 = vpop.f32.mrf.mxu2 }
 0x5ee   :  { %v3376_v63 = vadd.f32 %v3375_v17, %v3311_v6  ;;  %3920 = vmatmul.f32.gmra.mxu3 %v3573_v62  ;;  %v3511_v8 = vadd.f32 %v3510_v47, %v6237_v23  ;;  %v4044_v17 = vld [vmem:[%s6643_s26 + $0x38] sm:$0xff] }
 0x5ef   :  { %v3313_v31 = vpop.f32.mrf.mxu0 }
 0x5f0   :  { %3704 = vmatmul.f32.gmra.mxu1 %v6186_v49  ;;  %4483 = vrot.lane.b32.xlu0 %v3376_v63, %s4986_s17  ;;  %v3314_v7 = vadd.f32 %v6225_v15, %v3313_v31 }
 0x5f2   :  { %3642 = vmatmul.f32.gmra.mxu0 %v6191_v19  ;;  %4614 = vmatmul.msk.f32.gmra.mxu2 %vm3753_vm3, %v259_v40  ;;  %v260_v19 = vld [vmem:[%s6675_s30 + $0x68] sm:$0xff] }
 0x5f3   :  { %v3575_v30 = vpop.f32.mrf.mxu3 }
 0x5f4   :  { %v3576_v42 = vadd.f32 %v3575_v30, %v3511_v8  ;;  %v4043_v8 = vld [vmem:[%s6643_s26 + $0x30] sm:$0xff] }
 0x5f5   :  { %v3378_v12 = vpop.f32.mrf.mxu1  ;;  %v3513_v56 = vpop.f32.mrf.mxu2 }
 0x5f6   :  { %v3379_v49 = vadd.f32 %v3378_v12, %v3314_v7  ;;  %3923 = vmatmul.f32.gmra.mxu3 %v3576_v42  ;;  %v3514_v55 = vadd.f32 %v3513_v56, %v6237_v23  ;;  %v4042_v12 = vld [vmem:[%s6643_s26 + $0x28] sm:$0xff] }
 0x5f7   :  { %v3316_v9 = vpop.f32.mrf.mxu0 }
 0x5f8   :  { %3707 = vmatmul.f32.gmra.mxu1 %v6208_v36  ;;  %4485 = vrot.lane.b32.xlu1 %v3379_v49, %s4986_s17  ;;  %v3317_v14 = vadd.f32 %v6225_v15, %v3316_v9 }
 0x5fa   :  { %3645 = vmatmul.f32.gmra.mxu0 %v6210_v43  ;;  %4615 = vmatmul.msk.f32.gmra.mxu2 %vm3753_vm3, %v260_v19  ;;  %v261_v43 = vld [vmem:[%s6675_s30 + $0x70] sm:$0xff] }
 0x5fb   :  { %v3578_v58 = vpop.f32.mrf.mxu3 }
 0x5fc   :  { %v3579_v20 = vadd.f32 %v3578_v58, %v3514_v55  ;;  %v4041_v55 = vld [vmem:[%s6643_s26 + $0x20] sm:$0xff] }
 0x5fd   :  { %v3381_v27 = vpop.f32.mrf.mxu1  ;;  %v3516_v52 = vpop.f32.mrf.mxu2 }
 0x5fe   :  { %v3382_v36 = vadd.f32 %v3381_v27, %v3317_v14  ;;  %3926 = vmatmul.f32.gmra.mxu3 %v3579_v20  ;;  %v3517_v28 = vadd.f32 %v3516_v52, %v6237_v23  ;;  %v4040_v27 = vld [vmem:[%s6643_s26 + $0x18] sm:$0xff] }
 0x5ff   :  { %v3319_v33 = vpop.f32.mrf.mxu0 }
 0x600   :  { %3710 = vmatmul.f32.gmra.mxu1 %v6218_v59  ;;  %4487 = vrot.lane.b32.xlu2 %v3382_v36, %s4986_s17  ;;  %v3320_v38 = vadd.f32 %v6225_v15, %v3319_v33  ;;  %v4049_v15 = vld [vmem:[%s6643_s26 + $0x60] sm:$0xff] }
 0x601   :  { %4060 = vmatpush.msra.mxu1 %v4049_v15 }
 0x602   :  { %4616 = vmatmul.msk.f32.gmra.mxu2 %vm3753_vm3, %v261_v43 }
 0x603   :  { %v3581_v26 = vpop.f32.mrf.mxu3 }
 0x604   :  { %v3582_v34 = vadd.f32 %v3581_v26, %v3517_v28  ;;  %v4039_v28 = vld [vmem:[%s6643_s26 + $0x10] sm:$0xff] }
 0x605   :  { %v3384_v39 = vpop.f32.mrf.mxu1  ;;  %v3519_v18 = vpop.f32.mrf.mxu2 }
 0x606   :  { %v3385_v44 = vadd.f32 %v3384_v39, %v3320_v38  ;;  %3929 = vmatmul.f32.gmra.mxu3 %v3582_v34  ;;  %v3520_v10 = vadd.f32 %v3519_v18, %v6237_v23 }
 0x607   :  { %v3604_v59 = vpop.f32.mrf.mxu0 }
 0x608   :  { %3713 = vmatmul.f32.gmra.mxu1 %v6223_v54  ;;  %4489 = vrot.lane.b32.xlu0 %v3385_v44, %s4986_s17  ;;  %v3605_v45 = vadd.f32 %v3604_v59, %v6386_v48  ;;  %v4048_v54 = vld [vmem:[%s6643_s26 + $0x58] sm:$0xff]  ;;  %v4038_v44 = vld [vmem:[%s6643_s26 + $0x8] sm:$0xff] }
 0x609   :  { %4061 = vmatpush.msra.mxu1 %v4048_v54 }
 0x60a   :  { %4617 = vmatmul.msk.f32.gmra.mxu2 %vm3753_vm3, %v262_v24 }
 0x60b   :  { %v3584_v0 = vpop.f32.mrf.mxu3  ;;  %4062 = vmatpush.msra.mxu1 %v4047_v4 }
 0x60c   :  { %v3585_v35 = vadd.f32 %v3584_v0, %v3520_v10  ;;  %v4037_v0 = vld [vmem:[%s6643_s26] sm:$0xff] }
 0x60d   :  { %v3669_v21 = vpop.f32.mrf.mxu1  ;;  %4063 = vmatpush.msra.mxu1 %v4046_v53  ;;  %v3649_v39 = vpop.f32.mrf.mxu2 }
 0x60e   :  { %v3670_v3 = vadd.f32 %v3669_v21, %v3605_v45  ;;  %3932 = vmatmul.f32.gmra.mxu3 %v3585_v35 }
 0x60f   :  { %v3607_v50 = vpop.f32.mrf.mxu0  ;;  %4064 = vmatpush.msra.mxu1 %v4045_v41 }
 0x610   :  { %3952 = vmatmul.f32.vlgmr.msra.gmra.mxu0 %v3670_v3  ;;  %v3608_v23 = vadd.f32 %v3607_v50, %v6386_v48 }
 0x611   :  { %4065 = vmatpush.msra.mxu1 %v4044_v17 }
 0x613   :  { %4066 = vmatpush.msra.mxu1 %v4043_v8 }
 0x615   :  { %v3672_v11 = vpop.f32.mrf.mxu1  ;;  %4067 = vmatpush.msra.mxu1 %v4042_v12  ;;  %v3823_v15 = vpop.f32.mrf.mxu2 }
 0x616   :  { %v3673_v16 = vadd.f32 %v3672_v11, %v3608_v23 }
 0x617   :  { %v3610_v1 = vpop.f32.mrf.mxu0  ;;  %4068 = vmatpush.msra.mxu1 %v4041_v55 }
 0x618   :  { %3955 = vmatmul.f32.gmra.mxu0 %v3673_v16  ;;  %v3611_v60 = vadd.f32 %v3610_v1, %v6386_v48 }
 0x619   :  { %4069 = vmatpush.msra.mxu1 %v4040_v27  ;;  %v3888_v45 = vpop.f32.mrf.mxu3 }
 0x61b   :  { %4070 = vmatpush.msra.mxu1 %v4039_v28 }
 0x61d   :  { %v3675_v5 = vpop.f32.mrf.mxu1  ;;  %4071 = vmatpush.msra.mxu1 %v4038_v44  ;;  %v3826_v54 = vpop.f32.mrf.mxu2 }
 0x61e   :  { %v3676_v51 = vadd.f32 %v3675_v5, %v3611_v60 }
 0x61f   :  { %v3613_v29 = vpop.f32.mrf.mxu0  ;;  %4072 = vmatpush.msra.mxu1 %v4037_v0 }
 0x620   :  { %3958 = vmatmul.f32.gmra.mxu0 %v3676_v51  ;;  %v3614_v22 = vadd.f32 %v3613_v29, %v6386_v48 }
 0x621   :  { %v3891_v11 = vpop.f32.mrf.mxu3 }
 0x625   :  { %v3678_v46 = vpop.f32.mrf.mxu1  ;;  %v3829_v51 = vpop.f32.mrf.mxu2 }
 0x626   :  { %v3679_v57 = vadd.f32 %v3678_v46, %v3614_v22  ;;  %v3650_v22 = vadd.f32 %v3649_v39, %v6386_v48 }
 0x627   :  { %v3616_v25 = vpop.f32.mrf.mxu0 }
 0x628   :  { %3961 = vmatmul.f32.gmra.mxu0 %v3679_v57  ;;  %v3617_v61 = vadd.f32 %v3616_v25, %v6386_v48 }
 0x629   :  { %v3894_v53 = vpop.f32.mrf.mxu3 }
 0x62d   :  { %v3681_v2 = vpop.f32.mrf.mxu1  ;;  %v3832_v25 = vpop.f32.mrf.mxu2 }
 0x62e   :  { %v3682_v6 = vadd.f32 %v3681_v2, %v3617_v61  ;;  %v3889_v61 = vadd.f32 %v3888_v45, %v3823_v15  ;;  %v6450_v2 = vld [vmem:[%s6642_s25] ss:$0 sm:$0xff] }
 0x62f   :  { %v3619_v62 = vpop.f32.mrf.mxu0 }
 0x630   :  { %3964 = vmatmul.f32.gmra.mxu0 %v3682_v6  ;;  %v3620_v47 = vadd.f32 %v3619_v62, %v6386_v48 }
 0x631   :  { %v3897_v41 = vpop.f32.mrf.mxu3 }
 0x632   :  { %v3898_v55 = vadd.f32 %v3897_v41, %v3832_v25 }
 0x635   :  { %v3684_v63 = vpop.f32.mrf.mxu1 }
 0x636   :  { %v3685_v31 = vadd.f32 %v3684_v63, %v3620_v47  ;;  %v3835_v47 = vpop.f32.mrf.mxu2 }
 0x637   :  { %v3622_v40 = vpop.f32.mrf.mxu0 }
 0x638   :  { %3967 = vmatmul.f32.gmra.mxu0 %v3685_v31  ;;  %v3623_v37 = vadd.f32 %v3622_v40, %v6386_v48  ;;  %v3892_v40 = vadd.f32 %v3891_v11, %v3826_v54 }
 0x639   :  { %v3900_v31 = vpop.f32.mrf.mxu3 }
 0x63d   :  { %v3687_v30 = vpop.f32.mrf.mxu1 }
 0x63e   :  { %v3688_v7 = vadd.f32 %v3687_v30, %v3623_v37 }
 0x63f   :  { %v3625_v42 = vpop.f32.mrf.mxu0 }
 0x640   :  { %3970 = vmatmul.f32.gmra.mxu0 %v3688_v7  ;;  %v3626_v56 = vadd.f32 %v3625_v42, %v6386_v48  ;;  %v3895_v7 = vadd.f32 %v3894_v53, %v3829_v51  ;;  %v3838_v42 = vpop.f32.mrf.mxu2 }
 0x641   :  { %v3903_v12 = vpop.f32.mrf.mxu3 }
 0x645   :  { %v3690_v49 = vpop.f32.mrf.mxu1 }
 0x646   :  { %v3691_v9 = vadd.f32 %v3690_v49, %v3626_v56 }
 0x647   :  { %v3628_v19 = vpop.f32.mrf.mxu0 }
 0x648   :  { %3973 = vmatmul.f32.gmra.mxu0 %v3691_v9  ;;  %v3629_v13 = vadd.f32 %v3628_v19, %v6386_v48 }
 0x64d   :  { %v3693_v58 = vpop.f32.mrf.mxu1 }
 0x64e   :  { %v3694_v14 = vadd.f32 %v3693_v58, %v3629_v13  ;;  %v3841_v58 = vpop.f32.mrf.mxu2 }
 0x64f   :  { %v3631_v20 = vpop.f32.mrf.mxu0 }
 0x650   :  { %3976 = vmatmul.f32.gmra.mxu0 %v3694_v14  ;;  %v3632_v52 = vadd.f32 %v3631_v20, %v6386_v48  ;;  %v3906_v20 = vpop.f32.mrf.mxu3 }
 0x651   :  { %v3907_v15 = vadd.f32 %v3906_v20, %v3841_v58 }
 0x655   :  { %v3696_v36 = vpop.f32.mrf.mxu1 }
 0x656   :  { %v3697_v33 = vadd.f32 %v3696_v36, %v3632_v52  ;;  %v3901_v36 = vadd.f32 %v3900_v31, %v3835_v47  ;;  %v3844_v28 = vpop.f32.mrf.mxu2 }
 0x657   :  { %v3634_v43 = vpop.f32.mrf.mxu0 }
 0x658   :  { %3979 = vmatmul.f32.gmra.mxu0 %v3697_v33  ;;  %v3635_v32 = vadd.f32 %v3634_v43, %v6386_v48 }
 0x65d   :  { %v3699_v26 = vpop.f32.mrf.mxu1 }
 0x65e   :  { %v3700_v38 = vadd.f32 %v3699_v26, %v3635_v32  ;;  %v3909_v26 = vpop.f32.mrf.mxu3 }
 0x65f   :  { %v3637_v34 = vpop.f32.mrf.mxu0 }
 0x660   :  { %3982 = vmatmul.f32.gmra.mxu0 %v3700_v38  ;;  %v3638_v18 = vadd.f32 %v3637_v34, %v6386_v48  ;;  %v3904_v34 = vadd.f32 %v3903_v12, %v3838_v42 }
 0x665   :  { %v3702_v59 = vpop.f32.mrf.mxu1 }
 0x666   :  { %v3703_v24 = vadd.f32 %v3702_v59, %v3638_v18  ;;  %v3847_v59 = vpop.f32.mrf.mxu2 }
 0x667   :  { %v3640_v10 = vpop.f32.mrf.mxu0 }
 0x668   :  { %3985 = vmatmul.f32.gmra.mxu0 %v3703_v24  ;;  %v3641_v35 = vadd.f32 %v3640_v10, %v6386_v48  ;;  %v3912_v10 = vpop.f32.mrf.mxu3 }
 0x66d   :  { %v3705_v21 = vpop.f32.mrf.mxu1 }
 0x66e   :  { %v3706_v3 = vadd.f32 %v3705_v21, %v3641_v35 }
 0x66f   :  { %v3643_v50 = vpop.f32.mrf.mxu0 }
 0x670   :  { %3988 = vmatmul.f32.gmra.mxu0 %v3706_v3  ;;  %v3644_v23 = vadd.f32 %v3643_v50, %v6386_v48  ;;  %v3910_v3 = vadd.f32 %v3909_v26, %v3844_v28  ;;  %v3850_v50 = vpop.f32.mrf.mxu2  ;;  %v3915_v54 = vpop.f32.mrf.mxu3 }
 0x675   :  { %v3708_v16 = vpop.f32.mrf.mxu1 }
 0x676   :  { %v3709_v1 = vadd.f32 %v3708_v16, %v3644_v23 }
 0x677   :  { %v3646_v4 = vpop.f32.mrf.mxu0 }
 0x678   :  { %3991 = vmatmul.f32.gmra.mxu0 %v3709_v1  ;;  %v3647_v60 = vadd.f32 %v3646_v4, %v6386_v48  ;;  %v3913_v4 = vadd.f32 %v3912_v10, %v3847_v59 }
 0x67d   :  { %v3711_v5 = vpop.f32.mrf.mxu1 }
 0x67e   :  { %v3712_v29 = vadd.f32 %v3711_v5, %v3647_v60  ;;  %v3853_v5 = vpop.f32.mrf.mxu2 }
 0x680   :  { %3994 = vmatmul.f32.gmra.mxu0 %v3712_v29  ;;  %v3918_v29 = vpop.f32.mrf.mxu3 }
 0x685   :  { %v3714_v46 = vpop.f32.mrf.mxu1 }
 0x686   :  { %v3715_v57 = vadd.f32 %v3714_v46, %v3650_v22  ;;  %v3916_v46 = vadd.f32 %v3915_v54, %v3850_v50  ;;  %v3856_v41 = vpop.f32.mrf.mxu2 }
 0x688   :  { %3997 = vmatmul.f32.gmra.mxu0 %v3715_v57 }
 0x68d   :  { %v3953_v6 = vpop.f32.mrf.mxu0 }
 0x68e   :  { %v3954_v62 = vadd.f32 %v3953_v6, %v3889_v61  ;;  %v3921_v6 = vpop.f32.mrf.mxu3 }
 0x690   :  { %v4005_v17 = vadd.f32 %v6450_v2, %v3954_v62 }
 0x692   :  { %v4021_v63 = vmax.f32 %v4005_v17, 0.0  ;;  %v3919_v17 = vadd.f32 %v3918_v29, %v3853_v5 }
 0x694   :  { %4073 = vmatmul.f32.vlgmr.msra.gmra.mxu1 %v4021_v63 }
 0x695   :  { %v3956_v48 = vpop.f32.mrf.mxu0 }
 0x696   :  { %v3957_v8 = vadd.f32 %v3956_v48, %v3892_v40  ;;  %v3859_v40 = vpop.f32.mrf.mxu2 }
 0x698   :  { %v4006_v37 = vadd.f32 %v6450_v2, %v3957_v8  ;;  %v3924_v8 = vpop.f32.mrf.mxu3 }
 0x69a   :  { %v4022_v30 = vmax.f32 %v4006_v37, 0.0  ;;  %v3922_v37 = vadd.f32 %v3921_v6, %v3856_v41 }
 0x69c   :  { %4076 = vmatmul.f32.gmra.mxu1 %v4022_v30 }
 0x69d   :  { %v3959_v56 = vpop.f32.mrf.mxu0 }
 0x69e   :  { %v3960_v49 = vadd.f32 %v3959_v56, %v3895_v7  ;;  %v3925_v56 = vadd.f32 %v3924_v8, %v3859_v40  ;;  %v4460_v8 = vpop.permute.xlu0 %4459 }
 0x6a0   :  { %v4007_v9 = vadd.f32 %v6450_v2, %v3960_v49  ;;  %v3862_v49 = vpop.f32.mrf.mxu2 }
 0x6a2   :  { %v4023_v19 = vmax.f32 %v4007_v9, 0.0  ;;  %v3927_v9 = vpop.f32.mrf.mxu3 }
 0x6a4   :  { %4079 = vmatmul.f32.gmra.mxu1 %v4023_v19 }
 0x6a5   :  { %v3962_v13 = vpop.f32.mrf.mxu0 }
 0x6a6   :  { %v3963_v14 = vadd.f32 %v3962_v13, %v3898_v55 }
 0x6a8   :  { %v4008_v27 = vadd.f32 %v6450_v2, %v3963_v14  ;;  %v3928_v14 = vadd.f32 %v3927_v9, %v3862_v49 }
 0x6aa   :  { %v4024_v52 = vmax.f32 %v4008_v27, 0.0 }
 0x6ac   :  { %4082 = vmatmul.f32.gmra.mxu1 %v4024_v52  ;;  %v3865_v52 = vpop.f32.mrf.mxu2 }
 0x6ad   :  { %v3965_v33 = vpop.f32.mrf.mxu0 }
 0x6ae   :  { %v3966_v43 = vadd.f32 %v3965_v33, %v3901_v36  ;;  %v3930_v36 = vpop.f32.mrf.mxu3 }
 0x6af   :  { %v3931_v28 = vadd.f32 %v3930_v36, %v3865_v52 }
 0x6b0   :  { %v4009_v32 = vadd.f32 %v6450_v2, %v3966_v43 }
 0x6b2   :  { %v4025_v38 = vmax.f32 %v4009_v32, 0.0 }
 0x6b4   :  { %4085 = vmatmul.f32.gmra.mxu1 %v4025_v38 }
 0x6b5   :  { %v3968_v39 = vpop.f32.mrf.mxu0 }
 0x6b6   :  { %v3969_v44 = vadd.f32 %v3968_v39, %v3904_v34  ;;  %v3868_v34 = vpop.f32.mrf.mxu2  ;;  %v3933_v39 = vpop.f32.mrf.mxu3 }
 0x6b8   :  { %v4010_v18 = vadd.f32 %v6450_v2, %v3969_v44 }
 0x6ba   :  { %v4026_v24 = vmax.f32 %v4010_v18, 0.0  ;;  %v3934_v18 = vadd.f32 %v3933_v39, %v3868_v34 }
 0x6bc   :  { %4088 = vmatmul.f32.gmra.mxu1 %v4026_v24 }
 0x6bd   :  { %v3971_v0 = vpop.f32.mrf.mxu0 }
 0x6be   :  { %v3972_v45 = vadd.f32 %v3971_v0, %v3907_v15  ;;  %v6471_v0 = vld [vmem:[%s6644_s27] ss:$0 sm:$0xff] }
 0x6c0   :  { %v4011_v35 = vadd.f32 %v6450_v2, %v3972_v45 }
 0x6c2   :  { %v4027_v21 = vmax.f32 %v4011_v35, 0.0 }
 0x6c4   :  { %4091 = vmatmul.f32.gmra.mxu1 %v4027_v21 }
 0x6c5   :  { %v3974_v23 = vpop.f32.mrf.mxu0 }
 0x6c6   :  { %v3975_v11 = vadd.f32 %v3974_v23, %v3910_v3 }
 0x6c8   :  { %v4012_v16 = vadd.f32 %v6450_v2, %v3975_v11 }
 0x6ca   :  { %v4028_v1 = vmax.f32 %v4012_v16, 0.0 }
 0x6cc   :  { %4094 = vmatmul.f32.gmra.mxu1 %v4028_v1 }
 0x6cd   :  { %v3977_v60 = vpop.f32.mrf.mxu0 }
 0x6ce   :  { %v3978_v51 = vadd.f32 %v3977_v60, %v3913_v4 }
 0x6d0   :  { %v4013_v53 = vadd.f32 %v6450_v2, %v3978_v51 }
 0x6d2   :  { %v4029_v22 = vmax.f32 %v4013_v53, 0.0 }
 0x6d4   :  { %4097 = vmatmul.f32.gmra.mxu1 %v4029_v22 }
 0x6d5   :  { %v3980_v57 = vpop.f32.mrf.mxu0 }
 0x6d6   :  { %v3981_v25 = vadd.f32 %v3980_v57, %v3916_v46 }
 0x6d8   :  { %v4014_v61 = vadd.f32 %v6450_v2, %v3981_v25 }
 0x6da   :  { %v4030_v62 = vmax.f32 %v4014_v61, 0.0 }
 0x6dc   :  { %4100 = vmatmul.f32.gmra.mxu1 %v4030_v62 }
 0x6dd   :  { %v3983_v47 = vpop.f32.mrf.mxu0 }
 0x6de   :  { %v3984_v63 = vadd.f32 %v3983_v47, %v3919_v17 }
 0x6e0   :  { %v4015_v31 = vadd.f32 %v6450_v2, %v3984_v63 }
 0x6e2   :  { %v4031_v48 = vmax.f32 %v4015_v31, 0.0 }
 0x6e4   :  { %4103 = vmatmul.f32.gmra.mxu1 %v4031_v48 }
 0x6e5   :  { %v3986_v30 = vpop.f32.mrf.mxu0 }
 0x6e6   :  { %v3987_v7 = vadd.f32 %v3986_v30, %v3922_v37 }
 0x6e8   :  { %v4016_v42 = vadd.f32 %v6450_v2, %v3987_v7 }
 0x6ea   :  { %v4032_v12 = vmax.f32 %v4016_v42, 0.0 }
 0x6ec   :  { %4106 = vmatmul.f32.gmra.mxu1 %v4032_v12 }
 0x6ed   :  { %v3989_v19 = vpop.f32.mrf.mxu0 }
 0x6ee   :  { %v3990_v55 = vadd.f32 %v3989_v19, %v3925_v56 }
 0x6f0   :  { %v4017_v13 = vadd.f32 %v6450_v2, %v3990_v55 }
 0x6f2   :  { %v4033_v58 = vmax.f32 %v4017_v13, 0.0 }
 0x6f4   :  { %4109 = vmatmul.f32.gmra.mxu1 %v4033_v58 }
 0x6f5   :  { %v3992_v20 = vpop.f32.mrf.mxu0 }
 0x6f6   :  { %v3993_v27 = vadd.f32 %v3992_v20, %v3928_v14 }
 0x6f8   :  { %v4018_v33 = vadd.f32 %v6450_v2, %v3993_v27 }
 0x6fa   :  { %v4034_v43 = vmax.f32 %v4018_v33, 0.0 }
 0x6fc   :  { %4112 = vmatmul.f32.gmra.mxu1 %v4034_v43 }
 0x6fd   :  { %v3995_v32 = vpop.f32.mrf.mxu0 }
 0x6fe   :  { %v3996_v26 = vadd.f32 %v3995_v32, %v3931_v28  ;;  %v4462_v32 = vpop.permute.xlu0 %4461 }
 0x700   :  { %v4019_v38 = vadd.f32 %v6450_v2, %v3996_v26 }
 0x702   :  { %v4035_v44 = vmax.f32 %v4019_v38, 0.0 }
 0x704   :  { %4115 = vmatmul.f32.gmra.mxu1 %v4035_v44 }
 0x705   :  { %v3998_v59 = vpop.f32.mrf.mxu0 }
 0x706   :  { %v3999_v24 = vadd.f32 %v3998_v59, %v3934_v18 }
 0x708   :  { %v4020_v10 = vadd.f32 %v6450_v2, %v3999_v24 }
 0x70a   :  { %v4036_v15 = vmax.f32 %v4020_v10, 0.0 }
 0x70c   :  { %4118 = vmatmul.f32.gmra.mxu1 %v4036_v15 }
 0x711   :  { %v4074_v45 = vpop.f32.mrf.mxu1 }
 0x712   :  { %v4075_v35 = vadd.f32 %v6471_v0, %v4074_v45 }
 0x714   :  { %v4122_v21 = vsub.f32 0.0, %v4075_v35 }
 0x716   :  { %v4138_v3 = vmul.f32 1.442695, %v4122_v21  ;;  %v4464_v21 = vpop.permute.xlu1 %4463 }
 0x718   :  { %4667 = vpow2.f32 %v4138_v3 }
 0x719   :  { %v4077_v50 = vpop.f32.mrf.mxu1 }
 0x71a   :  { %v4078_v54 = vadd.f32 %v6471_v0, %v4077_v50 }
 0x71c   :  { %v4123_v23 = vsub.f32 0.0, %v4078_v54 }
 0x71e   :  { %v4668_v11 = vpop.eup %4667  ;;  %v4140_v16 = vmul.f32 1.442695, %v4123_v23 }
 0x71f   :  { %v4170_v2 = vadd.f32 1.0, %v4668_v11 }
 0x720   :  { %4669 = vpow2.f32 %v4140_v16 }
 0x721   :  { %4671 = vrcp.f32 %v4170_v2  ;;  %v4080_v1 = vpop.f32.mrf.mxu1  ;;  %v4197_v41 = vand.u32 2147483648, %v4170_v2  ;;  %v4195_v6 = vand.u32 2147483647, %v4170_v2  ;;  %vm4191_vm5 = vweird.f32 %v4170_v2 }
 0x722   :  { %v4081_v4 = vadd.f32 %v6471_v0, %v4080_v1 }
 0x723   :  { %v4198_v40 = vor.u32 1.1754944e-38, %v4197_v41  ;;  %vm4196_vm9 = vcmp.eq.f32.partialorder %v4195_v6, 8.507059e+37  ;;  %v4466_v6 = vpop.permute.xlu1 %4465 }
 0x724   :  { %v4124_v60 = vsub.f32 0.0, %v4081_v4 }
 0x726   :  { %v4670_v5 = vpop.eup %4669  ;;  %v4142_v51 = vmul.f32 1.442695, %v4124_v60 }
 0x727   :  { %v4672_v29 = vpop.eup %4671  ;;  %v4171_v53 = vadd.f32 1.0, %v4670_v5 }
 0x728   :  { %v4187_v22 = vmul.f32 %v4672_v29, %v4170_v2  ;;  %4673 = vpow2.f32 %v4142_v51  ;;  %vm4192_vm4 = vweird.f32 %v4672_v29 }
 0x729   :  { %4675 = vrcp.f32 %v4171_v53  ;;  %v4083_v46 = vpop.f32.mrf.mxu1  ;;  %vm4193_vm6 = vmor %vm4191_vm5, %vm4192_vm4  ;;  %v4212_v49 = vand.u32 2147483648, %v4171_v53  ;;  %v4210_v19 = vand.u32 2147483647, %v4171_v53  ;;  %vm4206_vm11 = vweird.f32 %v4171_v53 }
 0x72a   :  { %v4188_v57 = vsub.f32 1.0, %v4187_v22  ;;  %v4084_v25 = vadd.f32 %v6471_v0, %v4083_v46 }
 0x72b   :  { %v4213_v27 = vor.u32 1.1754944e-38, %v4212_v49  ;;  %vm4211_vm13 = vcmp.eq.f32.partialorder %v4210_v19, 8.507059e+37 }
 0x72c   :  { %v4189_v61 = vmul.f32 %v4672_v29, %v4188_v57  ;;  %v4125_v62 = vsub.f32 0.0, %v4084_v25 }
 0x72e   :  { %v4674_v17 = vpop.eup %4673  ;;  %v4190_v47 = vadd.f32 %v4672_v29, %v4189_v61  ;;  %v4144_v63 = vmul.f32 1.442695, %v4125_v62 }
 0x72f   :  { %v4676_v31 = vpop.eup %4675  ;;  %v4172_v48 = vadd.f32 1.0, %v4674_v17 }
 0x730   :  { %v4194_v37 = vsel %vm4193_vm6, %v4672_v29, %v4190_v47  ;;  %v4202_v30 = vmul.f32 %v4676_v31, %v4171_v53  ;;  %4677 = vpow2.f32 %v4144_v63  ;;  %vm4207_vm10 = vweird.f32 %v4676_v31 }
 0x731   :  { %v4199_v7 = vsel %vm4196_vm9, %v4198_v40, %v4194_v37  ;;  %4679 = vrcp.f32 %v4172_v48  ;;  %v4086_v42 = vpop.f32.mrf.mxu1  ;;  %vm4208_vm12 = vmor %vm4206_vm11, %vm4207_vm10  ;;  %v4227_v34 = vand.u32 2147483648, %v4172_v48  ;;  %v4225_v44 = vand.u32 2147483647, %v4172_v48 }
 0x732   :  { %4427 = vst.msk [vmem:[%s6645_s28] sm:$0xff] %vm4426_vm7, %v4199_v7  ;;  %v4203_v12 = vsub.f32 1.0, %v4202_v30  ;;  %v4087_v56 = vadd.f32 %v6471_v0, %v4086_v42  ;;  %vm4221_vm15 = vweird.f32 %v4172_v48 }
 0x733   :  { %4508 = vst.msk [vmem:[%s6645_s28] sm:$0xff] %vm4507_vm8, %v4460_v8  ;;  %v4228_v45 = vor.u32 1.1754944e-38, %v4227_v34  ;;  %vm4226_vm1 = vcmp.eq.f32.partialorder %v4225_v44, 8.507059e+37 }
 0x734   :  { %v4204_v9 = vmul.f32 %v4676_v31, %v4203_v12  ;;  %v4126_v55 = vsub.f32 0.0, %v4087_v56  ;;  %v4468_v12 = vpop.permute.xlu2 %4467 }
 0x736   :  { %v4678_v13 = vpop.eup %4677  ;;  %v4205_v58 = vadd.f32 %v4676_v31, %v4204_v9  ;;  %v4146_v14 = vmul.f32 1.442695, %v4126_v55 }
 0x737   :  { %v4680_v20 = vpop.eup %4679  ;;  %v4173_v52 = vadd.f32 1.0, %v4678_v13 }
 0x738   :  { %v4209_v36 = vsel %vm4208_vm12, %v4676_v31, %v4205_v58  ;;  %v4217_v33 = vmul.f32 %v4680_v20, %v4172_v48  ;;  %4681 = vpow2.f32 %v4146_v14  ;;  %vm4222_vm14 = vweird.f32 %v4680_v20 }
 0x739   :  { %v4214_v43 = vsel %vm4211_vm13, %v4213_v27, %v4209_v36  ;;  %4683 = vrcp.f32 %v4173_v52  ;;  %v4089_v28 = vpop.f32.mrf.mxu1  ;;  %vm4223_vm0 = vmor %vm4221_vm15, %vm4222_vm14  ;;  %v4242_v2 = vand.u32 2147483648, %v4173_v52  ;;  %v4240_v4 = vand.u32 2147483647, %v4173_v52 }
 0x73a   :  { %4428 = vst.msk [vmem:[%s6645_s28 + $0x8] sm:$0xff] %vm4426_vm7, %v4214_v43  ;;  %v4218_v26 = vsub.f32 1.0, %v4217_v33  ;;  %v4090_v38 = vadd.f32 %v6471_v0, %v4089_v28  ;;  %vm4236_vm3 = vweird.f32 %v4173_v52 }
 0x73b   :  { %4509 = vst.msk [vmem:[%s6645_s28 + $0x8] sm:$0xff] %vm4507_vm8, %v4462_v32  ;;  %v4243_v22 = vor.u32 1.1754944e-38, %v4242_v2  ;;  %vm4241_vm5 = vcmp.eq.f32.partialorder %v4240_v4, 8.507059e+37  ;;  %v4472_v4 = vpop.permute.xlu0 %4471 }
 0x73c   :  { %v4219_v39 = vmul.f32 %v4680_v20, %v4218_v26  ;;  %v4127_v18 = vsub.f32 0.0, %v4090_v38  ;;  %v4470_v44 = vpop.permute.xlu2 %4469 }
 0x73e   :  { %v4682_v59 = vpop.eup %4681  ;;  %v4220_v24 = vadd.f32 %v4680_v20, %v4219_v39  ;;  %v4148_v10 = vmul.f32 1.442695, %v4127_v18 }
 0x73f   :  { %v4684_v15 = vpop.eup %4683  ;;  %v4174_v35 = vadd.f32 1.0, %v4682_v59 }
 0x740   :  { %v4224_v3 = vsel %vm4223_vm0, %v4680_v20, %v4220_v24  ;;  %v4232_v50 = vmul.f32 %v4684_v15, %v4173_v52  ;;  %4685 = vpow2.f32 %v4148_v10  ;;  %vm4237_vm2 = vweird.f32 %v4684_v15 }
 0x741   :  { %v4229_v54 = vsel %vm4226_vm1, %v4228_v45, %v4224_v3  ;;  %4687 = vrcp.f32 %v4174_v35  ;;  %v4092_v23 = vpop.f32.mrf.mxu1  ;;  %vm4238_vm4 = vmor %vm4236_vm3, %vm4237_vm2  ;;  %v4257_v47 = vand.u32 2147483648, %v4174_v35  ;;  %v4255_v31 = vand.u32 2147483647, %v4174_v35 }
 0x742   :  { %4429 = vst.msk [vmem:[%s6645_s28 + $0x10] sm:$0xff] %vm4426_vm7, %v4229_v54  ;;  %v4233_v11 = vsub.f32 1.0, %v4232_v50  ;;  %v4093_v16 = vadd.f32 %v6471_v0, %v4092_v23  ;;  %vm4251_vm9 = vweird.f32 %v4174_v35 }
 0x743   :  { %4510 = vst.msk [vmem:[%s6645_s28 + $0x10] sm:$0xff] %vm4507_vm8, %v4464_v21  ;;  %v4258_v7 = vor.u32 1.1754944e-38, %v4257_v47  ;;  %vm4256_vm11 = vcmp.eq.f32.partialorder %v4255_v31, 8.507059e+37  ;;  %v4474_v31 = vpop.permute.xlu1 %4473 }
 0x744   :  { %v4234_v1 = vmul.f32 %v4684_v15, %v4233_v11  ;;  %v4128_v60 = vsub.f32 0.0, %v4093_v16 }
 0x746   :  { %v4686_v5 = vpop.eup %4685  ;;  %v4235_v51 = vadd.f32 %v4684_v15, %v4234_v1  ;;  %v4150_v29 = vmul.f32 1.442695, %v4128_v60 }
 0x747   :  { %v4688_v53 = vpop.eup %4687  ;;  %v4175_v46 = vadd.f32 1.0, %v4686_v5 }
 0x748   :  { %v4239_v57 = vsel %vm4238_vm4, %v4684_v15, %v4235_v51  ;;  %v4247_v25 = vmul.f32 %v4688_v53, %v4174_v35  ;;  %4689 = vpow2.f32 %v4150_v29  ;;  %vm4252_vm6 = vweird.f32 %v4688_v53 }
 0x749   :  { %v4244_v41 = vsel %vm4241_vm5, %v4243_v22, %v4239_v57  ;;  %4691 = vrcp.f32 %v4175_v46  ;;  %v4095_v61 = vpop.f32.mrf.mxu1  ;;  %vm4253_vm10 = vmor %vm4251_vm9, %vm4252_vm6  ;;  %v4272_v58 = vand.u32 2147483648, %v4175_v46  ;;  %v4270_v20 = vand.u32 2147483647, %v4175_v46 }
 0x74a   :  { %4430 = vst.msk [vmem:[%s6645_s28 + $0x18] sm:$0xff] %vm4426_vm7, %v4244_v41  ;;  %v4248_v62 = vsub.f32 1.0, %v4247_v25  ;;  %v4096_v17 = vadd.f32 %v6471_v0, %v4095_v61  ;;  %vm4266_vm13 = vweird.f32 %v4175_v46 }
 0x74b   :  { %4511 = vst.msk [vmem:[%s6645_s28 + $0x18] sm:$0xff] %vm4507_vm8, %v4466_v6  ;;  %v4273_v28 = vor.u32 1.1754944e-38, %v4272_v58  ;;  %vm4271_vm15 = vcmp.eq.f32.partialorder %v4270_v20, 8.507059e+37  ;;  %v4476_v20 = vpop.permute.xlu2 %4475 }
 0x74c   :  { %v4249_v63 = vmul.f32 %v4688_v53, %v4248_v62  ;;  %v4129_v40 = vsub.f32 0.0, %v4096_v17 }
 0x74e   :  { %v4690_v48 = vpop.eup %4689  ;;  %v4250_v8 = vadd.f32 %v4688_v53, %v4249_v63  ;;  %v4152_v37 = vmul.f32 1.442695, %v4129_v40 }
 0x74f   :  { %v4692_v30 = vpop.eup %4691  ;;  %v4176_v42 = vadd.f32 1.0, %v4690_v48 }
 0x750   :  { %v4254_v56 = vsel %vm4253_vm10, %v4688_v53, %v4250_v8  ;;  %v4262_v49 = vmul.f32 %v4692_v30, %v4175_v46  ;;  %4693 = vpow2.f32 %v4152_v37  ;;  %vm4267_vm12 = vweird.f32 %v4692_v30 }
 0x751   :  { %v4259_v9 = vsel %vm4256_vm11, %v4258_v7, %v4254_v56  ;;  %4695 = vrcp.f32 %v4176_v42  ;;  %v4098_v19 = vpop.f32.mrf.mxu1  ;;  %vm4268_vm14 = vmor %vm4266_vm13, %vm4267_vm12  ;;  %v4287_v24 = vand.u32 2147483648, %v4176_v42  ;;  %v4285_v15 = vand.u32 2147483647, %v4176_v42 }
 0x752   :  { %4431 = vst.msk [vmem:[%s6645_s28 + $0x20] sm:$0xff] %vm4426_vm7, %v4259_v9  ;;  %v4263_v55 = vsub.f32 1.0, %v4262_v49  ;;  %v4099_v13 = vadd.f32 %v6471_v0, %v4098_v19  ;;  %vm4281_vm1 = vweird.f32 %v4176_v42 }
 0x753   :  { %4512 = vst.msk [vmem:[%s6645_s28 + $0x20] sm:$0xff] %vm4507_vm8, %v4468_v12  ;;  %v4288_v54 = vor.u32 1.1754944e-38, %v4287_v24  ;;  %vm4286_vm3 = vcmp.eq.f32.partialorder %v4285_v15, 8.507059e+37  ;;  %v4478_v15 = vpop.permute.xlu0 %4477 }
 0x754   :  { %v4264_v14 = vmul.f32 %v4692_v30, %v4263_v55  ;;  %v4130_v27 = vsub.f32 0.0, %v4099_v13 }
 0x756   :  { %v4694_v52 = vpop.eup %4693  ;;  %v4265_v36 = vadd.f32 %v4692_v30, %v4264_v14  ;;  %v4154_v33 = vmul.f32 1.442695, %v4130_v27 }
 0x757   :  { %v4696_v43 = vpop.eup %4695  ;;  %v4177_v32 = vadd.f32 1.0, %v4694_v52 }
 0x758   :  { %v4269_v26 = vsel %vm4268_vm14, %v4692_v30, %v4265_v36  ;;  %v4277_v38 = vmul.f32 %v4696_v43, %v4176_v42  ;;  %4697 = vpow2.f32 %v4154_v33  ;;  %vm4282_vm0 = vweird.f32 %v4696_v43 }
 0x759   :  { %v4274_v34 = vsel %vm4271_vm15, %v4273_v28, %v4269_v26  ;;  %4699 = vrcp.f32 %v4177_v32  ;;  %v4101_v39 = vpop.f32.mrf.mxu1  ;;  %vm4283_vm2 = vmor %vm4281_vm1, %vm4282_vm0  ;;  %v4302_v51 = vand.u32 2147483648, %v4177_v32  ;;  %v4300_v53 = vand.u32 2147483647, %v4177_v32 }
 0x75a   :  { %4432 = vst.msk [vmem:[%s6645_s28 + $0x28] sm:$0xff] %vm4426_vm7, %v4274_v34  ;;  %v4278_v18 = vsub.f32 1.0, %v4277_v38  ;;  %v4102_v59 = vadd.f32 %v6471_v0, %v4101_v39  ;;  %vm4296_vm5 = vweird.f32 %v4177_v32 }
 0x75b   :  { %4513 = vst.msk [vmem:[%s6645_s28 + $0x28] sm:$0xff] %vm4507_vm8, %v4470_v44  ;;  %v4303_v61 = vor.u32 1.1754944e-38, %v4302_v51  ;;  %vm4301_vm9 = vcmp.eq.f32.partialorder %v4300_v53, 8.507059e+37  ;;  %v4480_v53 = vpop.permute.xlu1 %4479 }
 0x75c   :  { %v4279_v10 = vmul.f32 %v4696_v43, %v4278_v18  ;;  %v4131_v45 = vsub.f32 0.0, %v4102_v59 }
 0x75e   :  { %v4698_v35 = vpop.eup %4697  ;;  %v4280_v21 = vadd.f32 %v4696_v43, %v4279_v10  ;;  %v4156_v3 = vmul.f32 1.442695, %v4131_v45 }
 0x75f   :  { %v4700_v50 = vpop.eup %4699  ;;  %v4178_v23 = vadd.f32 1.0, %v4698_v35 }
 0x760   :  { %v4284_v11 = vsel %vm4283_vm2, %v4696_v43, %v4280_v21  ;;  %v4292_v16 = vmul.f32 %v4700_v50, %v4177_v32  ;;  %4701 = vpow2.f32 %v4156_v3  ;;  %vm4297_vm4 = vweird.f32 %v4700_v50 }
 0x761   :  { %v4289_v2 = vsel %vm4286_vm3, %v4288_v54, %v4284_v11  ;;  %4703 = vrcp.f32 %v4178_v23  ;;  %v4104_v1 = vpop.f32.mrf.mxu1  ;;  %vm4298_vm6 = vmor %vm4296_vm5, %vm4297_vm4  ;;  %v4317_v8 = vand.u32 2147483648, %v4178_v23  ;;  %v4315_v30 = vand.u32 2147483647, %v4178_v23 }
 0x762   :  { %4433 = vst.msk [vmem:[%s6645_s28 + $0x30] sm:$0xff] %vm4426_vm7, %v4289_v2  ;;  %v4293_v60 = vsub.f32 1.0, %v4292_v16  ;;  %v4105_v5 = vadd.f32 %v6471_v0, %v4104_v1  ;;  %vm4311_vm11 = vweird.f32 %v4178_v23 }
 0x763   :  { %4514 = vst.msk [vmem:[%s6645_s28 + $0x30] sm:$0xff] %vm4507_vm8, %v4472_v4  ;;  %v4318_v9 = vor.u32 1.1754944e-38, %v4317_v8  ;;  %vm4316_vm13 = vcmp.eq.f32.partialorder %v4315_v30, 8.507059e+37  ;;  %v4482_v30 = vpop.permute.xlu2 %4481 }
 0x764   :  { %v4294_v29 = vmul.f32 %v4700_v50, %v4293_v60  ;;  %v4132_v22 = vsub.f32 0.0, %v4105_v5 }
 0x766   :  { %v4702_v46 = vpop.eup %4701  ;;  %v4295_v57 = vadd.f32 %v4700_v50, %v4294_v29  ;;  %v4158_v25 = vmul.f32 1.442695, %v4132_v22 }
 0x767   :  { %v4704_v41 = vpop.eup %4703  ;;  %v4179_v6 = vadd.f32 1.0, %v4702_v46 }
 0x768   :  { %v4299_v62 = vsel %vm4298_vm6, %v4700_v50, %v4295_v57  ;;  %v4307_v17 = vmul.f32 %v4704_v41, %v4178_v23  ;;  %4705 = vpow2.f32 %v4158_v25  ;;  %vm4312_vm10 = vweird.f32 %v4704_v41 }
 0x769   :  { %v4304_v47 = vsel %vm4301_vm9, %v4303_v61, %v4299_v62  ;;  %4707 = vrcp.f32 %v4179_v6  ;;  %v4107_v63 = vpop.f32.mrf.mxu1  ;;  %vm4313_vm12 = vmor %vm4311_vm11, %vm4312_vm10  ;;  %v4332_v36 = vand.u32 2147483648, %v4179_v6  ;;  %v4330_v43 = vand.u32 2147483647, %v4179_v6 }
 0x76a   :  { %4434 = vst.msk [vmem:[%s6645_s28 + $0x38] sm:$0xff] %vm4426_vm7, %v4304_v47  ;;  %v4308_v40 = vsub.f32 1.0, %v4307_v17  ;;  %v4108_v48 = vadd.f32 %v6471_v0, %v4107_v63  ;;  %vm4326_vm15 = vweird.f32 %v4179_v6 }
 0x76b   :  { %4515 = vst.msk [vmem:[%s6645_s28 + $0x38] sm:$0xff] %vm4507_vm8, %v4474_v31  ;;  %v4333_v39 = vor.u32 1.1754944e-38, %v4332_v36  ;;  %vm4331_vm1 = vcmp.eq.f32.partialorder %v4330_v43, 8.507059e+37  ;;  %v4484_v36 = vpop.permute.xlu0 %4483 }
 0x76c   :  { %v4309_v37 = vmul.f32 %v4704_v41, %v4308_v40  ;;  %v4133_v7 = vsub.f32 0.0, %v4108_v48 }
 0x76e   :  { %v4706_v42 = vpop.eup %4705  ;;  %v4310_v12 = vadd.f32 %v4704_v41, %v4309_v37  ;;  %v4160_v56 = vmul.f32 1.442695, %v4133_v7 }
 0x76f   :  { %v4708_v49 = vpop.eup %4707  ;;  %v4180_v19 = vadd.f32 1.0, %v4706_v42 }
 0x770   :  { %v4314_v55 = vsel %vm4313_vm12, %v4704_v41, %v4310_v12  ;;  %v4322_v13 = vmul.f32 %v4708_v49, %v4179_v6  ;;  %4709 = vpow2.f32 %v4160_v56  ;;  %vm4327_vm14 = vweird.f32 %v4708_v49 }
 0x771   :  { %v4319_v58 = vsel %vm4316_vm13, %v4318_v9, %v4314_v55  ;;  %4711 = vrcp.f32 %v4180_v19  ;;  %v4110_v14 = vpop.f32.mrf.mxu1  ;;  %vm4328_vm0 = vmor %vm4326_vm15, %vm4327_vm14  ;;  %v4347_v21 = vand.u32 2147483648, %v4180_v19  ;;  %v4345_v50 = vand.u32 2147483647, %v4180_v19 }
 0x772   :  { %4435 = vst.msk [vmem:[%s6645_s28 + $0x40] sm:$0xff] %vm4426_vm7, %v4319_v58  ;;  %v4323_v27 = vsub.f32 1.0, %v4322_v13  ;;  %v4111_v52 = vadd.f32 %v6471_v0, %v4110_v14  ;;  %vm4341_vm3 = vweird.f32 %v4180_v19 }
 0x773   :  { %4516 = vst.msk [vmem:[%s6645_s28 + $0x40] sm:$0xff] %vm4507_vm8, %v4476_v20  ;;  %v4348_v1 = vor.u32 1.1754944e-38, %v4347_v21  ;;  %vm4346_vm5 = vcmp.eq.f32.partialorder %v4345_v50, 8.507059e+37 }
 0x774   :  { %v4324_v33 = vmul.f32 %v4708_v49, %v4323_v27  ;;  %v4134_v28 = vsub.f32 0.0, %v4111_v52 }
 0x776   :  { %v4710_v32 = vpop.eup %4709  ;;  %v4325_v26 = vadd.f32 %v4708_v49, %v4324_v33  ;;  %v4162_v38 = vmul.f32 1.442695, %v4134_v28 }
 0x777   :  { %v4712_v34 = vpop.eup %4711  ;;  %v4181_v44 = vadd.f32 1.0, %v4710_v32 }
 0x778   :  { %v4329_v18 = vsel %vm4328_vm0, %v4708_v49, %v4325_v26  ;;  %v4337_v59 = vmul.f32 %v4712_v34, %v4180_v19  ;;  %4713 = vpow2.f32 %v4162_v38  ;;  %vm4342_vm2 = vweird.f32 %v4712_v34 }
 0x779   :  { %v4334_v24 = vsel %vm4331_vm1, %v4333_v39, %v4329_v18  ;;  %4715 = vrcp.f32 %v4181_v44  ;;  %v4113_v10 = vpop.f32.mrf.mxu1  ;;  %vm4343_vm4 = vmor %vm4341_vm3, %vm4342_vm2  ;;  %v4362_v57 = vand.u32 2147483648, %v4181_v44  ;;  %v4360_v41 = vand.u32 2147483647, %v4181_v44 }
 0x77a   :  { %4436 = vst.msk [vmem:[%s6645_s28 + $0x48] sm:$0xff] %vm4426_vm7, %v4334_v24  ;;  %v4338_v45 = vsub.f32 1.0, %v4337_v59  ;;  %v4114_v35 = vadd.f32 %v6471_v0, %v4113_v10  ;;  %vm4356_vm9 = vweird.f32 %v4181_v44  ;;  %v4486_v10 = vpop.permute.xlu1 %4485 }
 0x77b   :  { %4517 = vst.msk [vmem:[%s6645_s28 + $0x48] sm:$0xff] %vm4507_vm8, %v4478_v15  ;;  %v4363_v63 = vor.u32 1.1754944e-38, %v4362_v57  ;;  %vm4361_vm11 = vcmp.eq.f32.partialorder %v4360_v41, 8.507059e+37 }
 0x77c   :  { %v4339_v3 = vmul.f32 %v4712_v34, %v4338_v45  ;;  %v4135_v54 = vsub.f32 0.0, %v4114_v35 }
 0x77e   :  { %v4714_v23 = vpop.eup %4713  ;;  %v4340_v11 = vadd.f32 %v4712_v34, %v4339_v3  ;;  %v4164_v16 = vmul.f32 1.442695, %v4135_v54 }
 0x77f   :  { %v4716_v2 = vpop.eup %4715  ;;  %v4182_v4 = vadd.f32 1.0, %v4714_v23 }
 0x780   :  { %v4344_v60 = vsel %vm4343_vm4, %v4712_v34, %v4340_v11  ;;  %v4352_v5 = vmul.f32 %v4716_v2, %v4181_v44  ;;  %4717 = vpow2.f32 %v4164_v16  ;;  %vm4357_vm6 = vweird.f32 %v4716_v2 }
 0x781   :  { %v4349_v51 = vsel %vm4346_vm5, %v4348_v1, %v4344_v60  ;;  %4719 = vrcp.f32 %v4182_v4  ;;  %v4116_v29 = vpop.f32.mrf.mxu1  ;;  %vm4358_vm10 = vmor %vm4356_vm9, %vm4357_vm6  ;;  %v4377_v12 = vand.u32 2147483648, %v4182_v4  ;;  %v4375_v49 = vand.u32 2147483647, %v4182_v4 }
 0x782   :  { %4437 = vst.msk [vmem:[%s6645_s28 + $0x50] sm:$0xff] %vm4426_vm7, %v4349_v51  ;;  %v4353_v22 = vsub.f32 1.0, %v4352_v5  ;;  %v4117_v46 = vadd.f32 %v6471_v0, %v4116_v29  ;;  %vm4371_vm13 = vweird.f32 %v4182_v4 }
 0x783   :  { %4518 = vst.msk [vmem:[%s6645_s28 + $0x50] sm:$0xff] %vm4507_vm8, %v4480_v53  ;;  %v4378_v14 = vor.u32 1.1754944e-38, %v4377_v12  ;;  %vm4376_vm15 = vcmp.eq.f32.partialorder %v4375_v49, 8.507059e+37 }
 0x784   :  { %v4354_v25 = vmul.f32 %v4716_v2, %v4353_v22  ;;  %v4136_v61 = vsub.f32 0.0, %v4117_v46  ;;  %v4490_v46 = vpop.permute.xlu0 %4489 }
 0x786   :  { %v4718_v6 = vpop.eup %4717  ;;  %v4355_v62 = vadd.f32 %v4716_v2, %v4354_v25  ;;  %v4166_v17 = vmul.f32 1.442695, %v4136_v61 }
 0x787   :  { %v4720_v47 = vpop.eup %4719  ;;  %v4183_v31 = vadd.f32 1.0, %v4718_v6 }
 0x788   :  { %v4359_v40 = vsel %vm4358_vm10, %v4716_v2, %v4355_v62  ;;  %v4367_v48 = vmul.f32 %v4720_v47, %v4182_v4  ;;  %4721 = vpow2.f32 %v4166_v17  ;;  %vm4372_vm12 = vweird.f32 %v4720_v47  ;;  %v4488_v2 = vpop.permute.xlu2 %4487 }
 0x789   :  { %v4364_v8 = vsel %vm4361_vm11, %v4363_v63, %v4359_v40  ;;  %4723 = vrcp.f32 %v4183_v31  ;;  %v4119_v37 = vpop.f32.mrf.mxu1  ;;  %vm4373_vm14 = vmor %vm4371_vm13, %vm4372_vm12  ;;  %v4392_v43 = vand.u32 2147483648, %v4183_v31  ;;  %v4390_v32 = vand.u32 2147483647, %v4183_v31 }
 0x78a   :  { %4438 = vst.msk [vmem:[%s6645_s28 + $0x58] sm:$0xff] %vm4426_vm7, %v4364_v8  ;;  %v4368_v7 = vsub.f32 1.0, %v4367_v48  ;;  %v4120_v42 = vadd.f32 %v6471_v0, %v4119_v37  ;;  %vm4386_vm1 = vweird.f32 %v4183_v31 }
 0x78b   :  { %4519 = vst.msk [vmem:[%s6645_s28 + $0x58] sm:$0xff] %vm4507_vm8, %v4482_v30  ;;  %v4393_v39 = vor.u32 1.1754944e-38, %v4392_v43  ;;  %vm4391_vm3 = vcmp.eq.f32.partialorder %v4390_v32, 8.507059e+37 }
 0x78c   :  { %v4369_v56 = vmul.f32 %v4720_v47, %v4368_v7  ;;  %v4137_v9 = vsub.f32 0.0, %v4120_v42 }
 0x78e   :  { %v4722_v19 = vpop.eup %4721  ;;  %v4370_v55 = vadd.f32 %v4720_v47, %v4369_v56  ;;  %v4168_v13 = vmul.f32 1.442695, %v4137_v9 }
 0x78f   :  { %v4724_v58 = vpop.eup %4723  ;;  %v4184_v20 = vadd.f32 1.0, %v4722_v19 }
 0x790   :  { %v4374_v27 = vsel %vm4373_vm14, %v4720_v47, %v4370_v55  ;;  %v4382_v0 = vmul.f32 %v4724_v58, %v4183_v31  ;;  %4725 = vpow2.f32 %v4168_v13  ;;  %vm4387_vm0 = vweird.f32 %v4724_v58 }
 0x791   :  { %v4379_v52 = vsel %vm4376_vm15, %v4378_v14, %v4374_v27  ;;  %4727 = vrcp.f32 %v4184_v20  ;;  %vm4388_vm2 = vmor %vm4386_vm1, %vm4387_vm0  ;;  %v4407_v45 = vand.u32 2147483648, %v4184_v20  ;;  %v4405_v21 = vand.u32 2147483647, %v4184_v20 }
 0x792   :  { %4439 = vst.msk [vmem:[%s6645_s28 + $0x60] sm:$0xff] %vm4426_vm7, %v4379_v52  ;;  %v4383_v33 = vsub.f32 1.0, %v4382_v0  ;;  %vm4401_vm5 = vweird.f32 %v4184_v20 }
 0x793   :  { %4520 = vst.msk [vmem:[%s6645_s28 + $0x60] sm:$0xff] %vm4507_vm8, %v4484_v36  ;;  %v4408_v54 = vor.u32 1.1754944e-38, %v4407_v45  ;;  %vm4406_vm9 = vcmp.eq.f32.partialorder %v4405_v21, 8.507059e+37 }
 0x794   :  { %v4384_v28 = vmul.f32 %v4724_v58, %v4383_v33 }
 0x796   :  { %v4726_v26 = vpop.eup %4725  ;;  %v4385_v38 = vadd.f32 %v4724_v58, %v4384_v28 }
 0x797   :  { %v4728_v34 = vpop.eup %4727  ;;  %v4185_v44 = vadd.f32 1.0, %v4726_v26 }
 0x798   :  { %v4389_v18 = vsel %vm4388_vm2, %v4724_v58, %v4385_v38  ;;  %v4397_v59 = vmul.f32 %v4728_v34, %v4184_v20  ;;  %vm4402_vm4 = vweird.f32 %v4728_v34 }
 0x799   :  { %v4394_v24 = vsel %vm4391_vm3, %v4393_v39, %v4389_v18  ;;  %4729 = vrcp.f32 %v4185_v44  ;;  %vm4403_vm6 = vmor %vm4401_vm5, %vm4402_vm4  ;;  %v4422_v4 = vand.u32 2147483648, %v4185_v44  ;;  %v4420_v5 = vand.u32 2147483647, %v4185_v44 }
 0x79a   :  { %4440 = vst.msk [vmem:[%s6645_s28 + $0x68] sm:$0xff] %vm4426_vm7, %v4394_v24  ;;  %v4398_v15 = vsub.f32 1.0, %v4397_v59  ;;  %vm4416_vm11 = vweird.f32 %v4185_v44 }
 0x79b   :  { %4521 = vst.msk [vmem:[%s6645_s28 + $0x68] sm:$0xff] %vm4507_vm8, %v4486_v10  ;;  %v4423_v29 = vor.u32 1.1754944e-38, %v4422_v4  ;;  %vm4421_vm13 = vcmp.eq.f32.partialorder %v4420_v5, 8.507059e+37 }
 0x79c   :  { %v4399_v35 = vmul.f32 %v4728_v34, %v4398_v15 }
 0x79e   :  { %v4400_v3 = vadd.f32 %v4728_v34, %v4399_v35 }
 0x79f   :  { %v4730_v50 = vpop.eup %4729 }
 0x7a0   :  { %v4404_v23 = vsel %vm4403_vm6, %v4728_v34, %v4400_v3  ;;  %v4412_v11 = vmul.f32 %v4730_v50, %v4185_v44  ;;  %vm4417_vm10 = vweird.f32 %v4730_v50 }
 0x7a1   :  { %v4409_v16 = vsel %vm4406_vm9, %v4408_v54, %v4404_v23  ;;  %vm4418_vm12 = vmor %vm4416_vm11, %vm4417_vm10 }
 0x7a2   :  { %4441 = vst.msk [vmem:[%s6645_s28 + $0x70] sm:$0xff] %vm4426_vm7, %v4409_v16  ;;  %v4413_v1 = vsub.f32 1.0, %v4412_v11 }
 0x7a3   :  { %4522 = vst.msk [vmem:[%s6645_s28 + $0x70] sm:$0xff] %vm4507_vm8, %v4488_v2 }
 0x7a4   :  { %v4414_v60 = vmul.f32 %v4730_v50, %v4413_v1 }
 0x7a6   :  { %v4415_v51 = vadd.f32 %v4730_v50, %v4414_v60 }
 0x7a8   :  { %v4419_v53 = vsel %vm4418_vm12, %v4730_v50, %v4415_v51 }
 0x7a9   :  { %v4424_v22 = vsel %vm4421_vm13, %v4423_v29, %v4419_v53 }
 0x7aa   :  { %4442 = vst.msk [vmem:[%s6645_s28 + $0x78] sm:$0xff] %vm4426_vm7, %v4424_v22 }
 0x7ab   :  { %4523 = vst.msk [vmem:[%s6645_s28 + $0x78] sm:$0xff] %vm4507_vm8, %v4490_v46 }
 0x7ac   :  { %4528 = vsyncpa [#allocation4], 1 }
 0x7ad   :  { %4529 = vsyncpa [#allocation6], 1 }
 0x7ae   :  { %4530 = vsyncpa [#allocation9], 1 }
 0x7af   :  { %4531 = vsyncpa [#allocation12], 1 }
 0x7b0   :  { %4532 = vsyncpa [#allocation15], 1 }

</bundles_post_ra>
